<compile_context>
chip_gen: v6e
topology: v6e:2x2x1
jax: 0.10.0
libtpu: 0.0.40
codegen_flags: <defaults>
</compile_context>

<pallas_src>
import functools

import jax
import jax.numpy as jnp
from jax.experimental import pallas as pl
from jax.experimental.pallas import tpu as pltpu

EPS = 1e-5  # PyTorch InstanceNorm2d default


# ---------------------------------------------------------------------------
# In-kernel helpers (trace-time Python, all static shapes).
# ---------------------------------------------------------------------------
def _fill_reflect_border(p_ref, H, W):
    """Given p_ref[(H+2),(W+2),C] with its interior [1:H+1, 1:W+1, :] already
    written, fill the 1-pixel reflect border (PyTorch ReflectionPad2d(1))."""
    # Rows: padded row 0 <- original row 1 (= padded row 2); bottom likewise.
    p_ref[0:1, 1:W + 1, :] = p_ref[2:3, 1:W + 1, :]
    p_ref[H + 1:H + 2, 1:W + 1, :] = p_ref[H - 1:H, 1:W + 1, :]
    # Columns (also fills the corners from the just-written border rows).
    p_ref[:, 0:1, :] = p_ref[:, 2:3, :]
    p_ref[:, W + 1:W + 2, :] = p_ref[:, W - 1:W, :]


def _im2col(plane_ref, col_ref, H, W, C):
    """col[:, t*C:(t+1)*C] = plane[kh:kh+H, kw:kw+W, :]  (t = kh*3+kw), bf16.

    One pass over the padded plane per tap, written straight into the VMEM
    im2col scratch; the 9 taps are folded into the matmul contraction dim so the
    conv becomes a single well-shaped MXU matmul (K = 9*C)."""
    for kh in range(3):
        for kw in range(3):
            t = kh * 3 + kw
            win = plane_ref[kh:kh + H, kw:kw + W, :]
            col_ref[:, t * C:(t + 1) * C] = (
                win.reshape(H * W, C).astype(jnp.bfloat16))


def _instance_norm(y, n_pix):
    """InstanceNorm2d(affine=False, eps=1e-5) over the spatial axis of a
    (H*W, C) f32 activation, using a single pass (sum and sum-of-squares)."""
    inv_n = 1.0 / n_pix
    mean = jnp.sum(y, axis=0, keepdims=True) * inv_n
    mean_sq = jnp.sum(y * y, axis=0, keepdims=True) * inv_n
    var = jnp.maximum(mean_sq - mean * mean, 0.0)   # biased variance, as PyTorch
    return (y - mean) * jax.lax.rsqrt(var + EPS)


# ---------------------------------------------------------------------------
# Fused ResnetBlock kernel: one batch element per grid step.
# ---------------------------------------------------------------------------
def _resnet_block_kernel(x_ref, w1_ref, w2_ref, o_ref,
                         xpad_ref, hpad_ref, col_ref, *, H, W, C):
    HW = H * W

    # ---- reflect-pad the input plane into VMEM scratch.  The residual is
    #      re-read from this buffer later, so no extra residual operand. ----
    x_hw_c = x_ref[0].T                                   # (C,HW) -> (HW,C)
    xpad_ref[1:H + 1, 1:W + 1, :] = x_hw_c.reshape(H, W, C)
    _fill_reflect_border(xpad_ref, H, W)

    # ---- conv1 (3x3 valid on padded plane) as ONE im2col matmul + IN + ReLU.
    #      Conv bias omitted: exactly cancelled by affine-free InstanceNorm. ----
    _im2col(xpad_ref, col_ref, H, W, C)
    y1 = jnp.dot(col_ref[...], w1_ref[...],
                 preferred_element_type=jnp.float32)       # (HW, C) f32
    h = jnp.maximum(_instance_norm(y1, HW), 0.0)

    # ---- reflect-pad h entirely inside VMEM (h never touches HBM). ----
    hpad_ref[1:H + 1, 1:W + 1, :] = h.reshape(H, W, C)
    _fill_reflect_border(hpad_ref, H, W)

    # ---- conv2 + IN + residual add. ----
    _im2col(hpad_ref, col_ref, H, W, C)
    y2 = jnp.dot(col_ref[...], w2_ref[...],
                 preferred_element_type=jnp.float32)       # (HW, C) f32
    res = xpad_ref[1:H + 1, 1:W + 1, :].reshape(HW, C)     # the original x plane
    out = res + _instance_norm(y2, HW)

    # Lane-dense store: output block is (1, C, HW) so the minor dim is HW
    # (a multiple of 128), not C -- avoids masked partial stores when C < 128.
    o_ref[0] = out.T                                       # (HW,C) -> (C,HW)


def _weight_to_im2col(w_oihw):
    # (Cout, Cin, 3, 3) -> (9*Cin, Cout); row index = (kh*3 + kw)*Cin + cin.
    # bf16 operands for the MXU; accumulation stays f32 in the kernel.
    cout, cin = w_oihw.shape[0], w_oihw.shape[1]
    w = jnp.transpose(w_oihw, (2, 3, 1, 0)).reshape(9 * cin, cout)
    return w.astype(jnp.bfloat16)


def resnet_block_forward(x_nchw, params):
    """x + conv_block(x); input/output in PyTorch NCHW layout (single fused
    pallas_call, one batch element per grid step)."""
    N, C, H, W = x_nchw.shape
    HW = H * W
    # NCHW -> (N, C, H*W) is a free row-major reshape (no HBM transpose).
    x2 = x_nchw.astype(jnp.float32).reshape(N, C, HW)
    w1 = _weight_to_im2col(params["w1"])
    w2 = _weight_to_im2col(params["w2"])

    kernel = functools.partial(_resnet_block_kernel, H=H, W=W, C=C)
    out = pl.pallas_call(
        kernel,
        out_shape=jax.ShapeDtypeStruct((N, C, HW), jnp.float32),
        grid_spec=pltpu.PrefetchScalarGridSpec(
            num_scalar_prefetch=0,
            grid=(N,),
            in_specs=[
                pl.BlockSpec((1, C, HW), lambda n: (n, 0, 0)),      # x plane
                pl.BlockSpec((9 * C, C), lambda n: (0, 0)),         # conv1 weights
                pl.BlockSpec((9 * C, C), lambda n: (0, 0)),         # conv2 weights
            ],
            out_specs=pl.BlockSpec((1, C, HW), lambda n: (n, 0, 0)),
            scratch_shapes=[
                pltpu.VMEM((H + 2, W + 2, C), jnp.float32),   # padded input (f32: residual)
                pltpu.VMEM((H + 2, W + 2, C), jnp.float32),   # padded h
                pltpu.VMEM((HW, 9 * C), jnp.bfloat16),        # shared im2col buffer
            ],
        ),
        compiler_params=pltpu.CompilerParams(
            dimension_semantics=("parallel",),
            vmem_limit_bytes=48 * 1024 * 1024,
        ),
    )(x2, w1, w2)
    return out.reshape(N, C, H, W)


def hook_based_feature_extractor(x_nchw, params):
    """Mirror HookBasedFeatureExtractor.forward with the ResnetBlock itself as
    the hooked layer: returns ([layer inputs], [layer outputs])."""
    # TODO(synk): register_forward_hook / .data.clone() capture, size printing
    # and the optional nn.Upsample(bilinear) rescale are host-side framework
    # glue with no Pallas equivalent; only the hooked layer's forward is a kernel.
    out = resnet_block_forward(x_nchw, params)
    return [x_nchw], [out]


# ---------------------------------------------------------------------------
# Pure-JAX f32 reference (keeps the conv bias; InstanceNorm cancels it exactly,
# so the bias-free kernel must still match).
# ---------------------------------------------------------------------------
def _ref_forward(x_nchw, params):
    def conv(x, w, b):
        xp = jnp.pad(x, ((0, 0), (0, 0), (1, 1), (1, 1)), mode="reflect")
        y = jax.lax.conv_general_dilated(
            xp, w, window_strides=(1, 1), padding="VALID",
            dimension_numbers=("NCHW", "OIHW", "NCHW"))
        return y + b[None, :, None, None]

    def inorm(x):
        m = jnp.mean(x, axis=(2, 3), keepdims=True)
        v = jnp.mean(jnp.square(x - m), axis=(2, 3), keepdims=True)
        return (x - m) * jax.lax.rsqrt(v + EPS)

    h = jnp.maximum(inorm(conv(x_nchw, params["w1"], params["b1"])), 0.0)
    h = inorm(conv(h, params["w2"], params["b2"]))
    return x_nchw + h


if __name__ == "__main__":
    # Small shapes consistent with the module: dim (channels) = 32, 16x16 spatial.
    N, C, H, W = 2, 32, 16, 16

    key = jax.random.PRNGKey(0)
    kx, kw1, kb1, kw2, kb2 = jax.random.split(key, 5)

    x = jax.random.normal(kx, (N, C, H, W), dtype=jnp.float32)
    params = {
        "w1": 0.05 * jax.random.normal(kw1, (C, C, 3, 3), dtype=jnp.float32),
        "b1": 0.05 * jax.random.normal(kb1, (C,), dtype=jnp.float32),
        "w2": 0.05 * jax.random.normal(kw2, (C, C, 3, 3), dtype=jnp.float32),
        "b2": 0.05 * jax.random.normal(kb2, (C,), dtype=jnp.float32),
    }

    inputs, outputs = hook_based_feature_extractor(x, params)
    out = jax.block_until_ready(outputs[0])
    ref = jax.block_until_ready(_ref_forward(x, params))

    assert out.shape == (N, C, H, W), out.shape
    assert inputs[0].shape == (N, C, H, W)
    # bf16 MXU operands (f32 accumulation / f32 IN statistics): observed error is
    # O(1e-2) at these shapes, so the tolerance is loosened from the f32 1e-3.
    max_err = float(jnp.max(jnp.abs(out - ref)))
    assert max_err < 5e-2, f"mismatch vs reference: {max_err}"

    print("KERNEL_OK")
</pallas_src>

<mosaic_0001>
module attributes {stable_mosaic.version = 11 : i64} {
  func.func @_resnet_block_kernel(%arg0: i32, %arg1: memref<1x32x256xf32, #tpu.memory_space<vmem>>, %arg2: memref<288x32xbf16, #tpu.memory_space<vmem>>, %arg3: memref<288x32xbf16, #tpu.memory_space<vmem>>, %arg4: memref<1x32x256xf32, #tpu.memory_space<vmem>>, %arg5: memref<18x18x32xf32, #tpu.memory_space<vmem>>, %arg6: memref<18x18x32xf32, #tpu.memory_space<vmem>>, %arg7: memref<256x288xbf16, #tpu.memory_space<vmem>>) attributes {dimension_semantics = [#tpu.dimension_semantics<parallel>], iteration_bounds = array<i64: 2>, scalar_prefetch = 0 : i64, scratch_operands = 3 : i64, tpu.core_type = #tpu.core_type<tc>, window_params = [{transform_indices = @transform_0, window_bounds = array<i64: 1, 32, 256>}, {pipeline_mode = #tpu.pipeline_mode<synchronous>, transform_indices = @transform_1, window_bounds = array<i64: 288, 32>}, {pipeline_mode = #tpu.pipeline_mode<synchronous>, transform_indices = @transform_2, window_bounds = array<i64: 288, 32>}, {transform_indices = @transform_3, window_bounds = array<i64: 1, 32, 256>}]} {
    %c0 = arith.constant 0 : index
    %c0_0 = arith.constant 0 : index
    %c0_1 = arith.constant 0 : index
    %0 = vector.load %arg1[%c0, %c0_0, %c0_1] : memref<1x32x256xf32, #tpu.memory_space<vmem>>, vector<1x32x256xf32>
    %1 = vector.shape_cast %0 : vector<1x32x256xf32> to vector<32x256xf32>
    %2 = tpu.transpose %1, [1, 0] : vector<32x256xf32> -> vector<256x32xf32>
    %3 = vector.shape_cast %2 : vector<256x32xf32> to vector<16x16x32xf32>
    %c1 = arith.constant 1 : index
    %c1_2 = arith.constant 1 : index
    %c0_3 = arith.constant 0 : index
    %4 = vector.load %arg5[%c1, %c1_2, %c0_3] : memref<18x18x32xf32, #tpu.memory_space<vmem>>, vector<16x16x32xf32>
    tpu.vector_store %arg5[%c1, %c1_2, %c0_3], %3 {strides = array<i32>} : memref<18x18x32xf32, #tpu.memory_space<vmem>>, vector<16x16x32xf32>,
    %c2 = arith.constant 2 : index
    %c1_4 = arith.constant 1 : index
    %c0_5 = arith.constant 0 : index
    %5 = vector.load %arg5[%c2, %c1_4, %c0_5] : memref<18x18x32xf32, #tpu.memory_space<vmem>>, vector<1x16x32xf32>
    %c0_6 = arith.constant 0 : index
    %c1_7 = arith.constant 1 : index
    %c0_8 = arith.constant 0 : index
    %6 = vector.load %arg5[%c0_6, %c1_7, %c0_8] : memref<18x18x32xf32, #tpu.memory_space<vmem>>, vector<1x16x32xf32>
    tpu.vector_store %arg5[%c0_6, %c1_7, %c0_8], %5 {strides = array<i32>} : memref<18x18x32xf32, #tpu.memory_space<vmem>>, vector<1x16x32xf32>,
    %c15 = arith.constant 15 : index
    %c1_9 = arith.constant 1 : index
    %c0_10 = arith.constant 0 : index
    %7 = vector.load %arg5[%c15, %c1_9, %c0_10] : memref<18x18x32xf32, #tpu.memory_space<vmem>>, vector<1x16x32xf32>
    %c17 = arith.constant 17 : index
    %c1_11 = arith.constant 1 : index
    %c0_12 = arith.constant 0 : index
    %8 = vector.load %arg5[%c17, %c1_11, %c0_12] : memref<18x18x32xf32, #tpu.memory_space<vmem>>, vector<1x16x32xf32>
    tpu.vector_store %arg5[%c17, %c1_11, %c0_12], %7 {strides = array<i32>} : memref<18x18x32xf32, #tpu.memory_space<vmem>>, vector<1x16x32xf32>,
    %c0_13 = arith.constant 0 : index
    %c2_14 = arith.constant 2 : index
    %c0_15 = arith.constant 0 : index
    %9 = vector.load %arg5[%c0_13, %c2_14, %c0_15] : memref<18x18x32xf32, #tpu.memory_space<vmem>>, vector<18x1x32xf32>
    %c0_16 = arith.constant 0 : index
    %c0_17 = arith.constant 0 : index
    %c0_18 = arith.constant 0 : index
    %10 = vector.load %arg5[%c0_16, %c0_17, %c0_18] : memref<18x18x32xf32, #tpu.memory_space<vmem>>, vector<18x1x32xf32>
    tpu.vector_store %arg5[%c0_16, %c0_17, %c0_18], %9 {strides = array<i32>} : memref<18x18x32xf32, #tpu.memory_space<vmem>>, vector<18x1x32xf32>,
    %c0_19 = arith.constant 0 : index
    %c15_20 = arith.constant 15 : index
    %c0_21 = arith.constant 0 : index
    %11 = vector.load %arg5[%c0_19, %c15_20, %c0_21] : memref<18x18x32xf32, #tpu.memory_space<vmem>>, vector<18x1x32xf32>
    %c0_22 = arith.constant 0 : index
    %c17_23 = arith.constant 17 : index
    %c0_24 = arith.constant 0 : index
    %12 = vector.load %arg5[%c0_22, %c17_23, %c0_24] : memref<18x18x32xf32, #tpu.memory_space<vmem>>, vector<18x1x32xf32>
    tpu.vector_store %arg5[%c0_22, %c17_23, %c0_24], %11 {strides = array<i32>} : memref<18x18x32xf32, #tpu.memory_space<vmem>>, vector<18x1x32xf32>,
    %c0_25 = arith.constant 0 : index
    %c0_26 = arith.constant 0 : index
    %c0_27 = arith.constant 0 : index
    %13 = vector.load %arg5[%c0_25, %c0_26, %c0_27] : memref<18x18x32xf32, #tpu.memory_space<vmem>>, vector<16x16x32xf32>
    %14 = vector.shape_cast %13 : vector<16x16x32xf32> to vector<256x32xf32>
    %15 = arith.truncf %14 : vector<256x32xf32> to vector<256x32xbf16>
    %c0_28 = arith.constant 0 : index
    %c0_29 = arith.constant 0 : index
    %16 = vector.load %arg7[%c0_28, %c0_29] : memref<256x288xbf16, #tpu.memory_space<vmem>>, vector<256x32xbf16>
    tpu.vector_store %arg7[%c0_28, %c0_29], %15 {strides = array<i32>} : memref<256x288xbf16, #tpu.memory_space<vmem>>, vector<256x32xbf16>,
    %c0_30 = arith.constant 0 : index
    %c1_31 = arith.constant 1 : index
    %c0_32 = arith.constant 0 : index
    %17 = vector.load %arg5[%c0_30, %c1_31, %c0_32] : memref<18x18x32xf32, #tpu.memory_space<vmem>>, vector<16x16x32xf32>
    %18 = vector.shape_cast %17 : vector<16x16x32xf32> to vector<256x32xf32>
    %19 = arith.truncf %18 : vector<256x32xf32> to vector<256x32xbf16>
    %c0_33 = arith.constant 0 : index
    %c32 = arith.constant 32 : index
    %20 = vector.load %arg7[%c0_33, %c32] : memref<256x288xbf16, #tpu.memory_space<vmem>>, vector<256x32xbf16>
    tpu.vector_store %arg7[%c0_33, %c32], %19 {strides = array<i32>} : memref<256x288xbf16, #tpu.memory_space<vmem>>, vector<256x32xbf16>,
    %c0_34 = arith.constant 0 : index
    %c2_35 = arith.constant 2 : index
    %c0_36 = arith.constant 0 : index
    %21 = vector.load %arg5[%c0_34, %c2_35, %c0_36] : memref<18x18x32xf32, #tpu.memory_space<vmem>>, vector<16x16x32xf32>
    %22 = vector.shape_cast %21 : vector<16x16x32xf32> to vector<256x32xf32>
    %23 = arith.truncf %22 : vector<256x32xf32> to vector<256x32xbf16>
    %c0_37 = arith.constant 0 : index
    %c64 = arith.constant 64 : index
    %24 = vector.load %arg7[%c0_37, %c64] : memref<256x288xbf16, #tpu.memory_space<vmem>>, vector<256x32xbf16>
    tpu.vector_store %arg7[%c0_37, %c64], %23 {strides = array<i32>} : memref<256x288xbf16, #tpu.memory_space<vmem>>, vector<256x32xbf16>,
    %c1_38 = arith.constant 1 : index
    %c0_39 = arith.constant 0 : index
    %c0_40 = arith.constant 0 : index
    %25 = vector.load %arg5[%c1_38, %c0_39, %c0_40] : memref<18x18x32xf32, #tpu.memory_space<vmem>>, vector<16x16x32xf32>
    %26 = vector.shape_cast %25 : vector<16x16x32xf32> to vector<256x32xf32>
    %27 = arith.truncf %26 : vector<256x32xf32> to vector<256x32xbf16>
    %c0_41 = arith.constant 0 : index
    %c96 = arith.constant 96 : index
    %28 = vector.load %arg7[%c0_41, %c96] : memref<256x288xbf16, #tpu.memory_space<vmem>>, vector<256x32xbf16>
    tpu.vector_store %arg7[%c0_41, %c96], %27 {strides = array<i32>} : memref<256x288xbf16, #tpu.memory_space<vmem>>, vector<256x32xbf16>,
    %c1_42 = arith.constant 1 : index
    %c1_43 = arith.constant 1 : index
    %c0_44 = arith.constant 0 : index
    %29 = vector.load %arg5[%c1_42, %c1_43, %c0_44] : memref<18x18x32xf32, #tpu.memory_space<vmem>>, vector<16x16x32xf32>
    %30 = vector.shape_cast %29 : vector<16x16x32xf32> to vector<256x32xf32>
    %31 = arith.truncf %30 : vector<256x32xf32> to vector<256x32xbf16>
    %c0_45 = arith.constant 0 : index
    %c128 = arith.constant 128 : index
    %32 = vector.load %arg7[%c0_45, %c128] : memref<256x288xbf16, #tpu.memory_space<vmem>>, vector<256x32xbf16>
    tpu.vector_store %arg7[%c0_45, %c128], %31 {strides = array<i32>} : memref<256x288xbf16, #tpu.memory_space<vmem>>, vector<256x32xbf16>,
    %c1_46 = arith.constant 1 : index
    %c2_47 = arith.constant 2 : index
    %c0_48 = arith.constant 0 : index
    %33 = vector.load %arg5[%c1_46, %c2_47, %c0_48] : memref<18x18x32xf32, #tpu.memory_space<vmem>>, vector<16x16x32xf32>
    %34 = vector.shape_cast %33 : vector<16x16x32xf32> to vector<256x32xf32>
    %35 = arith.truncf %34 : vector<256x32xf32> to vector<256x32xbf16>
    %c0_49 = arith.constant 0 : index
    %c160 = arith.constant 160 : index
    %36 = vector.load %arg7[%c0_49, %c160] : memref<256x288xbf16, #tpu.memory_space<vmem>>, vector<256x32xbf16>
    tpu.vector_store %arg7[%c0_49, %c160], %35 {strides = array<i32>} : memref<256x288xbf16, #tpu.memory_space<vmem>>, vector<256x32xbf16>,
    %c2_50 = arith.constant 2 : index
    %c0_51 = arith.constant 0 : index
    %c0_52 = arith.constant 0 : index
    %37 = vector.load %arg5[%c2_50, %c0_51, %c0_52] : memref<18x18x32xf32, #tpu.memory_space<vmem>>, vector<16x16x32xf32>
    %38 = vector.shape_cast %37 : vector<16x16x32xf32> to vector<256x32xf32>
    %39 = arith.truncf %38 : vector<256x32xf32> to vector<256x32xbf16>
    %c0_53 = arith.constant 0 : index
    %c192 = arith.constant 192 : index
    %40 = vector.load %arg7[%c0_53, %c192] : memref<256x288xbf16, #tpu.memory_space<vmem>>, vector<256x32xbf16>
    tpu.vector_store %arg7[%c0_53, %c192], %39 {strides = array<i32>} : memref<256x288xbf16, #tpu.memory_space<vmem>>, vector<256x32xbf16>,
    %c2_54 = arith.constant 2 : index
    %c1_55 = arith.constant 1 : index
    %c0_56 = arith.constant 0 : index
    %41 = vector.load %arg5[%c2_54, %c1_55, %c0_56] : memref<18x18x32xf32, #tpu.memory_space<vmem>>, vector<16x16x32xf32>
    %42 = vector.shape_cast %41 : vector<16x16x32xf32> to vector<256x32xf32>
    %43 = arith.truncf %42 : vector<256x32xf32> to vector<256x32xbf16>
    %c0_57 = arith.constant 0 : index
    %c224 = arith.constant 224 : index
    %44 = vector.load %arg7[%c0_57, %c224] : memref<256x288xbf16, #tpu.memory_space<vmem>>, vector<256x32xbf16>
    tpu.vector_store %arg7[%c0_57, %c224], %43 {strides = array<i32>} : memref<256x288xbf16, #tpu.memory_space<vmem>>, vector<256x32xbf16>,
    %c2_58 = arith.constant 2 : index
    %c2_59 = arith.constant 2 : index
    %c0_60 = arith.constant 0 : index
    %45 = vector.load %arg5[%c2_58, %c2_59, %c0_60] : memref<18x18x32xf32, #tpu.memory_space<vmem>>, vector<16x16x32xf32>
    %46 = vector.shape_cast %45 : vector<16x16x32xf32> to vector<256x32xf32>
    %47 = arith.truncf %46 : vector<256x32xf32> to vector<256x32xbf16>
    %c0_61 = arith.constant 0 : index
    %c256 = arith.constant 256 : index
    %48 = vector.load %arg7[%c0_61, %c256] : memref<256x288xbf16, #tpu.memory_space<vmem>>, vector<256x32xbf16>
    tpu.vector_store %arg7[%c0_61, %c256], %47 {strides = array<i32>} : memref<256x288xbf16, #tpu.memory_space<vmem>>, vector<256x32xbf16>,
    %c0_62 = arith.constant 0 : index
    %c0_63 = arith.constant 0 : index
    %49 = vector.load %arg7[%c0_62, %c0_63] : memref<256x288xbf16, #tpu.memory_space<vmem>>, vector<256x288xbf16>
    %c0_64 = arith.constant 0 : index
    %c0_65 = arith.constant 0 : index
    %50 = vector.load %arg2[%c0_64, %c0_65] : memref<288x32xbf16, #tpu.memory_space<vmem>>, vector<288x32xbf16>
    %cst = arith.constant dense<0.000000e+00> : vector<256x32xf32>
    %51 = tpu.matmul %49, %50, %cst {dimension_numbers = #tpu.dot_dimension_numbers<[1], [0], [0], [1], [0, 0, 1, 1], [], []>} : vector<256x288xbf16>, vector<288x32xbf16>, vector<256x32xf32> -> vector<256x32xf32>
    %cst_66 = arith.constant dense<0.000000e+00> : vector<32xf32>
    %52 = vector.multi_reduction <add>, %51, %cst_66 [0] : vector<256x32xf32> to vector<32xf32>
    %53 = vector.shape_cast %52 : vector<32xf32> to vector<1x32xf32>
    %cst_67 = arith.constant 3.906250e-03 : f32
    %54 = vector.broadcast %cst_67 : f32 to vector<1x32xf32>
    %55 = arith.mulf %53, %54 : vector<1x32xf32>
    %56 = arith.mulf %51, %51 : vector<256x32xf32>
    %cst_68 = arith.constant dense<0.000000e+00> : vector<32xf32>
    %57 = vector.multi_reduction <add>, %56, %cst_68 [0] : vector<256x32xf32> to vector<32xf32>
    %58 = vector.shape_cast %57 : vector<32xf32> to vector<1x32xf32>
    %cst_69 = arith.constant 3.906250e-03 : f32
    %59 = vector.broadcast %cst_69 : f32 to vector<1x32xf32>
    %60 = arith.mulf %58, %59 : vector<1x32xf32>
    %61 = arith.mulf %55, %55 : vector<1x32xf32>
    %62 = arith.subf %60, %61 : vector<1x32xf32>
    %cst_70 = arith.constant 0.000000e+00 : f32
    %63 = vector.broadcast %cst_70 : f32 to vector<1x32xf32>
    %64 = arith.maximumf %62, %63 : vector<1x32xf32>
    %65 = vector.broadcast %55 : vector<1x32xf32> to vector<256x32xf32>
    %66 = arith.subf %51, %65 : vector<256x32xf32>
    %cst_71 = arith.constant 9.99999974E-6 : f32
    %67 = vector.broadcast %cst_71 : f32 to vector<1x32xf32>
    %68 = arith.addf %64, %67 : vector<1x32xf32>
    %69 = math.rsqrt %68 : vector<1x32xf32>
    %70 = vector.broadcast %69 : vector<1x32xf32> to vector<256x32xf32>
    %71 = arith.mulf %66, %70 : vector<256x32xf32>
    %cst_72 = arith.constant 0.000000e+00 : f32
    %72 = vector.broadcast %cst_72 : f32 to vector<256x32xf32>
    %73 = arith.maximumf %71, %72 : vector<256x32xf32>
    %74 = vector.shape_cast %73 : vector<256x32xf32> to vector<16x16x32xf32>
    %c1_73 = arith.constant 1 : index
    %c1_74 = arith.constant 1 : index
    %c0_75 = arith.constant 0 : index
    %75 = vector.load %arg6[%c1_73, %c1_74, %c0_75] : memref<18x18x32xf32, #tpu.memory_space<vmem>>, vector<16x16x32xf32>
    tpu.vector_store %arg6[%c1_73, %c1_74, %c0_75], %74 {strides = array<i32>} : memref<18x18x32xf32, #tpu.memory_space<vmem>>, vector<16x16x32xf32>,
    %c2_76 = arith.constant 2 : index
    %c1_77 = arith.constant 1 : index
    %c0_78 = arith.constant 0 : index
    %76 = vector.load %arg6[%c2_76, %c1_77, %c0_78] : memref<18x18x32xf32, #tpu.memory_space<vmem>>, vector<1x16x32xf32>
    %c0_79 = arith.constant 0 : index
    %c1_80 = arith.constant 1 : index
    %c0_81 = arith.constant 0 : index
    %77 = vector.load %arg6[%c0_79, %c1_80, %c0_81] : memref<18x18x32xf32, #tpu.memory_space<vmem>>, vector<1x16x32xf32>
    tpu.vector_store %arg6[%c0_79, %c1_80, %c0_81], %76 {strides = array<i32>} : memref<18x18x32xf32, #tpu.memory_space<vmem>>, vector<1x16x32xf32>,
    %c15_82 = arith.constant 15 : index
    %c1_83 = arith.constant 1 : index
    %c0_84 = arith.constant 0 : index
    %78 = vector.load %arg6[%c15_82, %c1_83, %c0_84] : memref<18x18x32xf32, #tpu.memory_space<vmem>>, vector<1x16x32xf32>
    %c17_85 = arith.constant 17 : index
    %c1_86 = arith.constant 1 : index
    %c0_87 = arith.constant 0 : index
    %79 = vector.load %arg6[%c17_85, %c1_86, %c0_87] : memref<18x18x32xf32, #tpu.memory_space<vmem>>, vector<1x16x32xf32>
    tpu.vector_store %arg6[%c17_85, %c1_86, %c0_87], %78 {strides = array<i32>} : memref<18x18x32xf32, #tpu.memory_space<vmem>>, vector<1x16x32xf32>,
    %c0_88 = arith.constant 0 : index
    %c2_89 = arith.constant 2 : index
    %c0_90 = arith.constant 0 : index
    %80 = vector.load %arg6[%c0_88, %c2_89, %c0_90] : memref<18x18x32xf32, #tpu.memory_space<vmem>>, vector<18x1x32xf32>
    %c0_91 = arith.constant 0 : index
    %c0_92 = arith.constant 0 : index
    %c0_93 = arith.constant 0 : index
    %81 = vector.load %arg6[%c0_91, %c0_92, %c0_93] : memref<18x18x32xf32, #tpu.memory_space<vmem>>, vector<18x1x32xf32>
    tpu.vector_store %arg6[%c0_91, %c0_92, %c0_93], %80 {strides = array<i32>} : memref<18x18x32xf32, #tpu.memory_space<vmem>>, vector<18x1x32xf32>,
    %c0_94 = arith.constant 0 : index
    %c15_95 = arith.constant 15 : index
    %c0_96 = arith.constant 0 : index
    %82 = vector.load %arg6[%c0_94, %c15_95, %c0_96] : memref<18x18x32xf32, #tpu.memory_space<vmem>>, vector<18x1x32xf32>
    %c0_97 = arith.constant 0 : index
    %c17_98 = arith.constant 17 : index
    %c0_99 = arith.constant 0 : index
    %83 = vector.load %arg6[%c0_97, %c17_98, %c0_99] : memref<18x18x32xf32, #tpu.memory_space<vmem>>, vector<18x1x32xf32>
    tpu.vector_store %arg6[%c0_97, %c17_98, %c0_99], %82 {strides = array<i32>} : memref<18x18x32xf32, #tpu.memory_space<vmem>>, vector<18x1x32xf32>,
    %c0_100 = arith.constant 0 : index
    %c0_101 = arith.constant 0 : index
    %c0_102 = arith.constant 0 : index
    %84 = vector.load %arg6[%c0_100, %c0_101, %c0_102] : memref<18x18x32xf32, #tpu.memory_space<vmem>>, vector<16x16x32xf32>
    %85 = vector.shape_cast %84 : vector<16x16x32xf32> to vector<256x32xf32>
    %86 = arith.truncf %85 : vector<256x32xf32> to vector<256x32xbf16>
    %c0_103 = arith.constant 0 : index
    %c0_104 = arith.constant 0 : index
    %87 = vector.load %arg7[%c0_103, %c0_104] : memref<256x288xbf16, #tpu.memory_space<vmem>>, vector<256x32xbf16>
    tpu.vector_store %arg7[%c0_103, %c0_104], %86 {strides = array<i32>} : memref<256x288xbf16, #tpu.memory_space<vmem>>, vector<256x32xbf16>,
    %c0_105 = arith.constant 0 : index
    %c1_106 = arith.constant 1 : index
    %c0_107 = arith.constant 0 : index
    %88 = vector.load %arg6[%c0_105, %c1_106, %c0_107] : memref<18x18x32xf32, #tpu.memory_space<vmem>>, vector<16x16x32xf32>
    %89 = vector.shape_cast %88 : vector<16x16x32xf32> to vector<256x32xf32>
    %90 = arith.truncf %89 : vector<256x32xf32> to vector<256x32xbf16>
    %c0_108 = arith.constant 0 : index
    %c32_109 = arith.constant 32 : index
    %91 = vector.load %arg7[%c0_108, %c32_109] : memref<256x288xbf16, #tpu.memory_space<vmem>>, vector<256x32xbf16>
    tpu.vector_store %arg7[%c0_108, %c32_109], %90 {strides = array<i32>} : memref<256x288xbf16, #tpu.memory_space<vmem>>, vector<256x32xbf16>,
    %c0_110 = arith.constant 0 : index
    %c2_111 = arith.constant 2 : index
    %c0_112 = arith.constant 0 : index
    %92 = vector.load %arg6[%c0_110, %c2_111, %c0_112] : memref<18x18x32xf32, #tpu.memory_space<vmem>>, vector<16x16x32xf32>
    %93 = vector.shape_cast %92 : vector<16x16x32xf32> to vector<256x32xf32>
    %94 = arith.truncf %93 : vector<256x32xf32> to vector<256x32xbf16>
    %c0_113 = arith.constant 0 : index
    %c64_114 = arith.constant 64 : index
    %95 = vector.load %arg7[%c0_113, %c64_114] : memref<256x288xbf16, #tpu.memory_space<vmem>>, vector<256x32xbf16>
    tpu.vector_store %arg7[%c0_113, %c64_114], %94 {strides = array<i32>} : memref<256x288xbf16, #tpu.memory_space<vmem>>, vector<256x32xbf16>,
    %c1_115 = arith.constant 1 : index
    %c0_116 = arith.constant 0 : index
    %c0_117 = arith.constant 0 : index
    %96 = vector.load %arg6[%c1_115, %c0_116, %c0_117] : memref<18x18x32xf32, #tpu.memory_space<vmem>>, vector<16x16x32xf32>
    %97 = vector.shape_cast %96 : vector<16x16x32xf32> to vector<256x32xf32>
    %98 = arith.truncf %97 : vector<256x32xf32> to vector<256x32xbf16>
    %c0_118 = arith.constant 0 : index
    %c96_119 = arith.constant 96 : index
    %99 = vector.load %arg7[%c0_118, %c96_119] : memref<256x288xbf16, #tpu.memory_space<vmem>>, vector<256x32xbf16>
    tpu.vector_store %arg7[%c0_118, %c96_119], %98 {strides = array<i32>} : memref<256x288xbf16, #tpu.memory_space<vmem>>, vector<256x32xbf16>,
    %c1_120 = arith.constant 1 : index
    %c1_121 = arith.constant 1 : index
    %c0_122 = arith.constant 0 : index
    %100 = vector.load %arg6[%c1_120, %c1_121, %c0_122] : memref<18x18x32xf32, #tpu.memory_space<vmem>>, vector<16x16x32xf32>
    %101 = vector.shape_cast %100 : vector<16x16x32xf32> to vector<256x32xf32>
    %102 = arith.truncf %101 : vector<256x32xf32> to vector<256x32xbf16>
    %c0_123 = arith.constant 0 : index
    %c128_124 = arith.constant 128 : index
    %103 = vector.load %arg7[%c0_123, %c128_124] : memref<256x288xbf16, #tpu.memory_space<vmem>>, vector<256x32xbf16>
    tpu.vector_store %arg7[%c0_123, %c128_124], %102 {strides = array<i32>} : memref<256x288xbf16, #tpu.memory_space<vmem>>, vector<256x32xbf16>,
    %c1_125 = arith.constant 1 : index
    %c2_126 = arith.constant 2 : index
    %c0_127 = arith.constant 0 : index
    %104 = vector.load %arg6[%c1_125, %c2_126, %c0_127] : memref<18x18x32xf32, #tpu.memory_space<vmem>>, vector<16x16x32xf32>
    %105 = vector.shape_cast %104 : vector<16x16x32xf32> to vector<256x32xf32>
    %106 = arith.truncf %105 : vector<256x32xf32> to vector<256x32xbf16>
    %c0_128 = arith.constant 0 : index
    %c160_129 = arith.constant 160 : index
    %107 = vector.load %arg7[%c0_128, %c160_129] : memref<256x288xbf16, #tpu.memory_space<vmem>>, vector<256x32xbf16>
    tpu.vector_store %arg7[%c0_128, %c160_129], %106 {strides = array<i32>} : memref<256x288xbf16, #tpu.memory_space<vmem>>, vector<256x32xbf16>,
    %c2_130 = arith.constant 2 : index
    %c0_131 = arith.constant 0 : index
    %c0_132 = arith.constant 0 : index
    %108 = vector.load %arg6[%c2_130, %c0_131, %c0_132] : memref<18x18x32xf32, #tpu.memory_space<vmem>>, vector<16x16x32xf32>
    %109 = vector.shape_cast %108 : vector<16x16x32xf32> to vector<256x32xf32>
    %110 = arith.truncf %109 : vector<256x32xf32> to vector<256x32xbf16>
    %c0_133 = arith.constant 0 : index
    %c192_134 = arith.constant 192 : index
    %111 = vector.load %arg7[%c0_133, %c192_134] : memref<256x288xbf16, #tpu.memory_space<vmem>>, vector<256x32xbf16>
    tpu.vector_store %arg7[%c0_133, %c192_134], %110 {strides = array<i32>} : memref<256x288xbf16, #tpu.memory_space<vmem>>, vector<256x32xbf16>,
    %c2_135 = arith.constant 2 : index
    %c1_136 = arith.constant 1 : index
    %c0_137 = arith.constant 0 : index
    %112 = vector.load %arg6[%c2_135, %c1_136, %c0_137] : memref<18x18x32xf32, #tpu.memory_space<vmem>>, vector<16x16x32xf32>
    %113 = vector.shape_cast %112 : vector<16x16x32xf32> to vector<256x32xf32>
    %114 = arith.truncf %113 : vector<256x32xf32> to vector<256x32xbf16>
    %c0_138 = arith.constant 0 : index
    %c224_139 = arith.constant 224 : index
    %115 = vector.load %arg7[%c0_138, %c224_139] : memref<256x288xbf16, #tpu.memory_space<vmem>>, vector<256x32xbf16>
    tpu.vector_store %arg7[%c0_138, %c224_139], %114 {strides = array<i32>} : memref<256x288xbf16, #tpu.memory_space<vmem>>, vector<256x32xbf16>,
    %c2_140 = arith.constant 2 : index
    %c2_141 = arith.constant 2 : index
    %c0_142 = arith.constant 0 : index
    %116 = vector.load %arg6[%c2_140, %c2_141, %c0_142] : memref<18x18x32xf32, #tpu.memory_space<vmem>>, vector<16x16x32xf32>
    %117 = vector.shape_cast %116 : vector<16x16x32xf32> to vector<256x32xf32>
    %118 = arith.truncf %117 : vector<256x32xf32> to vector<256x32xbf16>
    %c0_143 = arith.constant 0 : index
    %c256_144 = arith.constant 256 : index
    %119 = vector.load %arg7[%c0_143, %c256_144] : memref<256x288xbf16, #tpu.memory_space<vmem>>, vector<256x32xbf16>
    tpu.vector_store %arg7[%c0_143, %c256_144], %118 {strides = array<i32>} : memref<256x288xbf16, #tpu.memory_space<vmem>>, vector<256x32xbf16>,
    %c0_145 = arith.constant 0 : index
    %c0_146 = arith.constant 0 : index
    %120 = vector.load %arg7[%c0_145, %c0_146] : memref<256x288xbf16, #tpu.memory_space<vmem>>, vector<256x288xbf16>
    %c0_147 = arith.constant 0 : index
    %c0_148 = arith.constant 0 : index
    %121 = vector.load %arg3[%c0_147, %c0_148] : memref<288x32xbf16, #tpu.memory_space<vmem>>, vector<288x32xbf16>
    %cst_149 = arith.constant dense<0.000000e+00> : vector<256x32xf32>
    %122 = tpu.matmul %120, %121, %cst_149 {dimension_numbers = #tpu.dot_dimension_numbers<[1], [0], [0], [1], [0, 0, 1, 1], [], []>} : vector<256x288xbf16>, vector<288x32xbf16>, vector<256x32xf32> -> vector<256x32xf32>
    %c1_150 = arith.constant 1 : index
    %c1_151 = arith.constant 1 : index
    %c0_152 = arith.constant 0 : index
    %123 = vector.load %arg5[%c1_150, %c1_151, %c0_152] : memref<18x18x32xf32, #tpu.memory_space<vmem>>, vector<16x16x32xf32>
    %124 = vector.shape_cast %123 : vector<16x16x32xf32> to vector<256x32xf32>
    %cst_153 = arith.constant dense<0.000000e+00> : vector<32xf32>
    %125 = vector.multi_reduction <add>, %122, %cst_153 [0] : vector<256x32xf32> to vector<32xf32>
    %126 = vector.shape_cast %125 : vector<32xf32> to vector<1x32xf32>
    %cst_154 = arith.constant 3.906250e-03 : f32
    %127 = vector.broadcast %cst_154 : f32 to vector<1x32xf32>
    %128 = arith.mulf %126, %127 : vector<1x32xf32>
    %129 = arith.mulf %122, %122 : vector<256x32xf32>
    %cst_155 = arith.constant dense<0.000000e+00> : vector<32xf32>
    %130 = vector.multi_reduction <add>, %129, %cst_155 [0] : vector<256x32xf32> to vector<32xf32>
    %131 = vector.shape_cast %130 : vector<32xf32> to vector<1x32xf32>
    %cst_156 = arith.constant 3.906250e-03 : f32
    %132 = vector.broadcast %cst_156 : f32 to vector<1x32xf32>
    %133 = arith.mulf %131, %132 : vector<1x32xf32>
    %134 = arith.mulf %128, %128 : vector<1x32xf32>
    %135 = arith.subf %133, %134 : vector<1x32xf32>
    %cst_157 = arith.constant 0.000000e+00 : f32
    %136 = vector.broadcast %cst_157 : f32 to vector<1x32xf32>
    %137 = arith.maximumf %135, %136 : vector<1x32xf32>
    %138 = vector.broadcast %128 : vector<1x32xf32> to vector<256x32xf32>
    %139 = arith.subf %122, %138 : vector<256x32xf32>
    %cst_158 = arith.constant 9.99999974E-6 : f32
    %140 = vector.broadcast %cst_158 : f32 to vector<1x32xf32>
    %141 = arith.addf %137, %140 : vector<1x32xf32>
    %142 = math.rsqrt %141 : vector<1x32xf32>
    %143 = vector.broadcast %142 : vector<1x32xf32> to vector<256x32xf32>
    %144 = arith.mulf %139, %143 : vector<256x32xf32>
    %145 = arith.addf %124, %144 : vector<256x32xf32>
    %146 = tpu.transpose %145, [1, 0] : vector<256x32xf32> -> vector<32x256xf32>
    %c0_159 = arith.constant 0 : index
    %c0_160 = arith.constant 0 : index
    %c0_161 = arith.constant 0 : index
    %147 = vector.load %arg4[%c0_159, %c0_160, %c0_161] : memref<1x32x256xf32, #tpu.memory_space<vmem>>, vector<1x32x256xf32>
    %148 = vector.shape_cast %147 : vector<1x32x256xf32> to vector<32x256xf32>
    %149 = vector.shape_cast %146 : vector<32x256xf32> to vector<1x32x256xf32>
    tpu.vector_store %arg4[%c0_159, %c0_160, %c0_161], %149 {strides = array<i32>} : memref<1x32x256xf32, #tpu.memory_space<vmem>>, vector<1x32x256xf32>,
    return
  }
  func.func @transform_0(%arg0: i32) -> (i32, i32, i32) {
    %c0_i32 = arith.constant 0 : i32
    %c0_i32_0 = arith.constant 0 : i32
    %c0_i32_1 = arith.constant 0 : i32
    return %arg0, %c0_i32, %c0_i32_0 : i32, i32, i32
  }
  func.func @transform_1(%arg0: i32) -> (i32, i32) {
    %c0_i32 = arith.constant 0 : i32
    %c0_i32_0 = arith.constant 0 : i32
    %c0_i32_1 = arith.constant 0 : i32
    return %c0_i32, %c0_i32_0 : i32, i32
  }
  func.func @transform_2(%arg0: i32) -> (i32, i32) {
    %c0_i32 = arith.constant 0 : i32
    %c0_i32_0 = arith.constant 0 : i32
    %c0_i32_1 = arith.constant 0 : i32
    return %c0_i32, %c0_i32_0 : i32, i32
  }
  func.func @transform_3(%arg0: i32) -> (i32, i32, i32) {
    %c0_i32 = arith.constant 0 : i32
    %c0_i32_0 = arith.constant 0 : i32
    %c0_i32_1 = arith.constant 0 : i32
    return %arg0, %c0_i32, %c0_i32_0 : i32, i32, i32
  }
}

</mosaic_0001>

<bundles_post_ra>
// kernel: tpu_custom_call.1
= control target key start
LH: loop header
LB: loop body
LE: loop exit
PB: predicated region body
PF: predicated region fallthrough
CT: control target
= control target key end

     0   :  { %8 = vsyncpa [#allocation6], 0  ;;  %s12193_s0 = inlined_call_operand.vmem [shape: f32[2,32,256], index: 0, kind: input, shape index: {}]   ;;  %s12194_s1 = inlined_call_operand.vmem [shape: bf16[288,32], index: 1, kind: input, shape index: {}]   ;;  %s12195_s2 = inlined_call_operand.vmem [shape: bf16[288,32], index: 2, kind: input, shape index: {}]   ;;  %s12196_s3 = inlined_call_operand.hbm [shape: f32[2,32,256], index: 3, kind: output, shape index: {}]  }
   0x1   :  { %10 = vsyncpa [#allocation6 + $0x1], 0  ;;  %s9008_s12 = smov 0   ;;  %s9010_s13 = smov 0  }
   0x2   :  { %s9012_s14 = smov 0   ;;  %s9014_s15 = smov 0  }
   0x3 LB: > { %s9029_s16 = sadd.s32 4294967295, %s8980_s15   ;;  %s7066_s17 = sadd.s32 4294967294, %s8980_s15   ;;  %s8980_s15 = sphi %s9014_s15, %s12233_s15   ;;  %s8976_s14 = sphi %s9012_s14, %s12232_s14   ;;  %s8972_s13 = sphi %s9010_s13, %s12231_s13   ;;  %s8968_s12 = sphi %s9008_s12, %s12230_s12  }
   0x4   : > { %s9033_s18 = sadd.s32 1, %s8980_s15   ;;  %s91_s19 = sadd.s32 1, %s8976_s14 }
   0x5   : > { %s88_s20 = ssub.s32 %s8980_s15, %s9033_s18  ;;  %p101_p0 = scmp.ne.s32.totalorder %s8976_s14, %s8972_s13 }
   0x6   : > { %p89_p1 = scmp.eq.s32.totalorder %s88_s20, 0  ;;  %p102_p2 = scmp.eq.s32.totalorder %s9029_s16, 1 }
   0x7   : > { %p107_p3 = scmp.ne.s32.totalorder %s8972_s13, %s8968_s12  ;;  %p108_p4 = scmp.eq.s32.totalorder %s7066_s17, 1 }
   0x8   : > { %s9044_s21 = scalar_select %p89_p1, %s8976_s14, %s91_s19  }
   0x9   : > { %p9046_p5 = por %p102_p2, %p101_p0  ;;  %p9050_p6 = por %p108_p4, %p107_p3 }
   0xa   : > { %p7069_p7 = scmp.ge.s32.totalorder %s8980_s15, 1  ;;  %p140_p8 = scmp.lt.s32.totalorder %s8980_s15, 3 }
   0xc   : > { %p141_p9 = pnand %p7069_p7, %p140_p8 }
   0xe   : > { %144 = sbr.rel (%p141_p9) target bundleno = 1888 (0x760), region = 32 }
  0x13   : > { %p164_p10 = scmp.lt.s32.totalorder %s9029_s16, 1  ;;  %v8778_v8 = vld [vmem:[%s12194_s1 + $0x88] sm:$0xff]   ;;  %v8779_v9 = vld [vmem:[%s12194_s1 + $0x80] sm:$0xff]   ;;  %vm243_vm0 = vcmask 261120   ;;  %vm305_vm1 = vcmask 253952   ;;  %vm520_vm2 = vcmask 257024  }
  0x14   : > { %8656 = vmatprep.subr.bf16.mxu1 %v8778_v8  ;;  %s8982_s6 = smov 32   ;;  %s8983_s7 = smov 96   ;;  %v8789_v63 = vld [vmem:[%s12194_s1 + $0x78] sm:$0xff]   ;;  %vm777_vm3 = vcmask 519424   ;;  %vm1034_vm4 = vcmask 781824   ;;  %vm1291_vm5 = vcmask 1044224  }
  0x15   : > { %s165_s24 = scalar_select %p164_p10, %s9029_s16, 1  ;;  %8657 = vmatpush3.bf16.msra.mxu1 %v8778_v8  ;;  %8396 = vmatprep.subr.bf16.mxu0 %v8789_v63 }
  0x16   : > { %8658 = vmatprep.subr.bf16.mxu1 %v8779_v9  ;;  %s8395_s4 = sshll.u32 %s9029_s16, 10  ;;  %s8985_s16 = smov [#allocation5]  }
  0x17   : > { %s7818_s25 = sshll.u32 %s165_s24, 6  ;;  %s12151_s9 = scalar_lea.hbm %s12196_s3, %s8395_s4 }
  0x18   : > { %s168_s28 = scalar_lea.vmem %s12193_s0, %s7818_s25  ;;  %s8984_s25 = smov 64  }
  0x19   : > { %v170_v0 = vld [vmem:[%s168_s28] sm:$0xff]  ;;  %v171_v1 = vld [vmem:[%s168_s28 + $0x8] sm:$0xff]  ;;  %v172_v2 = vld [vmem:[%s168_s28 + $0x10] sm:$0xff]  ;;  %8659 = vmatpush3.bf16.msra.mxu1 %v8779_v9  ;;  %s8924_s17 = sshll.u32 %s8985_s16, 4  ;;  %s8925_s17 = int_to_ptr.vmem [resolvable:$false] %s8924_s17 }
  0x1a   : > { %178 = vxpose.xlu0.b32.start [1/4] (short) %v170_v0, 128  ;;  %210 = vxpose.xlu1.b32.start [1/4] (short) %v171_v1, 128  ;;  %v173_v3 = vld [vmem:[%s168_s28 + $0x18] sm:$0xff]  ;;  %v174_v4 = vld [vmem:[%s168_s28 + $0x20] sm:$0xff]  ;;  %v175_v5 = vld [vmem:[%s168_s28 + $0x28] sm:$0xff]  ;;  %s8926_s19 = scalar_lea.vmem %s8925_s17, 2048 }
  0x1b   : > { %v176_v6 = vld [vmem:[%s168_s28 + $0x30] sm:$0xff]  ;;  %v177_v7 = vld [vmem:[%s168_s28 + $0x38] sm:$0xff] }
  0x1c   : > { %v8791_v1 = vld [vmem:[%s12194_s1 + $0x38] sm:$0xff]  }
  0x1d   : > { %8397 = vmatpush3.bf16.msra.mxu0 %v8791_v1 }
  0x1e   : > { %179 = vxpose.xlu0.b32.cont [2/4] (short) %v172_v2, 128  ;;  %211 = vxpose.xlu1.b32.cont [2/4] (short) %v173_v3, 128 }
  0x22   : > { %180 = vxpose.xlu0.b32.cont [3/4] (short) %v174_v4, 128  ;;  %212 = vxpose.xlu1.b32.cont [3/4] (short) %v175_v5, 128 }
  0x26   : > { %181 = vxpose.xlu0.b32.end [4/4] (short) %v176_v6, 128  ;;  %213 = vxpose.xlu1.b32.end [4/4] (short) %v177_v7, 128 }
  0x96   : > { %v194_v10 = vpop.trf.xlu0  ;;  %v226_v11 = vpop.trf.xlu1 }
  0x97   : > { %244 = vst.msk [vmem:[#allocation2 + $0x19] sm:$0xff] %vm243_vm0, %v194_v10  ;;  %260 = vst.msk [vmem:[#allocation2 + $0xd9] sm:$0xff] %vm243_vm0, %v226_v11  ;;  %v8793_v10 = vld [vmem:[%s12194_s1 + $0x70] sm:$0xff]  }
  0x98   : > { %v8794_v11 = vld [vmem:[%s12194_s1 + $0x30] sm:$0xff]   ;;  %8398 = vmatprep.subr.bf16.mxu0 %v8793_v10 }
  0x99   : > { %8399 = vmatpush3.bf16.msra.mxu0 %v8794_v11 }
  0x9a   : > { %v195_v12 = vpop.trf.xlu0  ;;  %v227_v13 = vpop.trf.xlu1 }
  0x9b   : > { %245 = vst.msk [vmem:[#allocation2 + $0x21] sm:$0xff] %vm243_vm0, %v195_v12  ;;  %261 = vst.msk [vmem:[#allocation2 + $0xe1] sm:$0xff] %vm243_vm0, %v227_v13 }
  0x9e   : > { %v288_v14 = vld [vmem:[#allocation2 + $0x1a] sm:$0x1]  ;;  %v196_v15 = vpop.trf.xlu0  ;;  %v228_v19 = vpop.trf.xlu1 }
  0x9f   : > { %v555_v16 = vld [vmem:[#allocation2 + $0x19] sm:$0xff]  ;;  %307 = vst.msk [vmem:[#allocation2 + $0x18] sm:$0x1] %vm305_vm1, %v288_v14 }
  0xa0   : > { %246 = vst.msk [vmem:[#allocation2 + $0x31] sm:$0xff] %vm243_vm0, %v196_v15  ;;  %v9073_v17 = vpack.c.bf16 %v555_v16, %v555_v16  ;;  %v296_v18 = vld [vmem:[#allocation2 + $0xda] sm:$0x1]  ;;  %262 = vst.msk [vmem:[#allocation2 + $0xf1] sm:$0xff] %vm243_vm0, %v228_v19 }
  0xa1   : > { %v2042_v20 = vld [vmem:[#allocation2 + $0xd9] sm:$0xff]  ;;  %315 = vst.msk [vmem:[#allocation2 + $0xd8] sm:$0x1] %vm305_vm1, %v296_v18 }
  0xa2   : > { %v9077_v21 = vpack.c.bf16 %v2042_v20, %v2042_v20  ;;  %1484 = vst.msk [vmem:[#allocation4 + $0x4] sm:$0xf] %vm520_vm2, %v9073_v17  ;;  %v325_v22 = vld [vmem:[#allocation2 + $0x27] sm:$0x1]  ;;  %v197_v23 = vpop.trf.xlu0  ;;  %v1516_v24 = vld [vmem:[#allocation2 + $0x1a] sm:$0xff]  ;;  %v229_v31 = vpop.trf.xlu1 }
  0xa3   : > { %v1068_v25 = vld [vmem:[#allocation2 + $0x20] sm:$0xff]  ;;  %343 = vst.msk [vmem:[#allocation2 + $0x29] sm:$0x1] %vm305_vm1, %v325_v22  ;;  %v9085_v26 = vpack.c.bf16 %v1516_v24, %v1516_v24 }
  0xa4   : > { %1500 = vst.msk [vmem:[#allocation4 + $0xc4] sm:$0xf] %vm520_vm2, %v9077_v21  ;;  %v7916_v27 = vpack.c.bf16 %v1068_v25, %v1068_v25  ;;  %v556_v28 = vld [vmem:[#allocation2 + $0x21] sm:$0xff] }
  0xa5   : > { %247 = vst.msk [vmem:[#allocation2 + $0x39] sm:$0xff] %vm243_vm0, %v197_v23  ;;  %v333_v29 = vld [vmem:[#allocation2 + $0xe7] sm:$0x1]  ;;  %v2298_v30 = vld [vmem:[#allocation2 + $0xda] sm:$0xff]  ;;  %v9087_v32 = vpack.c.bf16 %v556_v28, %v556_v28  ;;  %263 = vst.msk [vmem:[#allocation2 + $0xf9] sm:$0xff] %vm243_vm0, %v229_v31  ;;  %1644 = vrot.lane.b32.xlu1 %v9085_v26, %s8982_s6 }
  0xa6   : > { %351 = vst.msk [vmem:[#allocation2 + $0xe9] sm:$0x1] %vm305_vm1, %v333_v29  ;;  %v8089_v33 = vpack.c.bf16 %v2298_v30, %v2298_v30  ;;  %v1787_v34 = vld [vmem:[#allocation2 + $0xe0] sm:$0xff]  ;;  %v198_v40 = vpop.trf.xlu0  ;;  %v230_v42 = vpop.trf.xlu1  ;;  %v362_v44 = vld [vmem:[#allocation2 + $0x18] sm:$0xff] }
  0xa7   : > { %v2043_v35 = vld [vmem:[#allocation2 + $0xe1] sm:$0xff]  ;;  %524 = vst.msk [vmem:[#allocation4 + $0x24] sm:$0xf] %vm520_vm2, %v7916_v27  ;;  %v9094_v36 = vpack.c.bf16 %v1787_v34, %v1787_v34  ;;  %v277_v38 = vld [vmem:[#allocation2 + $0x31] sm:$0xff]  ;;  %1485 = vst.msk [vmem:[#allocation4 + $0x10] sm:$0xf] %vm520_vm2, %v9087_v32  ;;  %v7821_v47 = vpack.c.bf16 %v362_v44, %v362_v44 }
  0xa8   : > { %v9096_v37 = vpack.c.bf16 %v2043_v35, %v2043_v35  ;;  %v289_v39 = vld [vmem:[#allocation2 + $0x32] sm:$0x1]  ;;  %2458 = vst.msk [vmem:[#allocation4 + $0xb0] sm:$0xf] %vm520_vm2, %v8089_v33  ;;  %v1067_v45 = vld [vmem:[#allocation2 + $0x18] sm:$0xff]  ;;  %v9139_v6 = vpack.c.bf16 %v277_v38, %v277_v38 }
  0xa9   : > { %279 = vst.msk [vmem:[#allocation2 + $0x1] sm:$0xff] %vm243_vm0, %v277_v38  ;;  %248 = vst.msk [vmem:[#allocation2 + $0x49] sm:$0xff] %vm243_vm0, %v198_v40  ;;  %v297_v41 = vld [vmem:[#allocation2 + $0xf2] sm:$0x1]  ;;  %v378_v49 = vld [vmem:[#allocation2 + $0xd8] sm:$0xff]  ;;  %1197 = vrot.lane.b32.xlu1 %v7916_v27, %s8983_s7  ;;  %v7915_v57 = vpack.c.bf16 %v1067_v45, %v1067_v45 }
  0xaa   : > { %308 = vst.msk [vmem:[#allocation2 + $0x30] sm:$0x1] %vm305_vm1, %v289_v39  ;;  %v1326_v43 = vld [vmem:[#allocation2 + $0x31] sm:$0xff]  ;;  %316 = vst.msk [vmem:[#allocation2 + $0xf0] sm:$0x1] %vm305_vm1, %v297_v41  ;;  %v7837_v51 = vpack.c.bf16 %v378_v49, %v378_v49  ;;  %v199_v55 = vpop.trf.xlu0  ;;  %v231_v59 = vpop.trf.xlu1  ;;  %v1517_v7 = vld [vmem:[#allocation2 + $0x22] sm:$0xff] }
  0xab   : > { %1501 = vst.msk [vmem:[#allocation4 + $0xd0] sm:$0xf] %vm520_vm2, %v9096_v37  ;;  %540 = vst.msk [vmem:[#allocation4 + $0xe4] sm:$0xf] %vm520_vm2, %v9094_v36  ;;  %v7949_v46 = vpack.c.bf16 %v1326_v43, %v1326_v43  ;;  %v2044_v48 = vld [vmem:[#allocation2 + $0xf1] sm:$0xff]  ;;  %v9160_v28 = vpack.c.bf16 %v1517_v7, %v1517_v7 }
  0xac   : > { %264 = vst.msk [vmem:[#allocation2 + $0x109] sm:$0xff] %vm243_vm0, %v230_v42  ;;  %v9111_v50 = vpack.c.bf16 %v2044_v48, %v2044_v48  ;;  %v9113_v52 = vld [vmem:[#allocation2 + $0x39] sm:$0xff]  ;;  %249 = vst.msk [vmem:[#allocation2 + $0x51] sm:$0xff] %vm243_vm0, %v199_v55 }
  0xad   : > { %v326_v53 = vld [vmem:[#allocation2 + $0x3f] sm:$0x1]  ;;  %v2284_v54 = vld [vmem:[#allocation2 + $0x32] sm:$0xff]  ;;  %1486 = vst.msk [vmem:[#allocation4 + $0x1c] sm:$0xf] %vm520_vm2, %v7949_v46  ;;  %v2299_v58 = vld [vmem:[#allocation2 + $0xe2] sm:$0xff]  ;;  %1195 = vrot.lane.b32.xlu1 %v7915_v57, %s8983_s7 }
  0xae   : > { %523 = vst.msk [vmem:[#allocation4 + $0x18] sm:$0xf] %vm520_vm2, %v7821_v47  ;;  %v9120_v56 = vpack.c.bf16 %v2284_v54, %v2284_v54  ;;  %539 = vst.msk [vmem:[#allocation4 + $0xd8] sm:$0xf] %vm520_vm2, %v7837_v51  ;;  %v8090_v60 = vpack.c.bf16 %v2299_v58, %v2299_v58  ;;  %v334_v61 = vld [vmem:[#allocation2 + $0xff] sm:$0x1]  ;;  %v200_v4 = vpop.trf.xlu0  ;;  %v232_v9 = vpop.trf.xlu1 }
  0xaf   : > { %280 = vst.msk [vmem:[#allocation2 + $0x9] sm:$0xff] %vm243_vm0, %v9113_v52  ;;  %v2300_v62 = vld [vmem:[#allocation2 + $0xf2] sm:$0xff]  ;;  %265 = vst.msk [vmem:[#allocation2 + $0x111] sm:$0xff] %vm243_vm0, %v231_v59  ;;  %v8795_v51 = vld [vmem:[%s12194_s1 + $0x68] sm:$0xff]  }
  0xb0   : > { %344 = vst.msk [vmem:[#allocation2 + $0x41] sm:$0x1] %vm305_vm1, %v326_v53  ;;  %352 = vst.msk [vmem:[#allocation2 + $0x101] sm:$0x1] %vm305_vm1, %v334_v61  ;;  %v8091_v0 = vpack.c.bf16 %v2300_v62, %v2300_v62  ;;  %v1327_v2 = vld [vmem:[#allocation2 + $0x39] sm:$0xff]  ;;  %v1328_v16 = vld [vmem:[#allocation2 + $0x49] sm:$0xff]  ;;  %8400 = vmatprep.subr.bf16.mxu0 %v8795_v51  ;;  %v9205_v62 = vpack.c.bf16 %v9113_v52, %v9113_v52 }
  0xb1   : > { %1502 = vst.msk [vmem:[#allocation4 + $0xdc] sm:$0xf] %vm520_vm2, %v9111_v50  ;;  %2444 = vst.msk [vmem:[#allocation4 + $0x8] sm:$0xf] %vm520_vm2, %v9120_v56  ;;  %v290_v3 = vld [vmem:[#allocation2 + $0x4a] sm:$0x1]  ;;  %v7950_v5 = vpack.c.bf16 %v1327_v2, %v1327_v2  ;;  %2156 = vrot.lane.b32.xlu1 %v9139_v6, %s8983_s7  ;;  %v7951_v24 = vpack.c.bf16 %v1328_v16, %v1328_v16 }
  0xb2   : > { %2459 = vst.msk [vmem:[#allocation4 + $0xbc] sm:$0xf] %vm520_vm2, %v8090_v60  ;;  %2460 = vst.msk [vmem:[#allocation4 + $0xc8] sm:$0xf] %vm520_vm2, %v8091_v0  ;;  %v287_v12 = vld [vmem:[#allocation2 + $0x2] sm:$0x1]  ;;  %v201_v22 = vpop.trf.xlu0  ;;  %v233_v31 = vpop.trf.xlu1 }
  0xb3   : > { %309 = vst.msk [vmem:[#allocation2 + $0x48] sm:$0x1] %vm305_vm1, %v290_v3  ;;  %v298_v8 = vld [vmem:[#allocation2 + $0x10a] sm:$0x1]  ;;  %v364_v13 = vld [vmem:[#allocation2 + $0x30] sm:$0xff]  ;;  %v365_v15 = vld [vmem:[#allocation2 + $0x38] sm:$0xff] }
  0xb4   : > { %250 = vst.msk [vmem:[#allocation2 + $0x61] sm:$0xff] %vm243_vm0, %v200_v4  ;;  %266 = vst.msk [vmem:[#allocation2 + $0x121] sm:$0xff] %vm243_vm0, %v232_v9  ;;  %v7823_v14 = vpack.c.bf16 %v364_v13, %v364_v13  ;;  %v327_v19 = vld [vmem:[#allocation2 + $0x57] sm:$0x1]  ;;  %v2286_v20 = vld [vmem:[#allocation2 + $0x4a] sm:$0xff]  ;;  %v7824_v23 = vpack.c.bf16 %v365_v15, %v365_v15 }
  0xb5   : > { %317 = vst.msk [vmem:[#allocation2 + $0x108] sm:$0x1] %vm305_vm1, %v298_v8  ;;  %306 = vst.msk [vmem:[#allocation2] sm:$0x1] %vm305_vm1, %v287_v12  ;;  %v9158_v27 = vpack.c.bf16 %v2286_v20, %v2286_v20  ;;  %v1773_v34 = vld [vmem:[#allocation2 + $0x38] sm:$0xff]  ;;  %1646 = vrot.lane.b32.xlu1 %v9160_v28, %s8982_s6  ;;  %v8796_v54 = vld [vmem:[%s12194_s1 + $0x28] sm:$0xff]  }
  0xb6   : > { %1487 = vst.msk [vmem:[#allocation4 + $0x28] sm:$0xf] %vm520_vm2, %v7950_v5  ;;  %v810_v29 = vld [vmem:[#allocation2 + $0x2] sm:$0xff]  ;;  %v324_v30 = vld [vmem:[#allocation2 + $0xf] sm:$0x1]  ;;  %v202_v41 = vpop.trf.xlu0  ;;  %v9176_v45 = vpack.c.bf16 %v1773_v34, %v1773_v34  ;;  %v234_v47 = vpop.trf.xlu1  ;;  %8401 = vmatpush3.bf16.msra.mxu0 %v8796_v54  ;;  %v1772_v12 = vld [vmem:[#allocation2 + $0x30] sm:$0xff] }
  0xb7   : > { %v2285_v18 = vld [vmem:[#allocation2 + $0x3a] sm:$0xff]  ;;  %345 = vst.msk [vmem:[#allocation2 + $0x59] sm:$0x1] %vm305_vm1, %v327_v19  ;;  %v7883_v33 = vpack.c.bf16 %v810_v29, %v810_v29  ;;  %342 = vst.msk [vmem:[#allocation2 + $0x11] sm:$0x1] %vm305_vm1, %v324_v30  ;;  %v2302_v39 = vld [vmem:[#allocation2 + $0x10a] sm:$0xff] }
  0xb8   : > { %v9155_v25 = vpack.c.bf16 %v2285_v18, %v2285_v18  ;;  %251 = vst.msk [vmem:[#allocation2 + $0x69] sm:$0xff] %vm243_vm0, %v201_v22  ;;  %267 = vst.msk [vmem:[#allocation2 + $0x129] sm:$0xff] %vm243_vm0, %v233_v31  ;;  %v2301_v35 = vld [vmem:[#allocation2 + $0xfa] sm:$0xff]  ;;  %v335_v38 = vld [vmem:[#allocation2 + $0x117] sm:$0x1]  ;;  %v8093_v43 = vpack.c.bf16 %v2302_v39, %v2302_v39  ;;  %v9248_v31 = vpack.c.bf16 %v1772_v12, %v1772_v12 }
  0xb9   : > { %525 = vst.msk [vmem:[#allocation4 + $0x30] sm:$0xf] %vm520_vm2, %v7823_v14  ;;  %526 = vst.msk [vmem:[#allocation4 + $0x3c] sm:$0xf] %vm520_vm2, %v7824_v23  ;;  %938 = vrot.lane.b32.xlu0 %v7883_v33, %s8984_s25  ;;  %v8092_v42 = vpack.c.bf16 %v2301_v35, %v2301_v35  ;;  %1902 = vrot.lane.b32.xlu1 %v9176_v45, %s8984_s25  ;;  %v8797_v55 = vld [vmem:[%s12194_s1 + $0x60] sm:$0xff]   ;;  %v361_v16 = vld [vmem:[#allocation2 + $0x8] sm:$0xff] }
  0xba   : > { %1488 = vst.msk [vmem:[#allocation4 + $0x34] sm:$0xf] %vm520_vm2, %v7951_v24  ;;  %2446 = vst.msk [vmem:[#allocation4 + $0x20] sm:$0xf] %vm520_vm2, %v9158_v27  ;;  %v203_v60 = vpop.trf.xlu0  ;;  %v553_v63 = vld [vmem:[#allocation2 + $0x1] sm:$0xff]  ;;  %v235_v1 = vpop.trf.xlu1  ;;  %8402 = vmatprep.subr.bf16.mxu0 %v8797_v55  ;;  %v8799_v18 = vld [vmem:[%s12194_s1 + $0x58] sm:$0xff]   ;;  %v7820_v19 = vpack.c.bf16 %v361_v16, %v361_v16 }
  0xbb   : > { %2445 = vst.msk [vmem:[#allocation4 + $0x14] sm:$0xf] %vm520_vm2, %v9155_v25  ;;  %v291_v40 = vld [vmem:[#allocation2 + $0x62] sm:$0x1]  ;;  %2461 = vst.msk [vmem:[#allocation4 + $0xd4] sm:$0xf] %vm520_vm2, %v8092_v42  ;;  %v7851_v11 = vpack.c.bf16 %v553_v63, %v553_v63 }
  0xbc   : > { %353 = vst.msk [vmem:[#allocation2 + $0x119] sm:$0x1] %vm305_vm1, %v335_v38  ;;  %v2032_v44 = vld [vmem:[#allocation2 + $0x61] sm:$0xff]  ;;  %310 = vst.msk [vmem:[#allocation2 + $0x60] sm:$0x1] %vm305_vm1, %v291_v40  ;;  %v8801_v20 = vld [vmem:[%s12194_s1 + $0x18] sm:$0xff]  }
  0xbd   : > { %252 = vst.msk [vmem:[#allocation2 + $0x79] sm:$0xff] %vm243_vm0, %v202_v41  ;;  %v299_v46 = vld [vmem:[#allocation2 + $0x122] sm:$0x1]  ;;  %v9180_v48 = vpack.c.bf16 %v2032_v44, %v2032_v44  ;;  %268 = vst.msk [vmem:[#allocation2 + $0x139] sm:$0xff] %vm243_vm0, %v234_v47  ;;  %687 = vrot.lane.b32.xlu0 %v9087_v32, %s8982_s6  ;;  %2158 = vrot.lane.b32.xlu1 %v9205_v62, %s8983_s7  ;;  %v8803_v22 = vld [vmem:[%s12194_s1 + $0x50] sm:$0xff]  }
  0xbe   : > { %2462 = vst.msk [vmem:[#allocation4 + $0xe0] sm:$0xf] %vm520_vm2, %v8093_v43  ;;  %v360_v49 = vld [vmem:[#allocation2] sm:$0xff]  ;;  %v2287_v57 = vld [vmem:[#allocation2 + $0x52] sm:$0xff]  ;;  %v204_v7 = vpop.trf.xlu0  ;;  %v236_v14 = vpop.trf.xlu1  ;;  %v554_v33 = vld [vmem:[#allocation2 + $0x9] sm:$0xff] }
  0xbf   : > { %318 = vst.msk [vmem:[#allocation2 + $0x120] sm:$0x1] %vm305_vm1, %v299_v46  ;;  %v7819_v53 = vpack.c.bf16 %v360_v49, %v360_v49  ;;  %v328_v58 = vld [vmem:[#allocation2 + $0x6f] sm:$0x1]  ;;  %v2288_v59 = vld [vmem:[#allocation2 + $0x62] sm:$0xff]  ;;  %v9201_v61 = vpack.c.bf16 %v2287_v57, %v2287_v57  ;;  %v8804_v40 = vld [vmem:[%s12194_s1 + $0x10] sm:$0xff]   ;;  %v7852_v54 = vpack.c.bf16 %v554_v33, %v554_v33 }
  0xc0   : > { %1490 = vst.msk [vmem:[#allocation4 + $0x4c] sm:$0xf] %vm520_vm2, %v9180_v48  ;;  %v9208_v0 = vpack.c.bf16 %v2288_v59, %v2288_v59  ;;  %v8798_v32 = vld [vmem:[%s12194_s1 + $0x20] sm:$0xff]   ;;  %v336_v3 = vld [vmem:[#allocation2 + $0x12f] sm:$0x1]  ;;  %v367_v63 = vld [vmem:[#allocation2 + $0x50] sm:$0xff] }
  0xc1   : > { %346 = vst.msk [vmem:[#allocation2 + $0x71] sm:$0x1] %vm305_vm1, %v328_v58  ;;  %v2304_v4 = vld [vmem:[#allocation2 + $0x122] sm:$0xff]  ;;  %1648 = vrot.lane.b32.xlu0 %v9120_v56, %s8982_s6  ;;  %354 = vst.msk [vmem:[#allocation2 + $0x131] sm:$0x1] %vm305_vm1, %v336_v3  ;;  %8403 = vmatpush3.bf16.msra.mxu0 %v8798_v32  ;;  %v811_v55 = vld [vmem:[#allocation2 + $0xa] sm:$0xff] }
  0xc2   : > { %253 = vst.msk [vmem:[#allocation2 + $0x81] sm:$0xff] %vm243_vm0, %v203_v60  ;;  %v8777_v2 = vld [vmem:[#allocation4 + $0x8] ss:$12 sps:$4 sm:$0xff]   ;;  %269 = vst.msk [vmem:[#allocation2 + $0x141] sm:$0xff] %vm243_vm0, %v235_v1  ;;  %v8095_v9 = vpack.c.bf16 %v2304_v4, %v2304_v4  ;;  %681 = vrot.lane.b32.xlu1 %v7851_v11, %s8982_s6  ;;  %v205_v30 = vpop.trf.xlu0  ;;  %8404 = vmatprep.subr.bf16.mxu0 %v8799_v18  ;;  %v237_v39 = vpop.trf.xlu1  ;;  %v8809_v1 = vld [vmem:[%s12194_s1 + $0x40] sm:$0xff]  }
  0xc3   : > { %521 = vst.msk [vmem:[#allocation4] sm:$0xf] %vm520_vm2, %v7819_v53  ;;  %2447 = vst.msk [vmem:[#allocation4 + $0x2c] sm:$0xf] %vm520_vm2, %v9201_v61  ;;  %v2303_v52 = vld [vmem:[#allocation2 + $0x112] sm:$0xff]  ;;  %8660 = vmatprep.mubr.msk.bf16.mxu1 %vm243_vm0, %v8777_v2  ;;  %v8805_v46 = vld [vmem:[%s12194_s1 + $0x48] sm:$0xff]   ;;  %v7826_v2 = vpack.c.bf16 %v367_v63, %v367_v63 }
  0xc4   : > { %2448 = vst.msk [vmem:[#allocation4 + $0x38] sm:$0xf] %vm520_vm2, %v9208_v0  ;;  %v292_v5 = vld [vmem:[#allocation2 + $0x7a] sm:$0x1]  ;;  %v8094_v8 = vpack.c.bf16 %v2303_v52, %v2303_v52  ;;  %2464 = vst.msk [vmem:[#allocation4 + $0xf8] sm:$0xf] %vm520_vm2, %v8095_v9  ;;  %v7884_v9 = vpack.c.bf16 %v811_v55, %v811_v55 }
  0xc5   : > { %v2034_v10 = vld [vmem:[#allocation2 + $0x79] sm:$0xff]  ;;  %311 = vst.msk [vmem:[#allocation2 + $0x78] sm:$0x1] %vm305_vm1, %v292_v5  ;;  %1650 = vrot.lane.b32.xlu0 %v9155_v25, %s8982_s6  ;;  %8405 = vmatpush3.bf16.msra.mxu0 %v8801_v20  ;;  %v1774_v57 = vld [vmem:[#allocation2 + $0x48] sm:$0xff] }
  0xc6   : > { %254 = vst.msk [vmem:[#allocation2 + $0x91] sm:$0xff] %vm243_vm0, %v204_v7  ;;  %v300_v13 = vld [vmem:[#allocation2 + $0x13a] sm:$0x1]  ;;  %v9228_v15 = vpack.c.bf16 %v2034_v10, %v2034_v10  ;;  %270 = vst.msk [vmem:[#allocation2 + $0x151] sm:$0xff] %vm243_vm0, %v236_v14  ;;  %8406 = vmatprep.subr.bf16.mxu0 %v8803_v22  ;;  %1900 = vrot.lane.b32.xlu1 %v9248_v31, %s8984_s25  ;;  %v206_v49 = vpop.trf.xlu0  ;;  %v238_v59 = vpop.trf.xlu1  ;;  %v8810_v32 = vld [vmem:[%s12194_s1] sm:$0xff]  }
  0xc7   : > { %2463 = vst.msk [vmem:[#allocation4 + $0xec] sm:$0xf] %vm520_vm2, %v8094_v8  ;;  %522 = vst.msk [vmem:[#allocation4 + $0xc] sm:$0xf] %vm520_vm2, %v7820_v19  ;;  %v1331_v52 = vld [vmem:[#allocation2 + $0x69] sm:$0xff] }
  0xc8   : > { %319 = vst.msk [vmem:[#allocation2 + $0x138] sm:$0x1] %vm305_vm1, %v300_v13  ;;  %v2289_v23 = vld [vmem:[#allocation2 + $0x6a] sm:$0xff]  ;;  %v7954_v8 = vpack.c.bf16 %v1331_v52, %v1331_v52 }
  0xc9   : > { %1492 = vst.msk [vmem:[#allocation4 + $0x64] sm:$0xf] %vm520_vm2, %v9228_v15  ;;  %v329_v24 = vld [vmem:[#allocation2 + $0x87] sm:$0x1]  ;;  %v2290_v29 = vld [vmem:[#allocation2 + $0x7a] sm:$0xff]  ;;  %v9250_v34 = vpack.c.bf16 %v2289_v23, %v2289_v23  ;;  %v2305_v43 = vld [vmem:[#allocation2 + $0x12a] sm:$0xff]  ;;  %942 = vrot.lane.b32.xlu0 %v9085_v26, %s8984_s25  ;;  %8407 = vmatpush3.bf16.msra.mxu0 %v8804_v40 }
  0xca   : > { %347 = vst.msk [vmem:[#allocation2 + $0x89] sm:$0x1] %vm305_vm1, %v329_v24  ;;  %v9253_v35 = vpack.c.bf16 %v2290_v29, %v2290_v29  ;;  %v337_v38 = vld [vmem:[#allocation2 + $0x147] sm:$0x1]  ;;  %v8780_v41 = vld [vmem:[#allocation4 + $0x20] ss:$12 sps:$4 sm:$0xff]   ;;  %v8096_v51 = vpack.c.bf16 %v2305_v43, %v2305_v43  ;;  %8408 = vmatprep.subr.bf16.mxu0 %v8805_v46  ;;  %683 = vrot.lane.b32.xlu1 %v7852_v54, %s8982_s6  ;;  %v207_v7 = vpop.trf.xlu0  ;;  %v239_v16 = vpop.trf.xlu1 }
  0xcb   : > { %255 = vst.msk [vmem:[#allocation2 + $0x99] sm:$0xff] %vm243_vm0, %v205_v30  ;;  %v2306_v42 = vld [vmem:[#allocation2 + $0x13a] sm:$0xff]  ;;  %271 = vst.msk [vmem:[#allocation2 + $0x159] sm:$0xff] %vm243_vm0, %v237_v39  ;;  %8661 = vmatmul.mubr.msk.bf16.vlgmr.msra.gmra.mxu1 %vm243_vm0, %v8780_v41  ;;  %v8806_v26 = vld [vmem:[%s12194_s1 + $0x8] sm:$0xff]  }
  0xcc   : > { %355 = vst.msk [vmem:[#allocation2 + $0x149] sm:$0x1] %vm305_vm1, %v337_v38  ;;  %v8097_v44 = vpack.c.bf16 %v2306_v42, %v2306_v42  ;;  %v1775_v22 = vld [vmem:[#allocation2 + $0x50] sm:$0xff]  ;;  %v1777_v24 = vld [vmem:[#allocation2 + $0x68] sm:$0xff] }
  0xcd   : > { %2449 = vst.msk [vmem:[#allocation4 + $0x44] sm:$0xf] %vm520_vm2, %v9250_v34  ;;  %2450 = vst.msk [vmem:[#allocation4 + $0x50] sm:$0xf] %vm520_vm2, %v9253_v35  ;;  %v293_v47 = vld [vmem:[#allocation2 + $0x92] sm:$0x1]  ;;  %944 = vrot.lane.b32.xlu0 %v9160_v28, %s8984_s25  ;;  %8409 = vmatpush3.bf16.msra.mxu0 %v8806_v26  ;;  %v9303_v28 = vpack.c.bf16 %v1774_v57, %v1774_v57  ;;  %v8014_v41 = vpack.c.bf16 %v1775_v22, %v1775_v22 }
  0xce   : > { %v2036_v53 = vld [vmem:[#allocation2 + $0x91] sm:$0xff]  ;;  %312 = vst.msk [vmem:[#allocation2 + $0x90] sm:$0x1] %vm305_vm1, %v293_v47  ;;  %8410 = vmatprep.subr.bf16.mxu0 %v8809_v1  ;;  %940 = vrot.lane.b32.xlu1 %v7884_v9, %s8984_s25  ;;  %v208_v30 = vpop.trf.xlu0  ;;  %v240_v40 = vpop.trf.xlu1  ;;  %v2033_v9 = vld [vmem:[#allocation2 + $0x69] sm:$0xff] }
  0xcf   : > { %256 = vst.msk [vmem:[#allocation2 + $0xa9] sm:$0xff] %vm243_vm0, %v206_v49  ;;  %v301_v58 = vld [vmem:[#allocation2 + $0x152] sm:$0x1]  ;;  %v9277_v60 = vpack.c.bf16 %v2036_v53, %v2036_v53  ;;  %272 = vst.msk [vmem:[#allocation2 + $0x169] sm:$0xff] %vm243_vm0, %v238_v59  ;;  %v1789_v49 = vld [vmem:[#allocation2 + $0xf8] sm:$0xff] }
  0xd0   : > { %2466 = vst.msk [vmem:[#allocation4 + $0x110] sm:$0xf] %vm520_vm2, %v8097_v44  ;;  %2465 = vst.msk [vmem:[#allocation4 + $0x104] sm:$0xf] %vm520_vm2, %v8096_v51  ;;  %v1329_v43 = vld [vmem:[#allocation2 + $0x51] sm:$0xff]  ;;  %v9329_v44 = vpack.c.bf16 %v1777_v24, %v1777_v24  ;;  %v369_v51 = vld [vmem:[#allocation2 + $0x68] sm:$0xff]  ;;  %v9334_v59 = vpack.c.bf16 %v1789_v49, %v1789_v49 }
  0xd1   : > { %320 = vst.msk [vmem:[#allocation2 + $0x150] sm:$0x1] %vm305_vm1, %v301_v58  ;;  %v2291_v3 = vld [vmem:[#allocation2 + $0x82] sm:$0xff]  ;;  %1904 = vrot.lane.b32.xlu0 %v9303_v28, %s8984_s25  ;;  %8411 = vmatpush3.bf16.msra.mxu0 %v8810_v32  ;;  %v7952_v47 = vpack.c.bf16 %v1329_v43, %v1329_v43  ;;  %v2045_v53 = vld [vmem:[#allocation2 + $0xf9] sm:$0xff]  ;;  %v7828_v26 = vpack.c.bf16 %v369_v51, %v369_v51 }
  0xd2   : > { %1494 = vst.msk [vmem:[#allocation4 + $0x7c] sm:$0xf] %vm520_vm2, %v9277_v60  ;;  %v330_v4 = vld [vmem:[#allocation2 + $0x9f] sm:$0x1]  ;;  %v2292_v5 = vld [vmem:[#allocation2 + $0x92] sm:$0xff]  ;;  %v9296_v10 = vpack.c.bf16 %v2291_v3, %v2291_v3  ;;  %685 = vrot.lane.b32.xlu1 %v9073_v17, %s8982_s6  ;;  %v209_v58 = vpop.trf.xlu0  ;;  %v9336_v63 = vpack.c.bf16 %v2045_v53, %v2045_v53  ;;  %v241_v3 = vpop.trf.xlu1  ;;  %v366_v24 = vld [vmem:[#allocation2 + $0x48] sm:$0xff] }
  0xd3   : > { %348 = vst.msk [vmem:[#allocation2 + $0xa1] sm:$0x1] %vm305_vm1, %v330_v4  ;;  %v9299_v11 = vpack.c.bf16 %v2292_v5, %v2292_v5  ;;  %v2307_v12 = vld [vmem:[#allocation2 + $0x142] sm:$0xff]  ;;  %v338_v13 = vld [vmem:[#allocation2 + $0x15f] sm:$0x1]  ;;  %v2308_v14 = vld [vmem:[#allocation2 + $0x152] sm:$0xff] }
  0xd4   : > { %257 = vst.msk [vmem:[#allocation2 + $0xb1] sm:$0xff] %vm243_vm0, %v207_v7  ;;  %v8098_v18 = vpack.c.bf16 %v2307_v12, %v2307_v12  ;;  %v8781_v19 = vld [vmem:[#allocation4 + $0x38] ss:$12 sps:$4 sm:$0xff]   ;;  %v8099_v20 = vpack.c.bf16 %v2308_v14, %v2308_v14  ;;  %273 = vst.msk [vmem:[#allocation2 + $0x171] sm:$0xff] %vm243_vm0, %v239_v16 }
  0xd5   : > { %528 = vst.msk [vmem:[#allocation4 + $0x54] sm:$0xf] %vm520_vm2, %v7826_v2  ;;  %1491 = vst.msk [vmem:[#allocation4 + $0x58] sm:$0xf] %vm520_vm2, %v7954_v8  ;;  %v2037_v23 = vld [vmem:[#allocation2 + $0x99] sm:$0xff]  ;;  %8664 = vmatprep.mubr.msk.bf16.mxu1 %vm243_vm0, %v8781_v19  ;;  %1906 = vrot.lane.b32.xlu0 %v8014_v41, %s8984_s25  ;;  %v1333_v19 = vld [vmem:[#allocation2 + $0x81] sm:$0xff] }
  0xd6   : > { %356 = vst.msk [vmem:[#allocation2 + $0x161] sm:$0x1] %vm305_vm1, %v338_v13  ;;  %v294_v29 = vld [vmem:[#allocation2 + $0xaa] sm:$0x1]  ;;  %v9318_v33 = vpack.c.bf16 %v2037_v23, %v2037_v23  ;;  %1910 = vrot.lane.b32.xlu1 %v9329_v44, %s8984_s25  ;;  %v7956_v23 = vpack.c.bf16 %v1333_v19, %v1333_v19 }
  0xd7   : > { %2451 = vst.msk [vmem:[#allocation4 + $0x5c] sm:$0xf] %vm520_vm2, %v9296_v10  ;;  %2452 = vst.msk [vmem:[#allocation4 + $0x68] sm:$0xf] %vm520_vm2, %v9299_v11  ;;  %v282_v38 = vld [vmem:[#allocation2 + $0x169] sm:$0xff] }
  0xd8   : > { %2467 = vst.msk [vmem:[#allocation4 + $0x11c] sm:$0xf] %vm520_vm2, %v8098_v18  ;;  %2468 = vst.msk [vmem:[#allocation4 + $0x128] sm:$0xf] %vm520_vm2, %v8099_v20  ;;  %v302_v39 = vld [vmem:[#allocation2 + $0x16a] sm:$0x1]  ;;  %v9373_v20 = vpack.c.bf16 %v2033_v9, %v2033_v9 }
  0xd9   : > { %313 = vst.msk [vmem:[#allocation2 + $0xa8] sm:$0x1] %vm305_vm1, %v294_v29  ;;  %321 = vst.msk [vmem:[#allocation2 + $0x168] sm:$0x1] %vm305_vm1, %v302_v39  ;;  %v2038_v42 = vld [vmem:[#allocation2 + $0xa9] sm:$0xff]  ;;  %1199 = vrot.lane.b32.xlu0 %v9248_v31, %s8983_s7  ;;  %v2031_v29 = vld [vmem:[#allocation2 + $0x51] sm:$0xff] }
  0xda   : > { %258 = vst.msk [vmem:[#allocation2 + $0xc1] sm:$0xff] %vm243_vm0, %v208_v30  ;;  %285 = vst.msk [vmem:[#allocation2 + $0x199] sm:$0xff] %vm243_vm0, %v282_v38  ;;  %v9331_v46 = vpack.c.bf16 %v2038_v42, %v2038_v42  ;;  %v2293_v54 = vld [vmem:[#allocation2 + $0x9a] sm:$0xff]  ;;  %1205 = vrot.lane.b32.xlu1 %v8014_v41, %s8983_s7  ;;  %v2030_v31 = vld [vmem:[#allocation2 + $0x49] sm:$0xff] }
  0xdb   : > { %274 = vst.msk [vmem:[#allocation2 + $0x181] sm:$0xff] %vm243_vm0, %v240_v40  ;;  %v331_v55 = vld [vmem:[#allocation2 + $0xb7] sm:$0x1]  ;;  %v2294_v57 = vld [vmem:[#allocation2 + $0xaa] sm:$0xff]  ;;  %v9338_v17 = vpack.c.bf16 %v2293_v54, %v2293_v54  ;;  %259 = vst.msk [vmem:[#allocation2 + $0xc9] sm:$0xff] %vm243_vm0, %v209_v58  ;;  %v7825_v40 = vpack.c.bf16 %v366_v24, %v366_v24  ;;  %v9385_v51 = vpack.c.bf16 %v2030_v31, %v2030_v31 }
  0xdc   : > { %1495 = vst.msk [vmem:[#allocation4 + $0x88] sm:$0xf] %vm520_vm2, %v9318_v33  ;;  %v9341_v1 = vpack.c.bf16 %v2294_v57, %v2294_v57  ;;  %v283_v2 = vld [vmem:[#allocation2 + $0x171] sm:$0xff]  ;;  %1489 = vst.msk [vmem:[#allocation4 + $0x40] sm:$0xf] %vm520_vm2, %v7952_v47  ;;  %v368_v9 = vld [vmem:[#allocation2 + $0x60] sm:$0xff] }
  0xdd   : > { %349 = vst.msk [vmem:[#allocation2 + $0xb9] sm:$0x1] %vm305_vm1, %v331_v55  ;;  %v2309_v32 = vld [vmem:[#allocation2 + $0x15a] sm:$0xff]  ;;  %v339_v52 = vld [vmem:[#allocation2 + $0x177] sm:$0x1]  ;;  %v2310_v7 = vld [vmem:[#allocation2 + $0x16a] sm:$0xff]  ;;  %1201 = vrot.lane.b32.xlu0 %v9176_v45, %s8983_s7 }
  0xde   : > { %1496 = vst.msk [vmem:[#allocation4 + $0x94] sm:$0xf] %vm520_vm2, %v9331_v46  ;;  %v8782_v4 = vld [vmem:[#allocation4 + $0x50] ss:$12 sps:$4 sm:$0xff]   ;;  %v8100_v5 = vpack.c.bf16 %v2309_v32, %v2309_v32  ;;  %530 = vst.msk [vmem:[#allocation4 + $0x6c] sm:$0xf] %vm520_vm2, %v7828_v26  ;;  %v8101_v13 = vpack.c.bf16 %v2310_v7, %v2310_v7  ;;  %2166 = vrot.lane.b32.xlu1 %v9373_v20, %s8983_s7  ;;  %v8046_v26 = vpack.c.bf16 %v2031_v29, %v2031_v29 }
  0xdf   : > { %286 = vst.msk [vmem:[#allocation2 + $0x1a1] sm:$0xff] %vm243_vm0, %v283_v2  ;;  %275 = vst.msk [vmem:[#allocation2 + $0x189] sm:$0xff] %vm243_vm0, %v241_v3  ;;  %v2039_v8 = vld [vmem:[#allocation2 + $0xb1] sm:$0xff]  ;;  %8665 = vmatmul.mubr.msk.bf16.gmra.mxu1 %vm243_vm0, %v8782_v4  ;;  %v371_v4 = vld [vmem:[#allocation2 + $0x80] sm:$0xff] }
  0xe0   : > { %357 = vst.msk [vmem:[#allocation2 + $0x179] sm:$0x1] %vm305_vm1, %v339_v52  ;;  %v9365_v14 = vpack.c.bf16 %v2039_v8, %v2039_v8  ;;  %v7830_v7 = vpack.c.bf16 %v371_v4, %v371_v4  ;;  %v2048_v4 = vld [vmem:[#allocation2 + $0x121] sm:$0xff] }
  0xe1   : > { %1503 = vst.msk [vmem:[#allocation4 + $0xe8] sm:$0xf] %vm520_vm2, %v9336_v63  ;;  %542 = vst.msk [vmem:[#allocation4 + $0xfc] sm:$0xf] %vm520_vm2, %v9334_v59  ;;  %v295_v12 = vld [vmem:[#allocation2 + $0xc2] sm:$0x1]  ;;  %2160 = vrot.lane.b32.xlu0 %v9385_v51, %s8983_s7 }
  0xe2   : > { %2453 = vst.msk [vmem:[#allocation4 + $0x74] sm:$0xf] %vm520_vm2, %v9338_v17  ;;  %2454 = vst.msk [vmem:[#allocation4 + $0x80] sm:$0xf] %vm520_vm2, %v9341_v1  ;;  %v303_v16 = vld [vmem:[#allocation2 + $0x182] sm:$0x1]  ;;  %695 = vrot.lane.b32.xlu1 %v8046_v26, %s8982_s6 }
  0xe3   : > { %2469 = vst.msk [vmem:[#allocation4 + $0x134] sm:$0xf] %vm520_vm2, %v8100_v5  ;;  %2470 = vst.msk [vmem:[#allocation4 + $0x140] sm:$0xf] %vm520_vm2, %v8101_v13  ;;  %v2040_v18 = vld [vmem:[#allocation2 + $0xc1] sm:$0xff]  ;;  %v2041_v57 = vld [vmem:[#allocation2 + $0xc9] sm:$0xff]  ;;  %v7827_v13 = vpack.c.bf16 %v368_v9, %v368_v9 }
  0xe4   : > { %314 = vst.msk [vmem:[#allocation2 + $0xc0] sm:$0x1] %vm305_vm1, %v295_v12  ;;  %322 = vst.msk [vmem:[#allocation2 + $0x180] sm:$0x1] %vm305_vm1, %v303_v16  ;;  %v9375_v22 = vpack.c.bf16 %v2040_v18, %v2040_v18  ;;  %v2295_v30 = vld [vmem:[#allocation2 + $0xb2] sm:$0xff]  ;;  %v2296_v39 = vld [vmem:[#allocation2 + $0xc2] sm:$0xff]  ;;  %v9399_v32 = vpack.c.bf16 %v2041_v57, %v2041_v57 }
  0xe5   : > { %1497 = vst.msk [vmem:[#allocation4 + $0xa0] sm:$0xf] %vm520_vm2, %v9365_v14  ;;  %v332_v38 = vld [vmem:[#allocation2 + $0xcf] sm:$0x1]  ;;  %v9379_v42 = vpack.c.bf16 %v2295_v30, %v2295_v30  ;;  %v8087_v41 = vpack.c.bf16 %v2296_v39, %v2296_v39  ;;  %1493 = vst.msk [vmem:[#allocation4 + $0x70] sm:$0xf] %vm520_vm2, %v7956_v23  ;;  %2162 = vrot.lane.b32.xlu0 %v8046_v26, %s8983_s7 }
  0xe6   : > { %350 = vst.msk [vmem:[#allocation2 + $0xd1] sm:$0x1] %vm305_vm1, %v332_v38  ;;  %v341_v43 = vld [vmem:[#allocation2 + $0x1a7] sm:$0x1]  ;;  %v340_v49 = vld [vmem:[#allocation2 + $0x18f] sm:$0x1]  ;;  %1658 = vrot.lane.b32.xlu1 %v9250_v34, %s8982_s6 }
  0xe7   : > { %v2311_v47 = vld [vmem:[#allocation2 + $0x172] sm:$0xff]  ;;  %1498 = vst.msk [vmem:[#allocation4 + $0xac] sm:$0xf] %vm520_vm2, %v9375_v22  ;;  %527 = vst.msk [vmem:[#allocation4 + $0x48] sm:$0xf] %vm520_vm2, %v7825_v40  ;;  %v2312_v54 = vld [vmem:[#allocation2 + $0x182] sm:$0xff] }
  0xe8   : > { %359 = vst.msk [vmem:[#allocation2 + $0x1a9] sm:$0x1] %vm305_vm1, %v341_v43  ;;  %v8102_v53 = vpack.c.bf16 %v2311_v47, %v2311_v47  ;;  %358 = vst.msk [vmem:[#allocation2 + $0x191] sm:$0x1] %vm305_vm1, %v340_v49  ;;  %v8103_v55 = vpack.c.bf16 %v2312_v54, %v2312_v54  ;;  %v2314_v58 = vld [vmem:[#allocation2 + $0x19a] sm:$0xff]  ;;  %v2047_v5 = vld [vmem:[#allocation2 + $0x111] sm:$0xff] }
  0xe9   : > { %v8783_v45 = vld [vmem:[#allocation4 + $0x68] ss:$12 sps:$4 sm:$0xff]   ;;  %2455 = vst.msk [vmem:[#allocation4 + $0x8c] sm:$0xf] %vm520_vm2, %v9379_v42  ;;  %2456 = vst.msk [vmem:[#allocation4 + $0x98] sm:$0xf] %vm520_vm2, %v8087_v41  ;;  %v8105_v2 = vpack.c.bf16 %v2314_v58, %v2314_v58  ;;  %v9406_v8 = vpack.c.bf16 %v2047_v5, %v2047_v5  ;;  %689 = vrot.lane.b32.xlu0 %v9139_v6, %s8982_s6 }
  0xea   : > { %8668 = vmatprep.mubr.msk.bf16.mxu1 %vm243_vm0, %v8783_v45  ;;  %2471 = vst.msk [vmem:[#allocation4 + $0x14c] sm:$0xf] %vm520_vm2, %v8102_v53  ;;  %2472 = vst.msk [vmem:[#allocation4 + $0x158] sm:$0xf] %vm520_vm2, %v8103_v55  ;;  %v373_v16 = vld [vmem:[#allocation2 + $0x98] sm:$0xff]  ;;  %v2049_v18 = vld [vmem:[#allocation2 + $0x129] sm:$0xff]  ;;  %952 = vrot.lane.b32.xlu1 %v9201_v61, %s8984_s25 }
  0xeb   : > { %v1784_v52 = vld [vmem:[#allocation2 + $0xc0] sm:$0xff]  ;;  %2474 = vst.msk [vmem:[#allocation4 + $0x170] sm:$0xf] %vm520_vm2, %v8105_v2  ;;  %1499 = vst.msk [vmem:[#allocation4 + $0xb8] sm:$0xf] %vm520_vm2, %v9399_v32  ;;  %v7832_v24 = vpack.c.bf16 %v373_v16, %v373_v16  ;;  %v9416_v29 = vpack.c.bf16 %v2049_v18, %v2049_v18  ;;  %v370_v41 = vld [vmem:[#allocation2 + $0x78] sm:$0xff] }
  0xec   : > { %v9402_v3 = vpack.c.bf16 %v1784_v52, %v1784_v52  ;;  %532 = vst.msk [vmem:[#allocation4 + $0x84] sm:$0xf] %vm520_vm2, %v7830_v7  ;;  %1505 = vst.msk [vmem:[#allocation4 + $0x100] sm:$0xf] %vm520_vm2, %v9406_v8  ;;  %v1779_v40 = vld [vmem:[#allocation2 + $0x80] sm:$0xff]  ;;  %v7829_v43 = vpack.c.bf16 %v370_v41, %v370_v41  ;;  %v2046_v47 = vld [vmem:[#allocation2 + $0x109] sm:$0xff] }
  0xed   : > { %v2297_v12 = vld [vmem:[#allocation2 + $0xca] sm:$0xff]  ;;  %529 = vst.msk [vmem:[#allocation4 + $0x60] sm:$0xf] %vm520_vm2, %v7827_v13  ;;  %534 = vst.msk [vmem:[#allocation4 + $0x9c] sm:$0xf] %vm520_vm2, %v7832_v24  ;;  %v9433_v45 = vpack.c.bf16 %v2046_v47, %v2046_v47  ;;  %v2051_v54 = vld [vmem:[#allocation2 + $0x141] sm:$0xff]  ;;  %v9437_v55 = vpack.c.bf16 %v1779_v40, %v1779_v40  ;;  %691 = vrot.lane.b32.xlu0 %v9205_v62, %s8982_s6  ;;  %v9451_v13 = vpack.c.bf16 %v2048_v4, %v2048_v4 }
  0xee   : > { %537 = vst.msk [vmem:[#allocation4 + $0xc0] sm:$0xf] %vm520_vm2, %v9402_v3  ;;  %v9413_v19 = vpack.c.bf16 %v2297_v12, %v2297_v12  ;;  %1507 = vst.msk [vmem:[#allocation4 + $0x118] sm:$0xf] %vm520_vm2, %v9416_v29  ;;  %v375_v49 = vld [vmem:[#allocation2 + $0xb0] sm:$0xff]  ;;  %v9440_v6 = vpack.c.bf16 %v2051_v54, %v2051_v54  ;;  %v1792_v57 = vld [vmem:[#allocation2 + $0x120] sm:$0xff] }
  0xef   : > { %v2313_v31 = vld [vmem:[#allocation2 + $0x18a] sm:$0xff]  ;;  %v2315_v23 = vld [vmem:[#allocation2 + $0x1a2] sm:$0xff]  ;;  %v7834_v53 = vpack.c.bf16 %v375_v49, %v375_v49  ;;  %531 = vst.msk [vmem:[#allocation4 + $0x78] sm:$0xf] %vm520_vm2, %v7829_v43  ;;  %v9445_v26 = vpack.c.bf16 %v1792_v57, %v1792_v57  ;;  %v1797_v52 = vld [vmem:[#allocation2 + $0x158] sm:$0xff]  ;;  %1914 = vrot.lane.b32.xlu1 %v9437_v55, %s8984_s25 }
  0xf0   : > { %v8784_v30 = vld [vmem:[#allocation4 + $0x80] ss:$12 sps:$4 sm:$0xff]   ;;  %v8104_v38 = vpack.c.bf16 %v2313_v31, %v2313_v31  ;;  %v8106_v39 = vpack.c.bf16 %v2315_v23, %v2315_v23  ;;  %2457 = vst.msk [vmem:[#allocation4 + $0xa4] sm:$0xf] %vm520_vm2, %v9413_v19  ;;  %v372_v58 = vld [vmem:[#allocation2 + $0x90] sm:$0xff]  ;;  %v9449_v12 = vpack.c.bf16 %v1797_v52, %v1797_v52  ;;  %v1794_v23 = vld [vmem:[#allocation2 + $0x138] sm:$0xff] }
  0xf1   : > { %8669 = vmatmul.mubr.msk.bf16.gmra.mxu1 %vm243_vm0, %v8784_v30  ;;  %536 = vst.msk [vmem:[#allocation4 + $0xb4] sm:$0xf] %vm520_vm2, %v7834_v53  ;;  %v7831_v2 = vpack.c.bf16 %v372_v58, %v372_v58  ;;  %v377_v5 = vld [vmem:[#allocation2 + $0xc8] sm:$0xff]  ;;  %1504 = vst.msk [vmem:[#allocation4 + $0xf4] sm:$0xf] %vm520_vm2, %v9433_v45  ;;  %v2053_v18 = vld [vmem:[#allocation2 + $0x159] sm:$0xff]  ;;  %v9463_v24 = vpack.c.bf16 %v1794_v23, %v1794_v23  ;;  %1652 = vrot.lane.b32.xlu0 %v9158_v27, %s8982_s6 }
  0xf2   : > { %2473 = vst.msk [vmem:[#allocation4 + $0x164] sm:$0xf] %vm520_vm2, %v8104_v38  ;;  %2475 = vst.msk [vmem:[#allocation4 + $0x17c] sm:$0xf] %vm520_vm2, %v8106_v39  ;;  %v8786_v7 = vld [vmem:[#allocation4 + $0xb0] ss:$12 sps:$4 sm:$0xff]   ;;  %v7836_v16 = vpack.c.bf16 %v377_v5, %v377_v5  ;;  %v9456_v31 = vpack.c.bf16 %v2053_v18, %v2053_v18 }
  0xf3   : > { %v8787_v9 = vld [vmem:[#allocation4 + $0xc8] ss:$12 sps:$4 sm:$0xff]   ;;  %1509 = vst.msk [vmem:[#allocation4 + $0x130] sm:$0xf] %vm520_vm2, %v9440_v6  ;;  %533 = vst.msk [vmem:[#allocation4 + $0x90] sm:$0xf] %vm520_vm2, %v7831_v2  ;;  %1209 = vrot.lane.b32.xlu1 %v9329_v44, %s8983_s7 }
  0xf4   : > { %545 = vst.msk [vmem:[#allocation4 + $0x120] sm:$0xf] %vm520_vm2, %v9445_v26  ;;  %538 = vst.msk [vmem:[#allocation4 + $0xcc] sm:$0xf] %vm520_vm2, %v7836_v16  ;;  %v2035_v30 = vld [vmem:[#allocation2 + $0x81] sm:$0xff]  ;;  %v1799_v39 = vld [vmem:[#allocation2 + $0x170] sm:$0xff] }
  0xf5   : > { %1506 = vst.msk [vmem:[#allocation4 + $0x10c] sm:$0xf] %vm520_vm2, %v9451_v13  ;;  %550 = vst.msk [vmem:[#allocation4 + $0x15c] sm:$0xf] %vm520_vm2, %v9449_v12  ;;  %v374_v38 = vld [vmem:[#allocation2 + $0xa8] sm:$0xff]  ;;  %v9475_v41 = vpack.c.bf16 %v1799_v39, %v1799_v39  ;;  %v2050_v43 = vld [vmem:[#allocation2 + $0x139] sm:$0xff]  ;;  %v9486_v57 = vpack.c.bf16 %v2035_v30, %v2035_v30  ;;  %1654 = vrot.lane.b32.xlu0 %v9201_v61, %s8982_s6 }
  0xf6   : > { %1511 = vst.msk [vmem:[#allocation4 + $0x148] sm:$0xf] %vm520_vm2, %v9456_v31  ;;  %v7833_v40 = vpack.c.bf16 %v374_v38, %v374_v38  ;;  %v2055_v47 = vld [vmem:[#allocation2 + $0x171] sm:$0xff]  ;;  %547 = vst.msk [vmem:[#allocation4 + $0x138] sm:$0xf] %vm520_vm2, %v9463_v24  ;;  %v9480_v49 = vpack.c.bf16 %v2050_v43, %v2050_v43  ;;  %v2057_v52 = vld [vmem:[#allocation2 + $0x189] sm:$0xff] }
  0xf7   : > { %v8785_v62 = vld [vmem:[#allocation4 + $0x98] ss:$12 sps:$4 sm:$0xff]   ;;  %v9482_v53 = vpack.c.bf16 %v2055_v47, %v2055_v47  ;;  %v1796_v54 = vld [vmem:[#allocation2 + $0x150] sm:$0xff]  ;;  %552 = vst.msk [vmem:[#allocation4 + $0x174] sm:$0xf] %vm520_vm2, %v9475_v41  ;;  %v9497_v5 = vpack.c.bf16 %v2057_v52, %v2057_v52  ;;  %2170 = vrot.lane.b32.xlu1 %v9486_v57, %s8983_s7 }
  0xf8   : > { %8672 = vmatprep.mubr.msk.bf16.mxu1 %vm243_vm0, %v8785_v62  ;;  %535 = vst.msk [vmem:[#allocation4 + $0xa8] sm:$0xf] %vm520_vm2, %v7833_v40  ;;  %v9489_v58 = vpack.c.bf16 %v1796_v54, %v1796_v54  ;;  %v2052_v2 = vld [vmem:[#allocation2 + $0x151] sm:$0xff]  ;;  %1508 = vst.msk [vmem:[#allocation4 + $0x124] sm:$0xf] %vm520_vm2, %v9480_v49  ;;  %v2054_v16 = vld [vmem:[#allocation2 + $0x169] sm:$0xff] }
  0xf9   : > { %8673 = vmatmul.mubr.msk.bf16.gmra.mxu1 %vm243_vm0, %v8786_v7  ;;  %v9495_v4 = vpack.c.bf16 %v2052_v2, %v2052_v2  ;;  %v1798_v7 = vld [vmem:[#allocation2 + $0x168] sm:$0xff]  ;;  %1513 = vst.msk [vmem:[#allocation4 + $0x160] sm:$0xf] %vm520_vm2, %v9482_v53  ;;  %v383_v18 = vld [vmem:[#allocation2 + $0x110] sm:$0xff]  ;;  %v8790_v61 = vld [vmem:[#allocation4 + $0xf8] ss:$12 sps:$4 sm:$0xff]   ;;  %v9507_v62 = vpack.c.bf16 %v2054_v16, %v2054_v16  ;;  %946 = vrot.lane.b32.xlu0 %v9120_v56, %s8984_s25 }
  0xfa   : > { %8676 = vmatprep.mubr.msk.bf16.mxu1 %vm243_vm0, %v8787_v9  ;;  %v8788_v44 = vld [vmem:[#allocation4 + $0xe0] ss:$12 sps:$4 sm:$0xff]   ;;  %v9503_v9 = vpack.c.bf16 %v1798_v7, %v1798_v7  ;;  %549 = vst.msk [vmem:[#allocation4 + $0x150] sm:$0xf] %vm520_vm2, %v9489_v58  ;;  %v7842_v23 = vpack.c.bf16 %v383_v18, %v383_v18  ;;  %v380_v30 = vld [vmem:[#allocation2 + $0xf0] sm:$0xff] }
  0xfb   : > { %1510 = vst.msk [vmem:[#allocation4 + $0x13c] sm:$0xf] %vm520_vm2, %v9495_v4  ;;  %1515 = vst.msk [vmem:[#allocation4 + $0x178] sm:$0xf] %vm520_vm2, %v9497_v5  ;;  %v7839_v38 = vpack.c.bf16 %v380_v30, %v380_v30  ;;  %v2056_v39 = vld [vmem:[#allocation2 + $0x181] sm:$0xff]  ;;  %699 = vrot.lane.b32.xlu1 %v9373_v20, %s8982_s6 }
  0xfc   : > { %v385_v40 = vld [vmem:[#allocation2 + $0x128] sm:$0xff]  ;;  %551 = vst.msk [vmem:[#allocation4 + $0x168] sm:$0xf] %vm520_vm2, %v9503_v9  ;;  %544 = vst.msk [vmem:[#allocation4 + $0x114] sm:$0xf] %vm520_vm2, %v7842_v23  ;;  %v9520_v43 = vpack.c.bf16 %v2056_v39, %v2056_v39  ;;  %v387_v7 = vld [vmem:[#allocation2 + $0x140] sm:$0xff] }
  0xfd   : > { %v7844_v47 = vpack.c.bf16 %v385_v40, %v385_v40  ;;  %v304_v54 = vld [vmem:[#allocation2 + $0x19a] sm:$0x1]  ;;  %v382_v2 = vld [vmem:[#allocation2 + $0x108] sm:$0xff]  ;;  %1512 = vst.msk [vmem:[#allocation4 + $0x154] sm:$0xf] %vm520_vm2, %v9507_v62  ;;  %v7846_v56 = vpack.c.bf16 %v387_v7, %v387_v7  ;;  %v1776_v16 = vld [vmem:[#allocation2 + $0x60] sm:$0xff]  ;;  %948 = vrot.lane.b32.xlu0 %v9155_v25, %s8984_s25 }
  0xfe   : > { %541 = vst.msk [vmem:[#allocation4 + $0xf0] sm:$0xf] %vm520_vm2, %v7839_v38  ;;  %v7841_v52 = vpack.c.bf16 %v382_v2, %v382_v2  ;;  %1514 = vst.msk [vmem:[#allocation4 + $0x16c] sm:$0xf] %vm520_vm2, %v9520_v43  ;;  %v8015_v18 = vpack.c.bf16 %v1776_v16, %v1776_v16  ;;  %v1781_v23 = vld [vmem:[#allocation2 + $0x98] sm:$0xff] }
  0xff   : > { %323 = vst.msk [vmem:[#allocation2 + $0x198] sm:$0x1] %vm305_vm1, %v304_v54  ;;  %1662 = vrot.lane.b32.xlu1 %v9296_v10, %s8982_s6  ;;  %v8020_v20 = vpack.c.bf16 %v1781_v23, %v1781_v23  ;;  %v8802_v25 = vld [vmem:[#allocation4 + $0x140] ss:$12 sps:$4 sm:$0xff]   ;;  %v8807_v30 = vld [vmem:[#allocation4 + $0x158] ss:$12 sps:$4 sm:$0xff]  }
 0x100   : > { %546 = vst.msk [vmem:[#allocation4 + $0x12c] sm:$0xf] %vm520_vm2, %v7844_v47  ;;  %543 = vst.msk [vmem:[#allocation4 + $0x108] sm:$0xf] %vm520_vm2, %v7841_v52  ;;  %v1780_v54 = vld [vmem:[#allocation2 + $0x90] sm:$0xff] }
 0x101   : > { %8677 = vmatmul.mubr.msk.bf16.gmra.mxu1 %vm243_vm0, %v8788_v44  ;;  %548 = vst.msk [vmem:[#allocation4 + $0x144] sm:$0xf] %vm520_vm2, %v7846_v56  ;;  %v8792_v44 = vld [vmem:[#allocation4 + $0x110] ss:$12 sps:$4 sm:$0xff]   ;;  %1908 = vrot.lane.b32.xlu0 %v8015_v18, %s8984_s25  ;;  %v8019_v52 = vpack.c.bf16 %v1780_v54, %v1780_v54  ;;  %v1785_v56 = vld [vmem:[#allocation2 + $0xc8] sm:$0xff] }
 0x102   : > { %8680 = vmatprep.mubr.msk.bf16.mxu1 %vm243_vm0, %v8790_v61  ;;  %v8800_v61 = vld [vmem:[#allocation4 + $0x128] ss:$12 sps:$4 sm:$0xff]   ;;  %v8024_v16 = vpack.c.bf16 %v1785_v56, %v1785_v56 }
 0x103   : > { %956 = vrot.lane.b32.xlu1 %v9250_v34, %s8984_s25  ;;  %v8808_v34 = vld [vmem:[#allocation4 + $0x170] ss:$12 sps:$4 sm:$0xff]  }
 0x105   : > { %1203 = vrot.lane.b32.xlu0 %v9303_v28, %s8983_s7  ;;  %v1778_v28 = vld [vmem:[#allocation2 + $0x78] sm:$0xff] }
 0x107   : > { %1918 = vrot.lane.b32.xlu1 %v8020_v20, %s8984_s25 }
 0x109   : > { %8681 = vmatmul.mubr.msk.bf16.gmra.mxu1 %vm243_vm0, %v8792_v44  ;;  %2164 = vrot.lane.b32.xlu0 %v9180_v48, %s8983_s7 }
 0x10a   : > { %8684 = vmatprep.mubr.msk.bf16.mxu1 %vm243_vm0, %v8800_v61 }
 0x10b   : > { %1213 = vrot.lane.b32.xlu1 %v9437_v55, %s8983_s7  ;;  %v8017_v55 = vpack.c.bf16 %v1778_v28, %v1778_v28 }
 0x10d   : > { %693 = vrot.lane.b32.xlu0 %v9385_v51, %s8982_s6  ;;  %v1783_v51 = vld [vmem:[#allocation2 + $0xb0] sm:$0xff] }
 0x10e   : > { %v8022_v39 = vpack.c.bf16 %v1783_v51, %v1783_v51 }
 0x10f   : > { %2174 = vrot.lane.b32.xlu1 %v9318_v33, %s8983_s7 }
 0x111   : > { %8685 = vmatmul.mubr.msk.bf16.gmra.mxu1 %vm243_vm0, %v8802_v25  ;;  %1656 = vrot.lane.b32.xlu0 %v9208_v0, %s8982_s6 }
 0x112   : > { %8688 = vmatprep.mubr.msk.bf16.mxu1 %vm243_vm0, %v8807_v30 }
 0x113   : > { %703 = vrot.lane.b32.xlu1 %v9486_v57, %s8982_s6 }
 0x115   : > { %950 = vrot.lane.b32.xlu0 %v9158_v27, %s8984_s25 }
 0x117   : > { %1666 = vrot.lane.b32.xlu1 %v9338_v17, %s8982_s6  ;;  %v1645_v38 = vpop.permute.xlu1 %1644 }
 0x118   : > { %1740 = vst.msk [vmem:[#allocation4 + $0x4] sm:$0xf] %vm777_vm3, %v1645_v38 }
 0x119   : > { %8689 = vmatmul.mubr.msk.bf16.gmra.mxu1 %vm243_vm0, %v8808_v34  ;;  %1912 = vrot.lane.b32.xlu0 %v8017_v55, %s8984_s25 }
 0x11b   : > { %960 = vrot.lane.b32.xlu1 %v9296_v10, %s8984_s25  ;;  %v1198_v57 = vpop.permute.xlu1 %1197 }
 0x11d   : > { %1207 = vrot.lane.b32.xlu0 %v8015_v18, %s8983_s7 }
 0x11f   : > { %1922 = vrot.lane.b32.xlu1 %v8022_v39, %s8984_s25  ;;  %v1196_v27 = vpop.permute.xlu1 %1195 }
 0x121   : > { %2168 = vrot.lane.b32.xlu0 %v9228_v15, %s8983_s7 }
 0x123   : > { %1217 = vrot.lane.b32.xlu1 %v8020_v20, %s8983_s7  ;;  %v2157_v40 = vpop.permute.xlu1 %2156 }
 0x125   : > { %697 = vrot.lane.b32.xlu0 %v9180_v48, %s8982_s6 }
 0x127   : > { %2178 = vrot.lane.b32.xlu1 %v9365_v14, %s8983_s7  ;;  %v1647_v10 = vpop.permute.xlu1 %1646 }
 0x128   : > { %1741 = vst.msk [vmem:[#allocation4 + $0x10] sm:$0xf] %vm777_vm3, %v1647_v10 }
 0x129   : > { %1660 = vrot.lane.b32.xlu0 %v9253_v35, %s8982_s6 }
 0x12b   : > { %v939_v47 = vpop.permute.xlu0 %938  ;;  %707 = vrot.lane.b32.xlu1 %v9318_v33, %s8982_s6  ;;  %v1903_v48 = vpop.permute.xlu1 %1902 }
 0x12c   : > { %1997 = vst.msk [vmem:[#allocation4 + $0x10] sm:$0xf] %vm1034_vm4, %v1903_v48 }
 0x12d   : > { %954 = vrot.lane.b32.xlu0 %v9208_v0, %s8984_s25 }
 0x12f   : > { %v688_v2 = vpop.permute.xlu0 %687  ;;  %1670 = vrot.lane.b32.xlu1 %v9379_v42, %s8982_s6  ;;  %v2159_v7 = vpop.permute.xlu1 %2158 }
 0x130   : > { %781 = vst.msk [vmem:[#allocation4 + $0x24] sm:$0xf] %vm777_vm3, %v688_v2 }
 0x131   : > { %1916 = vrot.lane.b32.xlu0 %v8019_v52, %s8984_s25  ;;  %2253 = vst.msk [vmem:[#allocation4 + $0x10] sm:$0xf] %vm1291_vm5, %v2159_v7 }
 0x133   : > { %v1649_v33 = vpop.permute.xlu0 %1648  ;;  %964 = vrot.lane.b32.xlu1 %v9338_v17, %s8984_s25 }
 0x134   : > { %1742 = vst.msk [vmem:[#allocation4 + $0x1c] sm:$0xf] %vm777_vm3, %v1649_v33  ;;  %v682_v0 = vpop.permute.xlu1 %681 }
 0x135   : > { %1211 = vrot.lane.b32.xlu0 %v8017_v55, %s8983_s7  ;;  %778 = vst.msk [vmem:[#allocation4] sm:$0xf] %vm777_vm3, %v682_v0 }
 0x136   : > { %1035 = vst.msk [vmem:[#allocation4] sm:$0xf] %vm1034_vm4, %v939_v47  ;;  %v822_v47 = vld [vmem:[#allocation2 + $0x92] sm:$0xff] }
 0x137   : > { %v1651_v44 = vpop.permute.xlu0 %1650  ;;  %1926 = vrot.lane.b32.xlu1 %v8024_v16, %s8984_s25  ;;  %1292 = vst.msk [vmem:[#allocation4] sm:$0xf] %vm1291_vm5, %v1196_v27  ;;  %v7895_v2 = vpack.c.bf16 %v822_v47, %v822_v47 }
 0x138   : > { %1743 = vst.msk [vmem:[#allocation4 + $0x28] sm:$0xf] %vm777_vm3, %v1651_v44  ;;  %v1901_v18 = vpop.permute.xlu1 %1900 }
 0x139   : > { %2172 = vrot.lane.b32.xlu0 %v9277_v60, %s8983_s7  ;;  %1996 = vst.msk [vmem:[#allocation4 + $0x4] sm:$0xf] %vm1034_vm4, %v1901_v18 }
 0x13a   : > { %2252 = vst.msk [vmem:[#allocation4 + $0x4] sm:$0xf] %vm1291_vm5, %v2157_v40 }
 0x13b   : > { %v943_v17 = vpop.permute.xlu0 %942  ;;  %1221 = vrot.lane.b32.xlu1 %v8022_v39, %s8983_s7 }
 0x13c   : > { %v684_v61 = vpop.permute.xlu1 %683 }
 0x13d   : > { %701 = vrot.lane.b32.xlu0 %v9228_v15, %s8982_s6  ;;  %779 = vst.msk [vmem:[#allocation4 + $0xc] sm:$0xf] %vm777_vm3, %v684_v61  ;;  %v1782_v15 = vld [vmem:[#allocation2 + $0xa8] sm:$0xff] }
 0x13f   : > { %v945_v23 = vpop.permute.xlu0 %944  ;;  %2182 = vrot.lane.b32.xlu1 %v9399_v32, %s8983_s7 }
 0x140   : > { %1038 = vst.msk [vmem:[#allocation4 + $0x24] sm:$0xf] %vm1034_vm4, %v945_v23  ;;  %v941_v20 = vpop.permute.xlu1 %940  ;;  %v1530_v23 = vld [vmem:[#allocation2 + $0xc2] sm:$0xff] }
 0x141   : > { %1664 = vrot.lane.b32.xlu0 %v9299_v11, %s8982_s6  ;;  %1036 = vst.msk [vmem:[#allocation4 + $0xc] sm:$0xf] %vm1034_vm4, %v941_v20  ;;  %v8021_v11 = vpack.c.bf16 %v1782_v15, %v1782_v15  ;;  %v2476_v55 = vld [vmem:[#allocation4] sm:$0xff]  ;;  %v9681_v15 = vpack.c.bf16 %v1530_v23, %v1530_v23 }
 0x142   : > { %1293 = vst.msk [vmem:[#allocation4 + $0xc] sm:$0xf] %vm1291_vm5, %v1198_v57  ;;  %v8811_v38 = vld [vmem:[#allocation4 + $0x4] ss:$12 sps:$4 sm:$0xff]  }
 0x143   : > { %v1905_v25 = vpop.permute.xlu0 %1904  ;;  %711 = vrot.lane.b32.xlu1 %v9365_v14, %s8982_s6  ;;  %3004 = vmatprep.mubr.bf16.mxu0 %v8811_v38 }
 0x144   : > { %1998 = vst.msk [vmem:[#allocation4 + $0x1c] sm:$0xf] %vm1034_vm4, %v1905_v25  ;;  %v686_v30 = vpop.permute.xlu1 %685 }
 0x145   : > { %958 = vrot.lane.b32.xlu0 %v9253_v35, %s8984_s25  ;;  %780 = vst.msk [vmem:[#allocation4 + $0x18] sm:$0xf] %vm777_vm3, %v686_v30  ;;  %v824_v30 = vld [vmem:[#allocation2 + $0xaa] sm:$0xff] }
 0x146   : > { %1037 = vst.msk [vmem:[#allocation4 + $0x18] sm:$0xf] %vm1034_vm4, %v943_v17 }
 0x147   : > { %v1907_v34 = vpop.permute.xlu0 %1906  ;;  %1674 = vrot.lane.b32.xlu1 %v9413_v19, %s8982_s6 }
 0x148   : > { %1999 = vst.msk [vmem:[#allocation4 + $0x28] sm:$0xf] %vm1034_vm4, %v1907_v34  ;;  %v1911_v28 = vpop.permute.xlu1 %1910  ;;  %v7897_v34 = vpack.c.bf16 %v824_v30, %v824_v30 }
 0x149   : > { %1920 = vrot.lane.b32.xlu0 %v8021_v11, %s8984_s25  ;;  %v2478_v51 = vld [vmem:[#allocation4 + $0xc] sm:$0xff] }
 0x14a   : > { %v7361_v35 = vcombine.low %v2476_v55, %v2478_v51 }
 0x14b   : > { %v1200_v14 = vpop.permute.xlu0 %1199  ;;  %968 = vrot.lane.b32.xlu1 %v9379_v42, %s8984_s25 }
 0x14c   : > { %1294 = vst.msk [vmem:[#allocation4 + $0x18] sm:$0xf] %vm1291_vm5, %v1200_v14  ;;  %v9631_v39 = vpop.permute.xlu1 %1205  ;;  %3005 = vmatmul.mubr.bf16.vlgmr.msra.gmra.mxu0 %v7361_v35 }
 0x14d   : > { %1215 = vrot.lane.b32.xlu0 %v8019_v52, %s8983_s7  ;;  %v1533_v52 = vld [vmem:[#allocation2 + $0xe2] sm:$0xff] }
 0x14e   : > { %v9653_v7 = vpack.c.bf16 %v1533_v52, %v1533_v52 }
 0x14f   : > { %v1202_v57 = vpop.permute.xlu0 %1201  ;;  %1930 = vrot.lane.b32.xlu1 %v9094_v36, %s8984_s25 }
 0x150   : > { %1295 = vst.msk [vmem:[#allocation4 + $0x24] sm:$0xf] %vm1291_vm5, %v1202_v57  ;;  %v2167_v27 = vpop.permute.xlu1 %2166 }
 0x151   : > { %2176 = vrot.lane.b32.xlu0 %v9331_v46, %s8983_s7 }
 0x153   : > { %v2161_v40 = vpop.permute.xlu0 %2160  ;;  %1225 = vrot.lane.b32.xlu1 %v8024_v16, %s8983_s7 }
 0x154   : > { %2254 = vst.msk [vmem:[#allocation4 + $0x1c] sm:$0xf] %vm1291_vm5, %v2161_v40  ;;  %v696_v42 = vpop.permute.xlu1 %695 }
 0x155   : > { %705 = vrot.lane.b32.xlu0 %v9277_v60, %s8982_s6  ;;  %785 = vst.msk [vmem:[#allocation4 + $0x54] sm:$0xf] %vm777_vm3, %v696_v42 }
 0x157   : > { %v2163_v10 = vpop.permute.xlu0 %2162  ;;  %2186 = vrot.lane.b32.xlu1 %v9096_v37, %s8983_s7 }
 0x158   : > { %2255 = vst.msk [vmem:[#allocation4 + $0x28] sm:$0xf] %vm1291_vm5, %v2163_v10  ;;  %v1659_v54 = vpop.permute.xlu1 %1658 }
 0x159   : > { %1668 = vrot.lane.b32.xlu0 %v9341_v1, %s8982_s6  ;;  %1747 = vst.msk [vmem:[#allocation4 + $0x58] sm:$0xf] %vm777_vm3, %v1659_v54 }
 0x15b   : > { %v690_v48 = vpop.permute.xlu0 %689  ;;  %715 = vrot.lane.b32.xlu1 %v9399_v32, %s8982_s6  ;;  %v2480_v1 = vld [vmem:[#allocation4 + $0x18] sm:$0xff] }
 0x15c   : > { %782 = vst.msk [vmem:[#allocation4 + $0x30] sm:$0xf] %vm777_vm3, %v690_v48  ;;  %v953_v60 = vpop.permute.xlu1 %952 }
 0x15d   : > { %962 = vrot.lane.b32.xlu0 %v7895_v2, %s8984_s25  ;;  %1042 = vst.msk [vmem:[#allocation4 + $0x54] sm:$0xf] %vm1034_vm4, %v953_v60  ;;  %v1532_v2 = vld [vmem:[#allocation2 + $0xda] sm:$0xff] }
 0x15f   : > { %v692_v33 = vpop.permute.xlu0 %691  ;;  %v2482_v56 = vld [vmem:[#allocation4 + $0x24] sm:$0xff]  ;;  %1678 = vrot.lane.b32.xlu1 %v9653_v7, %s8982_s6 }
 0x160   : > { %v8813_v0 = vld [vmem:[#allocation4 + $0x1c] ss:$12 sps:$4 sm:$0xff]   ;;  %783 = vst.msk [vmem:[#allocation4 + $0x3c] sm:$0xf] %vm777_vm3, %v692_v33  ;;  %v7364_v16 = vcombine.low %v2480_v1, %v2482_v56  ;;  %v1537_v1 = vld [vmem:[#allocation2 + $0x112] sm:$0xff] }
 0x161   : > { %1924 = vrot.lane.b32.xlu0 %v9402_v3, %s8984_s25  ;;  %3012 = vmatprep.mubr.bf16.mxu0 %v8813_v0  ;;  %v1915_v32 = vpop.permute.xlu1 %1914  ;;  %v8000_v0 = vpack.c.bf16 %v1537_v1, %v1537_v1 }
 0x162   : > { %3013 = vmatmul.mubr.bf16.gmra.mxu0 %v7364_v16  ;;  %2003 = vst.msk [vmem:[#allocation4 + $0x58] sm:$0xf] %vm1034_vm4, %v1915_v32 }
 0x163   : > { %v1653_v44 = vpop.permute.xlu0 %1652  ;;  %972 = vrot.lane.b32.xlu1 %v9413_v19, %s8984_s25 }
 0x164   : > { %1744 = vst.msk [vmem:[#allocation4 + $0x34] sm:$0xf] %vm777_vm3, %v1653_v44 }
 0x165   : > { %1219 = vrot.lane.b32.xlu0 %v8021_v11, %s8983_s7  ;;  %v1210_v18 = vpop.permute.xlu1 %1209  ;;  %v1535_v11 = vld [vmem:[#allocation2 + $0xfa] sm:$0xff] }
 0x166   : > { %1299 = vst.msk [vmem:[#allocation4 + $0x54] sm:$0xf] %vm1291_vm5, %v1210_v18  ;;  %v7998_v55 = vpack.c.bf16 %v1535_v11, %v1535_v11  ;;  %v1793_v18 = vld [vmem:[#allocation2 + $0x128] sm:$0xff] }
 0x167   : > { %v1655_v17 = vpop.permute.xlu0 %1654  ;;  %1934 = vrot.lane.b32.xlu1 %v9334_v59, %s8984_s25 }
 0x168   : > { %1745 = vst.msk [vmem:[#allocation4 + $0x40] sm:$0xf] %vm777_vm3, %v1655_v17 }
 0x169   : > { %2001 = vst.msk [vmem:[#allocation4 + $0x40] sm:$0xf] %vm1034_vm4, %v1911_v28  ;;  %2180 = vrot.lane.b32.xlu0 %v9375_v22, %s8983_s7  ;;  %v2171_v61 = vpop.permute.xlu1 %2170  ;;  %v1786_v28 = vld [vmem:[#allocation2 + $0xd8] sm:$0xff] }
 0x16a   : > { %2257 = vst.msk [vmem:[#allocation4 + $0x40] sm:$0xf] %vm1291_vm5, %v2167_v27  ;;  %2259 = vst.msk [vmem:[#allocation4 + $0x58] sm:$0xf] %vm1291_vm5, %v2171_v61  ;;  %v8025_v38 = vpack.c.bf16 %v1786_v28, %v1786_v28  ;;  %v9738_v61 = vpack.c.bf16 %v1793_v18, %v1793_v18 }
 0x16b   : > { %v947_v19 = vpop.permute.xlu0 %946  ;;  %1229 = vrot.lane.b32.xlu1 %v9094_v36, %s8983_s7 }
 0x16c   : > { %1039 = vst.msk [vmem:[#allocation4 + $0x30] sm:$0xf] %vm1034_vm4, %v947_v19 }
 0x16d   : > { %709 = vrot.lane.b32.xlu0 %v9331_v46, %s8982_s6  ;;  %v700_v20 = vpop.permute.xlu1 %699 }
 0x16e   : > { %787 = vst.msk [vmem:[#allocation4 + $0x6c] sm:$0xf] %vm777_vm3, %v700_v20 }
 0x16f   : > { %v949_v25 = vpop.permute.xlu0 %948  ;;  %2190 = vrot.lane.b32.xlu1 %v9336_v63, %s8983_s7 }
 0x170   : > { %1040 = vst.msk [vmem:[#allocation4 + $0x3c] sm:$0xf] %vm1034_vm4, %v949_v25 }
 0x171   : > { %1297 = vst.msk [vmem:[#allocation4 + $0x3c] sm:$0xf] %vm1291_vm5, %v9631_v39  ;;  %1672 = vrot.lane.b32.xlu0 %v9681_v15, %s8982_s6  ;;  %v1663_v36 = vpop.permute.xlu1 %1662 }
 0x172   : > { %1749 = vst.msk [vmem:[#allocation4 + $0x70] sm:$0xf] %vm777_vm3, %v1663_v36 }
 0x173   : > { %v1909_v46 = vpop.permute.xlu0 %1908  ;;  %719 = vrot.lane.b32.xlu1 %v9096_v37, %s8982_s6  ;;  %v1791_v37 = vld [vmem:[#allocation2 + $0x110] sm:$0xff] }
 0x174   : > { %2000 = vst.msk [vmem:[#allocation4 + $0x34] sm:$0xf] %vm1034_vm4, %v1909_v46  ;;  %v9705_v27 = vpack.c.bf16 %v1791_v37, %v1791_v37  ;;  %v1534_v46 = vld [vmem:[#allocation2 + $0xf2] sm:$0xff] }
 0x175   : > { %966 = vrot.lane.b32.xlu0 %v7897_v34, %s8984_s25  ;;  %v957_v14 = vpop.permute.xlu1 %956  ;;  %v7997_v28 = vpack.c.bf16 %v1534_v46, %v1534_v46 }
 0x176   : > { %1044 = vst.msk [vmem:[#allocation4 + $0x6c] sm:$0xf] %vm1034_vm4, %v957_v14 }
 0x177   : > { %v1204_v51 = vpop.permute.xlu0 %1203  ;;  %1682 = vrot.lane.b32.xlu1 %v7998_v55, %s8982_s6 }
 0x178   : > { %1296 = vst.msk [vmem:[#allocation4 + $0x30] sm:$0xf] %vm1291_vm5, %v1204_v51  ;;  %v1539_v51 = vld [vmem:[#allocation2 + $0x12a] sm:$0xff] }
 0x179   : > { %1928 = vrot.lane.b32.xlu0 %v8025_v38, %s8984_s25  ;;  %v1919_v35 = vpop.permute.xlu1 %1918 }
 0x17a   : > { %2005 = vst.msk [vmem:[#allocation4 + $0x70] sm:$0xf] %vm1034_vm4, %v1919_v35  ;;  %v8002_v35 = vpack.c.bf16 %v1539_v51, %v1539_v51 }
 0x17b   : > { %v2165_v39 = vpop.permute.xlu0 %2164  ;;  %976 = vrot.lane.b32.xlu1 %v9653_v7, %s8984_s25  ;;  %v7995_v7 = vpack.c.bf16 %v1532_v2, %v1532_v2 }
 0x17c   : > { %2256 = vst.msk [vmem:[#allocation4 + $0x34] sm:$0xf] %vm1291_vm5, %v2165_v39 }
 0x17d   : > { %1223 = vrot.lane.b32.xlu0 %v9402_v3, %s8983_s7  ;;  %v1214_v57 = vpop.permute.xlu1 %1213  ;;  %v2486_v3 = vld [vmem:[#allocation4 + $0x3c] sm:$0xff] }
 0x17e   : > { %1301 = vst.msk [vmem:[#allocation4 + $0x6c] sm:$0xf] %vm1291_vm5, %v1214_v57 }
 0x17f   : > { %v694_v40 = vpop.permute.xlu0 %693  ;;  %1938 = vrot.lane.b32.xlu1 %v9705_v27, %s8984_s25 }
 0x180   : > { %784 = vst.msk [vmem:[#allocation4 + $0x48] sm:$0xf] %vm777_vm3, %v694_v40 }
 0x181   : > { %2184 = vrot.lane.b32.xlu0 %v9077_v21, %s8983_s7  ;;  %v2175_v42 = vpop.permute.xlu1 %2174 }
 0x182   : > { %2261 = vst.msk [vmem:[#allocation4 + $0x70] sm:$0xf] %vm1291_vm5, %v2175_v42 }
 0x183   : > { %v1657_v10 = vpop.permute.xlu0 %1656  ;;  %v2484_v47 = vld [vmem:[#allocation4 + $0x30] sm:$0xff]  ;;  %1233 = vrot.lane.b32.xlu1 %v9334_v59, %s8983_s7 }
 0x184   : > { %v8815_v54 = vld [vmem:[#allocation4 + $0x34] ss:$12 sps:$4 sm:$0xff]   ;;  %1746 = vst.msk [vmem:[#allocation4 + $0x4c] sm:$0xf] %vm777_vm3, %v1657_v10  ;;  %v7367_v48 = vcombine.low %v2484_v47, %v2486_v3 }
 0x185   : > { %713 = vrot.lane.b32.xlu0 %v9375_v22, %s8982_s6  ;;  %3020 = vmatprep.mubr.bf16.mxu0 %v8815_v54  ;;  %v704_v52 = vpop.permute.xlu1 %703  ;;  %v1788_v22 = vld [vmem:[#allocation2 + $0xf0] sm:$0xff] }
 0x186   : > { %3021 = vmatmul.mubr.bf16.gmra.mxu0 %v7367_v48  ;;  %789 = vst.msk [vmem:[#allocation4 + $0x84] sm:$0xf] %vm777_vm3, %v704_v52  ;;  %v8027_v32 = vpack.c.bf16 %v1788_v22, %v1788_v22 }
 0x187   : > { %v951_v60 = vpop.permute.xlu0 %950  ;;  %2194 = vrot.lane.b32.xlu1 %v9406_v8, %s8983_s7 }
 0x188   : > { %1041 = vst.msk [vmem:[#allocation4 + $0x48] sm:$0xf] %vm1034_vm4, %v951_v60  ;;  %v1536_v60 = vld [vmem:[#allocation2 + $0x10a] sm:$0xff] }
 0x189   : > { %1676 = vrot.lane.b32.xlu0 %v7995_v7, %s8982_s6  ;;  %v1667_v59 = vpop.permute.xlu1 %1666  ;;  %v2494_v48 = vld [vmem:[#allocation4 + $0x6c] sm:$0xff] }
 0x18a   : > { %1751 = vst.msk [vmem:[#allocation4 + $0x88] sm:$0xf] %vm777_vm3, %v1667_v59 }
 0x18b   : > { %v1913_v33 = vpop.permute.xlu0 %1912  ;;  %723 = vrot.lane.b32.xlu1 %v9336_v63, %s8982_s6 }
 0x18c   : > { %2002 = vst.msk [vmem:[#allocation4 + $0x4c] sm:$0xf] %vm1034_vm4, %v1913_v33  ;;  %v7999_v33 = vpack.c.bf16 %v1536_v60, %v1536_v60 }
 0x18d   : > { %970 = vrot.lane.b32.xlu0 %v9681_v15, %s8984_s25  ;;  %v961_v56 = vpop.permute.xlu1 %960  ;;  %v2490_v15 = vld [vmem:[#allocation4 + $0x54] sm:$0xff] }
 0x18e   : > { %1046 = vst.msk [vmem:[#allocation4 + $0x84] sm:$0xf] %vm1034_vm4, %v961_v56  ;;  %v1541_v56 = vld [vmem:[#allocation2 + $0x142] sm:$0xff] }
 0x18f   : > { %v1208_v16 = vpop.permute.xlu0 %1207  ;;  %1686 = vrot.lane.b32.xlu1 %v8000_v0, %s8982_s6 }
 0x190   : > { %1298 = vst.msk [vmem:[#allocation4 + $0x48] sm:$0xf] %vm1291_vm5, %v1208_v16 }
 0x191   : > { %1932 = vrot.lane.b32.xlu0 %v8027_v32, %s8984_s25  ;;  %v1923_v44 = vpop.permute.xlu1 %1922 }
 0x192   : > { %2007 = vst.msk [vmem:[#allocation4 + $0x88] sm:$0xf] %vm1034_vm4, %v1923_v44 }
 0x193   : > { %v2169_v63 = vpop.permute.xlu0 %2168  ;;  %980 = vrot.lane.b32.xlu1 %v7998_v55, %s8984_s25 }
 0x194   : > { %2258 = vst.msk [vmem:[#allocation4 + $0x4c] sm:$0xf] %vm1291_vm5, %v2169_v63 }
 0x195   : > { %1227 = vrot.lane.b32.xlu0 %v8025_v38, %s8983_s7  ;;  %v1218_v17 = vpop.permute.xlu1 %1217 }
 0x196   : > { %1303 = vst.msk [vmem:[#allocation4 + $0x84] sm:$0xf] %vm1291_vm5, %v1218_v17 }
 0x197   : > { %v698_v19 = vpop.permute.xlu0 %697  ;;  %1942 = vrot.lane.b32.xlu1 %v9738_v61, %s8984_s25 }
 0x198   : > { %786 = vst.msk [vmem:[#allocation4 + $0x60] sm:$0xf] %vm777_vm3, %v698_v19 }
 0x199   : > { %2188 = vrot.lane.b32.xlu0 %v9111_v50, %s8983_s7  ;;  %v2179_v23 = vpop.permute.xlu1 %2178 }
 0x19a   : > { %2263 = vst.msk [vmem:[#allocation4 + $0x88] sm:$0xf] %vm1291_vm5, %v2179_v23 }
 0x19b   : > { %v1661_v20 = vpop.permute.xlu0 %1660  ;;  %v2488_v25 = vld [vmem:[#allocation4 + $0x48] sm:$0xff]  ;;  %1237 = vrot.lane.b32.xlu1 %v9705_v27, %s8983_s7 }
 0x19c   : > { %v8817_v30 = vld [vmem:[#allocation4 + $0x4c] ss:$12 sps:$4 sm:$0xff]   ;;  %1748 = vst.msk [vmem:[#allocation4 + $0x64] sm:$0xf] %vm777_vm3, %v1661_v20  ;;  %v7370_v36 = vcombine.low %v2488_v25, %v2490_v15  ;;  %v1538_v25 = vld [vmem:[#allocation2 + $0x122] sm:$0xff] }
 0x19d   : > { %717 = vrot.lane.b32.xlu0 %v9077_v21, %s8982_s6  ;;  %3028 = vmatprep.mubr.bf16.mxu0 %v8817_v30  ;;  %v708_v34 = vpop.permute.xlu1 %707  ;;  %v1790_v21 = vld [vmem:[#allocation2 + $0x108] sm:$0xff] }
 0x19e   : > { %3029 = vmatmul.mubr.bf16.gmra.mxu0 %v7370_v36  ;;  %791 = vst.msk [vmem:[#allocation4 + $0x9c] sm:$0xf] %vm777_vm3, %v708_v34  ;;  %v8029_v37 = vpack.c.bf16 %v1790_v21, %v1790_v21  ;;  %v8001_v36 = vpack.c.bf16 %v1538_v25, %v1538_v25 }
 0x19f   : > { %v955_v11 = vpop.permute.xlu0 %954  ;;  %2198 = vrot.lane.b32.xlu1 %v9416_v29, %s8983_s7 }
 0x1a0   : > { %1043 = vst.msk [vmem:[#allocation4 + $0x60] sm:$0xf] %vm1034_vm4, %v955_v11  ;;  %v1543_v11 = vld [vmem:[#allocation2 + $0x15a] sm:$0xff] }
 0x1a1   : > { %1680 = vrot.lane.b32.xlu0 %v7997_v28, %s8982_s6  ;;  %v1671_v14 = vpop.permute.xlu1 %1670  ;;  %v2498_v19 = vld [vmem:[#allocation4 + $0x84] sm:$0xff] }
 0x1a2   : > { %1753 = vst.msk [vmem:[#allocation4 + $0xa0] sm:$0xf] %vm777_vm3, %v1671_v14 }
 0x1a3   : > { %v1917_v55 = vpop.permute.xlu0 %1916  ;;  %727 = vrot.lane.b32.xlu1 %v9406_v8, %s8982_s6  ;;  %v1795_v8 = vld [vmem:[#allocation2 + $0x140] sm:$0xff] }
 0x1a4   : > { %2004 = vst.msk [vmem:[#allocation4 + $0x64] sm:$0xf] %vm1034_vm4, %v1917_v55  ;;  %v8034_v42 = vpack.c.bf16 %v1795_v8, %v1795_v8 }
 0x1a5   : > { %974 = vrot.lane.b32.xlu0 %v7995_v7, %s8984_s25  ;;  %v965_v38 = vpop.permute.xlu1 %964 }
 0x1a6   : > { %1048 = vst.msk [vmem:[#allocation4 + $0x9c] sm:$0xf] %vm1034_vm4, %v965_v38 }
 0x1a7   : > { %v1212_v39 = vpop.permute.xlu0 %1211  ;;  %1690 = vrot.lane.b32.xlu1 %v8002_v35, %s8982_s6 }
 0x1a8   : > { %1300 = vst.msk [vmem:[#allocation4 + $0x60] sm:$0xf] %vm1291_vm5, %v1212_v39 }
 0x1a9   : > { %1936 = vrot.lane.b32.xlu0 %v8029_v37, %s8984_s25  ;;  %v1927_v57 = vpop.permute.xlu1 %1926 }
 0x1aa   : > { %2009 = vst.msk [vmem:[#allocation4 + $0xa0] sm:$0xf] %vm1034_vm4, %v1927_v57 }
 0x1ab   : > { %v2173_v27 = vpop.permute.xlu0 %2172  ;;  %984 = vrot.lane.b32.xlu1 %v8000_v0, %s8984_s25  ;;  %v8004_v0 = vpack.c.bf16 %v1541_v56, %v1541_v56 }
 0x1ac   : > { %2260 = vst.msk [vmem:[#allocation4 + $0x64] sm:$0xf] %vm1291_vm5, %v2173_v27  ;;  %v1540_v27 = vld [vmem:[#allocation2 + $0x13a] sm:$0xff] }
 0x1ad   : > { %1231 = vrot.lane.b32.xlu0 %v8027_v32, %s8983_s7  ;;  %v1222_v40 = vpop.permute.xlu1 %1221 }
 0x1ae   : > { %1305 = vst.msk [vmem:[#allocation4 + $0x9c] sm:$0xf] %vm1291_vm5, %v1222_v40 }
 0x1af   : > { %v702_v10 = vpop.permute.xlu0 %701  ;;  %1946 = vrot.lane.b32.xlu1 %v8034_v42, %s8984_s25 }
 0x1b0   : > { %788 = vst.msk [vmem:[#allocation4 + $0x78] sm:$0xf] %vm777_vm3, %v702_v10 }
 0x1b1   : > { %2192 = vrot.lane.b32.xlu0 %v9433_v45, %s8983_s7  ;;  %v2183_v47 = vpop.permute.xlu1 %2182 }
 0x1b2   : > { %2265 = vst.msk [vmem:[#allocation4 + $0xa0] sm:$0xf] %vm1291_vm5, %v2183_v47  ;;  %v1545_v47 = vld [vmem:[#allocation2 + $0x172] sm:$0xff] }
 0x1b3   : > { %v1665_v3 = vpop.permute.xlu0 %1664  ;;  %v2492_v54 = vld [vmem:[#allocation4 + $0x60] sm:$0xff]  ;;  %1241 = vrot.lane.b32.xlu1 %v9738_v61, %s8983_s7 }
 0x1b4   : > { %v8819_v2 = vld [vmem:[#allocation4 + $0x64] ss:$12 sps:$4 sm:$0xff]   ;;  %1750 = vst.msk [vmem:[#allocation4 + $0x7c] sm:$0xf] %vm777_vm3, %v1665_v3  ;;  %v7373_v52 = vcombine.low %v2492_v54, %v2494_v48  ;;  %v8008_v3 = vpack.c.bf16 %v1545_v47, %v1545_v47 }
 0x1b5   : > { %721 = vrot.lane.b32.xlu0 %v9111_v50, %s8982_s6  ;;  %3036 = vmatprep.mubr.bf16.mxu0 %v8819_v2  ;;  %v712_v7 = vpop.permute.xlu1 %711 }
 0x1b6   : > { %3037 = vmatmul.mubr.bf16.gmra.mxu0 %v7373_v52  ;;  %793 = vst.msk [vmem:[#allocation4 + $0xb4] sm:$0xf] %vm777_vm3, %v712_v7  ;;  %v1801_v52 = vld [vmem:[#allocation2 + $0x188] sm:$0xff] }
 0x1b7   : > { %v959_v59 = vpop.permute.xlu0 %958  ;;  %2202 = vrot.lane.b32.xlu1 %v9440_v6, %s8983_s7  ;;  %v9863_v60 = vpack.c.bf16 %v1801_v52, %v1801_v52  ;;  %v1802_v52 = vld [vmem:[#allocation2 + $0x198] sm:$0xff] }
 0x1b8   : > { %1045 = vst.msk [vmem:[#allocation4 + $0x78] sm:$0xf] %vm1034_vm4, %v959_v59 }
 0x1b9   : > { %1684 = vrot.lane.b32.xlu0 %v7999_v33, %s8982_s6  ;;  %v1675_v1 = vpop.permute.xlu1 %1674 }
 0x1ba   : > { %1755 = vst.msk [vmem:[#allocation4 + $0xb8] sm:$0xf] %vm777_vm3, %v1675_v1 }
 0x1bb   : > { %v1921_v22 = vpop.permute.xlu0 %1920  ;;  %731 = vrot.lane.b32.xlu1 %v9416_v29, %s8982_s6 }
 0x1bc   : > { %2006 = vst.msk [vmem:[#allocation4 + $0x7c] sm:$0xf] %vm1034_vm4, %v1921_v22 }
 0x1bd   : > { %978 = vrot.lane.b32.xlu0 %v7997_v28, %s8984_s25  ;;  %v969_v50 = vpop.permute.xlu1 %968  ;;  %v8006_v28 = vpack.c.bf16 %v1543_v11, %v1543_v11 }
 0x1be   : > { %1050 = vst.msk [vmem:[#allocation4 + $0xb4] sm:$0xf] %vm1034_vm4, %v969_v50  ;;  %v1542_v50 = vld [vmem:[#allocation2 + $0x152] sm:$0xff] }
 0x1bf   : > { %v1216_v16 = vpop.permute.xlu0 %1215  ;;  %1694 = vrot.lane.b32.xlu1 %v8004_v0, %s8982_s6 }
 0x1c0   : > { %1302 = vst.msk [vmem:[#allocation4 + $0x78] sm:$0xf] %vm1291_vm5, %v1216_v16 }
 0x1c1   : > { %1940 = vrot.lane.b32.xlu0 %v9445_v26, %s8984_s25  ;;  %v1931_v32 = vpop.permute.xlu1 %1930 }
 0x1c2   : > { %2011 = vst.msk [vmem:[#allocation4 + $0xb8] sm:$0xf] %vm1034_vm4, %v1931_v32  ;;  %v8005_v32 = vpack.c.bf16 %v1542_v50, %v1542_v50 }
 0x1c3   : > { %v2177_v44 = vpop.permute.xlu0 %2176  ;;  %988 = vrot.lane.b32.xlu1 %v8002_v35, %s8984_s25 }
 0x1c4   : > { %2262 = vst.msk [vmem:[#allocation4 + $0x7c] sm:$0xf] %vm1291_vm5, %v2177_v44 }
 0x1c5   : > { %1235 = vrot.lane.b32.xlu0 %v8029_v37, %s8983_s7  ;;  %v1226_v29 = vpop.permute.xlu1 %1225  ;;  %v2502_v37 = vld [vmem:[#allocation4 + $0x9c] sm:$0xff] }
 0x1c6   : > { %1307 = vst.msk [vmem:[#allocation4 + $0xb4] sm:$0xf] %vm1291_vm5, %v1226_v29  ;;  %v1547_v29 = vld [vmem:[#allocation2 + $0x18a] sm:$0xff] }
 0x1c7   : > { %v706_v63 = vpop.permute.xlu0 %705  ;;  %1950 = vrot.lane.b32.xlu1 %v9449_v12, %s8984_s25 }
 0x1c8   : > { %790 = vst.msk [vmem:[#allocation4 + $0x90] sm:$0xf] %vm777_vm3, %v706_v63  ;;  %v8010_v63 = vpack.c.bf16 %v1547_v29, %v1547_v29 }
 0x1c9   : > { %2196 = vrot.lane.b32.xlu0 %v9451_v13, %s8983_s7  ;;  %v2187_v18 = vpop.permute.xlu1 %2186 }
 0x1ca   : > { %2267 = vst.msk [vmem:[#allocation4 + $0xb8] sm:$0xf] %vm1291_vm5, %v2187_v18 }
 0x1cb   : > { %v1669_v17 = vpop.permute.xlu0 %1668  ;;  %v2496_v61 = vld [vmem:[#allocation4 + $0x78] sm:$0xff]  ;;  %1245 = vrot.lane.b32.xlu1 %v8034_v42, %s8983_s7  ;;  %v8003_v42 = vpack.c.bf16 %v1540_v27, %v1540_v27 }
 0x1cc   : > { %v8821_v23 = vld [vmem:[#allocation4 + $0x7c] ss:$12 sps:$4 sm:$0xff]   ;;  %1752 = vst.msk [vmem:[#allocation4 + $0x94] sm:$0xf] %vm777_vm3, %v1669_v17  ;;  %v7376_v20 = vcombine.low %v2496_v61, %v2498_v19  ;;  %v1803_v61 = vld [vmem:[#allocation2 + $0x1a0] sm:$0xff] }
 0x1cd   : > { %725 = vrot.lane.b32.xlu0 %v9433_v45, %s8982_s6  ;;  %3044 = vmatprep.mubr.bf16.mxu0 %v8821_v23  ;;  %v716_v15 = vpop.permute.xlu1 %715  ;;  %v8042_v23 = vpack.c.bf16 %v1803_v61, %v1803_v61 }
 0x1ce   : > { %3045 = vmatmul.mubr.bf16.gmra.mxu0 %v7376_v20  ;;  %795 = vst.msk [vmem:[#allocation4 + $0xcc] sm:$0xf] %vm777_vm3, %v716_v15 }
 0x1cf   : > { %v963_v30 = vpop.permute.xlu0 %962  ;;  %2206 = vrot.lane.b32.xlu1 %v9456_v31, %s8983_s7 }
 0x1d0   : > { %1047 = vst.msk [vmem:[#allocation4 + $0x90] sm:$0xf] %vm1034_vm4, %v963_v30 }
 0x1d1   : > { %1688 = vrot.lane.b32.xlu0 %v8001_v36, %s8982_s6  ;;  %v1679_v46 = vpop.permute.xlu1 %1678 }
 0x1d2   : > { %1757 = vst.msk [vmem:[#allocation4 + $0xd0] sm:$0xf] %vm777_vm3, %v1679_v46 }
 0x1d3   : > { %v1925_v34 = vpop.permute.xlu0 %1924  ;;  %735 = vrot.lane.b32.xlu1 %v9440_v6, %s8982_s6 }
 0x1d4   : > { %2008 = vst.msk [vmem:[#allocation4 + $0x94] sm:$0xf] %vm1034_vm4, %v1925_v34 }
 0x1d5   : > { %982 = vrot.lane.b32.xlu0 %v7999_v33, %s8984_s25  ;;  %v973_v45 = vpop.permute.xlu1 %972 }
 0x1d6   : > { %1052 = vst.msk [vmem:[#allocation4 + $0xcc] sm:$0xf] %vm1034_vm4, %v973_v45 }
 0x1d7   : > { %v1220_v14 = vpop.permute.xlu0 %1219  ;;  %1698 = vrot.lane.b32.xlu1 %v8006_v28, %s8982_s6 }
 0x1d8   : > { %1304 = vst.msk [vmem:[#allocation4 + $0x90] sm:$0xf] %vm1291_vm5, %v1220_v14 }
 0x1d9   : > { %1944 = vrot.lane.b32.xlu0 %v9463_v24, %s8984_s25  ;;  %v1935_v55 = vpop.permute.xlu1 %1934 }
 0x1da   : > { %2013 = vst.msk [vmem:[#allocation4 + $0xd0] sm:$0xf] %vm1034_vm4, %v1935_v55 }
 0x1db   : > { %v2181_v51 = vpop.permute.xlu0 %2180  ;;  %992 = vrot.lane.b32.xlu1 %v8004_v0, %s8984_s25 }
 0x1dc   : > { %2264 = vst.msk [vmem:[#allocation4 + $0x94] sm:$0xf] %vm1291_vm5, %v2181_v51 }
 0x1dd   : > { %1239 = vrot.lane.b32.xlu0 %v9445_v26, %s8983_s7  ;;  %v1230_v6 = vpop.permute.xlu1 %1229 }
 0x1de   : > { %1309 = vst.msk [vmem:[#allocation4 + $0xcc] sm:$0xf] %vm1291_vm5, %v1230_v6 }
 0x1df   : > { %v710_v21 = vpop.permute.xlu0 %709  ;;  %1954 = vrot.lane.b32.xlu1 %v9475_v41, %s8984_s25 }
 0x1e0   : > { %792 = vst.msk [vmem:[#allocation4 + $0xa8] sm:$0xf] %vm777_vm3, %v710_v21 }
 0x1e1   : > { %2200 = vrot.lane.b32.xlu0 %v9480_v49, %s8983_s7  ;;  %v2191_v38 = vpop.permute.xlu1 %2190 }
 0x1e2   : > { %2269 = vst.msk [vmem:[#allocation4 + $0xd0] sm:$0xf] %vm1291_vm5, %v2191_v38 }
 0x1e3   : > { %v1673_v35 = vpop.permute.xlu0 %1672  ;;  %v2500_v39 = vld [vmem:[#allocation4 + $0x90] sm:$0xff]  ;;  %1249 = vrot.lane.b32.xlu1 %v9449_v12, %s8983_s7 }
 0x1e4   : > { %v8823_v57 = vld [vmem:[#allocation4 + $0x94] ss:$12 sps:$4 sm:$0xff]   ;;  %1754 = vst.msk [vmem:[#allocation4 + $0xac] sm:$0xf] %vm777_vm3, %v1673_v35  ;;  %v7379_v26 = vcombine.low %v2500_v39, %v2502_v37 }
 0x1e5   : > { %729 = vrot.lane.b32.xlu0 %v9451_v13, %s8982_s6  ;;  %3052 = vmatprep.mubr.bf16.mxu0 %v8823_v57  ;;  %v720_v8 = vpop.permute.xlu1 %719 }
 0x1e6   : > { %3053 = vmatmul.mubr.bf16.gmra.mxu0 %v7379_v26  ;;  %797 = vst.msk [vmem:[#allocation4 + $0xe4] sm:$0xf] %vm777_vm3, %v720_v8 }
 0x1e7   : > { %v967_v40 = vpop.permute.xlu0 %966  ;;  %2210 = vrot.lane.b32.xlu1 %v9482_v53, %s8983_s7 }
 0x1e8   : > { %1049 = vst.msk [vmem:[#allocation4 + $0xa8] sm:$0xf] %vm1034_vm4, %v967_v40 }
 0x1e9   : > { %1692 = vrot.lane.b32.xlu0 %v8003_v42, %s8982_s6  ;;  %v1683_v12 = vpop.permute.xlu1 %1682  ;;  %v2510_v34 = vld [vmem:[#allocation4 + $0xcc] sm:$0xff] }
 0x1ea   : > { %1759 = vst.msk [vmem:[#allocation4 + $0xe8] sm:$0xf] %vm777_vm3, %v1683_v12 }
 0x1eb   : > { %v1929_v10 = vpop.permute.xlu0 %1928  ;;  %739 = vrot.lane.b32.xlu1 %v9456_v31, %s8982_s6 }
 0x1ec   : > { %2010 = vst.msk [vmem:[#allocation4 + $0xac] sm:$0xf] %vm1034_vm4, %v1929_v10 }
 0x1ed   : > { %986 = vrot.lane.b32.xlu0 %v8001_v36, %s8984_s25  ;;  %v977_v13 = vpop.permute.xlu1 %976  ;;  %v2059_v36 = vld [vmem:[#allocation2 + $0x1a1] sm:$0xff] }
 0x1ee   : > { %1054 = vst.msk [vmem:[#allocation4 + $0xe4] sm:$0xf] %vm1034_vm4, %v977_v13  ;;  %v8074_v55 = vpack.c.bf16 %v2059_v36, %v2059_v36 }
 0x1ef   : > { %v1224_v54 = vpop.permute.xlu0 %1223  ;;  %1702 = vrot.lane.b32.xlu1 %v8008_v3, %s8982_s6 }
 0x1f0   : > { %1306 = vst.msk [vmem:[#allocation4 + $0xa8] sm:$0xf] %vm1291_vm5, %v1224_v54 }
 0x1f1   : > { %1948 = vrot.lane.b32.xlu0 %v9489_v58, %s8984_s25  ;;  %v1939_v48 = vpop.permute.xlu1 %1938 }
 0x1f2   : > { %2015 = vst.msk [vmem:[#allocation4 + $0xe8] sm:$0xf] %vm1034_vm4, %v1939_v48 }
 0x1f3   : > { %v2185_v2 = vpop.permute.xlu0 %2184  ;;  %996 = vrot.lane.b32.xlu1 %v8006_v28, %s8984_s25  ;;  %v1544_v28 = vld [vmem:[#allocation2 + $0x16a] sm:$0xff] }
 0x1f4   : > { %2266 = vst.msk [vmem:[#allocation4 + $0xac] sm:$0xf] %vm1291_vm5, %v2185_v2  ;;  %v8007_v6 = vpack.c.bf16 %v1544_v28, %v1544_v28 }
 0x1f5   : > { %1243 = vrot.lane.b32.xlu0 %v9463_v24, %s8983_s7  ;;  %v1234_v31 = vpop.permute.xlu1 %1233  ;;  %v2506_v24 = vld [vmem:[#allocation4 + $0xb4] sm:$0xff] }
 0x1f6   : > { %1311 = vst.msk [vmem:[#allocation4 + $0xe4] sm:$0xf] %vm1291_vm5, %v1234_v31 }
 0x1f7   : > { %v714_v7 = vpop.permute.xlu0 %713  ;;  %1958 = vrot.lane.b32.xlu1 %v9863_v60, %s8984_s25 }
 0x1f8   : > { %794 = vst.msk [vmem:[#allocation4 + $0xc0] sm:$0xf] %vm777_vm3, %v714_v7 }
 0x1f9   : > { %2204 = vrot.lane.b32.xlu0 %v9495_v4, %s8983_s7  ;;  %v2195_v59 = vpop.permute.xlu1 %2194 }
 0x1fa   : > { %2271 = vst.msk [vmem:[#allocation4 + $0xe8] sm:$0xf] %vm1291_vm5, %v2195_v59 }
 0x1fb   : > { %v1677_v33 = vpop.permute.xlu0 %1676  ;;  %v2504_v1 = vld [vmem:[#allocation4 + $0xa8] sm:$0xff]  ;;  %1253 = vrot.lane.b32.xlu1 %v9475_v41, %s8983_s7 }
 0x1fc   : > { %v8825_v22 = vld [vmem:[#allocation4 + $0xac] ss:$12 sps:$4 sm:$0xff]   ;;  %1756 = vst.msk [vmem:[#allocation4 + $0xc4] sm:$0xf] %vm777_vm3, %v1677_v33  ;;  %v7382_v56 = vcombine.low %v2504_v1, %v2506_v24 }
 0x1fd   : > { %733 = vrot.lane.b32.xlu0 %v9480_v49, %s8982_s6  ;;  %3060 = vmatprep.mubr.bf16.mxu0 %v8825_v22  ;;  %v724_v0 = vpop.permute.xlu1 %723  ;;  %v2058_v33 = vld [vmem:[#allocation2 + $0x199] sm:$0xff] }
 0x1fe   : > { %3061 = vmatmul.mubr.bf16.gmra.mxu0 %v7382_v56  ;;  %799 = vst.msk [vmem:[#allocation4 + $0xfc] sm:$0xf] %vm777_vm3, %v724_v0  ;;  %v8073_v22 = vpack.c.bf16 %v2058_v33, %v2058_v33 }
 0x1ff   : > { %v971_v16 = vpop.permute.xlu0 %970  ;;  %2214 = vrot.lane.b32.xlu1 %v9497_v5, %s8983_s7 }
 0x200   : > { %1051 = vst.msk [vmem:[#allocation4 + $0xc0] sm:$0xf] %vm1034_vm4, %v971_v16 }
 0x201   : > { %1696 = vrot.lane.b32.xlu0 %v8005_v32, %s8982_s6  ;;  %v1687_v41 = vpop.permute.xlu1 %1686  ;;  %v2514_v10 = vld [vmem:[#allocation4 + $0xe4] sm:$0xff] }
 0x202   : > { %1761 = vst.msk [vmem:[#allocation4 + $0x100] sm:$0xf] %vm777_vm3, %v1687_v41 }
 0x203   : > { %v1933_v44 = vpop.permute.xlu0 %1932  ;;  %743 = vrot.lane.b32.xlu1 %v9482_v53, %s8982_s6 }
 0x204   : > { %2012 = vst.msk [vmem:[#allocation4 + $0xc4] sm:$0xf] %vm1034_vm4, %v1933_v44 }
 0x205   : > { %990 = vrot.lane.b32.xlu0 %v8003_v42, %s8984_s25  ;;  %v981_v49 = vpop.permute.xlu1 %980 }
 0x206   : > { %1056 = vst.msk [vmem:[#allocation4 + $0xfc] sm:$0xf] %vm1034_vm4, %v981_v49 }
 0x207   : > { %v1228_v18 = vpop.permute.xlu0 %1227  ;;  %1706 = vrot.lane.b32.xlu1 %v8010_v63, %s8982_s6 }
 0x208   : > { %1308 = vst.msk [vmem:[#allocation4 + $0xc0] sm:$0xf] %vm1291_vm5, %v1228_v18 }
 0x209   : > { %1952 = vrot.lane.b32.xlu0 %v9503_v9, %s8984_s25  ;;  %v1943_v5 = vpop.permute.xlu1 %1942 }
 0x20a   : > { %2017 = vst.msk [vmem:[#allocation4 + $0x100] sm:$0xf] %vm1034_vm4, %v1943_v5 }
 0x20b   : > { %v2189_v17 = vpop.permute.xlu0 %2188  ;;  %1000 = vrot.lane.b32.xlu1 %v8008_v3, %s8984_s25 }
 0x20c   : > { %2268 = vst.msk [vmem:[#allocation4 + $0xc4] sm:$0xf] %vm1291_vm5, %v2189_v17  ;;  %v8412_v19 = vpop.f32.mrf.mxu0 }
 0x20d   : > { %1247 = vrot.lane.b32.xlu0 %v9489_v58, %s8983_s7  ;;  %v1238_v53 = vpop.permute.xlu1 %1237 }
 0x20e   : > { %1313 = vst.msk [vmem:[#allocation4 + $0xfc] sm:$0xf] %vm1291_vm5, %v1238_v53  ;;  %v8413_v25 = vpop.f32.mrf.mxu0 }
 0x20f   : > { %v718_v20 = vpop.permute.xlu0 %717  ;;  %1962 = vrot.lane.b32.xlu1 %v8042_v23, %s8984_s25  ;;  %v9902_v15 = vadd.f32 %v8413_v25, %v8412_v19 }
 0x210   : > { %796 = vst.msk [vmem:[#allocation4 + $0xd8] sm:$0xf] %vm777_vm3, %v718_v20 }
 0x211   : > { %2208 = vrot.lane.b32.xlu0 %v9507_v62, %s8983_s7  ;;  %v2199_v30 = vpop.permute.xlu1 %2198 }
 0x212   : > { %2273 = vst.msk [vmem:[#allocation4 + $0x100] sm:$0xf] %vm1291_vm5, %v2199_v30 }
 0x213   : > { %v1681_v58 = vpop.permute.xlu0 %1680  ;;  %v2508_v46 = vld [vmem:[#allocation4 + $0xc0] sm:$0xff]  ;;  %1257 = vrot.lane.b32.xlu1 %v9863_v60, %s8983_s7  ;;  %v8041_v60 = vpack.c.bf16 %v1802_v52, %v1802_v52 }
 0x214   : > { %v8827_v11 = vld [vmem:[#allocation4 + $0xc4] ss:$12 sps:$4 sm:$0xff]   ;;  %1758 = vst.msk [vmem:[#allocation4 + $0xdc] sm:$0xf] %vm777_vm3, %v1681_v58  ;;  %v7385_v45 = vcombine.low %v2508_v46, %v2510_v34 }
 0x215   : > { %737 = vrot.lane.b32.xlu0 %v9495_v4, %s8982_s6  ;;  %3068 = vmatprep.mubr.bf16.mxu0 %v8827_v11  ;;  %v728_v14 = vpop.permute.xlu1 %727  ;;  %v1800_v4 = vld [vmem:[#allocation2 + $0x180] sm:$0xff] }
 0x216   : > { %3069 = vmatmul.mubr.bf16.gmra.mxu0 %v7385_v45  ;;  %801 = vst.msk [vmem:[#allocation4 + $0x114] sm:$0xf] %vm777_vm3, %v728_v14  ;;  %v8039_v37 = vpack.c.bf16 %v1800_v4, %v1800_v4 }
 0x217   : > { %v975_v51 = vpop.permute.xlu0 %974  ;;  %2218 = vrot.lane.b32.xlu1 %v8074_v55, %s8983_s7 }
 0x218   : > { %1053 = vst.msk [vmem:[#allocation4 + $0xd8] sm:$0xf] %vm1034_vm4, %v975_v51 }
 0x219   : > { %1700 = vrot.lane.b32.xlu0 %v8007_v6, %s8982_s6  ;;  %v1691_v21 = vpop.permute.xlu1 %1690  ;;  %v2518_v16 = vld [vmem:[#allocation4 + $0xfc] sm:$0xff] }
 0x21a   : > { %1763 = vst.msk [vmem:[#allocation4 + $0x118] sm:$0xf] %vm777_vm3, %v1691_v21 }
 0x21b   : > { %v1937_v38 = vpop.permute.xlu0 %1936 }
 0x21c   : > { %2014 = vst.msk [vmem:[#allocation4 + $0xdc] sm:$0xf] %vm1034_vm4, %v1937_v38 }
 0x21d   : > { %994 = vrot.lane.b32.xlu0 %v8005_v32, %s8984_s25  ;;  %v985_v35 = vpop.permute.xlu1 %984 }
 0x21e   : > { %1058 = vst.msk [vmem:[#allocation4 + $0x114] sm:$0xf] %vm1034_vm4, %v985_v35 }
 0x21f   : > { %v1232_v39 = vpop.permute.xlu0 %1231 }
 0x220   : > { %1310 = vst.msk [vmem:[#allocation4 + $0xd8] sm:$0xf] %vm1291_vm5, %v1232_v39 }
 0x221   : > { %1956 = vrot.lane.b32.xlu0 %v8039_v37, %s8984_s25  ;;  %v1947_v57 = vpop.permute.xlu1 %1946 }
 0x222   : > { %2019 = vst.msk [vmem:[#allocation4 + $0x118] sm:$0xf] %vm1034_vm4, %v1947_v57 }
 0x223   : > { %v2193_v26 = vpop.permute.xlu0 %2192 }
 0x224   : > { %2270 = vst.msk [vmem:[#allocation4 + $0xdc] sm:$0xf] %vm1291_vm5, %v2193_v26 }
 0x225   : > { %1251 = vrot.lane.b32.xlu0 %v9503_v9, %s8983_s7  ;;  %v1242_v27 = vpop.permute.xlu1 %1241  ;;  %v1546_v9 = vld [vmem:[#allocation2 + $0x182] sm:$0xff] }
 0x226   : > { %1315 = vst.msk [vmem:[#allocation4 + $0x114] sm:$0xf] %vm1291_vm5, %v1242_v27  ;;  %v8009_v54 = vpack.c.bf16 %v1546_v9, %v1546_v9 }
 0x227   : > { %v722_v8 = vpop.permute.xlu0 %721 }
 0x228   : > { %798 = vst.msk [vmem:[#allocation4 + $0xf0] sm:$0xf] %vm777_vm3, %v722_v8 }
 0x229   : > { %2212 = vrot.lane.b32.xlu0 %v9520_v43, %s8983_s7  ;;  %v2203_v40 = vpop.permute.xlu1 %2202 }
 0x22a   : > { %2275 = vst.msk [vmem:[#allocation4 + $0x118] sm:$0xf] %vm1291_vm5, %v2203_v40 }
 0x22b   : > { %v1685_v42 = vpop.permute.xlu0 %1684  ;;  %v2512_v12 = vld [vmem:[#allocation4 + $0xd8] sm:$0xff] }
 0x22c   : > { %v8829_v47 = vld [vmem:[#allocation4 + $0xdc] ss:$12 sps:$4 sm:$0xff]   ;;  %1760 = vst.msk [vmem:[#allocation4 + $0xf4] sm:$0xf] %vm777_vm3, %v1685_v42  ;;  %v7388_v13 = vcombine.low %v2512_v12, %v2514_v10 }
 0x22d   : > { %741 = vrot.lane.b32.xlu0 %v9507_v62, %s8982_s6  ;;  %3076 = vmatprep.mubr.bf16.mxu0 %v8829_v47  ;;  %v732_v3 = vpop.permute.xlu1 %731 }
 0x22e   : > { %3077 = vmatmul.mubr.bf16.gmra.mxu0 %v7388_v13  ;;  %803 = vst.msk [vmem:[#allocation4 + $0x12c] sm:$0xf] %vm777_vm3, %v732_v3 }
 0x22f   : > { %v979_v43 = vpop.permute.xlu0 %978 }
 0x230   : > { %1055 = vst.msk [vmem:[#allocation4 + $0xf0] sm:$0xf] %vm1034_vm4, %v979_v43 }
 0x231   : > { %1704 = vrot.lane.b32.xlu0 %v8009_v54, %s8982_s6  ;;  %v1695_v48 = vpop.permute.xlu1 %1694  ;;  %v2522_v30 = vld [vmem:[#allocation4 + $0x114] sm:$0xff] }
 0x232   : > { %1765 = vst.msk [vmem:[#allocation4 + $0x130] sm:$0xf] %vm777_vm3, %v1695_v48 }
 0x233   : > { %v1941_v2 = vpop.permute.xlu0 %1940 }
 0x234   : > { %2016 = vst.msk [vmem:[#allocation4 + $0xf4] sm:$0xf] %vm1034_vm4, %v1941_v2 }
 0x235   : > { %998 = vrot.lane.b32.xlu0 %v8007_v6, %s8984_s25  ;;  %v989_v62 = vpop.permute.xlu1 %988 }
 0x236   : > { %1060 = vst.msk [vmem:[#allocation4 + $0x12c] sm:$0xf] %vm1034_vm4, %v989_v62 }
 0x237   : > { %v1236_v31 = vpop.permute.xlu0 %1235 }
 0x238   : > { %1312 = vst.msk [vmem:[#allocation4 + $0xf0] sm:$0xf] %vm1291_vm5, %v1236_v31 }
 0x239   : > { %1960 = vrot.lane.b32.xlu0 %v8041_v60, %s8984_s25  ;;  %v1951_v7 = vpop.permute.xlu1 %1950 }
 0x23a   : > { %2021 = vst.msk [vmem:[#allocation4 + $0x130] sm:$0xf] %vm1034_vm4, %v1951_v7 }
 0x23b   : > { %v2197_v59 = vpop.permute.xlu0 %2196 }
 0x23c   : > { %2272 = vst.msk [vmem:[#allocation4 + $0xf4] sm:$0xf] %vm1291_vm5, %v2197_v59 }
 0x23d   : > { %1255 = vrot.lane.b32.xlu0 %v8039_v37, %s8983_s7  ;;  %v1246_v1 = vpop.permute.xlu1 %1245 }
 0x23e   : > { %1317 = vst.msk [vmem:[#allocation4 + $0x12c] sm:$0xf] %vm1291_vm5, %v1246_v1 }
 0x23f   : > { %v726_v24 = vpop.permute.xlu0 %725 }
 0x240   : > { %800 = vst.msk [vmem:[#allocation4 + $0x108] sm:$0xf] %vm777_vm3, %v726_v24 }
 0x241   : > { %2216 = vrot.lane.b32.xlu0 %v8073_v22, %s8983_s7  ;;  %v2207_v56 = vpop.permute.xlu1 %2206  ;;  %v9993_v22 = vpop.f32.mrf.mxu0 }
 0x242   : > { %2277 = vst.msk [vmem:[#allocation4 + $0x130] sm:$0xf] %vm1291_vm5, %v2207_v56 }
 0x243   : > { %v1689_v50 = vpop.permute.xlu0 %1688  ;;  %v2516_v0 = vld [vmem:[#allocation4 + $0xf0] sm:$0xff] }
 0x244   : > { %v8831_v32 = vld [vmem:[#allocation4 + $0xf4] ss:$12 sps:$4 sm:$0xff]   ;;  %1762 = vst.msk [vmem:[#allocation4 + $0x10c] sm:$0xf] %vm777_vm3, %v1689_v50  ;;  %v7391_v41 = vcombine.low %v2516_v0, %v2518_v16  ;;  %v9996_v50 = vpop.f32.mrf.mxu0 }
 0x245   : > { %3084 = vmatprep.mubr.bf16.mxu0 %v8831_v32  ;;  %v736_v44 = vpop.permute.xlu1 %735 }
 0x246   : > { %3085 = vmatmul.mubr.bf16.gmra.mxu0 %v7391_v41  ;;  %805 = vst.msk [vmem:[#allocation4 + $0x144] sm:$0xf] %vm777_vm3, %v736_v44  ;;  %v9998_v16 = vpop.f32.mrf.mxu0 }
 0x247   : > { %v983_v29 = vpop.permute.xlu0 %982 }
 0x248   : > { %1057 = vst.msk [vmem:[#allocation4 + $0x108] sm:$0xf] %vm1034_vm4, %v983_v29  ;;  %v8419_v32 = vpop.f32.mrf.mxu0 }
 0x249   : > { %v1699_v49 = vpop.permute.xlu1 %1698  ;;  %v2526_v39 = vld [vmem:[#allocation4 + $0x12c] sm:$0xff] }
 0x24a   : > { %1767 = vst.msk [vmem:[#allocation4 + $0x148] sm:$0xf] %vm777_vm3, %v1699_v49  ;;  %v8421_v29 = vpop.f32.mrf.mxu0 }
 0x24b   : > { %v1945_v63 = vpop.permute.xlu0 %1944 }
 0x24c   : > { %2018 = vst.msk [vmem:[#allocation4 + $0x10c] sm:$0xf] %vm1034_vm4, %v1945_v63  ;;  %v8422_v49 = vpop.f32.mrf.mxu0 }
 0x24d   : > { %v993_v18 = vpop.permute.xlu1 %992 }
 0x24e   : > { %1062 = vst.msk [vmem:[#allocation4 + $0x144] sm:$0xf] %vm1034_vm4, %v993_v18  ;;  %v8424_v63 = vpop.f32.mrf.mxu0 }
 0x24f   : > { %v1240_v5 = vpop.permute.xlu0 %1239 }
 0x250   : > { %1314 = vst.msk [vmem:[#allocation4 + $0x108] sm:$0xf] %vm1291_vm5, %v1240_v5  ;;  %v8425_v18 = vpop.f32.mrf.mxu0 }
 0x251   : > { %v1955_v17 = vpop.permute.xlu1 %1954 }
 0x252   : > { %2023 = vst.msk [vmem:[#allocation4 + $0x148] sm:$0xf] %vm1034_vm4, %v1955_v17  ;;  %v10001_v5 = vpop.f32.mrf.mxu0 }
 0x253   : > { %v2201_v61 = vpop.permute.xlu0 %2200 }
 0x254   : > { %2274 = vst.msk [vmem:[#allocation4 + $0x10c] sm:$0xf] %vm1291_vm5, %v2201_v61  ;;  %v10003_v17 = vpop.f32.mrf.mxu0 }
 0x255   : > { %v1250_v53 = vpop.permute.xlu1 %1249 }
 0x256   : > { %1319 = vst.msk [vmem:[#allocation4 + $0x144] sm:$0xf] %vm1291_vm5, %v1250_v53 }
 0x257   : > { %v730_v19 = vpop.permute.xlu0 %729 }
 0x258   : > { %802 = vst.msk [vmem:[#allocation4 + $0x120] sm:$0xf] %vm777_vm3, %v730_v19 }
 0x259   : > { %v2211_v23 = vpop.permute.xlu1 %2210 }
 0x25a   : > { %2279 = vst.msk [vmem:[#allocation4 + $0x148] sm:$0xf] %vm1291_vm5, %v2211_v23 }
 0x25b   : > { %v1693_v20 = vpop.permute.xlu0 %1692  ;;  %v2520_v25 = vld [vmem:[#allocation4 + $0x108] sm:$0xff] }
 0x25c   : > { %v8833_v36 = vld [vmem:[#allocation4 + $0x10c] ss:$12 sps:$4 sm:$0xff]   ;;  %1764 = vst.msk [vmem:[#allocation4 + $0x124] sm:$0xf] %vm777_vm3, %v1693_v20  ;;  %v7394_v58 = vcombine.low %v2520_v25, %v2522_v30 }
 0x25d   : > { %3092 = vmatprep.mubr.bf16.mxu0 %v8833_v36  ;;  %v740_v46 = vpop.permute.xlu1 %739 }
 0x25e   : > { %3093 = vmatmul.mubr.bf16.gmra.mxu0 %v7394_v58  ;;  %807 = vst.msk [vmem:[#allocation4 + $0x15c] sm:$0xf] %vm777_vm3, %v740_v46  ;;  %v10005_v61 = vpop.f32.mrf.mxu0 }
 0x25f   : > { %v987_v34 = vpop.permute.xlu0 %986 }
 0x260   : > { %1059 = vst.msk [vmem:[#allocation4 + $0x120] sm:$0xf] %vm1034_vm4, %v987_v34  ;;  %v10007_v53 = vpop.f32.mrf.mxu0 }
 0x261   : > { %v1703_v11 = vpop.permute.xlu1 %1702 }
 0x262   : > { %1769 = vst.msk [vmem:[#allocation4 + $0x160] sm:$0xf] %vm777_vm3, %v1703_v11  ;;  %v10009_v19 = vpop.f32.mrf.mxu0 }
 0x263   : > { %v1949_v45 = vpop.permute.xlu0 %1948 }
 0x264   : > { %2020 = vst.msk [vmem:[#allocation4 + $0x124] sm:$0xf] %vm1034_vm4, %v1949_v45  ;;  %v10011_v23 = vpop.f32.mrf.mxu0 }
 0x265   : > { %v997_v28 = vpop.permute.xlu1 %996 }
 0x266   : > { %1064 = vst.msk [vmem:[#allocation4 + $0x15c] sm:$0xf] %vm1034_vm4, %v997_v28 }
 0x267   : > { %v1244_v14 = vpop.permute.xlu0 %1243 }
 0x268   : > { %1316 = vst.msk [vmem:[#allocation4 + $0x120] sm:$0xf] %vm1291_vm5, %v1244_v14 }
 0x269   : > { %v1959_v55 = vpop.permute.xlu1 %1958 }
 0x26a   : > { %2025 = vst.msk [vmem:[#allocation4 + $0x160] sm:$0xf] %vm1034_vm4, %v1959_v55 }
 0x26b   : > { %v2205_v51 = vpop.permute.xlu0 %2204 }
 0x26c   : > { %2276 = vst.msk [vmem:[#allocation4 + $0x124] sm:$0xf] %vm1291_vm5, %v2205_v51  ;;  %v8662_v51 = vpop.f32.mrf.mxu1 }
 0x26d   : > { %v1254_v6 = vpop.permute.xlu1 %1253 }
 0x26e   : > { %1321 = vst.msk [vmem:[#allocation4 + $0x15c] sm:$0xf] %vm1291_vm5, %v1254_v6 }
 0x26f   : > { %v734_v21 = vpop.permute.xlu0 %733 }
 0x270   : > { %804 = vst.msk [vmem:[#allocation4 + $0x138] sm:$0xf] %vm777_vm3, %v734_v21  ;;  %v3167_v21 = vpop.f32.mrf.mxu1 }
 0x271   : > { %v2215_v38 = vpop.permute.xlu1 %2214 }
 0x272   : > { %2281 = vst.msk [vmem:[#allocation4 + $0x160] sm:$0xf] %vm1291_vm5, %v2215_v38 }
 0x273   : > { %v1697_v4 = vpop.permute.xlu0 %1696  ;;  %v2524_v35 = vld [vmem:[#allocation4 + $0x120] sm:$0xff] }
 0x274   : > { %v8835_v37 = vld [vmem:[#allocation4 + $0x124] ss:$12 sps:$4 sm:$0xff]   ;;  %1766 = vst.msk [vmem:[#allocation4 + $0x13c] sm:$0xf] %vm777_vm3, %v1697_v4  ;;  %v7397_v57 = vcombine.low %v2524_v35, %v2526_v39  ;;  %v8663_v4 = vpop.f32.mrf.mxu1 }
 0x275   : > { %3100 = vmatprep.mubr.bf16.mxu0 %v8835_v37  ;;  %v744_v26 = vpop.permute.xlu1 %743 }
 0x276   : > { %3101 = vmatmul.mubr.bf16.gmra.mxu0 %v7397_v57  ;;  %809 = vst.msk [vmem:[#allocation4 + $0x174] sm:$0xf] %vm777_vm3, %v744_v26  ;;  %v10013_v20 = vpop.f32.mrf.mxu0  ;;  %v3170_v39 = vpop.f32.mrf.mxu1 }
 0x277   : > { %v991_v27 = vpop.permute.xlu0 %990 }
 0x278   : > { %1061 = vst.msk [vmem:[#allocation4 + $0x138] sm:$0xf] %vm1034_vm4, %v991_v27  ;;  %v10015_v25 = vpop.f32.mrf.mxu0  ;;  %v8666_v57 = vpop.f32.mrf.mxu1 }
 0x279   : > { %v1707_v8 = vpop.permute.xlu1 %1706 }
 0x27a   : > { %1771 = vst.msk [vmem:[#allocation4 + $0x178] sm:$0xf] %vm777_vm3, %v1707_v8  ;;  %v10017_v30 = vpop.f32.mrf.mxu0  ;;  %v3183_v27 = vpop.f32.mrf.mxu1 }
 0x27b   : > { %v1953_v40 = vpop.permute.xlu0 %1952 }
 0x27c   : > { %2022 = vst.msk [vmem:[#allocation4 + $0x13c] sm:$0xf] %vm1034_vm4, %v1953_v40  ;;  %v10019_v36 = vpop.f32.mrf.mxu0  ;;  %v8667_v40 = vpop.f32.mrf.mxu1 }
 0x27d   : > { %v1001_v42 = vpop.permute.xlu1 %1000 }
 0x27e   : > { %1066 = vst.msk [vmem:[#allocation4 + $0x174] sm:$0xf] %vm1034_vm4, %v1001_v42 }
 0x27f   : > { %v1248_v12 = vpop.permute.xlu0 %1247 }
 0x280   : > { %1318 = vst.msk [vmem:[#allocation4 + $0x138] sm:$0xf] %vm1291_vm5, %v1248_v12  ;;  %v3186_v12 = vpop.f32.mrf.mxu1 }
 0x281   : > { %v1963_v10 = vpop.permute.xlu1 %1962 }
 0x282   : > { %2027 = vst.msk [vmem:[#allocation4 + $0x178] sm:$0xf] %vm1034_vm4, %v1963_v10 }
 0x283   : > { %v2209_v47 = vpop.permute.xlu0 %2208 }
 0x284   : > { %2278 = vst.msk [vmem:[#allocation4 + $0x13c] sm:$0xf] %vm1291_vm5, %v2209_v47 }
 0x285   : > { %v1258_v13 = vpop.permute.xlu1 %1257 }
 0x286   : > { %1323 = vst.msk [vmem:[#allocation4 + $0x174] sm:$0xf] %vm1291_vm5, %v1258_v13  ;;  %v10055_v13 = vpop.f32.mrf.mxu1 }
 0x287   : > { %v738_v9 = vpop.permute.xlu0 %737  ;;  %v8839_v48 = vld [vmem:[#allocation4 + $0x138] ss:$12 sps:$4 sm:$0xff]  }
 0x288   : > { %806 = vst.msk [vmem:[#allocation4 + $0x150] sm:$0xf] %vm777_vm3, %v738_v9 }
 0x289   : > { %v2219_v3 = vpop.permute.xlu1 %2218 }
 0x28a   : > { %2283 = vst.msk [vmem:[#allocation4 + $0x178] sm:$0xf] %vm1291_vm5, %v2219_v3  ;;  %v10059_v3 = vpop.f32.mrf.mxu1 }
 0x28b   : > { %v1701_v43 = vpop.permute.xlu0 %1700  ;;  %v8837_v54 = vld [vmem:[#allocation4 + $0x13c] ss:$12 sps:$4 sm:$0xff]  }
 0x28c   : > { %1768 = vst.msk [vmem:[#allocation4 + $0x154] sm:$0xf] %vm777_vm3, %v1701_v43  ;;  %3108 = vmatprep.mubr.bf16.mxu0 %v8837_v54  ;;  %v10063_v54 = vpop.f32.mrf.mxu1 }
 0x28d   : > { %3109 = vmatmul.mubr.bf16.gmra.mxu0 %v8839_v48 }
 0x28e   : > { %v10021_v58 = vpop.f32.mrf.mxu0 }
 0x28f   : > { %v995_v2 = vpop.permute.xlu0 %994 }
 0x290   : > { %1063 = vst.msk [vmem:[#allocation4 + $0x150] sm:$0xf] %vm1034_vm4, %v995_v2  ;;  %v10023_v46 = vpop.f32.mrf.mxu0  ;;  %v10067_v2 = vpop.f32.mrf.mxu1 }
 0x292   : > { %v10025_v34 = vpop.f32.mrf.mxu0 }
 0x293   : > { %v1957_v52 = vpop.permute.xlu0 %1956 }
 0x294   : > { %2024 = vst.msk [vmem:[#allocation4 + $0x154] sm:$0xf] %vm1034_vm4, %v1957_v52  ;;  %v10027_v11 = vpop.f32.mrf.mxu0 }
 0x297   : > { %v1252_v62 = vpop.permute.xlu0 %1251 }
 0x298   : > { %1320 = vst.msk [vmem:[#allocation4 + $0x150] sm:$0xf] %vm1291_vm5, %v1252_v62  ;;  %v10071_v62 = vpop.f32.mrf.mxu1 }
 0x29b   : > { %v2213_v31 = vpop.permute.xlu0 %2212 }
 0x29c   : > { %2280 = vst.msk [vmem:[#allocation4 + $0x154] sm:$0xf] %vm1291_vm5, %v2213_v31 }
 0x29f   : > { %v742_v60 = vpop.permute.xlu0 %741  ;;  %v8842_v33 = vld [vmem:[#allocation4 + $0x150] ss:$12 sps:$4 sm:$0xff]  }
 0x2a0   : > { %808 = vst.msk [vmem:[#allocation4 + $0x168] sm:$0xf] %vm777_vm3, %v742_v60  ;;  %v10075_v60 = vpop.f32.mrf.mxu1 }
 0x2a3   : > { %v1705_v7 = vpop.permute.xlu0 %1704  ;;  %v8840_v59 = vld [vmem:[#allocation4 + $0x154] ss:$12 sps:$4 sm:$0xff]  }
 0x2a4   : > { %1770 = vst.msk [vmem:[#allocation4 + $0x16c] sm:$0xf] %vm777_vm3, %v1705_v7  ;;  %3116 = vmatprep.mubr.bf16.mxu0 %v8840_v59  ;;  %v10079_v59 = vpop.f32.mrf.mxu1 }
 0x2a5   : > { %3117 = vmatmul.mubr.bf16.gmra.mxu0 %v8842_v33 }
 0x2a6   : > { %v10029_v45 = vpop.f32.mrf.mxu0 }
 0x2a7   : > { %v999_v1 = vpop.permute.xlu0 %998 }
 0x2a8   : > { %1065 = vst.msk [vmem:[#allocation4 + $0x168] sm:$0xf] %vm1034_vm4, %v999_v1  ;;  %v10031_v28 = vpop.f32.mrf.mxu0 }
 0x2aa   : > { %v10033_v14 = vpop.f32.mrf.mxu0 }
 0x2ab   : > { %v1961_v24 = vpop.permute.xlu0 %1960 }
 0x2ac   : > { %2026 = vst.msk [vmem:[#allocation4 + $0x16c] sm:$0xf] %vm1034_vm4, %v1961_v24  ;;  %v10035_v55 = vpop.f32.mrf.mxu0  ;;  %v8417_v24 = vadd.f32 %v9996_v50, %v9993_v22 }
 0x2af   : > { %v1256_v56 = vpop.permute.xlu0 %1255 }
 0x2b0   : > { %1322 = vst.msk [vmem:[#allocation4 + $0x168] sm:$0xf] %vm1291_vm5, %v1256_v56  ;;  %v10087_v56 = vpop.f32.mrf.mxu1 }
 0x2b3   : > { %v2217_v0 = vpop.permute.xlu0 %2216 }
 0x2b4   : > { %2282 = vst.msk [vmem:[#allocation4 + $0x16c] sm:$0xf] %vm1291_vm5, %v2217_v0  ;;  %v8420_v0 = vadd.f32 %v8419_v32, %v9998_v16  ;;  %v8429_v32 = vadd.f32 %v10003_v17, %v10001_v5  ;;  %v8435_v5 = vadd.f32 %v10011_v23, %v10009_v19 }
 0x2b7   : > { %v8845_v44 = vld [vmem:[#allocation4 + $0x168] ss:$12 sps:$4 sm:$0xff]  }
 0x2bb   : > { %v8843_v41 = vld [vmem:[#allocation4 + $0x16c] ss:$12 sps:$4 sm:$0xff]  }
 0x2bc   : > { %3124 = vmatprep.mubr.bf16.mxu0 %v8843_v41  ;;  %v10090_v41 = vpop.f32.mrf.mxu1 }
 0x2bd   : > { %3125 = vmatmul.mubr.bf16.gmra.mxu0 %v8845_v44 }
 0x2be   : > { %v10037_v6 = vpop.f32.mrf.mxu0 }
 0x2c0   : > { %v10039_v38 = vpop.f32.mrf.mxu0 }
 0x2c2   : > { %v10041_v35 = vpop.f32.mrf.mxu0 }
 0x2c4   : > { %v10043_v37 = vpop.f32.mrf.mxu0 }
 0x2d6   : > { %v10045_v26 = vpop.f32.mrf.mxu0 }
 0x2d8   : > { %v10047_v8 = vpop.f32.mrf.mxu0 }
 0x2da   : > { %v10049_v42 = vpop.f32.mrf.mxu0 }
 0x2dc   : > { %v10051_v10 = vpop.f32.mrf.mxu0 }
 0x2ee   : > { %v10053_v47 = vpop.f32.mrf.mxu0 }
 0x2f0   : > { %v10057_v9 = vpop.f32.mrf.mxu0 }
 0x2f2   : > { %v10061_v43 = vpop.f32.mrf.mxu0 }
 0x2f4   : > { %v10065_v48 = vpop.f32.mrf.mxu0 }
 0x2f5   : > { %12202 = vst [vmem:[#allocation8_spill] sm:$0xff] %v10065_v48  ;;  %v10101_v48 = vpop.f32.mrf.mxu1 }
 0x306   : > { %v10069_v52 = vpop.f32.mrf.mxu0 }
 0x307   : > { %12203 = vst [vmem:[#allocation9_spill] sm:$0xff] %v10069_v52  ;;  %v10097_v52 = vadd.f32 %v9902_v15, %v3167_v21  ;;  %v8432_v15 = vadd.f32 %v10007_v53, %v10005_v61 }
 0x308   : > { %v10073_v31 = vpop.f32.mrf.mxu0 }
 0x309   : > { %12204 = vst [vmem:[#allocation10_spill] sm:$0xff] %v10073_v31  ;;  %v10094_v31 = vadd.f32 %v8417_v24, %v3170_v39  ;;  %v3294_v21 = vsel %vm243_vm0, %v10097_v52, 0.0  ;;  %v10134_v39 = vadd.f32 %v8429_v32, %v3186_v12 }
 0x30a   : > { %v10077_v7 = vpop.f32.mrf.mxu0 }
 0x30b   : > { %12205 = vst [vmem:[#allocation11_spill] sm:$0xff] %v10077_v7  ;;  %v8423_v7 = vadd.f32 %v8422_v49, %v8421_v29  ;;  %v3365_v50 = vmul.f32 %v10094_v31, %v10094_v31  ;;  %v3364_v29 = vmul.f32 %v10097_v52, %v10097_v52  ;;  %v3295_v49 = vsel %vm243_vm0, %v10094_v31, 0.0 }
 0x30c   : > { %v10081_v33 = vpop.f32.mrf.mxu0 }
 0x30d   : > { %12206 = vst [vmem:[#allocation12_spill] sm:$0xff] %v10081_v33  ;;  %v10099_v33 = vadd.f32 %v8662_v51, %v8420_v0  ;;  %v10107_v16 = vadd.f32 %v8663_v4, %v8423_v7  ;;  %v10121_v51 = vpop.f32.mrf.mxu1  ;;  %v3397_v61 = vsel %vm243_vm0, %v3365_v50, 0.0  ;;  %v3296_v7 = vadd.f32 %v3295_v49, %v3294_v21 }
 0x30e   : > { %v8438_v50 = vadd.f32 %v10015_v25, %v10013_v20  ;;  %v10150_v49 = vadd.f32 %v8667_v40, %v8435_v5  ;;  %v8441_v21 = vadd.f32 %v10019_v36, %v10017_v30  ;;  %v8846_v20 = vld [vmem:[%s12195_s2 + $0x88] sm:$0xff]   ;;  %v8444_v36 = vadd.f32 %v10023_v46, %v10021_v58 }
 0x30f   : > { %v3297_v53 = vsel %vm243_vm0, %v10099_v33, 0.0  ;;  %v3367_v4 = vmul.f32 %v10107_v16, %v10107_v16  ;;  %v3299_v23 = vsel %vm243_vm0, %v10107_v16, 0.0  ;;  %v10148_v12 = vpop.f32.mrf.mxu1  ;;  %8692 = vmatprep.subr.bf16.mxu0 %v8846_v20  ;;  %v8447_v58 = vadd.f32 %v10027_v11, %v10025_v34 }
 0x310   : > { %v10172_v30 = vadd.f32 %v8438_v50, %v10059_v3  ;;  %8693 = vmatpush3.bf16.msra.mxu0 %v8846_v20  ;;  %v10185_v50 = vadd.f32 %v8441_v21, %v10067_v2  ;;  %v10199_v2 = vadd.f32 %v10055_v13, %v8444_v36  ;;  %v8450_v34 = vadd.f32 %v10031_v28, %v10029_v45 }
 0x311   : > { %v10162_v25 = vpop.f32.mrf.mxu1  ;;  %v8453_v13 = vadd.f32 %v10035_v55, %v10033_v14 }
 0x313   : > { %v10189_v46 = vpop.f32.mrf.mxu1 }
 0x315   : > { %v10213_v36 = vpop.f32.mrf.mxu1 }
 0x31e   : > { %v10083_v1 = vpop.f32.mrf.mxu0 }
 0x31f   : > { %12207 = vst [vmem:[#allocation13_spill] sm:$0xff] %v10083_v1  ;;  %v8426_v1 = vadd.f32 %v8425_v18, %v8424_v63  ;;  %v3366_v63 = vmul.f32 %v10099_v33, %v10099_v33 }
 0x320   : > { %v10092_v44 = vpop.f32.mrf.mxu0 }
 0x321   : > { %v10119_v18 = vadd.f32 %v8426_v1, %v3183_v27  ;;  %v3396_v27 = vsel %vm243_vm0, %v3364_v29, 0.0  ;;  %v10137_v1 = vadd.f32 %v8666_v57, %v8432_v15  ;;  %v3399_v19 = vsel %vm243_vm0, %v3366_v63, 0.0 }
 0x322   : > { %v10103_v22 = vpop.f32.mrf.mxu0  ;;  %v3398_v32 = vadd.f32 %v3397_v61, %v3396_v27  ;;  %v3298_v29 = vadd.f32 %v3297_v53, %v3296_v7  ;;  %v3401_v57 = vsel %vm243_vm0, %v3367_v4, 0.0  ;;  %v3369_v63 = vmul.f32 %v10134_v39, %v10134_v39 }
 0x323   : > { %v3368_v0 = vmul.f32 %v10119_v18, %v10119_v18  ;;  %v3301_v15 = vsel %vm243_vm0, %v10119_v18, 0.0  ;;  %v3370_v5 = vmul.f32 %v10137_v1, %v10137_v1  ;;  %v3303_v27 = vsel %vm243_vm0, %v10134_v39, 0.0 }
 0x324   : > { %v10127_v17 = vpop.f32.mrf.mxu0  ;;  %v3400_v61 = vadd.f32 %v3399_v19, %v3398_v32  ;;  %v3300_v40 = vadd.f32 %v3299_v23, %v3298_v29  ;;  %v3371_v23 = vmul.f32 %v10150_v49, %v10150_v49  ;;  %v3405_v32 = vsel %vm243_vm0, %v3369_v63, 0.0 }
 0x325   : > { %v3403_v4 = vsel %vm243_vm0, %v3368_v0, 0.0  ;;  %v8847_v0 = vld [vmem:[%s12195_s2 + $0x80] sm:$0xff]   ;;  %v3305_v3 = vsel %vm243_vm0, %v10137_v1, 0.0  ;;  %v3307_v63 = vsel %vm243_vm0, %v10150_v49, 0.0 }
 0x326   : > { %v3402_v7 = vadd.f32 %v3401_v57, %v3400_v61  ;;  %v3302_v19 = vadd.f32 %v3301_v15, %v3300_v40  ;;  %v3407_v15 = vsel %vm243_vm0, %v3370_v5, 0.0  ;;  %8694 = vmatprep.subr.bf16.mxu0 %v8847_v0  ;;  %v3372_v61 = vmul.f32 %v10172_v30, %v10172_v30 }
 0x327   : > { %v3409_v40 = vsel %vm243_vm0, %v3371_v23, 0.0  ;;  %8695 = vmatpush3.bf16.msra.mxu0 %v8847_v0  ;;  %v3309_v5 = vsel %vm243_vm0, %v10172_v30, 0.0  ;;  %v3311_v0 = vsel %vm243_vm0, %v10185_v50, 0.0 }
 0x328   : > { %v3404_v29 = vadd.f32 %v3403_v4, %v3402_v7  ;;  %v3304_v57 = vadd.f32 %v3303_v27, %v3302_v19  ;;  %v3373_v4 = vmul.f32 %v10185_v50, %v10185_v50  ;;  %v10209_v27 = vadd.f32 %v10063_v54, %v8447_v58 }
 0x329   : > { %v8456_v7 = vadd.f32 %v10039_v38, %v10037_v6  ;;  %v3411_v23 = vsel %vm243_vm0, %v3372_v61, 0.0  ;;  %v3374_v54 = vmul.f32 %v10199_v2, %v10199_v2  ;;  %v3313_v38 = vsel %vm243_vm0, %v10199_v2, 0.0 }
 0x32a   : > { %v3406_v11 = vadd.f32 %v3405_v32, %v3404_v29  ;;  %v3306_v21 = vadd.f32 %v3305_v3, %v3304_v57  ;;  %v10225_v32 = vadd.f32 %v8450_v34, %v10075_v60  ;;  %v8459_v3 = vadd.f32 %v10043_v37, %v10041_v35  ;;  %v10239_v60 = vpop.f32.mrf.mxu1 }
 0x32b   : > { %v3413_v6 = vsel %vm243_vm0, %v3373_v4, 0.0  ;;  %v3375_v29 = vmul.f32 %v10209_v27, %v10209_v27  ;;  %v10237_v57 = vadd.f32 %v8453_v13, %v10087_v56  ;;  %v10242_v61 = vadd.f32 %v10071_v62, %v8456_v7 }
 0x32c   : > { %v3408_v45 = vadd.f32 %v3407_v15, %v3406_v11  ;;  %v3308_v28 = vadd.f32 %v3307_v63, %v3306_v21  ;;  %v3415_v35 = vsel %vm243_vm0, %v3374_v54, 0.0  ;;  %v3315_v37 = vsel %vm243_vm0, %v10209_v27, 0.0  ;;  %v10251_v56 = vpop.f32.mrf.mxu1 }
 0x32d   : > { %v3376_v34 = vmul.f32 %v10225_v32, %v10225_v32  ;;  %v8462_v11 = vadd.f32 %v10047_v8, %v10045_v26  ;;  %v3417_v4 = vsel %vm243_vm0, %v3375_v29, 0.0  ;;  %v3317_v13 = vsel %vm243_vm0, %v10225_v32, 0.0  ;;  %v12208_v29 = vld [vmem:[#allocation8_spill] sm:$0xff] }
 0x32e   : > { %v3410_v14 = vadd.f32 %v3409_v40, %v3408_v45  ;;  %v3310_v55 = vadd.f32 %v3309_v5, %v3308_v28  ;;  %v10254_v5 = vadd.f32 %v10079_v59, %v8459_v3  ;;  %v3377_v45 = vmul.f32 %v10237_v57, %v10237_v57 }
 0x32f   : > { %v8465_v26 = vadd.f32 %v10051_v10, %v10049_v42  ;;  %v3378_v7 = vmul.f32 %v10242_v61, %v10242_v61  ;;  %v3419_v59 = vsel %vm243_vm0, %v3376_v34, 0.0  ;;  %v8468_v54 = vadd.f32 %v10057_v9, %v10053_v47 }
 0x330   : > { %v3412_v15 = vadd.f32 %v3411_v23, %v3410_v14  ;;  %v3312_v63 = vadd.f32 %v3311_v0, %v3310_v55  ;;  %v3319_v23 = vsel %vm243_vm0, %v10237_v57, 0.0  ;;  %v10271_v0 = vadd.f32 %v8462_v11, %v10101_v48  ;;  %v10275_v14 = vpop.f32.mrf.mxu1  ;;  %v12209_v11 = vld [vmem:[#allocation9_spill] sm:$0xff] }
 0x331   : > { %v3379_v10 = vmul.f32 %v10254_v5, %v10254_v5  ;;  %v10285_v48 = vadd.f32 %v8465_v26, %v10148_v12  ;;  %v8471_v47 = vadd.f32 %v12208_v29, %v10061_v43  ;;  %v10295_v34 = vadd.f32 %v10090_v41, %v8468_v54  ;;  %v12211_v41 = vld [vmem:[#allocation11_spill] sm:$0xff] }
 0x332   : > { %v3414_v21 = vadd.f32 %v3413_v6, %v3412_v15  ;;  %v3314_v40 = vadd.f32 %v3313_v38, %v3312_v63  ;;  %v3421_v6 = vsel %vm243_vm0, %v3377_v45, 0.0  ;;  %v3321_v38 = vsel %vm243_vm0, %v10242_v61, 0.0 }
 0x333   : > { %v3423_v63 = vsel %vm243_vm0, %v3378_v7, 0.0  ;;  %v3325_v26 = vsel %vm243_vm0, %v10271_v0, 0.0  ;;  %v12212_v7 = vld [vmem:[#allocation12_spill] sm:$0xff]  ;;  %v3382_v29 = vmul.f32 %v10295_v34, %v10295_v34 }
 0x334   : > { %v3416_v8 = vadd.f32 %v3415_v35, %v3414_v21  ;;  %v3316_v28 = vadd.f32 %v3315_v37, %v3314_v40  ;;  %v3323_v35 = vsel %vm243_vm0, %v10254_v5, 0.0  ;;  %v3380_v37 = vmul.f32 %v10271_v0, %v10271_v0  ;;  %v12210_v21 = vld [vmem:[#allocation10_spill] sm:$0xff]  ;;  %v10299_v40 = vpop.f32.mrf.mxu1 }
 0x335   : > { %v8474_v12 = vadd.f32 %v12210_v21, %v12209_v11 }
 0x336   : > { %v10139_v24 = vpop.f32.mrf.mxu0  ;;  %v3418_v55 = vadd.f32 %v3417_v4, %v3416_v8  ;;  %v3318_v42 = vadd.f32 %v3317_v13, %v3316_v28  ;;  %v3425_v13 = vsel %vm243_vm0, %v3379_v10, 0.0  ;;  %v3381_v8 = vmul.f32 %v10285_v48, %v10285_v48 }
 0x337   : > { %v10307_v28 = vadd.f32 %v10121_v51, %v8471_v47  ;;  %v3427_v10 = vsel %vm243_vm0, %v3380_v37, 0.0  ;;  %v10319_v51 = vadd.f32 %v8474_v12, %v10189_v46  ;;  %v3266_v47 = vpop.f32.mrf.mxu1 }
 0x338   : > { %v10166_v53 = vpop.f32.mrf.mxu0  ;;  %v3420_v9 = vadd.f32 %v3419_v59, %v3418_v55  ;;  %v3320_v15 = vadd.f32 %v3319_v23, %v3318_v42  ;;  %v8477_v59 = vadd.f32 %v12212_v7, %v12211_v41  ;;  %v12213_v55 = vld [vmem:[#allocation13_spill] sm:$0xff] }
 0x339   : > { %v8480_v42 = vadd.f32 %v10092_v44, %v12213_v55  ;;  %v3429_v44 = vsel %vm243_vm0, %v3381_v8, 0.0  ;;  %v3383_v37 = vmul.f32 %v10307_v28, %v10307_v28  ;;  %v3333_v7 = vsel %vm243_vm0, %v10319_v51, 0.0 }
 0x33a   : > { %v10192_v20 = vpop.f32.mrf.mxu0  ;;  %v3422_v4 = vadd.f32 %v3421_v6, %v3420_v9  ;;  %v3322_v43 = vadd.f32 %v3321_v38, %v3320_v15  ;;  %v3327_v38 = vsel %vm243_vm0, %v10285_v48, 0.0  ;;  %v10329_v11 = vadd.f32 %v8477_v59, %v10239_v60 }
 0x33b   : > { %v10332_v12 = vadd.f32 %v10162_v25, %v8480_v42  ;;  %v3433_v25 = vsel %vm243_vm0, %v3383_v37, 0.0 }
 0x33c   : > { %v10217_v19 = vpop.f32.mrf.mxu0  ;;  %v3424_v23 = vadd.f32 %v3423_v63, %v3422_v4  ;;  %v3324_v54 = vadd.f32 %v3323_v35, %v3322_v43  ;;  %v8483_v63 = vadd.f32 %v10127_v17, %v10103_v22  ;;  %v3329_v35 = vsel %vm243_vm0, %v10295_v34, 0.0 }
 0x33d   : > { %v3431_v43 = vsel %vm243_vm0, %v3382_v29, 0.0  ;;  %v3331_v22 = vsel %vm243_vm0, %v10307_v28, 0.0  ;;  %v3384_v17 = vmul.f32 %v10319_v51, %v10319_v51  ;;  %v3385_v59 = vmul.f32 %v10329_v11, %v10329_v11 }
 0x33e   : > { %v3426_v9 = vadd.f32 %v3425_v13, %v3424_v23  ;;  %v3326_v15 = vadd.f32 %v3325_v26, %v3324_v54  ;;  %v8486_v13 = vadd.f32 %v10166_v53, %v10139_v24  ;;  %v10341_v26 = vpop.f32.mrf.mxu1  ;;  %v10344_v41 = vadd.f32 %v10213_v36, %v8483_v63 }
 0x33f   : > { %v8489_v23 = vadd.f32 %v10217_v19, %v10192_v20  ;;  %v3386_v53 = vmul.f32 %v10332_v12, %v10332_v12  ;;  %v3435_v36 = vsel %vm243_vm0, %v3384_v17, 0.0  ;;  %v3335_v42 = vsel %vm243_vm0, %v10329_v11, 0.0 }
 0x340   : > { %v3428_v21 = vadd.f32 %v3427_v10, %v3426_v9  ;;  %v3328_v46 = vadd.f32 %v3327_v38, %v3326_v15  ;;  %v10359_v10 = vadd.f32 %v8486_v13, %v10275_v14  ;;  %v3279_v29 = vpop.f32.mrf.mxu1  ;;  %v3387_v19 = vmul.f32 %v10344_v41, %v10344_v41 }
 0x341   : > { %v3437_v15 = vsel %vm243_vm0, %v3385_v59, 0.0  ;;  %v3337_v63 = vsel %vm243_vm0, %v10332_v12, 0.0 }
 0x342   : > { %v3430_v60 = vadd.f32 %v3429_v44, %v3428_v21  ;;  %v3330_v8 = vadd.f32 %v3329_v35, %v3328_v46  ;;  %v10368_v44 = vadd.f32 %v8489_v23, %v3266_v47  ;;  %v3439_v21 = vsel %vm243_vm0, %v3386_v53, 0.0  ;;  %v8691_v17 = vpop.f32.mrf.mxu1 }
 0x343   : > { %v3388_v46 = vmul.f32 %v10359_v10, %v10359_v10 }
 0x344   : > { %v3432_v54 = vadd.f32 %v3431_v43, %v3430_v60  ;;  %v3332_v24 = vadd.f32 %v3331_v22, %v3330_v8  ;;  %v3389_v60 = vmul.f32 %v10368_v44, %v10368_v44 }
 0x346   : > { %v3434_v9 = vadd.f32 %v3433_v25, %v3432_v54  ;;  %v3334_v20 = vadd.f32 %v3333_v7, %v3332_v24  ;;  %v3282_v54 = vpop.f32.mrf.mxu1 }
 0x348   : > { %v3436_v14 = vadd.f32 %v3435_v36, %v3434_v9  ;;  %v3336_v37 = vadd.f32 %v3335_v42, %v3334_v20  ;;  %v3445_v36 = vsel %vm243_vm0, %v3389_v60, 0.0 }
 0x34a   : > { %v3438_v47 = vadd.f32 %v3437_v15, %v3436_v14  ;;  %v3338_v13 = vadd.f32 %v3337_v63, %v3336_v37 }
 0x34c   : > { %v3440_v7 = vadd.f32 %v3439_v21, %v3438_v47 }
 0x34d   : > { %v10229_v58 = vpop.f32.mrf.mxu0 }
 0x34f   : > { %v10256_v62 = vpop.f32.mrf.mxu0 }
 0x350   : > { %v8492_v38 = vadd.f32 %v10256_v62, %v10229_v58  ;;  %v3339_v62 = vsel %vm243_vm0, %v10344_v41, 0.0 }
 0x351   : > { %v10279_v3 = vpop.f32.mrf.mxu0  ;;  %v3340_v59 = vadd.f32 %v3339_v62, %v3338_v13 }
 0x352   : > { %v10377_v43 = vadd.f32 %v10251_v56, %v8492_v38  ;;  %v3443_v56 = vsel %vm243_vm0, %v3388_v46, 0.0 }
 0x353   : > { %v8494_v45 = vpop.f32.mrf.mxu0 }
 0x354   : > { %v8495_v35 = vadd.f32 %v8494_v45, %v10279_v3  ;;  %v3441_v3 = vsel %vm243_vm0, %v3387_v19, 0.0  ;;  %v3341_v45 = vsel %vm243_vm0, %v10359_v10, 0.0 }
 0x355   : > { %v3442_v24 = vadd.f32 %v3441_v3, %v3440_v7  ;;  %v3342_v53 = vadd.f32 %v3341_v45, %v3340_v59 }
 0x356   : > { %v10385_v8 = vadd.f32 %v10299_v40, %v8495_v35  ;;  %v3345_v40 = vsel %vm243_vm0, %v10377_v43, 0.0 }
 0x357   : > { %v3444_v38 = vadd.f32 %v3443_v56, %v3442_v24 }
 0x359   : > { %v3446_v63 = vadd.f32 %v3445_v36, %v3444_v38 }
 0x365   : > { %v8496_v6 = vpop.f32.mrf.mxu0 }
 0x367   : > { %v8497_v4 = vpop.f32.mrf.mxu0 }
 0x368   : > { %v8498_v22 = vadd.f32 %v8497_v4, %v8496_v6  ;;  %v3343_v6 = vsel %vm243_vm0, %v10368_v44, 0.0  ;;  %v3390_v4 = vmul.f32 %v10377_v43, %v10377_v43 }
 0x369   : > { %v8499_v55 = vpop.f32.mrf.mxu0  ;;  %v3344_v9 = vadd.f32 %v3343_v6, %v3342_v53 }
 0x36a   : > { %v10392_v23 = vadd.f32 %v8498_v22, %v3279_v29  ;;  %v3447_v19 = vsel %vm243_vm0, %v3390_v4, 0.0  ;;  %v3347_v29 = vsel %vm243_vm0, %v10385_v8, 0.0 }
 0x36b   : > { %v8500_v58 = vpop.f32.mrf.mxu0  ;;  %v3346_v35 = vadd.f32 %v3345_v40, %v3344_v9  ;;  %v3448_v46 = vadd.f32 %v3447_v19, %v3446_v63 }
 0x36c   : > { %v8501_v25 = vadd.f32 %v8500_v58, %v8499_v55  ;;  %v3391_v55 = vmul.f32 %v10385_v8, %v10385_v8  ;;  %v3392_v15 = vmul.f32 %v10392_v23, %v10392_v23  ;;  %v3349_v21 = vsel %vm243_vm0, %v10392_v23, 0.0 }
 0x36d   : > { %v3348_v22 = vadd.f32 %v3347_v29, %v3346_v35 }
 0x36e   : > { %v10399_v42 = vadd.f32 %v8501_v25, %v3282_v54  ;;  %v3449_v37 = vsel %vm243_vm0, %v3391_v55, 0.0  ;;  %v3451_v13 = vsel %vm243_vm0, %v3392_v15, 0.0 }
 0x36f   : > { %v3450_v60 = vadd.f32 %v3449_v37, %v3448_v46  ;;  %v3350_v25 = vadd.f32 %v3349_v21, %v3348_v22 }
 0x370   : > { %v3393_v58 = vmul.f32 %v10399_v42, %v10399_v42  ;;  %v3351_v3 = vsel %vm243_vm0, %v10399_v42, 0.0 }
 0x371   : > { %v3452_v54 = vadd.f32 %v3451_v13, %v3450_v60  ;;  %v3352_v24 = vadd.f32 %v3351_v3, %v3350_v25 }
 0x372   : > { %v3453_v59 = vsel %vm243_vm0, %v3393_v58, 0.0 }
 0x373   : > { %v3454_v40 = vadd.f32 %v3453_v59, %v3452_v54 }
 0x37d   : > { %v8502_v20 = vpop.f32.mrf.mxu0 }
 0x37f   : > { %v8503_v14 = vpop.f32.mrf.mxu0 }
 0x380   : > { %v8504_v62 = vadd.f32 %v8503_v14, %v8502_v20 }
 0x381   : > { %v8505_v47 = vpop.f32.mrf.mxu0 }
 0x382   : > { %v10415_v45 = vadd.f32 %v10341_v26, %v8504_v62 }
 0x383   : > { %v8506_v7 = vpop.f32.mrf.mxu0 }
 0x384   : > { %v3353_v56 = vsel %vm243_vm0, %v10415_v45, 0.0  ;;  %v3394_v6 = vmul.f32 %v10415_v45, %v10415_v45  ;;  %v8507_v4 = vadd.f32 %v8506_v7, %v8505_v47 }
 0x385   : > { %v3354_v26 = vadd.f32 %v3353_v56, %v3352_v24 }
 0x386   : > { %v3455_v53 = vsel %vm243_vm0, %v3394_v6, 0.0  ;;  %v3291_v36 = vadd.f32 %v8691_v17, %v8507_v4 }
 0x387   : > { %v3456_v9 = vadd.f32 %v3455_v53, %v3454_v40 }
 0x388   : > { %v3355_v55 = vsel %vm243_vm0, %v3291_v36, 0.0  ;;  %v3395_v38 = vmul.f32 %v3291_v36, %v3291_v36 }
 0x389   : > { %v3356_v20 = vadd.f32 %v3355_v55, %v3354_v26 }
 0x38a   : > { %v3457_v19 = vsel %vm243_vm0, %v3395_v38, 0.0 }
 0x38b   : > { %v3357_v29 = vrot.slane %v3356_v20, 4  ;;  %v3458_v15 = vadd.f32 %v3457_v19, %v3456_v9 }
 0x38d   : > { %v3358_v63 = vadd.f32 %v3357_v29, %v3356_v20  ;;  %v3459_v35 = vrot.slane %v3458_v15, 4 }
 0x38f   : > { %v3359_v14 = vrot.slane %v3358_v63, 2  ;;  %v3460_v37 = vadd.f32 %v3459_v35, %v3458_v15 }
 0x391   : > { %v3360_v21 = vadd.f32 %v3359_v14, %v3358_v63  ;;  %v3461_v58 = vrot.slane %v3460_v37, 2 }
 0x393   : > { %v3361_v62 = vrot.slane %v3360_v21, 1  ;;  %v3462_v46 = vadd.f32 %v3461_v58, %v3460_v37 }
 0x395   : > { %v3362_v17 = vadd.f32 %v3361_v62, %v3360_v21  ;;  %v3463_v22 = vrot.slane %v3462_v46, 1 }
 0x397   : > { %v10425_v47 = vmul.f32 0.00390625, %v3362_v17  ;;  %v3464_v13 = vadd.f32 %v3463_v22, %v3462_v46 }
 0x399   : > { %v3465_v3 = vmul.f32 0.00390625, %v3464_v13  ;;  %v3466_v60 = vmul.f32 %v10425_v47, %v10425_v47  ;;  %v3499_v56 = vsub.f32 %v10415_v45, %v10425_v47  ;;  %v3500_v6 = vsub.f32 %v3291_v36, %v10425_v47 }
 0x39a   : > { %v3469_v4 = vsub.f32 %v10097_v52, %v10425_v47  ;;  %v3470_v54 = vsub.f32 %v10094_v31, %v10425_v47  ;;  %v3471_v24 = vsub.f32 %v10099_v33, %v10425_v47  ;;  %v3472_v53 = vsub.f32 %v10107_v16, %v10425_v47 }
 0x39b   : > { %v3467_v25 = vsub.f32 %v3465_v3, %v3466_v60  ;;  %v3473_v40 = vsub.f32 %v10119_v18, %v10425_v47  ;;  %v3474_v45 = vsub.f32 %v10134_v39, %v10425_v47  ;;  %v3475_v36 = vsub.f32 %v10137_v1, %v10425_v47 }
 0x39c   : > { %v3476_v52 = vsub.f32 %v10150_v49, %v10425_v47  ;;  %v3477_v31 = vsub.f32 %v10172_v30, %v10425_v47  ;;  %v3478_v33 = vsub.f32 %v10185_v50, %v10425_v47  ;;  %v3479_v16 = vsub.f32 %v10199_v2, %v10425_v47 }
 0x39d   : > { %v3468_v7 = vmax.f32 %v3467_v25, 0.0  ;;  %v3480_v18 = vsub.f32 %v10209_v27, %v10425_v47  ;;  %v3481_v39 = vsub.f32 %v10225_v32, %v10425_v47  ;;  %v3482_v1 = vsub.f32 %v10237_v57, %v10425_v47 }
 0x39e   : > { %v3483_v49 = vsub.f32 %v10242_v61, %v10425_v47  ;;  %v3484_v30 = vsub.f32 %v10254_v5, %v10425_v47  ;;  %v3485_v50 = vsub.f32 %v10271_v0, %v10425_v47  ;;  %v3486_v2 = vsub.f32 %v10285_v48, %v10425_v47 }
 0x39f   : > { %v3501_v59 = vadd.f32 1e-05, %v3468_v7  ;;  %v3487_v27 = vsub.f32 %v10295_v34, %v10425_v47  ;;  %v3488_v32 = vsub.f32 %v10307_v28, %v10425_v47  ;;  %v3489_v57 = vsub.f32 %v10319_v51, %v10425_v47 }
 0x3a0   : > { %v3490_v61 = vsub.f32 %v10329_v11, %v10425_v47  ;;  %v3491_v5 = vsub.f32 %v10332_v12, %v10425_v47  ;;  %v3492_v0 = vsub.f32 %v10344_v41, %v10425_v47  ;;  %v3493_v48 = vsub.f32 %v10359_v10, %v10425_v47 }
 0x3a1   : > { %8914 = vrsqrt.f32 %v3501_v59  ;;  %v3494_v34 = vsub.f32 %v10368_v44, %v10425_v47  ;;  %v3495_v28 = vsub.f32 %v10377_v43, %v10425_v47  ;;  %v3496_v51 = vsub.f32 %v10385_v8, %v10425_v47 }
 0x3a2   : > { %v3497_v41 = vsub.f32 %v10392_v23, %v10425_v47  ;;  %v3498_v9 = vsub.f32 %v10399_v42, %v10425_v47 }
 0x3ae   : > { %v8915_v26 = vpop.eup %8914 }
 0x3af   : > { %v3533_v11 = vmul.f32 %v8915_v26, %v3499_v56  ;;  %v3534_v55 = vmul.f32 %v8915_v26, %v3500_v6  ;;  %v3505_v38 = vmul.f32 %v8915_v26, %v3471_v24  ;;  %v3506_v12 = vmul.f32 %v8915_v26, %v3472_v53 }
 0x3b0   : > { %v3503_v10 = vmul.f32 %v8915_v26, %v3469_v4  ;;  %v3504_v20 = vmul.f32 %v8915_v26, %v3470_v54  ;;  %v3507_v43 = vmul.f32 %v8915_v26, %v3473_v40  ;;  %v3508_v63 = vmul.f32 %v8915_v26, %v3474_v45 }
 0x3b1   : > { %v3565_v19 = vmax.f32 %v3533_v11, 0.0  ;;  %v3566_v44 = vmax.f32 %v3534_v55, 0.0  ;;  %v3537_v29 = vmax.f32 %v3505_v38, 0.0  ;;  %v3538_v15 = vmax.f32 %v3506_v12, 0.0 }
 0x3b2   : > { %v3509_v35 = vmul.f32 %v8915_v26, %v3475_v36  ;;  %v3510_v8 = vmul.f32 %v8915_v26, %v3476_v52  ;;  %v3511_v23 = vmul.f32 %v8915_v26, %v3477_v31  ;;  %v3512_v42 = vmul.f32 %v8915_v26, %v3478_v33 }
 0x3b3   : > { %3598 = vst.msk [vmem:[#allocation3 + $0x181] sm:$0xff] %vm243_vm0, %v3565_v19  ;;  %3599 = vst.msk [vmem:[#allocation3 + $0x189] sm:$0xff] %vm243_vm0, %v3566_v44  ;;  %v3513_v14 = vmul.f32 %v8915_v26, %v3479_v16  ;;  %v3514_v37 = vmul.f32 %v8915_v26, %v3480_v18  ;;  %v10496_v21 = vmul.f32 %v8915_v26, %v3481_v39  ;;  %v3535_v54 = vmax.f32 %v3503_v10, 0.0 }
 0x3b4   : > { %3570 = vst.msk [vmem:[#allocation3 + $0x31] sm:$0xff] %vm243_vm0, %v3537_v29  ;;  %3571 = vst.msk [vmem:[#allocation3 + $0x39] sm:$0xff] %vm243_vm0, %v3538_v15  ;;  %v10498_v58 = vmul.f32 %v8915_v26, %v3482_v1  ;;  %v10500_v62 = vmul.f32 %v8915_v26, %v3483_v49  ;;  %v10502_v46 = vmul.f32 %v8915_v26, %v3484_v30  ;;  %v3536_v24 = vmax.f32 %v3504_v20, 0.0 }
 0x3b5   : > { %v10504_v17 = vmul.f32 %v8915_v26, %v3485_v50  ;;  %v10506_v22 = vmul.f32 %v8915_v26, %v3486_v2  ;;  %v10508_v47 = vmul.f32 %v8915_v26, %v3487_v27  ;;  %v10510_v13 = vmul.f32 %v8915_v26, %v3488_v32  ;;  %3568 = vst.msk [vmem:[#allocation3 + $0x19] sm:$0xff] %vm243_vm0, %v3535_v54 }
 0x3b6   : > { %v10512_v3 = vmul.f32 %v8915_v26, %v3489_v57  ;;  %v10514_v60 = vmul.f32 %v8915_v26, %v3490_v61  ;;  %v10516_v25 = vmul.f32 %v8915_v26, %v3491_v5  ;;  %v10518_v7 = vmul.f32 %v8915_v26, %v3492_v0  ;;  %3569 = vst.msk [vmem:[#allocation3 + $0x21] sm:$0xff] %vm243_vm0, %v3536_v24 }
 0x3b7   : > { %v10520_v59 = vmul.f32 %v8915_v26, %v3493_v48  ;;  %v10522_v56 = vmul.f32 %v8915_v26, %v3494_v34  ;;  %v10524_v6 = vmul.f32 %v8915_v26, %v3495_v28  ;;  %v10526_v4 = vmul.f32 %v8915_v26, %v3496_v51 }
 0x3b8   : > { %v3539_v53 = vmax.f32 %v3507_v43, 0.0  ;;  %v3540_v40 = vmax.f32 %v3508_v63, 0.0  ;;  %v3541_v45 = vmax.f32 %v3509_v35, 0.0  ;;  %v3542_v36 = vmax.f32 %v3510_v8, 0.0 }
 0x3b9   : > { %v3543_v52 = vmax.f32 %v3511_v23, 0.0  ;;  %v3544_v31 = vmax.f32 %v3512_v42, 0.0  ;;  %v10528_v18 = vmul.f32 %v8915_v26, %v3497_v41  ;;  %v10530_v39 = vmul.f32 %v8915_v26, %v3498_v9 }
 0x3ba   : > { %v5631_v33 = vld [vmem:[#allocation3 + $0x182] sm:$0xff]  ;;  %v3545_v49 = vmax.f32 %v3513_v14, 0.0  ;;  %v3546_v30 = vmax.f32 %v3514_v37, 0.0  ;;  %3572 = vst.msk [vmem:[#allocation3 + $0x49] sm:$0xff] %vm243_vm0, %v3539_v53  ;;  %3573 = vst.msk [vmem:[#allocation3 + $0x51] sm:$0xff] %vm243_vm0, %v3540_v40  ;;  %v3547_v27 = vmax.f32 %v10496_v21, 0.0 }
 0x3bb   : > { %v5092_v16 = vld [vmem:[#allocation3 + $0x38] sm:$0xff]  ;;  %v8391_v50 = vpack.c.bf16 %v5631_v33, %v5631_v33  ;;  %v3548_v32 = vmax.f32 %v10498_v58, 0.0  ;;  %3574 = vst.msk [vmem:[#allocation3 + $0x61] sm:$0xff] %vm243_vm0, %v3541_v45  ;;  %3575 = vst.msk [vmem:[#allocation3 + $0x69] sm:$0xff] %vm243_vm0, %v3542_v36  ;;  %v3549_v5 = vmax.f32 %v10500_v62, 0.0  ;;  %v3550_v0 = vmax.f32 %v10502_v46, 0.0 }
 0x3bc   : > { %v3649_v1 = vld [vmem:[#allocation3 + $0x3f] sm:$0x1]  ;;  %v10536_v2 = vpack.c.bf16 %v5092_v16, %v5092_v16  ;;  %v5347_v57 = vld [vmem:[#allocation3 + $0x31] sm:$0xff]  ;;  %3576 = vst.msk [vmem:[#allocation3 + $0x79] sm:$0xff] %vm243_vm0, %v3543_v52  ;;  %3577 = vst.msk [vmem:[#allocation3 + $0x81] sm:$0xff] %vm243_vm0, %v3544_v31  ;;  %v3551_v26 = vmax.f32 %v10504_v17, 0.0 }
 0x3bd   : > { %3667 = vst.msk [vmem:[#allocation3 + $0x41] sm:$0x1] %vm305_vm1, %v3649_v1  ;;  %v10545_v61 = vld [vmem:[#allocation3 + $0x39] sm:$0xff]  ;;  %v3552_v48 = vmax.f32 %v10506_v22, 0.0  ;;  %v3613_v34 = vld [vmem:[#allocation3 + $0x32] sm:$0x1]  ;;  %v10584_v23 = vpack.c.bf16 %v5347_v57, %v5347_v57 }
 0x3be   : > { %3578 = vst.msk [vmem:[#allocation3 + $0x91] sm:$0xff] %vm243_vm0, %v3545_v49  ;;  %3579 = vst.msk [vmem:[#allocation3 + $0x99] sm:$0xff] %vm243_vm0, %v3546_v30  ;;  %5221 = vrot.lane.b32.xlu1 %v10536_v2, %s8984_s25  ;;  %v5603_v28 = vld [vmem:[#allocation3 + $0x32] sm:$0xff]  ;;  %v3553_v51 = vmax.f32 %v10508_v47, 0.0  ;;  %v3554_v11 = vmax.f32 %v10510_v13, 0.0  ;;  %v3555_v55 = vmax.f32 %v10512_v3, 0.0  ;;  %v10635_v1 = vpack.c.bf16 %v10545_v61, %v10545_v61 }
 0x3bf   : > { %3603 = vst.msk [vmem:[#allocation3 + $0x1] sm:$0xff] %vm243_vm0, %v5347_v57  ;;  %3604 = vst.msk [vmem:[#allocation3 + $0x9] sm:$0xff] %vm243_vm0, %v10545_v61  ;;  %v3556_v38 = vmax.f32 %v10514_v60, 0.0  ;;  %v3688_v12 = vld [vmem:[#allocation3 + $0x38] sm:$0xff]  ;;  %v3557_v41 = vmax.f32 %v10516_v25, 0.0  ;;  %v3558_v9 = vmax.f32 %v10518_v7, 0.0  ;;  %v10582_v8 = vpack.c.bf16 %v5603_v28, %v5603_v28 }
 0x3c0   : > { %5791 = vst.msk [vmem:[#allocation4 + $0x158] sm:$0xf] %vm520_vm2, %v8391_v50  ;;  %v3559_v10 = vmax.f32 %v10520_v59, 0.0  ;;  %v3560_v20 = vmax.f32 %v10522_v56, 0.0  ;;  %v4646_v19 = vld [vmem:[#allocation3 + $0x39] sm:$0xff]  ;;  %v5376_v44 = vld [vmem:[#allocation3 + $0x189] sm:$0xff]  ;;  %v8112_v42 = vpack.c.bf16 %v3688_v12, %v3688_v12 }
 0x3c1   : > { %3580 = vst.msk [vmem:[#allocation3 + $0xa9] sm:$0xff] %vm243_vm0, %v3547_v27  ;;  %3581 = vst.msk [vmem:[#allocation3 + $0xb1] sm:$0xff] %vm243_vm0, %v3548_v32  ;;  %v3561_v29 = vmax.f32 %v10524_v6, 0.0  ;;  %v3562_v15 = vmax.f32 %v10526_v4, 0.0  ;;  %v3563_v43 = vmax.f32 %v10528_v18, 0.0  ;;  %v3564_v63 = vmax.f32 %v10530_v39, 0.0 }
 0x3c2   : > { %3631 = vst.msk [vmem:[#allocation3 + $0x30] sm:$0x1] %vm305_vm1, %v3613_v34  ;;  %v3627_v35 = vld [vmem:[#allocation3 + $0x182] sm:$0x1]  ;;  %v3663_v37 = vld [vmem:[#allocation3 + $0x18f] sm:$0x1]  ;;  %v8238_v46 = vpack.c.bf16 %v4646_v19, %v4646_v19  ;;  %v10595_v17 = vpack.c.bf16 %v5376_v44, %v5376_v44 }
 0x3c3   : > { %3582 = vst.msk [vmem:[#allocation3 + $0xc1] sm:$0xff] %vm243_vm0, %v3549_v5  ;;  %3583 = vst.msk [vmem:[#allocation3 + $0xc9] sm:$0xff] %vm243_vm0, %v3550_v0  ;;  %v5375_v14 = vld [vmem:[#allocation3 + $0x181] sm:$0xff]  ;;  %v3650_v62 = vld [vmem:[#allocation3 + $0x57] sm:$0x1] }
 0x3c4   : > { %3584 = vst.msk [vmem:[#allocation3 + $0xd9] sm:$0xff] %vm243_vm0, %v3551_v26  ;;  %3585 = vst.msk [vmem:[#allocation3 + $0xe1] sm:$0xff] %vm243_vm0, %v3552_v48  ;;  %v4835_v21 = vld [vmem:[#allocation3 + $0x1a] sm:$0xff]  ;;  %v10597_v22 = vpack.c.bf16 %v5375_v14, %v5375_v14  ;;  %v3651_v60 = vld [vmem:[#allocation3 + $0x6f] sm:$0x1] }
 0x3c5   : > { %3586 = vst.msk [vmem:[#allocation3 + $0xf1] sm:$0xff] %vm243_vm0, %v3553_v51  ;;  %3587 = vst.msk [vmem:[#allocation3 + $0xf9] sm:$0xff] %vm243_vm0, %v3554_v11  ;;  %v4388_v58 = vld [vmem:[#allocation3 + $0x20] sm:$0xff]  ;;  %v10600_v47 = vpack.c.bf16 %v4835_v21, %v4835_v21  ;;  %v3653_v7 = vld [vmem:[#allocation3 + $0x9f] sm:$0x1] }
 0x3c6   : > { %3588 = vst.msk [vmem:[#allocation3 + $0x109] sm:$0xff] %vm243_vm0, %v3555_v55  ;;  %3589 = vst.msk [vmem:[#allocation3 + $0x111] sm:$0xff] %vm243_vm0, %v3556_v38  ;;  %v5604_v13 = vld [vmem:[#allocation3 + $0x3a] sm:$0xff]  ;;  %v8204_v3 = vpack.c.bf16 %v4388_v58, %v4388_v58  ;;  %v3652_v25 = vld [vmem:[#allocation3 + $0x87] sm:$0x1] }
 0x3c7   : > { %3590 = vst.msk [vmem:[#allocation3 + $0x121] sm:$0xff] %vm243_vm0, %v3557_v41  ;;  %3591 = vst.msk [vmem:[#allocation3 + $0x129] sm:$0xff] %vm243_vm0, %v3558_v9  ;;  %v5605_v59 = vld [vmem:[#allocation3 + $0x4a] sm:$0xff]  ;;  %v5607_v56 = vld [vmem:[#allocation3 + $0x62] sm:$0xff]  ;;  %v10608_v6 = vpack.c.bf16 %v5604_v13, %v5604_v13  ;;  %4963 = vrot.lane.b32.xlu0 %v10600_v47, %s8982_s6 }
 0x3c8   : > { %3592 = vst.msk [vmem:[#allocation3 + $0x139] sm:$0xff] %vm243_vm0, %v3559_v10  ;;  %3593 = vst.msk [vmem:[#allocation3 + $0x141] sm:$0xff] %vm243_vm0, %v3560_v20  ;;  %4517 = vrot.lane.b32.xlu1 %v8204_v3, %s8983_s7  ;;  %v3654_v4 = vld [vmem:[#allocation3 + $0xb7] sm:$0x1]  ;;  %v5609_v54 = vld [vmem:[#allocation3 + $0x7a] sm:$0xff]  ;;  %v10621_v53 = vpack.c.bf16 %v5605_v59, %v5605_v59  ;;  %v10623_v40 = vpack.c.bf16 %v5607_v56, %v5607_v56 }
 0x3c9   : > { %3645 = vst.msk [vmem:[#allocation3 + $0x180] sm:$0x1] %vm305_vm1, %v3627_v35  ;;  %3681 = vst.msk [vmem:[#allocation3 + $0x191] sm:$0x1] %vm305_vm1, %v3663_v37  ;;  %v5611_v24 = vld [vmem:[#allocation3 + $0x92] sm:$0xff]  ;;  %v5613_v52 = vld [vmem:[#allocation3 + $0xaa] sm:$0xff]  ;;  %v10627_v31 = vpack.c.bf16 %v5609_v54, %v5609_v54 }
 0x3ca   : > { %3594 = vst.msk [vmem:[#allocation3 + $0x151] sm:$0xff] %vm243_vm0, %v3561_v29  ;;  %3595 = vst.msk [vmem:[#allocation3 + $0x159] sm:$0xff] %vm243_vm0, %v3562_v15  ;;  %v3655_v45 = vld [vmem:[#allocation3 + $0xcf] sm:$0x1]  ;;  %v10629_v33 = vpack.c.bf16 %v5611_v24, %v5611_v24  ;;  %v5615_v39 = vld [vmem:[#allocation3 + $0xc2] sm:$0xff]  ;;  %v10639_v49 = vpack.c.bf16 %v5613_v52, %v5613_v52 }
 0x3cb   : > { %3596 = vst.msk [vmem:[#allocation3 + $0x169] sm:$0xff] %vm243_vm0, %v3563_v43  ;;  %3597 = vst.msk [vmem:[#allocation3 + $0x171] sm:$0xff] %vm243_vm0, %v3564_v63  ;;  %v3656_v36 = vld [vmem:[#allocation3 + $0xe7] sm:$0x1]  ;;  %v5617_v27 = vld [vmem:[#allocation3 + $0xda] sm:$0xff]  ;;  %v10647_v32 = vpack.c.bf16 %v5615_v39, %v5615_v39  ;;  %5475 = vrot.lane.b32.xlu0 %v10584_v23, %s8983_s7 }
 0x3cc   : > { %5763 = vst.msk [vmem:[#allocation4 + $0x8] sm:$0xf] %vm520_vm2, %v10582_v8  ;;  %4805 = vst.msk [vmem:[#allocation4 + $0x1c] sm:$0xf] %vm520_vm2, %v10584_v23  ;;  %v3657_v16 = vld [vmem:[#allocation3 + $0xff] sm:$0x1]  ;;  %5477 = vrot.lane.b32.xlu1 %v10635_v1, %s8983_s7  ;;  %v8377_v0 = vpack.c.bf16 %v5617_v27, %v5617_v27 }
 0x3cd   : > { %3668 = vst.msk [vmem:[#allocation3 + $0x59] sm:$0x1] %vm305_vm1, %v3650_v62  ;;  %3669 = vst.msk [vmem:[#allocation3 + $0x71] sm:$0x1] %vm305_vm1, %v3651_v60  ;;  %v3658_v18 = vld [vmem:[#allocation3 + $0x117] sm:$0x1] }
 0x3ce   : > { %3848 = vst.msk [vmem:[#allocation4 + $0x3c] sm:$0xf] %vm520_vm2, %v8112_v42  ;;  %4806 = vst.msk [vmem:[#allocation4 + $0x28] sm:$0xf] %vm520_vm2, %v8238_v46  ;;  %v3659_v30 = vld [vmem:[#allocation3 + $0x12f] sm:$0x1] }
 0x3cf   : > { %3670 = vst.msk [vmem:[#allocation3 + $0x89] sm:$0x1] %vm305_vm1, %v3652_v25  ;;  %3671 = vst.msk [vmem:[#allocation3 + $0xa1] sm:$0x1] %vm305_vm1, %v3653_v7  ;;  %v3660_v50 = vld [vmem:[#allocation3 + $0x147] sm:$0x1] }
 0x3d0   : > { %4834 = vst.msk [vmem:[#allocation4 + $0x178] sm:$0xf] %vm520_vm2, %v10595_v17  ;;  %4833 = vst.msk [vmem:[#allocation4 + $0x16c] sm:$0xf] %vm520_vm2, %v10597_v22  ;;  %v5619_v5 = vld [vmem:[#allocation3 + $0xf2] sm:$0xff]  ;;  %v5621_v26 = vld [vmem:[#allocation3 + $0x10a] sm:$0xff] }
 0x3d1   : > { %3846 = vst.msk [vmem:[#allocation4 + $0x24] sm:$0xf] %vm520_vm2, %v8204_v3  ;;  %5764 = vst.msk [vmem:[#allocation4 + $0x14] sm:$0xf] %vm520_vm2, %v10608_v6  ;;  %v3661_v57 = vld [vmem:[#allocation3 + $0x15f] sm:$0x1]  ;;  %v8379_v28 = vpack.c.bf16 %v5619_v5, %v5619_v5  ;;  %v8381_v55 = vpack.c.bf16 %v5621_v26, %v5621_v26 }
 0x3d2   : > { %3672 = vst.msk [vmem:[#allocation3 + $0xb9] sm:$0x1] %vm305_vm1, %v3654_v4  ;;  %3673 = vst.msk [vmem:[#allocation3 + $0xd1] sm:$0x1] %vm305_vm1, %v3655_v45  ;;  %v3662_v61 = vld [vmem:[#allocation3 + $0x177] sm:$0x1] }
 0x3d3   : > { %3674 = vst.msk [vmem:[#allocation3 + $0xe9] sm:$0x1] %vm305_vm1, %v3656_v36  ;;  %3675 = vst.msk [vmem:[#allocation3 + $0x101] sm:$0x1] %vm305_vm1, %v3657_v16  ;;  %v5623_v48 = vld [vmem:[#allocation3 + $0x122] sm:$0xff]  ;;  %v5625_v34 = vld [vmem:[#allocation3 + $0x13a] sm:$0xff] }
 0x3d4   : > { %5765 = vst.msk [vmem:[#allocation4 + $0x20] sm:$0xf] %vm520_vm2, %v10621_v53  ;;  %5767 = vst.msk [vmem:[#allocation4 + $0x38] sm:$0xf] %vm520_vm2, %v10623_v40  ;;  %v5627_v51 = vld [vmem:[#allocation3 + $0x152] sm:$0xff]  ;;  %v5629_v11 = vld [vmem:[#allocation3 + $0x16a] sm:$0xff]  ;;  %v8383_v38 = vpack.c.bf16 %v5623_v48, %v5623_v48  ;;  %v8385_v12 = vpack.c.bf16 %v5625_v34, %v5625_v34 }
 0x3d5   : > { %3676 = vst.msk [vmem:[#allocation3 + $0x119] sm:$0x1] %vm305_vm1, %v3658_v18  ;;  %3677 = vst.msk [vmem:[#allocation3 + $0x131] sm:$0x1] %vm305_vm1, %v3659_v30  ;;  %v3877_v41 = vld [vmem:[#allocation3 + $0x19] sm:$0xff]  ;;  %v8387_v9 = vpack.c.bf16 %v5627_v51, %v5627_v51  ;;  %v8389_v10 = vpack.c.bf16 %v5629_v11, %v5629_v11  ;;  %v5608_v44 = vld [vmem:[#allocation3 + $0x6a] sm:$0xff] }
 0x3d6   : > { %5769 = vst.msk [vmem:[#allocation4 + $0x50] sm:$0xf] %vm520_vm2, %v10627_v31  ;;  %5771 = vst.msk [vmem:[#allocation4 + $0x68] sm:$0xf] %vm520_vm2, %v10629_v33  ;;  %v8141_v20 = vpack.c.bf16 %v3877_v41, %v3877_v41  ;;  %v5606_v19 = vld [vmem:[#allocation3 + $0x52] sm:$0xff]  ;;  %v5610_v29 = vld [vmem:[#allocation3 + $0x82] sm:$0xff]  ;;  %v10672_v35 = vpack.c.bf16 %v5608_v44, %v5608_v44 }
 0x3d7   : > { %3678 = vst.msk [vmem:[#allocation3 + $0x149] sm:$0x1] %vm305_vm1, %v3660_v50  ;;  %3679 = vst.msk [vmem:[#allocation3 + $0x161] sm:$0x1] %vm305_vm1, %v3661_v57  ;;  %v5612_v15 = vld [vmem:[#allocation3 + $0x9a] sm:$0xff]  ;;  %v10670_v63 = vpack.c.bf16 %v5606_v19, %v5606_v19  ;;  %v10674_v42 = vpack.c.bf16 %v5610_v29, %v5610_v29  ;;  %v5094_v13 = vld [vmem:[#allocation3 + $0x50] sm:$0xff] }
 0x3d8   : > { %5773 = vst.msk [vmem:[#allocation4 + $0x80] sm:$0xf] %vm520_vm2, %v10639_v49  ;;  %5775 = vst.msk [vmem:[#allocation4 + $0x98] sm:$0xf] %vm520_vm2, %v10647_v32  ;;  %v3878_v14 = vld [vmem:[#allocation3 + $0x21] sm:$0xff]  ;;  %4007 = vrot.lane.b32.xlu0 %v8141_v20, %s8982_s6  ;;  %v10679_v58 = vpack.c.bf16 %v5612_v15, %v5612_v15  ;;  %v10692_v59 = vpack.c.bf16 %v5094_v13, %v5094_v13  ;;  %v5349_v50 = vld [vmem:[#allocation3 + $0x49] sm:$0xff] }
 0x3d9   : > { %3680 = vst.msk [vmem:[#allocation3 + $0x179] sm:$0x1] %vm305_vm1, %v3662_v61  ;;  %v5614_v43 = vld [vmem:[#allocation3 + $0xb2] sm:$0xff]  ;;  %v5616_v37 = vld [vmem:[#allocation3 + $0xca] sm:$0xff]  ;;  %v8142_v46 = vpack.c.bf16 %v3878_v14, %v3878_v14  ;;  %v10712_v27 = vpack.c.bf16 %v5349_v50, %v5349_v50  ;;  %v5351_v5 = vld [vmem:[#allocation3 + $0x61] sm:$0xff] }
 0x3da   : > { %5777 = vst.msk [vmem:[#allocation4 + $0xb0] sm:$0xf] %vm520_vm2, %v8377_v0  ;;  %5779 = vst.msk [vmem:[#allocation4 + $0xc8] sm:$0xf] %vm520_vm2, %v8379_v28  ;;  %v5618_v21 = vld [vmem:[#allocation3 + $0xe2] sm:$0xff]  ;;  %v10681_v62 = vpack.c.bf16 %v5614_v43, %v5614_v43  ;;  %v5620_v3 = vld [vmem:[#allocation3 + $0xfa] sm:$0xff]  ;;  %v10684_v25 = vpack.c.bf16 %v5616_v37, %v5616_v37  ;;  %v10724_v48 = vpack.c.bf16 %v5351_v5, %v5351_v5 }
 0x3db   : > { %5781 = vst.msk [vmem:[#allocation4 + $0xe0] sm:$0xf] %vm520_vm2, %v8381_v55  ;;  %5783 = vst.msk [vmem:[#allocation4 + $0xf8] sm:$0xf] %vm520_vm2, %v8383_v38  ;;  %v8378_v7 = vpack.c.bf16 %v5618_v21, %v5618_v21  ;;  %v8380_v54 = vpack.c.bf16 %v5620_v3, %v5620_v3  ;;  %4009 = vrot.lane.b32.xlu1 %v8142_v46, %s8982_s6  ;;  %v8848_v18 = vld [vmem:[#allocation4 + $0x8] ss:$12 sps:$4 sm:$0xff]  }
 0x3dc   : > { %5785 = vst.msk [vmem:[#allocation4 + $0x110] sm:$0xf] %vm520_vm2, %v8385_v12  ;;  %5787 = vst.msk [vmem:[#allocation4 + $0x128] sm:$0xf] %vm520_vm2, %v8387_v9  ;;  %v5622_v60 = vld [vmem:[#allocation3 + $0x112] sm:$0xff]  ;;  %v5624_v56 = vld [vmem:[#allocation3 + $0x12a] sm:$0xff]  ;;  %4967 = vrot.lane.b32.xlu0 %v10582_v8, %s8982_s6  ;;  %8696 = vmatprep.mubr.msk.bf16.mxu0 %vm243_vm0, %v8848_v18 }
 0x3dd   : > { %5789 = vst.msk [vmem:[#allocation4 + $0x140] sm:$0xf] %vm520_vm2, %v8389_v10  ;;  %4803 = vst.msk [vmem:[#allocation4 + $0x4] sm:$0xf] %vm520_vm2, %v8141_v20  ;;  %v8382_v24 = vpack.c.bf16 %v5622_v60, %v5622_v60  ;;  %v8384_v52 = vpack.c.bf16 %v5624_v56, %v5624_v56  ;;  %v5096_v57 = vld [vmem:[#allocation3 + $0x68] sm:$0xff]  ;;  %v5350_v51 = vld [vmem:[#allocation3 + $0x51] sm:$0xff] }
 0x3de   : > { %5766 = vst.msk [vmem:[#allocation4 + $0x2c] sm:$0xf] %vm520_vm2, %v10670_v63  ;;  %5768 = vst.msk [vmem:[#allocation4 + $0x44] sm:$0xf] %vm520_vm2, %v10672_v35  ;;  %v5626_v4 = vld [vmem:[#allocation3 + $0x142] sm:$0xff]  ;;  %v5628_v45 = vld [vmem:[#allocation3 + $0x15a] sm:$0xff]  ;;  %v10718_v61 = vpack.c.bf16 %v5096_v57, %v5096_v57 }
 0x3df   : > { %5770 = vst.msk [vmem:[#allocation4 + $0x5c] sm:$0xf] %vm520_vm2, %v10674_v42  ;;  %5772 = vst.msk [vmem:[#allocation4 + $0x74] sm:$0xf] %vm520_vm2, %v10679_v58  ;;  %v8386_v16 = vpack.c.bf16 %v5626_v4, %v5626_v4  ;;  %v8388_v39 = vpack.c.bf16 %v5628_v45, %v5628_v45  ;;  %5225 = vrot.lane.b32.xlu1 %v10692_v59, %s8984_s25  ;;  %v5352_v0 = vld [vmem:[#allocation3 + $0x69] sm:$0xff]  ;;  %v5098_v11 = vld [vmem:[#allocation3 + $0x80] sm:$0xff] }
 0x3e0   : > { %5774 = vst.msk [vmem:[#allocation4 + $0x8c] sm:$0xf] %vm520_vm2, %v10681_v62  ;;  %4804 = vst.msk [vmem:[#allocation4 + $0x10] sm:$0xf] %vm520_vm2, %v8142_v46  ;;  %v5630_v36 = vld [vmem:[#allocation3 + $0x172] sm:$0xff]  ;;  %4263 = vrot.lane.b32.xlu0 %v10600_v47, %s8984_s25  ;;  %v10726_v34 = vpack.c.bf16 %v5352_v0, %v5352_v0  ;;  %v10740_v47 = vpack.c.bf16 %v5350_v51, %v5350_v51  ;;  %v10744_v55 = vpack.c.bf16 %v5098_v11, %v5098_v11  ;;  %v5354_v12 = vld [vmem:[#allocation3 + $0x81] sm:$0xff] }
 0x3e1   : > { %5776 = vst.msk [vmem:[#allocation4 + $0xa4] sm:$0xf] %vm520_vm2, %v10684_v25  ;;  %5778 = vst.msk [vmem:[#allocation4 + $0xbc] sm:$0xf] %vm520_vm2, %v8378_v7  ;;  %v8390_v30 = vpack.c.bf16 %v5630_v36, %v5630_v36  ;;  %v5353_v38 = vld [vmem:[#allocation3 + $0x79] sm:$0xff]  ;;  %v10752_v10 = vpack.c.bf16 %v5354_v12, %v5354_v12  ;;  %v5358_v13 = vld [vmem:[#allocation3 + $0xb1] sm:$0xff] }
 0x3e2   : > { %3850 = vst.msk [vmem:[#allocation4 + $0x54] sm:$0xf] %vm520_vm2, %v10692_v59  ;;  %5780 = vst.msk [vmem:[#allocation4 + $0xd4] sm:$0xf] %vm520_vm2, %v8380_v54  ;;  %v10750_v9 = vpack.c.bf16 %v5353_v38, %v5353_v38  ;;  %v3648_v44 = vld [vmem:[#allocation3 + $0x27] sm:$0x1]  ;;  %v10781_v60 = vpack.c.bf16 %v5358_v13, %v5358_v13 }
 0x3e3   : > { %5782 = vst.msk [vmem:[#allocation4 + $0xec] sm:$0xf] %vm520_vm2, %v8382_v24  ;;  %5784 = vst.msk [vmem:[#allocation4 + $0x104] sm:$0xf] %vm520_vm2, %v8384_v52  ;;  %4521 = vrot.lane.b32.xlu1 %v10536_v2, %s8983_s7  ;;  %v3612_v29 = vld [vmem:[#allocation3 + $0x1a] sm:$0x1] }
 0x3e4   : > { %5786 = vst.msk [vmem:[#allocation4 + $0x11c] sm:$0xf] %vm520_vm2, %v8386_v16  ;;  %5788 = vst.msk [vmem:[#allocation4 + $0x134] sm:$0xf] %vm520_vm2, %v8388_v39  ;;  %5479 = vrot.lane.b32.xlu0 %v10712_v27, %s8983_s7  ;;  %v3614_v43 = vld [vmem:[#allocation3 + $0x4a] sm:$0x1] }
 0x3e5   : > { %5790 = vst.msk [vmem:[#allocation4 + $0x14c] sm:$0xf] %vm520_vm2, %v8390_v30  ;;  %4807 = vst.msk [vmem:[#allocation4 + $0x34] sm:$0xf] %vm520_vm2, %v10712_v27  ;;  %v8849_v26 = vld [vmem:[#allocation4 + $0x20] ss:$12 sps:$4 sm:$0xff]  }
 0x3e6   : > { %v8850_v28 = vld [vmem:[#allocation4 + $0x38] ss:$12 sps:$4 sm:$0xff]   ;;  %3852 = vst.msk [vmem:[#allocation4 + $0x6c] sm:$0xf] %vm520_vm2, %v10718_v61  ;;  %8697 = vmatmul.mubr.msk.bf16.vlgmr.msra.gmra.mxu0 %vm243_vm0, %v8849_v26  ;;  %4809 = vst.msk [vmem:[#allocation4 + $0x4c] sm:$0xf] %vm520_vm2, %v10724_v48 }
 0x3e7   : > { %4810 = vst.msk [vmem:[#allocation4 + $0x58] sm:$0xf] %vm520_vm2, %v10726_v34  ;;  %8700 = vmatprep.mubr.msk.bf16.mxu0 %vm243_vm0, %v8850_v28  ;;  %5481 = vrot.lane.b32.xlu1 %v10740_v47, %s8983_s7  ;;  %v8851_v2 = vld [vmem:[#allocation4 + $0x50] ss:$12 sps:$4 sm:$0xff]   ;;  %3854 = vst.msk [vmem:[#allocation4 + $0x84] sm:$0xf] %vm520_vm2, %v10744_v55 }
 0x3e8   : > { %4011 = vrot.lane.b32.xlu0 %v10584_v23, %s8982_s6  ;;  %v8852_v41 = vld [vmem:[#allocation4 + $0x68] ss:$12 sps:$4 sm:$0xff]   ;;  %4811 = vst.msk [vmem:[#allocation4 + $0x64] sm:$0xf] %vm520_vm2, %v10750_v9  ;;  %4812 = vst.msk [vmem:[#allocation4 + $0x70] sm:$0xf] %vm520_vm2, %v10752_v10 }
 0x3e9   : > { %v5355_v23 = vld [vmem:[#allocation3 + $0x91] sm:$0xff]  ;;  %3666 = vst.msk [vmem:[#allocation3 + $0x29] sm:$0x1] %vm305_vm1, %v3648_v44  ;;  %3630 = vst.msk [vmem:[#allocation3 + $0x18] sm:$0x1] %vm305_vm1, %v3612_v29  ;;  %v5357_v7 = vld [vmem:[#allocation3 + $0xa9] sm:$0xff] }
 0x3ea   : > { %v10764_v20 = vpack.c.bf16 %v5355_v23, %v5355_v23  ;;  %v8853_v19 = vld [vmem:[#allocation4 + $0x80] ss:$12 sps:$4 sm:$0xff]   ;;  %v3615_v14 = vld [vmem:[#allocation3 + $0x62] sm:$0x1]  ;;  %v3616_v37 = vld [vmem:[#allocation3 + $0x7a] sm:$0x1]  ;;  %v10789_v56 = vpack.c.bf16 %v5357_v7, %v5357_v7 }
 0x3eb   : > { %4013 = vrot.lane.b32.xlu1 %v10635_v1, %s8982_s6  ;;  %v5091_v1 = vld [vmem:[#allocation3 + $0x30] sm:$0xff]  ;;  %3632 = vst.msk [vmem:[#allocation3 + $0x48] sm:$0x1] %vm305_vm1, %v3614_v43  ;;  %3633 = vst.msk [vmem:[#allocation3 + $0x60] sm:$0x1] %vm305_vm1, %v3615_v14  ;;  %v5359_v24 = vld [vmem:[#allocation3 + $0xc1] sm:$0xff] }
 0x3ec   : > { %4971 = vrot.lane.b32.xlu0 %v10621_v53, %s8982_s6  ;;  %v10769_v15 = vpack.c.bf16 %v5091_v1, %v5091_v1  ;;  %4813 = vst.msk [vmem:[#allocation4 + $0x7c] sm:$0xf] %vm520_vm2, %v10764_v20  ;;  %v3617_v21 = vld [vmem:[#allocation3 + $0x92] sm:$0x1]  ;;  %v3618_v46 = vld [vmem:[#allocation3 + $0xaa] sm:$0x1]  ;;  %v10795_v36 = vpack.c.bf16 %v5359_v24, %v5359_v24 }
 0x3ed   : > { %3634 = vst.msk [vmem:[#allocation3 + $0x78] sm:$0x1] %vm305_vm1, %v3616_v37  ;;  %v8854_v3 = vld [vmem:[#allocation4 + $0x98] ss:$12 sps:$4 sm:$0xff]   ;;  %3635 = vst.msk [vmem:[#allocation3 + $0x90] sm:$0x1] %vm305_vm1, %v3617_v21 }
 0x3ee   : > { %8701 = vmatmul.mubr.msk.bf16.gmra.mxu0 %vm243_vm0, %v8851_v2  ;;  %3636 = vst.msk [vmem:[#allocation3 + $0xa8] sm:$0x1] %vm305_vm1, %v3618_v46  ;;  %v3619_v4 = vld [vmem:[#allocation3 + $0xc2] sm:$0x1]  ;;  %v5360_v54 = vld [vmem:[#allocation3 + $0xc9] sm:$0xff]  ;;  %v4654_v14 = vld [vmem:[#allocation3 + $0x99] sm:$0xff] }
 0x3ef   : > { %8704 = vmatprep.mubr.msk.bf16.mxu0 %vm243_vm0, %v8852_v41  ;;  %5229 = vrot.lane.b32.xlu1 %v10718_v61, %s8984_s25  ;;  %3847 = vst.msk [vmem:[#allocation4 + $0x30] sm:$0xf] %vm520_vm2, %v10769_v15  ;;  %v10793_v45 = vpack.c.bf16 %v5360_v54, %v5360_v54  ;;  %v3620_v52 = vld [vmem:[#allocation3 + $0xda] sm:$0x1]  ;;  %4816 = vst.msk [vmem:[#allocation4 + $0xa0] sm:$0xf] %vm520_vm2, %v10781_v60  ;;  %v8246_v37 = vpack.c.bf16 %v4654_v14, %v4654_v14 }
 0x3f0   : > { %4267 = vrot.lane.b32.xlu0 %v10582_v8, %s8984_s25  ;;  %v3647_v8 = vld [vmem:[#allocation3 + $0xf] sm:$0x1]  ;;  %3637 = vst.msk [vmem:[#allocation3 + $0xc0] sm:$0x1] %vm305_vm1, %v3619_v4  ;;  %3638 = vst.msk [vmem:[#allocation3 + $0xd8] sm:$0x1] %vm305_vm1, %v3620_v52 }
 0x3f1   : > { %3665 = vst.msk [vmem:[#allocation3 + $0x11] sm:$0x1] %vm305_vm1, %v3647_v8  ;;  %v4387_v16 = vld [vmem:[#allocation3 + $0x18] sm:$0xff]  ;;  %v8855_v57 = vld [vmem:[#allocation4 + $0xb0] ss:$12 sps:$4 sm:$0xff]  }
 0x3f2   : > { %4815 = vst.msk [vmem:[#allocation4 + $0x94] sm:$0xf] %vm520_vm2, %v10789_v56  ;;  %4818 = vst.msk [vmem:[#allocation4 + $0xb8] sm:$0xf] %vm520_vm2, %v10793_v45  ;;  %v10811_v18 = vpack.c.bf16 %v4387_v16, %v4387_v16  ;;  %v5093_v39 = vld [vmem:[#allocation3 + $0x48] sm:$0xff]  ;;  %v5095_v30 = vld [vmem:[#allocation3 + $0x60] sm:$0xff] }
 0x3f3   : > { %4525 = vrot.lane.b32.xlu1 %v10692_v59, %s8983_s7  ;;  %v3611_v59 = vld [vmem:[#allocation3 + $0x2] sm:$0x1]  ;;  %4817 = vst.msk [vmem:[#allocation4 + $0xac] sm:$0xf] %vm520_vm2, %v10795_v36  ;;  %v10815_v5 = vpack.c.bf16 %v5093_v39, %v5093_v39  ;;  %v10817_v0 = vpack.c.bf16 %v5095_v30, %v5095_v30  ;;  %v3684_v51 = vld [vmem:[#allocation3 + $0x8] sm:$0xff]  ;;  %v3696_v46 = vld [vmem:[#allocation3 + $0x98] sm:$0xff] }
 0x3f4   : > { %5483 = vrot.lane.b32.xlu0 %v10724_v48, %s8983_s7  ;;  %3629 = vst.msk [vmem:[#allocation3] sm:$0x1] %vm305_vm1, %v3611_v59  ;;  %v5097_v50 = vld [vmem:[#allocation3 + $0x78] sm:$0xff]  ;;  %v5099_v28 = vld [vmem:[#allocation3 + $0x90] sm:$0xff]  ;;  %v8108_v38 = vpack.c.bf16 %v3684_v51, %v3684_v51  ;;  %v3622_v41 = vld [vmem:[#allocation3 + $0x10a] sm:$0x1] }
 0x3f5   : > { %v10819_v26 = vpack.c.bf16 %v5097_v50, %v5097_v50  ;;  %v8856_v11 = vld [vmem:[#allocation4 + $0xc8] ss:$12 sps:$4 sm:$0xff]   ;;  %3845 = vst.msk [vmem:[#allocation4 + $0x18] sm:$0xf] %vm520_vm2, %v10811_v18  ;;  %v10823_v2 = vpack.c.bf16 %v5099_v28, %v5099_v28  ;;  %v3621_v12 = vld [vmem:[#allocation3 + $0xf2] sm:$0x1] }
 0x3f6   : > { %8705 = vmatmul.mubr.msk.bf16.gmra.mxu0 %vm243_vm0, %v8853_v19  ;;  %3849 = vst.msk [vmem:[#allocation4 + $0x48] sm:$0xf] %vm520_vm2, %v10815_v5  ;;  %3851 = vst.msk [vmem:[#allocation4 + $0x60] sm:$0xf] %vm520_vm2, %v10817_v0  ;;  %v5366_v19 = vld [vmem:[#allocation3 + $0x111] sm:$0xff]  ;;  %v5365_v44 = vld [vmem:[#allocation3 + $0x109] sm:$0xff] }
 0x3f7   : > { %8708 = vmatprep.mubr.msk.bf16.mxu0 %vm243_vm0, %v8854_v3  ;;  %5485 = vrot.lane.b32.xlu1 %v10726_v34, %s8983_s7  ;;  %3853 = vst.msk [vmem:[#allocation4 + $0x78] sm:$0xf] %vm520_vm2, %v10819_v26  ;;  %3844 = vst.msk [vmem:[#allocation4 + $0xc] sm:$0xf] %vm520_vm2, %v8108_v38  ;;  %v10845_v29 = vpack.c.bf16 %v5366_v19, %v5366_v19  ;;  %v10847_v43 = vpack.c.bf16 %v5365_v44, %v5365_v44  ;;  %v3623_v21 = vld [vmem:[#allocation3 + $0x122] sm:$0x1] }
 0x3f8   : > { %4015 = vrot.lane.b32.xlu0 %v10712_v27, %s8982_s6  ;;  %3639 = vst.msk [vmem:[#allocation3 + $0xf0] sm:$0x1] %vm305_vm1, %v3621_v12  ;;  %v4648_v27 = vld [vmem:[#allocation3 + $0x51] sm:$0xff]  ;;  %3640 = vst.msk [vmem:[#allocation3 + $0x108] sm:$0x1] %vm305_vm1, %v3622_v41  ;;  %v8120_v3 = vpack.c.bf16 %v3696_v46, %v3696_v46  ;;  %v5368_v8 = vld [vmem:[#allocation3 + $0x129] sm:$0xff] }
 0x3f9   : > { %3855 = vst.msk [vmem:[#allocation4 + $0x90] sm:$0xf] %vm520_vm2, %v10823_v2  ;;  %v8857_v13 = vld [vmem:[#allocation4 + $0xe0] ss:$12 sps:$4 sm:$0xff]   ;;  %v5367_v7 = vld [vmem:[#allocation3 + $0x121] sm:$0xff]  ;;  %v10858_v54 = vpack.c.bf16 %v5368_v8, %v5368_v8 }
 0x3fa   : > { %3641 = vst.msk [vmem:[#allocation3 + $0x120] sm:$0x1] %vm305_vm1, %v3623_v21  ;;  %v8858_v4 = vld [vmem:[#allocation4 + $0xf8] ss:$12 sps:$4 sm:$0xff]   ;;  %v5114_v24 = vld [vmem:[#allocation3 + $0x140] sm:$0xff]  ;;  %v5100_v8 = vld [vmem:[#allocation3 + $0x98] sm:$0xff] }
 0x3fb   : > { %4017 = vrot.lane.b32.xlu1 %v10740_v47, %s8982_s6  ;;  %v8240_v47 = vpack.c.bf16 %v4648_v27, %v4648_v27  ;;  %v3683_v23 = vld [vmem:[#allocation3] sm:$0xff]  ;;  %4824 = vst.msk [vmem:[#allocation4 + $0x100] sm:$0xf] %vm520_vm2, %v10845_v29  ;;  %4823 = vst.msk [vmem:[#allocation4 + $0xf4] sm:$0xf] %vm520_vm2, %v10847_v43  ;;  %v10866_v52 = vpack.c.bf16 %v5114_v24, %v5114_v24  ;;  %v3698_v16 = vld [vmem:[#allocation3 + $0xb0] sm:$0xff] }
 0x3fc   : > { %4975 = vrot.lane.b32.xlu0 %v10623_v40, %s8982_s6  ;;  %v8107_v1 = vpack.c.bf16 %v3683_v23, %v3683_v23  ;;  %4814 = vst.msk [vmem:[#allocation4 + $0x88] sm:$0xf] %vm520_vm2, %v8246_v37  ;;  %3856 = vst.msk [vmem:[#allocation4 + $0x9c] sm:$0xf] %vm520_vm2, %v8120_v3  ;;  %v3624_v59 = vld [vmem:[#allocation3 + $0x13a] sm:$0x1]  ;;  %v8122_v30 = vpack.c.bf16 %v3698_v16, %v3698_v16 }
 0x3fd   : > { %4808 = vst.msk [vmem:[#allocation4 + $0x40] sm:$0xf] %vm520_vm2, %v8240_v47  ;;  %v3697_v39 = vld [vmem:[#allocation3 + $0xa8] sm:$0xff]  ;;  %v5369_v28 = vld [vmem:[#allocation3 + $0x139] sm:$0xff]  ;;  %4826 = vst.msk [vmem:[#allocation4 + $0x118] sm:$0xf] %vm520_vm2, %v10858_v54 }
 0x3fe   : > { %8709 = vmatmul.mubr.msk.bf16.gmra.mxu0 %vm243_vm0, %v8855_v57  ;;  %3843 = vst.msk [vmem:[#allocation4] sm:$0xf] %vm520_vm2, %v8107_v1  ;;  %v8121_v50 = vpack.c.bf16 %v3697_v39, %v3697_v39  ;;  %v5370_v57 = vld [vmem:[#allocation3 + $0x141] sm:$0xff]  ;;  %v10878_v51 = vpack.c.bf16 %v5369_v28, %v5369_v28  ;;  %3870 = vst.msk [vmem:[#allocation4 + $0x144] sm:$0xf] %vm520_vm2, %v10866_v52  ;;  %v5372_v19 = vld [vmem:[#allocation3 + $0x159] sm:$0xff] }
 0x3ff   : > { %8712 = vmatprep.mubr.msk.bf16.mxu0 %vm243_vm0, %v8856_v11  ;;  %5233 = vrot.lane.b32.xlu1 %v10744_v55, %s8984_s25  ;;  %3642 = vst.msk [vmem:[#allocation3 + $0x138] sm:$0x1] %vm305_vm1, %v3624_v59  ;;  %v5116_v11 = vld [vmem:[#allocation3 + $0x158] sm:$0xff]  ;;  %v3625_v12 = vld [vmem:[#allocation3 + $0x152] sm:$0x1]  ;;  %v3700_v27 = vld [vmem:[#allocation3 + $0xc8] sm:$0xff]  ;;  %v10893_v21 = vpack.c.bf16 %v5372_v19, %v5372_v19 }
 0x400   : > { %4271 = vrot.lane.b32.xlu0 %v10621_v53, %s8984_s25  ;;  %v10860_v53 = vpack.c.bf16 %v5367_v7, %v5367_v7  ;;  %3858 = vst.msk [vmem:[#allocation4 + $0xb4] sm:$0xf] %vm520_vm2, %v8122_v30  ;;  %3857 = vst.msk [vmem:[#allocation4 + $0xa8] sm:$0xf] %vm520_vm2, %v8121_v50  ;;  %v10884_v38 = vpack.c.bf16 %v5116_v11, %v5116_v11  ;;  %v3699_v47 = vld [vmem:[#allocation3 + $0xc0] sm:$0xff]  ;;  %v8124_v41 = vpack.c.bf16 %v3700_v27, %v3700_v27  ;;  %v5371_v44 = vld [vmem:[#allocation3 + $0x151] sm:$0xff] }
 0x401   : > { %3643 = vst.msk [vmem:[#allocation3 + $0x150] sm:$0x1] %vm305_vm1, %v3625_v12  ;;  %v8123_v23 = vpack.c.bf16 %v3699_v47, %v3699_v47  ;;  %v4660_v1 = vld [vmem:[#allocation3 + $0xe1] sm:$0xff]  ;;  %v10895_v46 = vpack.c.bf16 %v5371_v44, %v5371_v44  ;;  %v4659_v3 = vld [vmem:[#allocation3 + $0xd9] sm:$0xff]  ;;  %v3626_v24 = vld [vmem:[#allocation3 + $0x16a] sm:$0x1] }
 0x402   : > { %4825 = vst.msk [vmem:[#allocation4 + $0x10c] sm:$0xf] %vm520_vm2, %v10860_v53  ;;  %4827 = vst.msk [vmem:[#allocation4 + $0x124] sm:$0xf] %vm520_vm2, %v10878_v51  ;;  %v8859_v14 = vld [vmem:[#allocation4 + $0x110] ss:$12 sps:$4 sm:$0xff]   ;;  %v8251_v7 = vpack.c.bf16 %v4659_v3, %v4659_v3 }
 0x403   : > { %4529 = vrot.lane.b32.xlu1 %v10718_v61, %s8983_s7  ;;  %v10876_v61 = vpack.c.bf16 %v5370_v57, %v5370_v57  ;;  %v8860_v37 = vld [vmem:[#allocation4 + $0x128] ss:$12 sps:$4 sm:$0xff]   ;;  %3872 = vst.msk [vmem:[#allocation4 + $0x15c] sm:$0xf] %vm520_vm2, %v10884_v38  ;;  %3860 = vst.msk [vmem:[#allocation4 + $0xcc] sm:$0xf] %vm520_vm2, %v8124_v41 }
 0x404   : > { %5487 = vrot.lane.b32.xlu0 %v10750_v9, %s8983_s7  ;;  %3859 = vst.msk [vmem:[#allocation4 + $0xc0] sm:$0xf] %vm520_vm2, %v8123_v23  ;;  %v3702_v16 = vld [vmem:[#allocation3 + $0xe0] sm:$0xff]  ;;  %v3701_v39 = vld [vmem:[#allocation3 + $0xd8] sm:$0xff]  ;;  %4830 = vst.msk [vmem:[#allocation4 + $0x148] sm:$0xf] %vm520_vm2, %v10893_v21 }
 0x405   : > { %4828 = vst.msk [vmem:[#allocation4 + $0x130] sm:$0xf] %vm520_vm2, %v10876_v61  ;;  %v5374_v30 = vld [vmem:[#allocation3 + $0x171] sm:$0xff]  ;;  %4829 = vst.msk [vmem:[#allocation4 + $0x13c] sm:$0xf] %vm520_vm2, %v10895_v46  ;;  %v8126_v50 = vpack.c.bf16 %v3702_v16, %v3702_v16  ;;  %v8125_v57 = vpack.c.bf16 %v3701_v39, %v3701_v39  ;;  %v5373_v11 = vld [vmem:[#allocation3 + $0x169] sm:$0xff] }
 0x406   : > { %8713 = vmatmul.mubr.msk.bf16.gmra.mxu0 %vm243_vm0, %v8857_v13  ;;  %v8252_v13 = vpack.c.bf16 %v4660_v1, %v4660_v1  ;;  %3644 = vst.msk [vmem:[#allocation3 + $0x168] sm:$0x1] %vm305_vm1, %v3626_v24  ;;  %v10915_v28 = vpack.c.bf16 %v5374_v30, %v5374_v30  ;;  %v4662_v12 = vld [vmem:[#allocation3 + $0xf9] sm:$0xff]  ;;  %v10921_v47 = vpack.c.bf16 %v5373_v11, %v5373_v11  ;;  %v4661_v23 = vld [vmem:[#allocation3 + $0xf1] sm:$0xff]  ;;  %v3705_v16 = vld [vmem:[#allocation3 + $0x108] sm:$0xff] }
 0x407   : > { %8716 = vmatprep.mubr.msk.bf16.mxu0 %vm243_vm0, %v8858_v4  ;;  %5489 = vrot.lane.b32.xlu1 %v10752_v10, %s8983_s7  ;;  %v5118_v4 = vld [vmem:[#allocation3 + $0x170] sm:$0xff]  ;;  %4819 = vst.msk [vmem:[#allocation4 + $0xc4] sm:$0xf] %vm520_vm2, %v8251_v7  ;;  %v8254_v41 = vpack.c.bf16 %v4662_v12, %v4662_v12  ;;  %3862 = vst.msk [vmem:[#allocation4 + $0xe4] sm:$0xf] %vm520_vm2, %v8126_v50  ;;  %v8253_v19 = vpack.c.bf16 %v4661_v23, %v4661_v23  ;;  %v3704_v44 = vld [vmem:[#allocation3 + $0xf8] sm:$0xff] }
 0x408   : > { %4019 = vrot.lane.b32.xlu0 %v10724_v48, %s8982_s6  ;;  %4820 = vst.msk [vmem:[#allocation4 + $0xd0] sm:$0xf] %vm520_vm2, %v8252_v13  ;;  %v10904_v59 = vpack.c.bf16 %v5118_v4, %v5118_v4  ;;  %v5113_v48 = vld [vmem:[#allocation3 + $0x138] sm:$0xff]  ;;  %3861 = vst.msk [vmem:[#allocation4 + $0xd8] sm:$0xf] %vm520_vm2, %v8125_v57  ;;  %v3703_v1 = vld [vmem:[#allocation3 + $0xf0] sm:$0xff] }
 0x409   : > { %3610 = vst.msk [vmem:[#allocation3 + $0x1a1] sm:$0xff] %vm243_vm0, %v5374_v30  ;;  %v10919_v27 = vpack.c.bf16 %v5113_v48, %v5113_v48  ;;  %3609 = vst.msk [vmem:[#allocation3 + $0x199] sm:$0xff] %vm243_vm0, %v5373_v11  ;;  %v8127_v13 = vpack.c.bf16 %v3703_v1, %v3703_v1  ;;  %v4866_v3 = vld [vmem:[#allocation3 + $0x18a] sm:$0xff]  ;;  %v3707_v30 = vld [vmem:[#allocation3 + $0x120] sm:$0xff]  ;;  %v8129_v48 = vpack.c.bf16 %v3705_v16, %v3705_v16 }
 0x40a   : > { %3874 = vst.msk [vmem:[#allocation4 + $0x174] sm:$0xf] %vm520_vm2, %v10904_v59  ;;  %4832 = vst.msk [vmem:[#allocation4 + $0x160] sm:$0xf] %vm520_vm2, %v10915_v28  ;;  %v3706_v7 = vld [vmem:[#allocation3 + $0x110] sm:$0xff]  ;;  %v10944_v4 = vpack.c.bf16 %v4866_v3, %v4866_v3  ;;  %v3708_v39 = vld [vmem:[#allocation3 + $0x128] sm:$0xff]  ;;  %v8131_v57 = vpack.c.bf16 %v3707_v30, %v3707_v30 }
 0x40b   : > { %4021 = vrot.lane.b32.xlu1 %v10726_v34, %s8982_s6  ;;  %v10928_v34 = vpack.c.bf16 %v5100_v8, %v5100_v8  ;;  %4822 = vst.msk [vmem:[#allocation4 + $0xe8] sm:$0xf] %vm520_vm2, %v8254_v41  ;;  %3869 = vst.msk [vmem:[#allocation4 + $0x138] sm:$0xf] %vm520_vm2, %v10919_v27  ;;  %v8130_v24 = vpack.c.bf16 %v3706_v7, %v3706_v7  ;;  %v8132_v50 = vpack.c.bf16 %v3708_v39, %v3708_v39  ;;  %v8861_v11 = vld [vmem:[#allocation4 + $0x140] ss:$12 sps:$4 sm:$0xff]  }
 0x40c   : > { %4979 = vrot.lane.b32.xlu0 %v10627_v31, %s8982_s6  ;;  %4831 = vst.msk [vmem:[#allocation4 + $0x154] sm:$0xf] %vm520_vm2, %v10921_v47  ;;  %4821 = vst.msk [vmem:[#allocation4 + $0xdc] sm:$0xf] %vm520_vm2, %v8253_v19  ;;  %v5356_v41 = vld [vmem:[#allocation3 + $0x99] sm:$0xff]  ;;  %v3875_v7 = vld [vmem:[#allocation3 + $0x1] sm:$0xff] }
 0x40d   : > { %3863 = vst.msk [vmem:[#allocation4 + $0xf0] sm:$0xf] %vm520_vm2, %v8127_v13  ;;  %v5117_v12 = vld [vmem:[#allocation3 + $0x168] sm:$0xff]  ;;  %3866 = vst.msk [vmem:[#allocation4 + $0x114] sm:$0xf] %vm520_vm2, %v8130_v24  ;;  %v10969_v1 = vpack.c.bf16 %v5356_v41, %v5356_v41  ;;  %v8868_v41 = vld [vmem:[%s12195_s2 + $0x60] sm:$0xff]  }
 0x40e   : > { %8717 = vmatmul.mubr.msk.bf16.gmra.mxu0 %vm243_vm0, %v8859_v14  ;;  %v5115_v14 = vld [vmem:[#allocation3 + $0x150] sm:$0xff]  ;;  %5792 = vst.msk [vmem:[#allocation4 + $0x164] sm:$0xf] %vm520_vm2, %v10944_v4  ;;  %v10955_v23 = vpack.c.bf16 %v5117_v12, %v5117_v12  ;;  %3865 = vst.msk [vmem:[#allocation4 + $0x108] sm:$0xf] %vm520_vm2, %v8129_v48  ;;  %v4131_v24 = vld [vmem:[#allocation3 + $0x2] sm:$0xff] }
 0x40f   : > { %8720 = vmatprep.mubr.msk.bf16.mxu0 %vm243_vm0, %v8860_v37  ;;  %v8128_v37 = vpack.c.bf16 %v3704_v44, %v3704_v44  ;;  %5237 = vrot.lane.b32.xlu1 %v10928_v34, %s8984_s25  ;;  %v10941_v8 = vpack.c.bf16 %v5115_v14, %v5115_v14  ;;  %3868 = vst.msk [vmem:[#allocation4 + $0x12c] sm:$0xf] %vm520_vm2, %v8132_v50  ;;  %3867 = vst.msk [vmem:[#allocation4 + $0x120] sm:$0xf] %vm520_vm2, %v8131_v57  ;;  %v4836_v39 = vld [vmem:[#allocation3 + $0x22] sm:$0xff] }
 0x410   : > { %4275 = vrot.lane.b32.xlu0 %v10623_v40, %s8984_s25  ;;  %v3664_v19 = vld [vmem:[#allocation3 + $0x1a7] sm:$0x1]  ;;  %v3628_v40 = vld [vmem:[#allocation3 + $0x19a] sm:$0x1]  ;;  %3873 = vst.msk [vmem:[#allocation4 + $0x168] sm:$0xf] %vm520_vm2, %v10955_v23  ;;  %v8171_v30 = vpack.c.bf16 %v4131_v24, %v4131_v24  ;;  %v8268_v48 = vpack.c.bf16 %v4836_v39, %v4836_v39 }
 0x411   : > { %3864 = vst.msk [vmem:[#allocation4 + $0xfc] sm:$0xf] %vm520_vm2, %v8128_v37  ;;  %3871 = vst.msk [vmem:[#allocation4 + $0x150] sm:$0xf] %vm520_vm2, %v10941_v8  ;;  %v5633_v44 = vld [vmem:[#allocation3 + $0x19a] sm:$0xff]  ;;  %v4132_v39 = vld [vmem:[#allocation3 + $0xa] sm:$0xff] }
 0x412   : > { %3682 = vst.msk [vmem:[#allocation3 + $0x1a9] sm:$0x1] %vm305_vm1, %v3664_v19  ;;  %3646 = vst.msk [vmem:[#allocation3 + $0x198] sm:$0x1] %vm305_vm1, %v3628_v40  ;;  %v8393_v14 = vpack.c.bf16 %v5633_v44, %v5633_v44  ;;  %v8869_v19 = vld [vmem:[%s12195_s2 + $0x20] sm:$0xff]   ;;  %v8870_v44 = vld [vmem:[%s12195_s2 + $0x58] sm:$0xff]  }
 0x413   : > { %4533 = vrot.lane.b32.xlu1 %v10744_v55, %s8983_s7  ;;  %v5102_v55 = vld [vmem:[#allocation3 + $0xb0] sm:$0xff]  ;;  %v8874_v24 = vld [vmem:[%s12195_s2 + $0x48] sm:$0xff]  }
 0x414   : > { %5491 = vrot.lane.b32.xlu0 %v10764_v20, %s8983_s7  ;;  %5793 = vst.msk [vmem:[#allocation4 + $0x170] sm:$0xf] %vm520_vm2, %v8393_v14  ;;  %v10980_v3 = vpack.c.bf16 %v5102_v55, %v5102_v55  ;;  %v8871_v14 = vld [vmem:[%s12195_s2 + $0x18] sm:$0xff]  }
 0x416   : > { %8721 = vmatmul.mubr.msk.bf16.gmra.mxu0 %vm243_vm0, %v8861_v11  ;;  %v8867_v11 = vld [vmem:[%s12195_s2 + $0x28] sm:$0xff]  }
 0x417   : > { %5493 = vrot.lane.b32.xlu1 %v10969_v1, %s8983_s7 }
 0x418   : > { %4023 = vrot.lane.b32.xlu0 %v10750_v9, %s8982_s6  ;;  %v3876_v9 = vld [vmem:[#allocation3 + $0x9] sm:$0xff] }
 0x419   : > { %v5634_v37 = vld [vmem:[#allocation3 + $0x1a2] sm:$0xff]  ;;  %v8140_v16 = vpack.c.bf16 %v3876_v9, %v3876_v9 }
 0x41a   : > { %v8394_v13 = vpack.c.bf16 %v5634_v37, %v5634_v37  ;;  %v8872_v37 = vld [vmem:[%s12195_s2 + $0x50] sm:$0xff]  }
 0x41b   : > { %4025 = vrot.lane.b32.xlu1 %v10752_v10, %s8982_s6  ;;  %v8139_v10 = vpack.c.bf16 %v3875_v7, %v3875_v7 }
 0x41c   : > { %4983 = vrot.lane.b32.xlu0 %v10629_v33, %s8982_s6  ;;  %5794 = vst.msk [vmem:[#allocation4 + $0x17c] sm:$0xf] %vm520_vm2, %v8394_v13  ;;  %v8873_v13 = vld [vmem:[%s12195_s2 + $0x10] sm:$0xff]  }
 0x41f   : > { %5241 = vrot.lane.b32.xlu1 %v10980_v3, %s8984_s25 }
 0x420   : > { %4279 = vrot.lane.b32.xlu0 %v10627_v31, %s8984_s25 }
 0x423   : > { %4537 = vrot.lane.b32.xlu1 %v10928_v34, %s8983_s7  ;;  %v8863_v34 = vld [vmem:[%s12195_s2 + $0x38] sm:$0xff]  }
 0x424   : > { %4003 = vrot.lane.b32.xlu0 %v8139_v10, %s8982_s6 }
 0x427   : > { %4005 = vrot.lane.b32.xlu1 %v8140_v16, %s8982_s6  ;;  %v8875_v16 = vld [vmem:[%s12195_s2 + $0x8] sm:$0xff]  }
 0x428   : > { %4259 = vrot.lane.b32.xlu0 %v8171_v30, %s8984_s25 }
 0x42b   : > { %4965 = vrot.lane.b32.xlu1 %v8268_v48, %s8982_s6 }
 0x42c   : > { %5219 = vrot.lane.b32.xlu0 %v10769_v15, %s8984_s25 }
 0x42f   : > { %4969 = vrot.lane.b32.xlu1 %v10608_v6, %s8982_s6 }
 0x430   : > { %4515 = vrot.lane.b32.xlu0 %v10811_v18, %s8983_s7  ;;  %v11008_v31 = vpop.permute.xlu1 %5221  ;;  %v8862_v18 = vld [vmem:[%s12195_s2 + $0x78] sm:$0xff]  }
 0x431   : > { %8526 = vmatprep.subr.bf16.mxu1 %v8862_v18 }
 0x432   : > { %8527 = vmatpush3.bf16.msra.mxu1 %v8863_v34  ;;  %v8172_v34 = vpack.c.bf16 %v4132_v39, %v4132_v39 }
 0x433   : > { %4265 = vrot.lane.b32.xlu1 %v8268_v48, %s8984_s25  ;;  %v8877_v48 = vld [vmem:[%s12195_s2] sm:$0xff]  }
 0x434   : > { %5223 = vrot.lane.b32.xlu0 %v10815_v5, %s8984_s25 }
 0x437   : > { %4973 = vrot.lane.b32.xlu1 %v10670_v63, %s8982_s6 }
 0x438   : > { %4519 = vrot.lane.b32.xlu0 %v10769_v15, %s8983_s7  ;;  %v8865_v15 = vld [vmem:[%s12195_s2 + $0x30] sm:$0xff]  }
 0x439   : > { %v4964_v50 = vpop.permute.xlu0 %4963 }
 0x43a   : > { %v11028_v57 = vpop.permute.xlu1 %4517  ;;  %5059 = vst.msk [vmem:[#allocation4 + $0x4] sm:$0xf] %vm777_vm3, %v4964_v50  ;;  %v11113_v50 = vld [vmem:[%s12195_s2 + $0x88] sm:$0xff]  }
 0x43b   : > { %4269 = vrot.lane.b32.xlu1 %v10608_v6, %s8984_s25  ;;  %v8864_v6 = vld [vmem:[%s12195_s2 + $0x70] sm:$0xff]  }
 0x43c   : > { %5227 = vrot.lane.b32.xlu0 %v10817_v0, %s8984_s25  ;;  %8528 = vmatprep.subr.bf16.mxu1 %v8864_v6 }
 0x43d   : > { %8529 = vmatpush3.bf16.msra.mxu1 %v8865_v15  ;;  %v11041_v12 = vpop.permute.xlu0 %5475 }
 0x43f   : > { %4977 = vrot.lane.b32.xlu1 %v10672_v35, %s8982_s6 }
 0x440   : > { %4523 = vrot.lane.b32.xlu0 %v10815_v5, %s8983_s7  ;;  %v8866_v5 = vld [vmem:[%s12195_s2 + $0x68] sm:$0xff]  }
 0x441   : > { %8530 = vmatprep.subr.bf16.mxu1 %v8866_v5 }
 0x442   : > { %8531 = vmatpush3.bf16.msra.mxu1 %v8867_v11 }
 0x443   : > { %4273 = vrot.lane.b32.xlu1 %v10670_v63, %s8984_s25  ;;  %v11045_v63 = vpop.permute.xlu1 %5477  ;;  %8532 = vmatprep.subr.bf16.mxu1 %v8868_v41 }
 0x444   : > { %5231 = vrot.lane.b32.xlu0 %v10819_v26, %s8984_s25 }
 0x446   : > { %8533 = vmatpush3.bf16.msra.mxu1 %v8869_v19  ;;  %v5104_v19 = vld [vmem:[#allocation3 + $0xc8] sm:$0xff] }
 0x447   : > { %4981 = vrot.lane.b32.xlu1 %v10674_v42, %s8982_s6  ;;  %8534 = vmatprep.subr.bf16.mxu1 %v8870_v44  ;;  %v8312_v44 = vpack.c.bf16 %v5104_v19, %v5104_v19 }
 0x448   : > { %4527 = vrot.lane.b32.xlu0 %v10817_v0, %s8983_s7 }
 0x44a   : > { %v4008_v40 = vpop.permute.xlu0 %4007  ;;  %8535 = vmatpush3.bf16.msra.mxu1 %v8871_v14 }
 0x44b   : > { %4277 = vrot.lane.b32.xlu1 %v10672_v35, %s8984_s25  ;;  %4101 = vst.msk [vmem:[#allocation4 + $0x18] sm:$0xf] %vm777_vm3, %v4008_v40  ;;  %v5101_v35 = vld [vmem:[#allocation3 + $0xa8] sm:$0xff]  ;;  %8536 = vmatprep.subr.bf16.mxu1 %v8872_v37 }
 0x44c   : > { %5235 = vrot.lane.b32.xlu0 %v10823_v2, %s8984_s25  ;;  %v8309_v10 = vpack.c.bf16 %v5101_v35, %v5101_v35 }
 0x44d   : > { %v4010_v0 = vpop.permute.xlu1 %4009 }
 0x44e   : > { %4102 = vst.msk [vmem:[#allocation4 + $0x24] sm:$0xf] %vm777_vm3, %v4010_v0  ;;  %v4968_v55 = vpop.permute.xlu0 %4967  ;;  %8537 = vmatpush3.bf16.msra.mxu1 %v8873_v13 }
 0x44f   : > { %4985 = vrot.lane.b32.xlu1 %v10679_v58, %s8982_s6  ;;  %5061 = vst.msk [vmem:[#allocation4 + $0x1c] sm:$0xf] %vm777_vm3, %v4968_v55  ;;  %8538 = vmatprep.subr.bf16.mxu1 %v8874_v24  ;;  %v5106_v24 = vld [vmem:[#allocation3 + $0xe0] sm:$0xff] }
 0x450   : > { %4531 = vrot.lane.b32.xlu0 %v10819_v26, %s8983_s7  ;;  %v8314_v39 = vpack.c.bf16 %v5106_v24, %v5106_v24  ;;  %v5108_v24 = vld [vmem:[#allocation3 + $0xf8] sm:$0xff] }
 0x451   : > { %v11078_v7 = vpop.permute.xlu1 %5225 }
 0x452   : > { %v4264_v9 = vpop.permute.xlu0 %4263  ;;  %8539 = vmatpush3.bf16.msra.mxu1 %v8875_v16  ;;  %v5105_v16 = vld [vmem:[#allocation3 + $0xd8] sm:$0xff] }
 0x453   : > { %4281 = vrot.lane.b32.xlu1 %v10674_v42, %s8984_s25  ;;  %4357 = vst.msk [vmem:[#allocation4 + $0x18] sm:$0xf] %vm1034_vm4, %v4264_v9  ;;  %v8876_v42 = vld [vmem:[%s12195_s2 + $0x40] sm:$0xff]  }
 0x454   : > { %5239 = vrot.lane.b32.xlu0 %v8309_v10, %s8984_s25  ;;  %8540 = vmatprep.subr.bf16.mxu1 %v8876_v42  ;;  %v4145_v9 = vld [vmem:[#allocation3 + $0xaa] sm:$0xff] }
 0x455   : > { %v11090_v26 = vpop.permute.xlu1 %4521 }
 0x456   : > { %v11092_v30 = vpop.permute.xlu0 %5479  ;;  %8541 = vmatpush3.bf16.msra.mxu1 %v8877_v48 }
 0x457   : > { %5497 = vrot.lane.b32.xlu1 %v10781_v60, %s8983_s7  ;;  %8728 = vmatprep.subr.bf16.mxu1 %v11113_v50 }
 0x458   : > { %4535 = vrot.lane.b32.xlu0 %v10823_v2, %s8983_s7 }
 0x459   : > { %v11104_v18 = vpop.permute.xlu1 %5481 }
 0x45a   : > { %v4012_v6 = vpop.permute.xlu0 %4011 }
 0x45b   : > { %4261 = vrot.lane.b32.xlu1 %v8172_v34, %s8984_s25  ;;  %4103 = vst.msk [vmem:[#allocation4 + $0x30] sm:$0xf] %vm777_vm3, %v4012_v6  ;;  %v5361_v6 = vld [vmem:[#allocation3 + $0xd9] sm:$0xff] }
 0x45c   : > { %5495 = vrot.lane.b32.xlu0 %v10789_v56, %s8983_s7  ;;  %v11191_v19 = vpack.c.bf16 %v5361_v6, %v5361_v6 }
 0x45d   : > { %v4014_v15 = vpop.permute.xlu1 %4013 }
 0x45e   : > { %4104 = vst.msk [vmem:[#allocation4 + $0x3c] sm:$0xf] %vm777_vm3, %v4014_v15  ;;  %v4972_v2 = vpop.permute.xlu0 %4971 }
 0x45f   : > { %4029 = vrot.lane.b32.xlu1 %v10969_v1, %s8982_s6  ;;  %5063 = vst.msk [vmem:[#allocation4 + $0x34] sm:$0xf] %vm777_vm3, %v4972_v2 }
 0x460   : > { %4027 = vrot.lane.b32.xlu0 %v10764_v20, %s8982_s6  ;;  %v5103_v20 = vld [vmem:[#allocation3 + $0xc0] sm:$0xff] }
 0x461   : > { %v11122_v5 = vpop.permute.xlu1 %5229  ;;  %v8311_v0 = vpack.c.bf16 %v5103_v20, %v5103_v20 }
 0x462   : > { %v4268_v11 = vpop.permute.xlu0 %4267 }
 0x463   : > { %4989 = vrot.lane.b32.xlu1 %v10681_v62, %s8982_s6  ;;  %4359 = vst.msk [vmem:[#allocation4 + $0x30] sm:$0xf] %vm1034_vm4, %v4268_v11 }
 0x464   : > { %4987 = vrot.lane.b32.xlu0 %v10639_v49, %s8982_s6 }
 0x465   : > { %v11129_v41 = vpop.permute.xlu1 %4525 }
 0x466   : > { %v11131_v1 = vpop.permute.xlu0 %5483 }
 0x467   : > { %4285 = vrot.lane.b32.xlu1 %v10679_v58, %s8984_s25 }
 0x468   : > { %4283 = vrot.lane.b32.xlu0 %v10629_v33, %s8984_s25 }
 0x469   : > { %v11137_v40 = vpop.permute.xlu1 %5485 }
 0x46a   : > { %v4016_v14 = vpop.permute.xlu0 %4015 }
 0x46b   : > { %5245 = vrot.lane.b32.xlu1 %v8312_v44, %s8984_s25  ;;  %4105 = vst.msk [vmem:[#allocation4 + $0x48] sm:$0xf] %vm777_vm3, %v4016_v14 }
 0x46c   : > { %5243 = vrot.lane.b32.xlu0 %v8311_v0, %s8984_s25 }
 0x46d   : > { %v4018_v49 = vpop.permute.xlu1 %4017 }
 0x46e   : > { %4106 = vst.msk [vmem:[#allocation4 + $0x54] sm:$0xf] %vm777_vm3, %v4018_v49  ;;  %v4976_v55 = vpop.permute.xlu0 %4975 }
 0x46f   : > { %4541 = vrot.lane.b32.xlu1 %v10980_v3, %s8983_s7  ;;  %5065 = vst.msk [vmem:[#allocation4 + $0x4c] sm:$0xf] %vm777_vm3, %v4976_v55 }
 0x470   : > { %4539 = vrot.lane.b32.xlu0 %v8309_v10, %s8983_s7 }
 0x471   : > { %v11147_v33 = vpop.permute.xlu1 %5233 }
 0x472   : > { %v4272_v58 = vpop.permute.xlu0 %4271 }
 0x473   : > { %5501 = vrot.lane.b32.xlu1 %v10793_v45, %s8983_s7  ;;  %4361 = vst.msk [vmem:[#allocation4 + $0x48] sm:$0xf] %vm1034_vm4, %v4272_v58  ;;  %v4148_v58 = vld [vmem:[#allocation3 + $0xca] sm:$0xff] }
 0x474   : > { %5499 = vrot.lane.b32.xlu0 %v10795_v36, %s8983_s7 }
 0x475   : > { %v11154_v35 = vpop.permute.xlu1 %4529 }
 0x476   : > { %v11156_v37 = vpop.permute.xlu0 %5487 }
 0x477   : > { %4033 = vrot.lane.b32.xlu1 %v10781_v60, %s8982_s6 }
 0x478   : > { %4031 = vrot.lane.b32.xlu0 %v10789_v56, %s8982_s6  ;;  %v8185_v56 = vpack.c.bf16 %v4145_v9, %v4145_v9 }
 0x479   : > { %v11162_v3 = vpop.permute.xlu1 %5489 }
 0x47a   : > { %v4020_v13 = vpop.permute.xlu0 %4019 }
 0x47b   : > { %4993 = vrot.lane.b32.xlu1 %v10684_v25, %s8982_s6  ;;  %4107 = vst.msk [vmem:[#allocation4 + $0x60] sm:$0xf] %vm777_vm3, %v4020_v13 }
 0x47c   : > { %4991 = vrot.lane.b32.xlu0 %v10647_v32, %s8982_s6  ;;  %v8313_v32 = vpack.c.bf16 %v5105_v16, %v5105_v16  ;;  %v5107_v16 = vld [vmem:[#allocation3 + $0xf0] sm:$0xff] }
 0x47d   : > { %v4022_v10 = vpop.permute.xlu1 %4021 }
 0x47e   : > { %4108 = vst.msk [vmem:[#allocation4 + $0x6c] sm:$0xf] %vm777_vm3, %v4022_v10  ;;  %v4980_v60 = vpop.permute.xlu0 %4979 }
 0x47f   : > { %4289 = vrot.lane.b32.xlu1 %v10681_v62, %s8984_s25  ;;  %5067 = vst.msk [vmem:[#allocation4 + $0x64] sm:$0xf] %vm777_vm3, %v4980_v60  ;;  %v5362_v62 = vld [vmem:[#allocation3 + $0xe1] sm:$0xff] }
 0x480   : > { %4287 = vrot.lane.b32.xlu0 %v8185_v56, %s8984_s25  ;;  %v11187_v2 = vpack.c.bf16 %v5362_v62, %v5362_v62  ;;  %v11218_v62 = vpack.c.bf16 %v5108_v24, %v5108_v24 }
 0x481   : > { %v11174_v25 = vpop.permute.xlu1 %5237 }
 0x482   : > { %v4276_v42 = vpop.permute.xlu0 %4275 }
 0x483   : > { %5249 = vrot.lane.b32.xlu1 %v8314_v39, %s8984_s25  ;;  %4363 = vst.msk [vmem:[#allocation4 + $0x60] sm:$0xf] %vm1034_vm4, %v4276_v42 }
 0x484   : > { %5247 = vrot.lane.b32.xlu0 %v8313_v32, %s8984_s25 }
 0x485   : > { %v11179_v48 = vpop.permute.xlu1 %4533 }
 0x486   : > { %v11181_v34 = vpop.permute.xlu0 %5491 }
 0x487   : > { %4545 = vrot.lane.b32.xlu1 %v8312_v44, %s8983_s7  ;;  %v4852_v44 = vld [vmem:[#allocation3 + $0xe2] sm:$0xff] }
 0x488   : > { %4543 = vrot.lane.b32.xlu0 %v8311_v0, %s8983_s7  ;;  %v4851_v0 = vld [vmem:[#allocation3 + $0xda] sm:$0xff]  ;;  %v11204_v55 = vpack.c.bf16 %v4852_v44, %v4852_v44 }
 0x489   : > { %v11185_v15 = vpop.permute.xlu1 %5493  ;;  %v11208_v9 = vpack.c.bf16 %v4851_v0, %v4851_v0  ;;  %v5364_v44 = vld [vmem:[#allocation3 + $0xf9] sm:$0xff]  ;;  %v5363_v0 = vld [vmem:[#allocation3 + $0xf1] sm:$0xff] }
 0x48a   : > { %v4024_v11 = vpop.permute.xlu0 %4023 }
 0x48b   : > { %5505 = vrot.lane.b32.xlu1 %v11187_v2, %s8983_s7  ;;  %4109 = vst.msk [vmem:[#allocation4 + $0x78] sm:$0xf] %vm777_vm3, %v4024_v11  ;;  %v11223_v11 = vpack.c.bf16 %v5107_v16, %v5107_v16 }
 0x48c   : > { %5503 = vrot.lane.b32.xlu0 %v11191_v19, %s8983_s7 }
 0x48d   : > { %v4026_v20 = vpop.permute.xlu1 %4025 }
 0x48e   : > { %4110 = vst.msk [vmem:[#allocation4 + $0x84] sm:$0xf] %vm777_vm3, %v4026_v20  ;;  %v4984_v14 = vpop.permute.xlu0 %4983 }
 0x48f   : > { %4037 = vrot.lane.b32.xlu1 %v10793_v45, %s8982_s6  ;;  %5069 = vst.msk [vmem:[#allocation4 + $0x7c] sm:$0xf] %vm777_vm3, %v4984_v14  ;;  %v4147_v45 = vld [vmem:[#allocation3 + $0xc2] sm:$0xff] }
 0x490   : > { %4035 = vrot.lane.b32.xlu0 %v10795_v36, %s8982_s6  ;;  %v8188_v36 = vpack.c.bf16 %v4148_v58, %v4148_v58  ;;  %v8187_v56 = vpack.c.bf16 %v4147_v45, %v4147_v45 }
 0x491   : > { %v11202_v49 = vpop.permute.xlu1 %5241 }
 0x492   : > { %v4280_v13 = vpop.permute.xlu0 %4279 }
 0x493   : > { %4997 = vrot.lane.b32.xlu1 %v11204_v55, %s8982_s6  ;;  %4365 = vst.msk [vmem:[#allocation4 + $0x78] sm:$0xf] %vm1034_vm4, %v4280_v13  ;;  %v11238_v13 = vpack.c.bf16 %v5364_v44, %v5364_v44 }
 0x494   : > { %4995 = vrot.lane.b32.xlu0 %v11208_v9, %s8982_s6 }
 0x495   : > { %v11213_v10 = vpop.permute.xlu1 %4537 }
 0x496   : > { %v4004_v60 = vpop.permute.xlu0 %4003 }
 0x497   : > { %4293 = vrot.lane.b32.xlu1 %v8188_v36, %s8984_s25  ;;  %4099 = vst.msk [vmem:[#allocation4] sm:$0xf] %vm777_vm3, %v4004_v60  ;;  %v5109_v36 = vld [vmem:[#allocation3 + $0x108] sm:$0xff] }
 0x498   : > { %4291 = vrot.lane.b32.xlu0 %v8187_v56, %s8984_s25  ;;  %v4855_v60 = vld [vmem:[#allocation3 + $0x10a] sm:$0xff] }
 0x499   : > { %v4006_v42 = vpop.permute.xlu1 %4005  ;;  %v11334_v16 = vpack.c.bf16 %v4855_v60, %v4855_v60 }
 0x49a   : > { %4100 = vst.msk [vmem:[#allocation4 + $0xc] sm:$0xf] %vm777_vm3, %v4006_v42  ;;  %v4260_v6 = vpop.permute.xlu0 %4259  ;;  %v5112_v42 = vld [vmem:[#allocation3 + $0x128] sm:$0xff] }
 0x49b   : > { %5253 = vrot.lane.b32.xlu1 %v11218_v62, %s8984_s25  ;;  %4355 = vst.msk [vmem:[#allocation4] sm:$0xf] %vm1034_vm4, %v4260_v6 }
 0x49c   : > { %5251 = vrot.lane.b32.xlu0 %v11223_v11, %s8984_s25 }
 0x49d   : > { %v4966_v20 = vpop.permute.xlu1 %4965 }
 0x49e   : > { %5060 = vst.msk [vmem:[#allocation4 + $0x10] sm:$0xf] %vm777_vm3, %v4966_v20  ;;  %v5220_v14 = vpop.permute.xlu0 %5219 }
 0x49f   : > { %5316 = vst.msk [vmem:[#allocation4 + $0x10] sm:$0xf] %vm1034_vm4, %v11008_v31  ;;  %4549 = vrot.lane.b32.xlu1 %v8314_v39, %s8983_s7  ;;  %5315 = vst.msk [vmem:[#allocation4 + $0x4] sm:$0xf] %vm1034_vm4, %v5220_v14  ;;  %v4854_v39 = vld [vmem:[#allocation3 + $0xfa] sm:$0xff] }
 0x4a0   : > { %5572 = vst.msk [vmem:[#allocation4 + $0x10] sm:$0xf] %vm1291_vm5, %v11045_v63  ;;  %5571 = vst.msk [vmem:[#allocation4 + $0x4] sm:$0xf] %vm1291_vm5, %v11041_v12  ;;  %4547 = vrot.lane.b32.xlu0 %v8313_v32, %s8983_s7  ;;  %v11245_v63 = vpack.c.bf16 %v5363_v0, %v5363_v0  ;;  %v4853_v32 = vld [vmem:[#allocation3 + $0xf2] sm:$0xff]  ;;  %v11262_v45 = vpack.c.bf16 %v4854_v39, %v4854_v39  ;;  %v4857_v39 = vld [vmem:[#allocation3 + $0x122] sm:$0xff] }
 0x4a1   : > { %v4970_v58 = vpop.permute.xlu1 %4969 }
 0x4a2   : > { %5062 = vst.msk [vmem:[#allocation4 + $0x28] sm:$0xf] %vm777_vm3, %v4970_v58  ;;  %v4516_v31 = vpop.permute.xlu0 %4515 }
 0x4a3   : > { %5318 = vst.msk [vmem:[#allocation4 + $0x28] sm:$0xf] %vm1034_vm4, %v11078_v7  ;;  %5509 = vrot.lane.b32.xlu1 %v11238_v13, %s8983_s7 }
 0x4a4   : > { %5574 = vst.msk [vmem:[#allocation4 + $0x28] sm:$0xf] %vm1291_vm5, %v11104_v18  ;;  %4611 = vst.msk [vmem:[#allocation4] sm:$0xf] %vm1291_vm5, %v4516_v31  ;;  %5507 = vrot.lane.b32.xlu0 %v11245_v63, %s8983_s7 }
 0x4a5   : > { %v4266_v12 = vpop.permute.xlu1 %4265 }
 0x4a6   : > { %4358 = vst.msk [vmem:[#allocation4 + $0x24] sm:$0xf] %vm1034_vm4, %v4266_v12  ;;  %v5224_v7 = vpop.permute.xlu0 %5223 }
 0x4a7   : > { %4614 = vst.msk [vmem:[#allocation4 + $0x24] sm:$0xf] %vm1291_vm5, %v11090_v26  ;;  %4041 = vrot.lane.b32.xlu1 %v11187_v2, %s8982_s6  ;;  %v11269_v2 = vpack.c.bf16 %v4853_v32, %v4853_v32 }
 0x4a8   : > { %5317 = vst.msk [vmem:[#allocation4 + $0x1c] sm:$0xf] %vm1034_vm4, %v5224_v7  ;;  %4039 = vrot.lane.b32.xlu0 %v11191_v19, %s8982_s6  ;;  %v5110_v19 = vld [vmem:[#allocation3 + $0x110] sm:$0xff] }
 0x4a9   : > { %5573 = vst.msk [vmem:[#allocation4 + $0x1c] sm:$0xf] %vm1291_vm5, %v11092_v30  ;;  %v4974_v18 = vpop.permute.xlu1 %4973  ;;  %v11286_v24 = vpack.c.bf16 %v5110_v19, %v5110_v19 }
 0x4aa   : > { %5064 = vst.msk [vmem:[#allocation4 + $0x40] sm:$0xf] %vm777_vm3, %v4974_v18  ;;  %v4520_v26 = vpop.permute.xlu0 %4519 }
 0x4ab   : > { %5320 = vst.msk [vmem:[#allocation4 + $0x40] sm:$0xf] %vm1034_vm4, %v11122_v5  ;;  %5001 = vrot.lane.b32.xlu1 %v11262_v45, %s8982_s6 }
 0x4ac   : > { %5576 = vst.msk [vmem:[#allocation4 + $0x40] sm:$0xf] %vm1291_vm5, %v11137_v40  ;;  %4613 = vst.msk [vmem:[#allocation4 + $0x18] sm:$0xf] %vm1291_vm5, %v4520_v26  ;;  %4999 = vrot.lane.b32.xlu0 %v11269_v2, %s8982_s6  ;;  %v8919_v26 = vld [vmem:[%s12195_s2 + $0x80] sm:$0xff]  }
 0x4ad   : > { %v4270_v30 = vpop.permute.xlu1 %4269 }
 0x4ae   : > { %4360 = vst.msk [vmem:[#allocation4 + $0x3c] sm:$0xf] %vm1034_vm4, %v4270_v30  ;;  %v5228_v5 = vpop.permute.xlu0 %5227  ;;  %v5801_v30 = vld [vmem:[#allocation4 + $0x24] sm:$0xff] }
 0x4af   : > { %4616 = vst.msk [vmem:[#allocation4 + $0x3c] sm:$0xf] %vm1291_vm5, %v11129_v41  ;;  %4297 = vrot.lane.b32.xlu1 %v11204_v55, %s8984_s25  ;;  %v8317_v55 = vpack.c.bf16 %v5109_v36, %v5109_v36 }
 0x4b0   : > { %5319 = vst.msk [vmem:[#allocation4 + $0x34] sm:$0xf] %vm1034_vm4, %v5228_v5  ;;  %4295 = vrot.lane.b32.xlu0 %v11208_v9, %s8984_s25  ;;  %v8881_v7 = vld [vmem:[#allocation4 + $0x1c] ss:$12 sps:$4 sm:$0xff]  }
 0x4b1   : > { %5575 = vst.msk [vmem:[#allocation4 + $0x34] sm:$0xf] %vm1291_vm5, %v11131_v1  ;;  %v4978_v40 = vpop.permute.xlu1 %4977 }
 0x4b2   : > { %5066 = vst.msk [vmem:[#allocation4 + $0x58] sm:$0xf] %vm777_vm3, %v4978_v40  ;;  %v4524_v41 = vpop.permute.xlu0 %4523 }
 0x4b3   : > { %5322 = vst.msk [vmem:[#allocation4 + $0x58] sm:$0xf] %vm1034_vm4, %v11147_v33  ;;  %5257 = vrot.lane.b32.xlu1 %v11286_v24, %s8984_s25 }
 0x4b4   : > { %5578 = vst.msk [vmem:[#allocation4 + $0x58] sm:$0xf] %vm1291_vm5, %v11162_v3  ;;  %4615 = vst.msk [vmem:[#allocation4 + $0x30] sm:$0xf] %vm1291_vm5, %v4524_v41  ;;  %5255 = vrot.lane.b32.xlu0 %v8317_v55, %s8984_s25 }
 0x4b5   : > { %v4274_v1 = vpop.permute.xlu1 %4273 }
 0x4b6   : > { %4362 = vst.msk [vmem:[#allocation4 + $0x54] sm:$0xf] %vm1034_vm4, %v4274_v1  ;;  %v5232_v9 = vpop.permute.xlu0 %5231 }
 0x4b7   : > { %4618 = vst.msk [vmem:[#allocation4 + $0x54] sm:$0xf] %vm1291_vm5, %v11154_v35  ;;  %4553 = vrot.lane.b32.xlu1 %v11218_v62, %s8983_s7 }
 0x4b8   : > { %5321 = vst.msk [vmem:[#allocation4 + $0x4c] sm:$0xf] %vm1034_vm4, %v5232_v9  ;;  %4551 = vrot.lane.b32.xlu0 %v11223_v11, %s8983_s7  ;;  %v11347_v11 = vpack.c.bf16 %v5112_v42, %v5112_v42  ;;  %v8883_v5 = vld [vmem:[#allocation4 + $0x34] ss:$12 sps:$4 sm:$0xff]  }
 0x4b9   : > { %5577 = vst.msk [vmem:[#allocation4 + $0x4c] sm:$0xf] %vm1291_vm5, %v11156_v37  ;;  %v4982_v33 = vpop.permute.xlu1 %4981  ;;  %v4856_v37 = vld [vmem:[#allocation3 + $0x112] sm:$0xff] }
 0x4ba   : > { %5068 = vst.msk [vmem:[#allocation4 + $0x70] sm:$0xf] %vm777_vm3, %v4982_v33  ;;  %v4528_v3 = vpop.permute.xlu0 %4527  ;;  %v11327_v56 = vpack.c.bf16 %v4856_v37, %v4856_v37 }
 0x4bb   : > { %5324 = vst.msk [vmem:[#allocation4 + $0x70] sm:$0xf] %vm1034_vm4, %v11174_v25  ;;  %5513 = vrot.lane.b32.xlu1 %v10845_v29, %s8983_s7 }
 0x4bc   : > { %5580 = vst.msk [vmem:[#allocation4 + $0x70] sm:$0xf] %vm1291_vm5, %v11185_v15  ;;  %4617 = vst.msk [vmem:[#allocation4 + $0x48] sm:$0xf] %vm1291_vm5, %v4528_v3  ;;  %5511 = vrot.lane.b32.xlu0 %v10847_v43, %s8983_s7 }
 0x4bd   : > { %v4278_v35 = vpop.permute.xlu1 %4277 }
 0x4be   : > { %4364 = vst.msk [vmem:[#allocation4 + $0x6c] sm:$0xf] %vm1034_vm4, %v4278_v35  ;;  %v5236_v25 = vpop.permute.xlu0 %5235  ;;  %v5809_v60 = vld [vmem:[#allocation4 + $0x54] sm:$0xff] }
 0x4bf   : > { %4620 = vst.msk [vmem:[#allocation4 + $0x6c] sm:$0xf] %vm1291_vm5, %v11179_v48  ;;  %4045 = vrot.lane.b32.xlu1 %v11238_v13, %s8982_s6  ;;  %v4858_v13 = vld [vmem:[#allocation3 + $0x12a] sm:$0xff] }
 0x4c0   : > { %5323 = vst.msk [vmem:[#allocation4 + $0x64] sm:$0xf] %vm1034_vm4, %v5236_v25  ;;  %4043 = vrot.lane.b32.xlu0 %v11245_v63, %s8982_s6  ;;  %v8880_v63 = vld [vmem:[#allocation4 + $0x4] ss:$12 sps:$4 sm:$0xff]   ;;  %v11376_v18 = vpack.c.bf16 %v4858_v13, %v4858_v13  ;;  %v8885_v33 = vld [vmem:[#allocation4 + $0x4c] ss:$12 sps:$4 sm:$0xff]  }
 0x4c1   : > { %5579 = vst.msk [vmem:[#allocation4 + $0x64] sm:$0xf] %vm1291_vm5, %v11181_v34  ;;  %v4986_v15 = vpop.permute.xlu1 %4985  ;;  %6323 = vmatprep.mubr.bf16.mxu1 %v8880_v63 }
 0x4c2   : > { %5070 = vst.msk [vmem:[#allocation4 + $0x88] sm:$0xf] %vm777_vm3, %v4986_v15  ;;  %v4532_v48 = vpop.permute.xlu0 %4531  ;;  %v4860_v15 = vld [vmem:[#allocation3 + $0x142] sm:$0xff] }
 0x4c3   : > { %5326 = vst.msk [vmem:[#allocation4 + $0x88] sm:$0xf] %vm1034_vm4, %v11202_v49  ;;  %5005 = vrot.lane.b32.xlu1 %v11327_v56, %s8982_s6  ;;  %v5111_v49 = vld [vmem:[#allocation3 + $0x120] sm:$0xff]  ;;  %v5807_v37 = vld [vmem:[#allocation4 + $0x48] sm:$0xff] }
 0x4c4   : > { %4619 = vst.msk [vmem:[#allocation4 + $0x60] sm:$0xf] %vm1291_vm5, %v4532_v48  ;;  %5003 = vrot.lane.b32.xlu0 %v11334_v16, %s8982_s6  ;;  %v7740_v48 = vcombine.low %v5807_v37, %v5809_v60 }
 0x4c5   : > { %v4282_v34 = vpop.permute.xlu1 %4281 }
 0x4c6   : > { %4366 = vst.msk [vmem:[#allocation4 + $0x84] sm:$0xf] %vm1034_vm4, %v4282_v34  ;;  %v5240_v62 = vpop.permute.xlu0 %5239 }
 0x4c7   : > { %4622 = vst.msk [vmem:[#allocation4 + $0x84] sm:$0xf] %vm1291_vm5, %v11213_v10  ;;  %4301 = vrot.lane.b32.xlu1 %v11262_v45, %s8984_s25  ;;  %v11352_v10 = vpack.c.bf16 %v5111_v49, %v5111_v49 }
 0x4c8   : > { %5325 = vst.msk [vmem:[#allocation4 + $0x7c] sm:$0xf] %vm1034_vm4, %v5240_v62  ;;  %4299 = vrot.lane.b32.xlu0 %v11269_v2, %s8984_s25  ;;  %v8887_v34 = vld [vmem:[#allocation4 + $0x64] ss:$12 sps:$4 sm:$0xff]   ;;  %v11420_v62 = vpack.c.bf16 %v4860_v15, %v4860_v15  ;;  %v4863_v15 = vld [vmem:[#allocation3 + $0x16a] sm:$0xff] }
 0x4c9   : > { %v5498_v6 = vpop.permute.xlu1 %5497 }
 0x4ca   : > { %5582 = vst.msk [vmem:[#allocation4 + $0x88] sm:$0xf] %vm1291_vm5, %v5498_v6  ;;  %v4536_v20 = vpop.permute.xlu0 %4535 }
 0x4cb   : > { %5261 = vrot.lane.b32.xlu1 %v11347_v11, %s8984_s25  ;;  %4621 = vst.msk [vmem:[#allocation4 + $0x78] sm:$0xf] %vm1291_vm5, %v4536_v20  ;;  %v5811_v6 = vld [vmem:[#allocation4 + $0x60] sm:$0xff] }
 0x4cc   : > { %5259 = vrot.lane.b32.xlu0 %v11352_v10, %s8984_s25 }
 0x4cd   : > { %v4262_v44 = vpop.permute.xlu1 %4261 }
 0x4ce   : > { %4356 = vst.msk [vmem:[#allocation4 + $0xc] sm:$0xf] %vm1034_vm4, %v4262_v44  ;;  %v5496_v14 = vpop.permute.xlu0 %5495 }
 0x4cf   : > { %4612 = vst.msk [vmem:[#allocation4 + $0xc] sm:$0xf] %vm1291_vm5, %v11028_v57  ;;  %4557 = vrot.lane.b32.xlu1 %v11286_v24, %s8983_s7  ;;  %5581 = vst.msk [vmem:[#allocation4 + $0x7c] sm:$0xf] %vm1291_vm5, %v5496_v14  ;;  %v5803_v24 = vld [vmem:[#allocation4 + $0x30] sm:$0xff] }
 0x4d0   : > { %4555 = vrot.lane.b32.xlu0 %v8317_v55, %s8983_s7  ;;  %v5805_v55 = vld [vmem:[#allocation4 + $0x3c] sm:$0xff] }
 0x4d1   : > { %v4030_v0 = vpop.permute.xlu1 %4029  ;;  %v7737_v9 = vcombine.low %v5803_v24, %v5805_v55  ;;  %v5817_v13 = vld [vmem:[#allocation4 + $0x84] sm:$0xff] }
 0x4d2   : > { %4112 = vst.msk [vmem:[#allocation4 + $0x9c] sm:$0xf] %vm777_vm3, %v4030_v0  ;;  %v4028_v58 = vpop.permute.xlu0 %4027 }
 0x4d3   : > { %5517 = vrot.lane.b32.xlu1 %v10858_v54, %s8983_s7  ;;  %4111 = vst.msk [vmem:[#allocation4 + $0x90] sm:$0xf] %vm777_vm3, %v4028_v58 }
 0x4d4   : > { %5515 = vrot.lane.b32.xlu0 %v10860_v53, %s8983_s7 }
 0x4d5   : > { %v4990_v57 = vpop.permute.xlu1 %4989 }
 0x4d6   : > { %5072 = vst.msk [vmem:[#allocation4 + $0xa0] sm:$0xf] %vm777_vm3, %v4990_v57  ;;  %v8878_v31 = vld [vmem:[#allocation4] ss:$12 sps:$4 sm:$0xff]   ;;  %v4988_v12 = vpop.permute.xlu0 %4987  ;;  %v8889_v44 = vld [vmem:[#allocation4 + $0x7c] ss:$12 sps:$4 sm:$0xff]  }
 0x4d7   : > { %4049 = vrot.lane.b32.xlu1 %v10845_v29, %s8982_s6  ;;  %5071 = vst.msk [vmem:[#allocation4 + $0x94] sm:$0xf] %vm777_vm3, %v4988_v12  ;;  %6324 = vmatmul.mubr.bf16.vlgmr.msra.gmra.mxu1 %v8878_v31  ;;  %v11382_v29 = vpack.c.bf16 %v4857_v39, %v4857_v39  ;;  %v5815_v58 = vld [vmem:[#allocation4 + $0x78] sm:$0xff] }
 0x4d8   : > { %4047 = vrot.lane.b32.xlu0 %v10847_v43, %s8982_s6  ;;  %6331 = vmatprep.mubr.bf16.mxu1 %v8881_v7  ;;  %v5799_v43 = vld [vmem:[#allocation4 + $0x18] sm:$0xff]  ;;  %v7746_v63 = vcombine.low %v5815_v58, %v5817_v13 }
 0x4d9   : > { %v4286_v32 = vpop.permute.xlu1 %4285  ;;  %8730 = vmatpush3.bf16.msra.mxu1 %v11113_v50  ;;  %v7734_v19 = vcombine.low %v5799_v43, %v5801_v30  ;;  %v4865_v13 = vld [vmem:[#allocation3 + $0x182] sm:$0xff] }
 0x4da   : > { %4368 = vst.msk [vmem:[#allocation4 + $0x9c] sm:$0xf] %vm1034_vm4, %v4286_v32  ;;  %v4284_v45 = vpop.permute.xlu0 %4283  ;;  %8729 = vmatprep.subr.bf16.mxu1 %v8919_v26 }
 0x4db   : > { %5009 = vrot.lane.b32.xlu1 %v11376_v18, %s8982_s6  ;;  %4367 = vst.msk [vmem:[#allocation4 + $0x90] sm:$0xf] %vm1034_vm4, %v4284_v45 }
 0x4dc   : > { %5007 = vrot.lane.b32.xlu0 %v11382_v29, %s8982_s6 }
 0x4dd   : > { %v5246_v2 = vpop.permute.xlu1 %5245  ;;  %8731 = vmatpush3.bf16.msra.mxu1 %v8919_v26  ;;  %v4861_v26 = vld [vmem:[#allocation3 + $0x152] sm:$0xff] }
 0x4de   : > { %5328 = vst.msk [vmem:[#allocation4 + $0xa0] sm:$0xf] %vm1034_vm4, %v5246_v2  ;;  %v5244_v50 = vpop.permute.xlu0 %5243 }
 0x4df   : > { %4305 = vrot.lane.b32.xlu1 %v11327_v56, %s8984_s25  ;;  %5327 = vst.msk [vmem:[#allocation4 + $0x94] sm:$0xf] %vm1034_vm4, %v5244_v50  ;;  %6332 = vmatmul.mubr.bf16.gmra.mxu1 %v7734_v19  ;;  %v8293_v19 = vpack.c.bf16 %v4861_v26, %v4861_v26 }
 0x4e0   : > { %4303 = vrot.lane.b32.xlu0 %v11334_v16, %s8984_s25  ;;  %6339 = vmatprep.mubr.bf16.mxu1 %v8883_v5  ;;  %v4859_v16 = vld [vmem:[#allocation3 + $0x13a] sm:$0xff] }
 0x4e1   : > { %v4542_v36 = vpop.permute.xlu1 %4541 }
 0x4e2   : > { %4624 = vst.msk [vmem:[#allocation4 + $0x9c] sm:$0xf] %vm1291_vm5, %v4542_v36  ;;  %v4540_v40 = vpop.permute.xlu0 %4539 }
 0x4e3   : > { %5265 = vrot.lane.b32.xlu1 %v10866_v52, %s8984_s25  ;;  %4623 = vst.msk [vmem:[#allocation4 + $0x90] sm:$0xf] %vm1291_vm5, %v4540_v40 }
 0x4e4   : > { %5263 = vrot.lane.b32.xlu0 %v10919_v27, %s8984_s25 }
 0x4e5   : > { %v5502_v41 = vpop.permute.xlu1 %5501 }
 0x4e6   : > { %5584 = vst.msk [vmem:[#allocation4 + $0xa0] sm:$0xf] %vm1291_vm5, %v5502_v41  ;;  %v5500_v1 = vpop.permute.xlu0 %5499 }
 0x4e7   : > { %4561 = vrot.lane.b32.xlu1 %v11347_v11, %s8983_s7  ;;  %5583 = vst.msk [vmem:[#allocation4 + $0x94] sm:$0xf] %vm1291_vm5, %v5500_v1  ;;  %6340 = vmatmul.mubr.bf16.gmra.mxu1 %v7737_v9  ;;  %v5813_v11 = vld [vmem:[#allocation4 + $0x6c] sm:$0xff] }
 0x4e8   : > { %4559 = vrot.lane.b32.xlu0 %v11352_v10, %s8983_s7  ;;  %6347 = vmatprep.mubr.bf16.mxu1 %v8885_v33  ;;  %v7743_v10 = vcombine.low %v5811_v6, %v5813_v11 }
 0x4e9   : > { %v4034_v3 = vpop.permute.xlu1 %4033 }
 0x4ea   : > { %4114 = vst.msk [vmem:[#allocation4 + $0xb4] sm:$0xf] %vm777_vm3, %v4034_v3  ;;  %v4032_v35 = vpop.permute.xlu0 %4031 }
 0x4eb   : > { %5521 = vrot.lane.b32.xlu1 %v10876_v61, %s8983_s7  ;;  %4113 = vst.msk [vmem:[#allocation4 + $0xa8] sm:$0xf] %vm777_vm3, %v4032_v35 }
 0x4ec   : > { %5519 = vrot.lane.b32.xlu0 %v10878_v51, %s8983_s7 }
 0x4ed   : > { %v4994_v25 = vpop.permute.xlu1 %4993 }
 0x4ee   : > { %5074 = vst.msk [vmem:[#allocation4 + $0xb8] sm:$0xf] %vm777_vm3, %v4994_v25  ;;  %v4992_v56 = vpop.permute.xlu0 %4991  ;;  %v8891_v12 = vld [vmem:[#allocation4 + $0x94] ss:$12 sps:$4 sm:$0xff]  }
 0x4ef   : > { %4053 = vrot.lane.b32.xlu1 %v10858_v54, %s8982_s6  ;;  %5073 = vst.msk [vmem:[#allocation4 + $0xac] sm:$0xf] %vm777_vm3, %v4992_v56  ;;  %6348 = vmatmul.mubr.bf16.gmra.mxu1 %v7740_v48  ;;  %v11425_v54 = vpack.c.bf16 %v4859_v16, %v4859_v16  ;;  %v5819_v32 = vld [vmem:[#allocation4 + $0x90] sm:$0xff] }
 0x4f0   : > { %4051 = vrot.lane.b32.xlu0 %v10860_v53, %s8982_s6  ;;  %6355 = vmatprep.mubr.bf16.mxu1 %v8887_v34  ;;  %v8295_v34 = vpack.c.bf16 %v4863_v15, %v4863_v15 }
 0x4f1   : > { %v4290_v42 = vpop.permute.xlu1 %4289 }
 0x4f2   : > { %4370 = vst.msk [vmem:[#allocation4 + $0xb4] sm:$0xf] %vm1034_vm4, %v4290_v42  ;;  %v4288_v49 = vpop.permute.xlu0 %4287  ;;  %v5120_v42 = vld [vmem:[#allocation3 + $0x188] sm:$0xff] }
 0x4f3   : > { %5013 = vrot.lane.b32.xlu1 %v11420_v62, %s8982_s6  ;;  %4369 = vst.msk [vmem:[#allocation4 + $0xa8] sm:$0xf] %vm1034_vm4, %v4288_v49 }
 0x4f4   : > { %5011 = vrot.lane.b32.xlu0 %v11425_v54, %s8982_s6 }
 0x4f5   : > { %v5250_v53 = vpop.permute.xlu1 %5249 }
 0x4f6   : > { %5330 = vst.msk [vmem:[#allocation4 + $0xb8] sm:$0xf] %vm1034_vm4, %v5250_v53  ;;  %v5248_v20 = vpop.permute.xlu0 %5247 }
 0x4f7   : > { %4309 = vrot.lane.b32.xlu1 %v11376_v18, %s8984_s25  ;;  %5329 = vst.msk [vmem:[#allocation4 + $0xac] sm:$0xf] %vm1034_vm4, %v5248_v20  ;;  %6356 = vmatmul.mubr.bf16.gmra.mxu1 %v7743_v10 }
 0x4f8   : > { %4307 = vrot.lane.b32.xlu0 %v11382_v29, %s8984_s25  ;;  %6363 = vmatprep.mubr.bf16.mxu1 %v8889_v44 }
 0x4f9   : > { %v4546_v14 = vpop.permute.xlu1 %4545 }
 0x4fa   : > { %4626 = vst.msk [vmem:[#allocation4 + $0xb4] sm:$0xf] %vm1291_vm5, %v4546_v14  ;;  %v4544_v0 = vpop.permute.xlu0 %4543 }
 0x4fb   : > { %5269 = vrot.lane.b32.xlu1 %v10884_v38, %s8984_s25  ;;  %4625 = vst.msk [vmem:[#allocation4 + $0xa8] sm:$0xf] %vm1291_vm5, %v4544_v0 }
 0x4fc   : > { %5267 = vrot.lane.b32.xlu0 %v10941_v8, %s8984_s25 }
 0x4fd   : > { %v5506_v57 = vpop.permute.xlu1 %5505 }
 0x4fe   : > { %5586 = vst.msk [vmem:[#allocation4 + $0xb8] sm:$0xf] %vm1291_vm5, %v5506_v57  ;;  %v5504_v31 = vpop.permute.xlu0 %5503 }
 0x4ff   : > { %4565 = vrot.lane.b32.xlu1 %v10866_v52, %s8983_s7  ;;  %5585 = vst.msk [vmem:[#allocation4 + $0xac] sm:$0xf] %vm1291_vm5, %v5504_v31  ;;  %6364 = vmatmul.mubr.bf16.gmra.mxu1 %v7746_v63  ;;  %v5821_v52 = vld [vmem:[#allocation4 + $0x9c] sm:$0xff]  ;;  %v8297_v31 = vpack.c.bf16 %v4865_v13, %v4865_v13  ;;  %v5122_v63 = vld [vmem:[#allocation3 + $0x1a0] sm:$0xff] }
 0x500   : > { %4563 = vrot.lane.b32.xlu0 %v10919_v27, %s8983_s7  ;;  %6371 = vmatprep.mubr.bf16.mxu1 %v8891_v12  ;;  %v4862_v27 = vld [vmem:[#allocation3 + $0x15a] sm:$0xff]  ;;  %v7749_v29 = vcombine.low %v5819_v32, %v5821_v52 }
 0x501   : > { %v4038_v39 = vpop.permute.xlu1 %4037  ;;  %v8294_v30 = vpack.c.bf16 %v4862_v27, %v4862_v27 }
 0x502   : > { %4116 = vst.msk [vmem:[#allocation4 + $0xcc] sm:$0xf] %vm777_vm3, %v4038_v39  ;;  %v4036_v7 = vpop.permute.xlu0 %4035 }
 0x503   : > { %5525 = vrot.lane.b32.xlu1 %v10893_v21, %s8983_s7  ;;  %4115 = vst.msk [vmem:[#allocation4 + $0xc0] sm:$0xf] %vm777_vm3, %v4036_v7  ;;  %v8330_v7 = vpack.c.bf16 %v5122_v63, %v5122_v63 }
 0x504   : > { %5523 = vrot.lane.b32.xlu0 %v10895_v46, %s8983_s7 }
 0x505   : > { %v4998_v18 = vpop.permute.xlu1 %4997  ;;  %v5825_v5 = vld [vmem:[#allocation4 + $0xb4] sm:$0xff] }
 0x506   : > { %5076 = vst.msk [vmem:[#allocation4 + $0xd0] sm:$0xf] %vm777_vm3, %v4998_v18  ;;  %v4996_v45 = vpop.permute.xlu0 %4995  ;;  %v8893_v43 = vld [vmem:[#allocation4 + $0xac] ss:$12 sps:$4 sm:$0xff]  }
 0x507   : > { %4057 = vrot.lane.b32.xlu1 %v10876_v61, %s8982_s6  ;;  %5075 = vst.msk [vmem:[#allocation4 + $0xc4] sm:$0xf] %vm777_vm3, %v4996_v45  ;;  %6372 = vmatmul.mubr.bf16.gmra.mxu1 %v7749_v29  ;;  %v5823_v61 = vld [vmem:[#allocation4 + $0xa8] sm:$0xff]  ;;  %v5378_v18 = vld [vmem:[#allocation3 + $0x1a1] sm:$0xff] }
 0x508   : > { %4055 = vrot.lane.b32.xlu0 %v10878_v51, %s8982_s6  ;;  %6379 = vmatprep.mubr.bf16.mxu1 %v8893_v43  ;;  %v7752_v40 = vcombine.low %v5823_v61, %v5825_v5  ;;  %v5377_v45 = vld [vmem:[#allocation3 + $0x199] sm:$0xff]  ;;  %v8362_v26 = vpack.c.bf16 %v5378_v18, %v5378_v18 }
 0x509   : > { %v4294_v2 = vpop.permute.xlu1 %4293 }
 0x50a   : > { %4372 = vst.msk [vmem:[#allocation4 + $0xcc] sm:$0xf] %vm1034_vm4, %v4294_v2  ;;  %v4292_v50 = vpop.permute.xlu0 %4291  ;;  %v8361_v2 = vpack.c.bf16 %v5377_v45, %v5377_v45 }
 0x50b   : > { %5017 = vrot.lane.b32.xlu1 %v8294_v30, %s8982_s6  ;;  %4371 = vst.msk [vmem:[#allocation4 + $0xc0] sm:$0xf] %vm1034_vm4, %v4292_v50 }
 0x50c   : > { %5015 = vrot.lane.b32.xlu0 %v8293_v19, %s8982_s6 }
 0x50d   : > { %v5254_v36 = vpop.permute.xlu1 %5253 }
 0x50e   : > { %5332 = vst.msk [vmem:[#allocation4 + $0xd0] sm:$0xf] %vm1034_vm4, %v5254_v36  ;;  %v5252_v51 = vpop.permute.xlu0 %5251 }
 0x50f   : > { %4313 = vrot.lane.b32.xlu1 %v11420_v62, %s8984_s25  ;;  %5331 = vst.msk [vmem:[#allocation4 + $0xc4] sm:$0xf] %vm1034_vm4, %v5252_v51  ;;  %6380 = vmatmul.mubr.bf16.gmra.mxu1 %v7752_v40 }
 0x510   : > { %4311 = vrot.lane.b32.xlu0 %v11425_v54, %s8984_s25  ;;  %v8328_v54 = vpack.c.bf16 %v5120_v42, %v5120_v42 }
 0x511   : > { %v4550_v24 = vpop.permute.xlu1 %4549 }
 0x512   : > { %4628 = vst.msk [vmem:[#allocation4 + $0xcc] sm:$0xf] %vm1291_vm5, %v4550_v24  ;;  %v4548_v41 = vpop.permute.xlu0 %4547 }
 0x513   : > { %5273 = vrot.lane.b32.xlu1 %v10904_v59, %s8984_s25  ;;  %4627 = vst.msk [vmem:[#allocation4 + $0xc0] sm:$0xf] %vm1291_vm5, %v4548_v41 }
 0x514   : > { %5271 = vrot.lane.b32.xlu0 %v10955_v23, %s8984_s25 }
 0x515   : > { %v5510_v55 = vpop.permute.xlu1 %5509 }
 0x516   : > { %5588 = vst.msk [vmem:[#allocation4 + $0xd0] sm:$0xf] %vm1291_vm5, %v5510_v55  ;;  %v5508_v1 = vpop.permute.xlu0 %5507 }
 0x517   : > { %4569 = vrot.lane.b32.xlu1 %v10884_v38, %s8983_s7  ;;  %5587 = vst.msk [vmem:[#allocation4 + $0xc4] sm:$0xf] %vm1291_vm5, %v5508_v1  ;;  %v4864_v38 = vld [vmem:[#allocation3 + $0x172] sm:$0xff] }
 0x518   : > { %4567 = vrot.lane.b32.xlu0 %v10941_v8, %s8983_s7  ;;  %v8296_v48 = vpack.c.bf16 %v4864_v38, %v4864_v38 }
 0x519   : > { %v4042_v9 = vpop.permute.xlu1 %4041 }
 0x51a   : > { %4118 = vst.msk [vmem:[#allocation4 + $0xe4] sm:$0xf] %vm777_vm3, %v4042_v9  ;;  %v4040_v33 = vpop.permute.xlu0 %4039 }
 0x51b   : > { %5529 = vrot.lane.b32.xlu1 %v10915_v28, %s8983_s7  ;;  %4117 = vst.msk [vmem:[#allocation4 + $0xd8] sm:$0xf] %vm777_vm3, %v4040_v33 }
 0x51c   : > { %5527 = vrot.lane.b32.xlu0 %v10921_v47, %s8983_s7 }
 0x51d   : > { %v5002_v3 = vpop.permute.xlu1 %5001  ;;  %v5829_v35 = vld [vmem:[#allocation4 + $0xcc] sm:$0xff] }
 0x51e   : > { %5078 = vst.msk [vmem:[#allocation4 + $0xe8] sm:$0xf] %vm777_vm3, %v5002_v3  ;;  %v5000_v37 = vpop.permute.xlu0 %4999  ;;  %v5827_v8 = vld [vmem:[#allocation4 + $0xc0] sm:$0xff] }
 0x51f   : > { %4061 = vrot.lane.b32.xlu1 %v10893_v21, %s8982_s6  ;;  %v8895_v25 = vld [vmem:[#allocation4 + $0xc4] ss:$12 sps:$4 sm:$0xff]   ;;  %5077 = vst.msk [vmem:[#allocation4 + $0xdc] sm:$0xf] %vm777_vm3, %v5000_v37  ;;  %v7755_v60 = vcombine.low %v5827_v8, %v5829_v35 }
 0x520   : > { %4059 = vrot.lane.b32.xlu0 %v10895_v46, %s8982_s6  ;;  %6387 = vmatprep.mubr.bf16.mxu1 %v8895_v25  ;;  %v5119_v46 = vld [vmem:[#allocation3 + $0x180] sm:$0xff] }
 0x521   : > { %v4298_v56 = vpop.permute.xlu1 %4297  ;;  %6388 = vmatmul.mubr.bf16.gmra.mxu1 %v7755_v60  ;;  %v8327_v53 = vpack.c.bf16 %v5119_v46, %v5119_v46 }
 0x522   : > { %4374 = vst.msk [vmem:[#allocation4 + $0xe4] sm:$0xf] %vm1034_vm4, %v4298_v56  ;;  %v4296_v16 = vpop.permute.xlu0 %4295 }
 0x523   : > { %5021 = vrot.lane.b32.xlu1 %v8296_v48, %s8982_s6  ;;  %4373 = vst.msk [vmem:[#allocation4 + $0xd8] sm:$0xf] %vm1034_vm4, %v4296_v16 }
 0x524   : > { %5019 = vrot.lane.b32.xlu0 %v8295_v34, %s8982_s6 }
 0x525   : > { %v5258_v21 = vpop.permute.xlu1 %5257 }
 0x526   : > { %5334 = vst.msk [vmem:[#allocation4 + $0xe8] sm:$0xf] %vm1034_vm4, %v5258_v21  ;;  %v5256_v62 = vpop.permute.xlu0 %5255 }
 0x527   : > { %4317 = vrot.lane.b32.xlu1 %v8294_v30, %s8984_s25  ;;  %5333 = vst.msk [vmem:[#allocation4 + $0xdc] sm:$0xf] %vm1034_vm4, %v5256_v62 }
 0x528   : > { %4315 = vrot.lane.b32.xlu0 %v8293_v19, %s8984_s25 }
 0x529   : > { %v4554_v49 = vpop.permute.xlu1 %4553 }
 0x52a   : > { %4630 = vst.msk [vmem:[#allocation4 + $0xe4] sm:$0xf] %vm1291_vm5, %v4554_v49  ;;  %v4552_v6 = vpop.permute.xlu0 %4551 }
 0x52b   : > { %5277 = vrot.lane.b32.xlu1 %v8328_v54, %s8984_s25  ;;  %4629 = vst.msk [vmem:[#allocation4 + $0xd8] sm:$0xf] %vm1291_vm5, %v4552_v6 }
 0x52c   : > { %5275 = vrot.lane.b32.xlu0 %v8327_v53, %s8984_s25 }
 0x52d   : > { %v5514_v11 = vpop.permute.xlu1 %5513 }
 0x52e   : > { %5590 = vst.msk [vmem:[#allocation4 + $0xe8] sm:$0xf] %vm1291_vm5, %v5514_v11  ;;  %v5512_v20 = vpop.permute.xlu0 %5511 }
 0x52f   : > { %4573 = vrot.lane.b32.xlu1 %v10904_v59, %s8983_s7  ;;  %5589 = vst.msk [vmem:[#allocation4 + $0xdc] sm:$0xf] %vm1291_vm5, %v5512_v20 }
 0x530   : > { %4571 = vrot.lane.b32.xlu0 %v10955_v23, %s8983_s7 }
 0x531   : > { %v4046_v10 = vpop.permute.xlu1 %4045 }
 0x532   : > { %4120 = vst.msk [vmem:[#allocation4 + $0xfc] sm:$0xf] %vm777_vm3, %v4046_v10  ;;  %v4044_v44 = vpop.permute.xlu0 %4043 }
 0x533   : > { %5533 = vrot.lane.b32.xlu1 %v10595_v17, %s8983_s7  ;;  %4119 = vst.msk [vmem:[#allocation4 + $0xf0] sm:$0xf] %vm777_vm3, %v4044_v44 }
 0x534   : > { %5531 = vrot.lane.b32.xlu0 %v10597_v22, %s8983_s7 }
 0x535   : > { %v5006_v14 = vpop.permute.xlu1 %5005  ;;  %v5833_v0 = vld [vmem:[#allocation4 + $0xe4] sm:$0xff] }
 0x536   : > { %5080 = vst.msk [vmem:[#allocation4 + $0x100] sm:$0xf] %vm777_vm3, %v5006_v14  ;;  %v5004_v59 = vpop.permute.xlu0 %5003  ;;  %v5831_v23 = vld [vmem:[#allocation4 + $0xd8] sm:$0xff] }
 0x537   : > { %4065 = vrot.lane.b32.xlu1 %v10915_v28, %s8982_s6  ;;  %v8897_v58 = vld [vmem:[#allocation4 + $0xdc] ss:$12 sps:$4 sm:$0xff]   ;;  %5079 = vst.msk [vmem:[#allocation4 + $0xf4] sm:$0xf] %vm777_vm3, %v5004_v59  ;;  %v7758_v57 = vcombine.low %v5831_v23, %v5833_v0 }
 0x538   : > { %4063 = vrot.lane.b32.xlu0 %v10921_v47, %s8982_s6  ;;  %6395 = vmatprep.mubr.bf16.mxu1 %v8897_v58  ;;  %v5121_v47 = vld [vmem:[#allocation3 + $0x198] sm:$0xff] }
 0x539   : > { %v4302_v17 = vpop.permute.xlu1 %4301  ;;  %6396 = vmatmul.mubr.bf16.gmra.mxu1 %v7758_v57  ;;  %v8329_v32 = vpack.c.bf16 %v5121_v47, %v5121_v47 }
 0x53a   : > { %4376 = vst.msk [vmem:[#allocation4 + $0xfc] sm:$0xf] %vm1034_vm4, %v4302_v17  ;;  %v4300_v22 = vpop.permute.xlu0 %4299 }
 0x53b   : > { %5025 = vrot.lane.b32.xlu1 %v10944_v4, %s8982_s6  ;;  %4375 = vst.msk [vmem:[#allocation4 + $0xf0] sm:$0xf] %vm1034_vm4, %v4300_v22 }
 0x53c   : > { %5023 = vrot.lane.b32.xlu0 %v8297_v31, %s8982_s6  ;;  %s161_s6 = sand.u32 1, %s8972_s13  }
 0x53d   : > { %v5262_v28 = vpop.permute.xlu1 %5261  ;;  %s12153_s10 = scalar_lea.sflag [#allocation6], %s161_s6 }
 0x53e   : > { %5336 = vst.msk [vmem:[#allocation4 + $0x100] sm:$0xf] %vm1034_vm4, %v5262_v28  ;;  %v5260_v12 = vpop.permute.xlu0 %5259 }
 0x53f   : > { %4321 = vrot.lane.b32.xlu1 %v8296_v48, %s8984_s25  ;;  %5335 = vst.msk [vmem:[#allocation4 + $0xf4] sm:$0xf] %vm1034_vm4, %v5260_v12 }
 0x540   : > { %4319 = vrot.lane.b32.xlu0 %v8295_v34, %s8984_s25 }
 0x541   : > { %v4558_v39 = vpop.permute.xlu1 %4557 }
 0x542   : > { %4632 = vst.msk [vmem:[#allocation4 + $0xfc] sm:$0xf] %vm1291_vm5, %v4558_v39  ;;  %v4556_v4 = vpop.permute.xlu0 %4555 }
 0x543   : > { %5281 = vrot.lane.b32.xlu1 %v8330_v7, %s8984_s25  ;;  %4631 = vst.msk [vmem:[#allocation4 + $0xf0] sm:$0xf] %vm1291_vm5, %v4556_v4 }
 0x544   : > { %5279 = vrot.lane.b32.xlu0 %v8329_v32, %s8984_s25 }
 0x545   : > { %v5518_v52 = vpop.permute.xlu1 %5517 }
 0x546   : > { %5592 = vst.msk [vmem:[#allocation4 + $0x100] sm:$0xf] %vm1291_vm5, %v5518_v52  ;;  %v5516_v27 = vpop.permute.xlu0 %5515 }
 0x547   : > { %4577 = vrot.lane.b32.xlu1 %v8328_v54, %s8983_s7  ;;  %5591 = vst.msk [vmem:[#allocation4 + $0xf4] sm:$0xf] %vm1291_vm5, %v5516_v27 }
 0x548   : > { %4575 = vrot.lane.b32.xlu0 %v8327_v53, %s8983_s7 }
 0x549   : > { %v4050_v29 = vpop.permute.xlu1 %4049 }
 0x54a   : > { %4122 = vst.msk [vmem:[#allocation4 + $0x114] sm:$0xf] %vm777_vm3, %v4050_v29  ;;  %v4048_v43 = vpop.permute.xlu0 %4047 }
 0x54b   : > { %5537 = vrot.lane.b32.xlu1 %v8362_v26, %s8983_s7  ;;  %4121 = vst.msk [vmem:[#allocation4 + $0x108] sm:$0xf] %vm777_vm3, %v4048_v43 }
 0x54c   : > { %5535 = vrot.lane.b32.xlu0 %v8361_v2, %s8983_s7  ;;  %s7070_s7 = sshll.u32 %s161_s6, 6 }
 0x54d   : > { %v5010_v30 = vpop.permute.xlu1 %5009  ;;  %v5837_v50 = vld [vmem:[#allocation4 + $0xfc] sm:$0xff]  ;;  %s163_s25 = scalar_lea.vmem [#allocation5], %s7070_s7 }
 0x54e   : > { %5082 = vst.msk [vmem:[#allocation4 + $0x118] sm:$0xf] %vm777_vm3, %v5010_v30  ;;  %v5008_v19 = vpop.permute.xlu0 %5007  ;;  %v5835_v61 = vld [vmem:[#allocation4 + $0xf0] sm:$0xff]  ;;  %s7004_s30 = sshll.u32 %s163_s25, 4  ;;  %s12146_s30 = int_to_ptr.vmem [resolvable:$true] %s7004_s30 }
 0x54f   : > { %v8899_v5 = vld [vmem:[#allocation4 + $0xf4] ss:$12 sps:$4 sm:$0xff]   ;;  %5081 = vst.msk [vmem:[#allocation4 + $0x10c] sm:$0xf] %vm777_vm3, %v5008_v19  ;;  %v7761_v36 = vcombine.low %v5835_v61, %v5837_v50  ;;  %s8920_s11 = scalar_lea.vmem %s12146_s30, 1024  ;;  %p8927_p0 = scmp.lt.s32.totalorder %s12146_s30, %s8925_s17 }
 0x550   : > { %6403 = vmatprep.mubr.bf16.mxu1 %v8899_v5  ;;  %p8921_p11 = scmp.ne.s32.totalorder %s12146_s30, %s8920_s11  ;;  %p8928_p1 = scmp.lt.s32.totalorder %s8926_s19, %s8920_s11 }
 0x551   : > { %v4306_v51 = vpop.permute.xlu1 %4305  ;;  %6404 = vmatmul.mubr.bf16.gmra.mxu1 %v7761_v36 }
 0x552   : > { %4378 = vst.msk [vmem:[#allocation4 + $0x114] sm:$0xf] %vm1034_vm4, %v4306_v51  ;;  %v4304_v40 = vpop.permute.xlu0 %4303  ;;  %p8922_p12 = pnand %p8921_p11, %p9046_p5  ;;  %p8929_p2 = por %p8928_p1, %p8927_p0 }
 0x553   : > { %4377 = vst.msk [vmem:[#allocation4 + $0x108] sm:$0xf] %vm1034_vm4, %v4304_v40 }
 0x554   : > { %p8923_p13 = pneg %p8922_p12 }
 0x555   : > { %v5266_v24 = vpop.permute.xlu1 %5265 }
 0x556   : > { %5338 = vst.msk [vmem:[#allocation4 + $0x118] sm:$0xf] %vm1034_vm4, %v5266_v24  ;;  %v5264_v41 = vpop.permute.xlu0 %5263  ;;  %p8930_p3 = pnand %p8929_p2, %p8923_p13 }
 0x557   : > { %5337 = vst.msk [vmem:[#allocation4 + $0x10c] sm:$0xf] %vm1034_vm4, %v5264_v41 }
 0x559   : > { %v4562_v55 = vpop.permute.xlu1 %4561 }
 0x55a   : > { %4634 = vst.msk [vmem:[#allocation4 + $0x114] sm:$0xf] %vm1291_vm5, %v4562_v55  ;;  %v4560_v1 = vpop.permute.xlu0 %4559 }
 0x55b   : > { %4633 = vst.msk [vmem:[#allocation4 + $0x108] sm:$0xf] %vm1291_vm5, %v4560_v1 }
 0x55d   : > { %v5522_v9 = vpop.permute.xlu1 %5521 }
 0x55e   : > { %5594 = vst.msk [vmem:[#allocation4 + $0x118] sm:$0xf] %vm1291_vm5, %v5522_v9  ;;  %v5520_v33 = vpop.permute.xlu0 %5519 }
 0x55f   : > { %5593 = vst.msk [vmem:[#allocation4 + $0x10c] sm:$0xf] %vm1291_vm5, %v5520_v33 }
 0x561   : > { %v4054_v3 = vpop.permute.xlu1 %4053 }
 0x562   : > { %4124 = vst.msk [vmem:[#allocation4 + $0x12c] sm:$0xf] %vm777_vm3, %v4054_v3  ;;  %v4052_v35 = vpop.permute.xlu0 %4051 }
 0x563   : > { %4123 = vst.msk [vmem:[#allocation4 + $0x120] sm:$0xf] %vm777_vm3, %v4052_v35 }
 0x565   : > { %v5014_v38 = vpop.permute.xlu1 %5013  ;;  %v5841_v37 = vld [vmem:[#allocation4 + $0x114] sm:$0xff] }
 0x566   : > { %5084 = vst.msk [vmem:[#allocation4 + $0x130] sm:$0xf] %vm777_vm3, %v5014_v38  ;;  %v5012_v8 = vpop.permute.xlu0 %5011  ;;  %v5839_v25 = vld [vmem:[#allocation4 + $0x108] sm:$0xff] }
 0x567   : > { %v8901_v60 = vld [vmem:[#allocation4 + $0x10c] ss:$12 sps:$4 sm:$0xff]   ;;  %5083 = vst.msk [vmem:[#allocation4 + $0x124] sm:$0xf] %vm777_vm3, %v5012_v8  ;;  %v7764_v15 = vcombine.low %v5839_v25, %v5841_v37 }
 0x568   : > { %6411 = vmatprep.mubr.bf16.mxu1 %v8901_v60 }
 0x569   : > { %v4310_v56 = vpop.permute.xlu1 %4309  ;;  %6412 = vmatmul.mubr.bf16.gmra.mxu1 %v7764_v15 }
 0x56a   : > { %4380 = vst.msk [vmem:[#allocation4 + $0x12c] sm:$0xf] %vm1034_vm4, %v4310_v56  ;;  %v4308_v48 = vpop.permute.xlu0 %4307 }
 0x56b   : > { %4379 = vst.msk [vmem:[#allocation4 + $0x120] sm:$0xf] %vm1034_vm4, %v4308_v48 }
 0x56d   : > { %v5270_v16 = vpop.permute.xlu1 %5269 }
 0x56e   : > { %5340 = vst.msk [vmem:[#allocation4 + $0x130] sm:$0xf] %vm1034_vm4, %v5270_v16  ;;  %v5268_v34 = vpop.permute.xlu0 %5267 }
 0x56f   : > { %5339 = vst.msk [vmem:[#allocation4 + $0x124] sm:$0xf] %vm1034_vm4, %v5268_v34 }
 0x571   : > { %v4566_v21 = vpop.permute.xlu1 %4565 }
 0x572   : > { %4636 = vst.msk [vmem:[#allocation4 + $0x12c] sm:$0xf] %vm1291_vm5, %v4566_v21  ;;  %v4564_v42 = vpop.permute.xlu0 %4563 }
 0x573   : > { %4635 = vst.msk [vmem:[#allocation4 + $0x120] sm:$0xf] %vm1291_vm5, %v4564_v42 }
 0x575   : > { %v5526_v62 = vpop.permute.xlu1 %5525 }
 0x576   : > { %5596 = vst.msk [vmem:[#allocation4 + $0x130] sm:$0xf] %vm1291_vm5, %v5526_v62  ;;  %v5524_v46 = vpop.permute.xlu0 %5523 }
 0x577   : > { %5595 = vst.msk [vmem:[#allocation4 + $0x124] sm:$0xf] %vm1291_vm5, %v5524_v46 }
 0x579   : > { %v4058_v49 = vpop.permute.xlu1 %4057 }
 0x57a   : > { %4126 = vst.msk [vmem:[#allocation4 + $0x144] sm:$0xf] %vm777_vm3, %v4058_v49  ;;  %v4056_v54 = vpop.permute.xlu0 %4055 }
 0x57b   : > { %4125 = vst.msk [vmem:[#allocation4 + $0x138] sm:$0xf] %vm777_vm3, %v4056_v54  ;;  %v8912_v54 = vld [vmem:[#allocation4 + $0x158] ss:$12 sps:$4 sm:$0xff]  }
 0x57d   : > { %v5018_v6 = vpop.permute.xlu1 %5017  ;;  %v5845_v53 = vld [vmem:[#allocation4 + $0x12c] sm:$0xff] }
 0x57e   : > { %5086 = vst.msk [vmem:[#allocation4 + $0x148] sm:$0xf] %vm777_vm3, %v5018_v6  ;;  %v5016_v11 = vpop.permute.xlu0 %5015  ;;  %v5843_v20 = vld [vmem:[#allocation4 + $0x120] sm:$0xff]  ;;  %v8913_v6 = vld [vmem:[#allocation4 + $0x170] ss:$12 sps:$4 sm:$0xff]  }
 0x57f   : > { %v8903_v10 = vld [vmem:[#allocation4 + $0x124] ss:$12 sps:$4 sm:$0xff]   ;;  %5085 = vst.msk [vmem:[#allocation4 + $0x13c] sm:$0xf] %vm777_vm3, %v5016_v11  ;;  %v7767_v44 = vcombine.low %v5843_v20, %v5845_v53 }
 0x580   : > { %6419 = vmatprep.mubr.bf16.mxu1 %v8903_v10 }
 0x581   : > { %v4314_v14 = vpop.permute.xlu1 %4313  ;;  %6420 = vmatmul.mubr.bf16.gmra.mxu1 %v7767_v44 }
 0x582   : > { %4382 = vst.msk [vmem:[#allocation4 + $0x144] sm:$0xf] %vm1034_vm4, %v4314_v14  ;;  %v4312_v0 = vpop.permute.xlu0 %4311 }
 0x583   : > { %4381 = vst.msk [vmem:[#allocation4 + $0x138] sm:$0xf] %vm1034_vm4, %v4312_v0 }
 0x585   : > { %v5274_v59 = vpop.permute.xlu1 %5273 }
 0x586   : > { %5342 = vst.msk [vmem:[#allocation4 + $0x148] sm:$0xf] %vm1034_vm4, %v5274_v59  ;;  %v5272_v23 = vpop.permute.xlu0 %5271 }
 0x587   : > { %5341 = vst.msk [vmem:[#allocation4 + $0x13c] sm:$0xf] %vm1034_vm4, %v5272_v23 }
 0x589   : > { %v4570_v58 = vpop.permute.xlu1 %4569 }
 0x58a   : > { %4638 = vst.msk [vmem:[#allocation4 + $0x144] sm:$0xf] %vm1291_vm5, %v4570_v58  ;;  %v4568_v57 = vpop.permute.xlu0 %4567 }
 0x58b   : > { %4637 = vst.msk [vmem:[#allocation4 + $0x138] sm:$0xf] %vm1291_vm5, %v4568_v57 }
 0x58d   : > { %v5530_v13 = vpop.permute.xlu1 %5529 }
 0x58e   : > { %5598 = vst.msk [vmem:[#allocation4 + $0x148] sm:$0xf] %vm1291_vm5, %v5530_v13  ;;  %v5528_v17 = vpop.permute.xlu0 %5527 }
 0x58f   : > { %5597 = vst.msk [vmem:[#allocation4 + $0x13c] sm:$0xf] %vm1291_vm5, %v5528_v17 }
 0x591   : > { %v4062_v22 = vpop.permute.xlu1 %4061 }
 0x592   : > { %4128 = vst.msk [vmem:[#allocation4 + $0x15c] sm:$0xf] %vm777_vm3, %v4062_v22  ;;  %v4060_v31 = vpop.permute.xlu0 %4059 }
 0x593   : > { %4127 = vst.msk [vmem:[#allocation4 + $0x150] sm:$0xf] %vm777_vm3, %v4060_v31 }
 0x595   : > { %v5022_v28 = vpop.permute.xlu1 %5021  ;;  %v5849_v63 = vld [vmem:[#allocation4 + $0x144] sm:$0xff] }
 0x596   : > { %5088 = vst.msk [vmem:[#allocation4 + $0x160] sm:$0xf] %vm777_vm3, %v5022_v28  ;;  %v5020_v12 = vpop.permute.xlu0 %5019  ;;  %v5847_v47 = vld [vmem:[#allocation4 + $0x138] sm:$0xff] }
 0x597   : > { %v8905_v39 = vld [vmem:[#allocation4 + $0x13c] ss:$12 sps:$4 sm:$0xff]   ;;  %5087 = vst.msk [vmem:[#allocation4 + $0x154] sm:$0xf] %vm777_vm3, %v5020_v12  ;;  %v7770_v7 = vcombine.low %v5847_v47, %v5849_v63  ;;  %v8542_v32 = vpop.f32.mrf.mxu1 }
 0x598   : > { %6427 = vmatprep.mubr.bf16.mxu1 %v8905_v39  ;;  %v8698_v39 = vpop.f32.mrf.mxu0 }
 0x599   : > { %v4318_v4 = vpop.permute.xlu1 %4317  ;;  %6428 = vmatmul.mubr.bf16.gmra.mxu1 %v7770_v7  ;;  %v8543_v18 = vpop.f32.mrf.mxu1 }
 0x59a   : > { %4384 = vst.msk [vmem:[#allocation4 + $0x15c] sm:$0xf] %vm1034_vm4, %v4318_v4  ;;  %v4316_v52 = vpop.permute.xlu0 %4315  ;;  %v11585_v27 = vadd.f32 %v8543_v18, %v8542_v32  ;;  %v6486_v4 = vpop.f32.mrf.mxu0 }
 0x59b   : > { %4383 = vst.msk [vmem:[#allocation4 + $0x150] sm:$0xf] %vm1034_vm4, %v4316_v52  ;;  %v8545_v29 = vpop.f32.mrf.mxu1 }
 0x59c   : > { %v8699_v52 = vpop.f32.mrf.mxu0 }
 0x59d   : > { %v5278_v45 = vpop.permute.xlu1 %5277  ;;  %v8546_v43 = vpop.f32.mrf.mxu1 }
 0x59e   : > { %5344 = vst.msk [vmem:[#allocation4 + $0x160] sm:$0xf] %vm1034_vm4, %v5278_v45  ;;  %v5276_v26 = vpop.permute.xlu0 %5275  ;;  %v11589_v2 = vadd.f32 %v8546_v43, %v8545_v29  ;;  %v6489_v29 = vpop.f32.mrf.mxu0 }
 0x59f   : > { %5343 = vst.msk [vmem:[#allocation4 + $0x154] sm:$0xf] %vm1034_vm4, %v5276_v26  ;;  %v8548_v50 = vpop.f32.mrf.mxu1 }
 0x5a0   : > { %v8702_v43 = vpop.f32.mrf.mxu0 }
 0x5a1   : > { %v4574_v30 = vpop.permute.xlu1 %4573  ;;  %v8549_v61 = vpop.f32.mrf.mxu1 }
 0x5a2   : > { %4640 = vst.msk [vmem:[#allocation4 + $0x15c] sm:$0xf] %vm1291_vm5, %v4574_v30  ;;  %v4572_v19 = vpop.permute.xlu0 %4571  ;;  %v11593_v5 = vadd.f32 %v8549_v61, %v8548_v50  ;;  %v6502_v50 = vpop.f32.mrf.mxu0 }
 0x5a3   : > { %4639 = vst.msk [vmem:[#allocation4 + $0x150] sm:$0xf] %vm1291_vm5, %v4572_v19  ;;  %v8551_v51 = vpop.f32.mrf.mxu1 }
 0x5a4   : > { %v8703_v61 = vpop.f32.mrf.mxu0 }
 0x5a5   : > { %v5534_v36 = vpop.permute.xlu1 %5533  ;;  %v8552_v24 = vpop.f32.mrf.mxu1 }
 0x5a6   : > { %5600 = vst.msk [vmem:[#allocation4 + $0x160] sm:$0xf] %vm1291_vm5, %v5534_v36  ;;  %v5532_v40 = vpop.permute.xlu0 %5531  ;;  %v11597_v41 = vadd.f32 %v8552_v24, %v8551_v51  ;;  %v6505_v51 = vpop.f32.mrf.mxu0 }
 0x5a7   : > { %5599 = vst.msk [vmem:[#allocation4 + $0x154] sm:$0xf] %vm1291_vm5, %v5532_v40  ;;  %v8554_v1 = vpop.f32.mrf.mxu1 }
 0x5a8   : > { %v11667_v24 = vpop.f32.mrf.mxu0 }
 0x5a9   : > { %v4066_v55 = vpop.permute.xlu1 %4065  ;;  %v8555_v33 = vpop.f32.mrf.mxu1 }
 0x5aa   : > { %4130 = vst.msk [vmem:[#allocation4 + $0x174] sm:$0xf] %vm777_vm3, %v4066_v55  ;;  %v4064_v9 = vpop.permute.xlu0 %4063  ;;  %v11601_v3 = vadd.f32 %v8555_v33, %v8554_v1  ;;  %v6518_v1 = vpop.f32.mrf.mxu0 }
 0x5ab   : > { %4129 = vst.msk [vmem:[#allocation4 + $0x168] sm:$0xf] %vm777_vm3, %v4064_v9  ;;  %v8557_v53 = vpop.f32.mrf.mxu1 }
 0x5ad   : > { %v5026_v35 = vpop.permute.xlu1 %5025  ;;  %v5853_v38 = vld [vmem:[#allocation4 + $0x15c] sm:$0xff]  ;;  %v8558_v11 = vpop.f32.mrf.mxu1 }
 0x5ae   : > { %5090 = vst.msk [vmem:[#allocation4 + $0x178] sm:$0xf] %vm777_vm3, %v5026_v35  ;;  %v5024_v37 = vpop.permute.xlu0 %5023  ;;  %v5851_v8 = vld [vmem:[#allocation4 + $0x150] sm:$0xff]  ;;  %v11675_v35 = vpop.f32.mrf.mxu0 }
 0x5af   : > { %v8907_v25 = vld [vmem:[#allocation4 + $0x154] ss:$12 sps:$4 sm:$0xff]   ;;  %5089 = vst.msk [vmem:[#allocation4 + $0x16c] sm:$0xf] %vm777_vm3, %v5024_v37  ;;  %v7773_v60 = vcombine.low %v5851_v8, %v5853_v38  ;;  %v11615_v20 = vpop.f32.mrf.mxu1 }
 0x5b0   : > { %6435 = vmatprep.mubr.bf16.mxu1 %v8907_v25  ;;  %v6521_v37 = vpop.f32.mrf.mxu0 }
 0x5b1   : > { %v4322_v15 = vpop.permute.xlu1 %4321  ;;  %6436 = vmatmul.mubr.bf16.gmra.mxu1 %v7773_v60  ;;  %v11617_v10 = vpop.f32.mrf.mxu1 }
 0x5b2   : > { %4386 = vst.msk [vmem:[#allocation4 + $0x174] sm:$0xf] %vm1034_vm4, %v4322_v15  ;;  %v4320_v56 = vpop.permute.xlu0 %4319  ;;  %v11681_v25 = vpop.f32.mrf.mxu0 }
 0x5b3   : > { %4385 = vst.msk [vmem:[#allocation4 + $0x168] sm:$0xf] %vm1034_vm4, %v4320_v56  ;;  %v11619_v44 = vpop.f32.mrf.mxu1 }
 0x5b4   : > { %v11685_v15 = vpop.f32.mrf.mxu0 }
 0x5b5   : > { %v5282_v48 = vpop.permute.xlu1 %5281  ;;  %v11621_v14 = vpop.f32.mrf.mxu1 }
 0x5b6   : > { %5346 = vst.msk [vmem:[#allocation4 + $0x178] sm:$0xf] %vm1034_vm4, %v5282_v48  ;;  %v5280_v16 = vpop.permute.xlu0 %5279  ;;  %v11689_v48 = vpop.f32.mrf.mxu0 }
 0x5b7   : > { %5345 = vst.msk [vmem:[#allocation4 + $0x16c] sm:$0xf] %vm1034_vm4, %v5280_v16  ;;  %v11623_v0 = vpop.f32.mrf.mxu1 }
 0x5b9   : > { %v4578_v34 = vpop.permute.xlu1 %4577  ;;  %v11625_v59 = vpop.f32.mrf.mxu1 }
 0x5ba   : > { %4642 = vst.msk [vmem:[#allocation4 + $0x174] sm:$0xf] %vm1291_vm5, %v4578_v34  ;;  %v4576_v21 = vpop.permute.xlu0 %4575  ;;  %v11693_v34 = vpop.f32.mrf.mxu0 }
 0x5bb   : > { %4641 = vst.msk [vmem:[#allocation4 + $0x168] sm:$0xf] %vm1291_vm5, %v4576_v21  ;;  %v11627_v23 = vpop.f32.mrf.mxu1 }
 0x5bd   : > { %v5538_v42 = vpop.permute.xlu1 %5537  ;;  %v11629_v58 = vpop.f32.mrf.mxu1 }
 0x5be   : > { %5602 = vst.msk [vmem:[#allocation4 + $0x178] sm:$0xf] %vm1291_vm5, %v5538_v42  ;;  %v5536_v62 = vpop.permute.xlu0 %5535  ;;  %v11698_v42 = vadd.f32 %v11589_v2, %v6489_v29 }
 0x5bf   : > { %5601 = vst.msk [vmem:[#allocation4 + $0x16c] sm:$0xf] %vm1291_vm5, %v5536_v62  ;;  %v11631_v57 = vpop.f32.mrf.mxu1  ;;  %v11701_v62 = vadd.f32 %v11585_v27, %v6486_v4  ;;  %v11718_v27 = vadd.f32 %v11601_v3, %v6502_v50 }
 0x5c0   : > { %12217 = vst [vmem:[#allocation11_spill] sm:$0xff] %v11698_v42 }
 0x5c1   : > { %v11633_v13 = vpop.f32.mrf.mxu1  ;;  %12218 = vst [vmem:[#allocation12_spill] sm:$0xff] %v11701_v62  ;;  %v6715_v2 = vmul.f32 %v11701_v62, %v11701_v62 }
 0x5c2   : > { %v8911_v49 = vld [vmem:[#allocation4 + $0x168] ss:$12 sps:$4 sm:$0xff]  }
 0x5c3   : > { %v11635_v17 = vpop.f32.mrf.mxu1 }
 0x5c5   : > { %v11637_v22 = vpop.f32.mrf.mxu1 }
 0x5c6   : > { %v8909_v46 = vld [vmem:[#allocation4 + $0x16c] ss:$12 sps:$4 sm:$0xff]  }
 0x5c7   : > { %6443 = vmatprep.mubr.bf16.mxu1 %v8909_v46  ;;  %v11639_v31 = vpop.f32.mrf.mxu1  ;;  %v11704_v46 = vadd.f32 %v8698_v39, %v11593_v5  ;;  %v6646_v5 = vsel %vm243_vm0, %v11698_v42, 0.0  ;;  %v8562_v39 = vadd.f32 %v11617_v10, %v11615_v20  ;;  %v6747_v20 = vsel %vm243_vm0, %v6715_v2, 0.0 }
 0x5c8   : > { %6444 = vmatmul.mubr.bf16.gmra.mxu1 %v8911_v49  ;;  %v11706_v49 = vpop.f32.mrf.mxu0 }
 0x5c9   : > { %8724 = vmatprep.mubr.msk.bf16.mxu1 %vm243_vm0, %v8912_v54  ;;  %v11641_v28 = vpop.f32.mrf.mxu1  ;;  %v11709_v54 = vadd.f32 %v8699_v52, %v11597_v41  ;;  %v6717_v41 = vmul.f32 %v11704_v46, %v11704_v46  ;;  %v6648_v29 = vsel %vm243_vm0, %v11704_v46, 0.0 }
 0x5ca   : > { %v11728_v52 = vpop.f32.mrf.mxu0 }
 0x5cb   : > { %v11643_v63 = vpop.f32.mrf.mxu1  ;;  %12219 = vst [vmem:[#allocation13_spill] sm:$0xff] %v11709_v54  ;;  %v6718_v3 = vmul.f32 %v11709_v54, %v11709_v54 }
 0x5cd   : > { %v11645_v12 = vpop.f32.mrf.mxu1  ;;  %v6752_v2 = vsel %vm243_vm0, %v6718_v3, 0.0 }
 0x5cf   : > { %v11647_v47 = vpop.f32.mrf.mxu1 }
 0x5d0   : > { %8725 = vmatmul.mubr.msk.bf16.vlgmr.msra.gmra.mxu1 %vm243_vm0, %v8913_v6 }
 0x5d1   : > { %v11649_v7 = vpop.f32.mrf.mxu1 }
 0x5d3   : > { %v11651_v32 = vpop.f32.mrf.mxu1 }
 0x5d5   : > { %v11653_v18 = vpop.f32.mrf.mxu1 }
 0x5e1   : > { %v11655_v45 = vpop.f32.mrf.mxu1 }
 0x5e3   : > { %v11657_v26 = vpop.f32.mrf.mxu1 }
 0x5e5   : > { %v11659_v30 = vpop.f32.mrf.mxu1 }
 0x5e7   : > { %v11661_v19 = vpop.f32.mrf.mxu1 }
 0x5f9   : > { %v11663_v36 = vpop.f32.mrf.mxu1 }
 0x5fb   : > { %v11665_v40 = vpop.f32.mrf.mxu1 }
 0x5fd   : > { %v11669_v55 = vpop.f32.mrf.mxu1 }
 0x5ff   : > { %v11671_v9 = vpop.f32.mrf.mxu1 }
 0x611   : > { %v11673_v33 = vpop.f32.mrf.mxu1 }
 0x613   : > { %v11677_v38 = vpop.f32.mrf.mxu1 }
 0x615   : > { %v11679_v8 = vpop.f32.mrf.mxu1 }
 0x617   : > { %v11683_v60 = vpop.f32.mrf.mxu1 }
 0x629   : > { %v11687_v56 = vpop.f32.mrf.mxu1 }
 0x62a   : > { %12214 = vst [vmem:[#allocation8_spill] sm:$0xff] %v11687_v56  ;;  %v11749_v56 = vadd.f32 %v8702_v43, %v8562_v39  ;;  %v8571_v43 = vadd.f32 %v11629_v58, %v11627_v23 }
 0x62b   : > { %v11691_v16 = vpop.f32.mrf.mxu1 }
 0x62c   : > { %12215 = vst [vmem:[#allocation9_spill] sm:$0xff] %v11691_v16  ;;  %v6716_v16 = vmul.f32 %v11698_v42, %v11698_v42  ;;  %v8565_v42 = vadd.f32 %v11621_v14, %v11619_v44 }
 0x62d   : > { %v11695_v21 = vpop.f32.mrf.mxu1 }
 0x62e   : > { %12216 = vst [vmem:[#allocation10_spill] sm:$0xff] %v11695_v21  ;;  %v8559_v21 = vadd.f32 %v8558_v11, %v8557_v53  ;;  %v6645_v53 = vsel %vm243_vm0, %v11701_v62, 0.0  ;;  %v6748_v11 = vsel %vm243_vm0, %v6716_v16, 0.0  ;;  %v6650_v16 = vsel %vm243_vm0, %v11709_v54, 0.0 }
 0x62f   : > { %v11711_v6 = vpop.f32.mrf.mxu1  ;;  %v6647_v10 = vadd.f32 %v6646_v5, %v6645_v53  ;;  %v6749_v44 = vadd.f32 %v6748_v11, %v6747_v20  ;;  %v6652_v5 = vsel %vm243_vm0, %v11718_v27, 0.0  ;;  %v11760_v53 = vadd.f32 %v8703_v61, %v8565_v42 }
 0x630   : > { %12220 = vst [vmem:[#allocation14_spill] sm:$0xff] %v11711_v6  ;;  %v11737_v50 = vadd.f32 %v8559_v21, %v6505_v51  ;;  %v6750_v6 = vsel %vm243_vm0, %v6717_v41, 0.0  ;;  %v8568_v51 = vadd.f32 %v11625_v59, %v11623_v0  ;;  %v11753_v21 = vpop.f32.mrf.mxu0  ;;  %v6721_v11 = vmul.f32 %v11749_v56, %v11749_v56 }
 0x631   : > { %v6649_v14 = vadd.f32 %v6648_v29, %v6647_v10  ;;  %v6751_v39 = vadd.f32 %v6750_v6, %v6749_v44  ;;  %v8574_v61 = vadd.f32 %v11633_v13, %v11631_v57  ;;  %v8577_v6 = vadd.f32 %v11637_v22, %v11635_v17 }
 0x632   : > { %v6720_v41 = vmul.f32 %v11737_v50, %v11737_v50  ;;  %v6654_v3 = vsel %vm243_vm0, %v11737_v50, 0.0  ;;  %v11771_v29 = vadd.f32 %v8568_v51, %v6518_v1  ;;  %v11775_v42 = vpop.f32.mrf.mxu0  ;;  %v6656_v20 = vsel %vm243_vm0, %v11749_v56, 0.0 }
 0x633   : > { %v6651_v54 = vadd.f32 %v6650_v16, %v6649_v14  ;;  %v6753_v23 = vadd.f32 %v6752_v2, %v6751_v39  ;;  %v6722_v10 = vmul.f32 %v11760_v53, %v11760_v53  ;;  %v11784_v1 = vadd.f32 %v8571_v43, %v6521_v37 }
 0x634   : > { %v8580_v57 = vadd.f32 %v11641_v28, %v11639_v31  ;;  %v6658_v17 = vsel %vm243_vm0, %v11760_v53, 0.0  ;;  %v6723_v22 = vmul.f32 %v11771_v29, %v11771_v29  ;;  %v11796_v44 = vadd.f32 %v11667_v24, %v8574_v61  ;;  %v11798_v37 = vpop.f32.mrf.mxu0 }
 0x635   : > { %v6653_v58 = vadd.f32 %v6652_v5, %v6651_v54  ;;  %v6758_v54 = vsel %vm243_vm0, %v6721_v11, 0.0  ;;  %v11801_v5 = vadd.f32 %v11675_v35, %v8577_v6  ;;  %v6760_v28 = vsel %vm243_vm0, %v6722_v10, 0.0 }
 0x636   : > { %v6724_v43 = vmul.f32 %v11784_v1, %v11784_v1  ;;  %v8583_v24 = vadd.f32 %v11645_v12, %v11643_v63  ;;  %v6762_v35 = vsel %vm243_vm0, %v6723_v22, 0.0  ;;  %v6662_v11 = vsel %vm243_vm0, %v11784_v1, 0.0 }
 0x637   : > { %v6655_v51 = vadd.f32 %v6654_v3, %v6653_v58  ;;  %v11813_v3 = vadd.f32 %v8580_v57, %v11685_v15  ;;  %v6725_v61 = vmul.f32 %v11796_v44, %v11796_v44  ;;  %v6566_v58 = vpop.f32.mrf.mxu0  ;;  %v6726_v63 = vmul.f32 %v11801_v5, %v11801_v5 }
 0x638   : > { %v6764_v15 = vsel %vm243_vm0, %v6724_v43, 0.0  ;;  %v11830_v10 = vadd.f32 %v8583_v24, %v11693_v34  ;;  %v8592_v34 = vadd.f32 %v11657_v26, %v11655_v45  ;;  %v8595_v45 = vadd.f32 %v11661_v19, %v11659_v30 }
 0x639   : > { %v6657_v2 = vadd.f32 %v6656_v20, %v6655_v51  ;;  %v6664_v20 = vsel %vm243_vm0, %v11796_v44, 0.0  ;;  %v6727_v51 = vmul.f32 %v11813_v3, %v11813_v3  ;;  %v6766_v57 = vsel %vm243_vm0, %v6725_v61, 0.0  ;;  %v11844_v22 = vpop.f32.mrf.mxu0 }
 0x63a   : > { %v8601_v30 = vadd.f32 %v11671_v9, %v11669_v55 }
 0x63b   : > { %v6770_v24 = vsel %vm243_vm0, %v6727_v51, 0.0 }
 0x641   : > { %v11720_v4 = vpop.f32.mrf.mxu1 }
 0x642   : > { %12221 = vst [vmem:[#allocation15_spill] sm:$0xff] %v11720_v4  ;;  %v6719_v4 = vmul.f32 %v11718_v27, %v11718_v27 }
 0x643   : > { %v11744_v62 = vpop.f32.mrf.mxu1 }
 0x644   : > { %v6754_v0 = vsel %vm243_vm0, %v6719_v4, 0.0  ;;  %v6756_v4 = vsel %vm243_vm0, %v6720_v41, 0.0  ;;  %v6660_v41 = vsel %vm243_vm0, %v11771_v29, 0.0 }
 0x645   : > { %v11765_v59 = vpop.f32.mrf.mxu1  ;;  %v6755_v16 = vadd.f32 %v6754_v0, %v6753_v23  ;;  %v6659_v0 = vadd.f32 %v6658_v17, %v6657_v2  ;;  %v8586_v23 = vadd.f32 %v11649_v7, %v11647_v47 }
 0x647   : > { %v11788_v13 = vpop.f32.mrf.mxu1  ;;  %v6757_v14 = vadd.f32 %v6756_v4, %v6755_v16  ;;  %v6661_v4 = vadd.f32 %v6660_v41, %v6659_v0  ;;  %v8589_v16 = vadd.f32 %v11653_v18, %v11651_v32  ;;  %v11840_v17 = vadd.f32 %v11681_v25, %v8586_v23 }
 0x648   : > { %v6768_v18 = vsel %vm243_vm0, %v6726_v63, 0.0  ;;  %v6728_v41 = vmul.f32 %v11830_v10, %v11830_v10  ;;  %v11878_v63 = vadd.f32 %v8595_v45, %v11775_v42  ;;  %v12222_v45 = vld [vmem:[#allocation8_spill] sm:$0xff] }
 0x649   : > { %v6759_v39 = vadd.f32 %v6758_v54, %v6757_v14  ;;  %v6663_v7 = vadd.f32 %v6662_v11, %v6661_v4  ;;  %v6666_v54 = vsel %vm243_vm0, %v11801_v5, 0.0  ;;  %v11854_v25 = vadd.f32 %v11689_v48, %v8589_v16  ;;  %v6569_v11 = vpop.f32.mrf.mxu0 }
 0x64a   : > { %v6729_v0 = vmul.f32 %v11840_v17, %v11840_v17  ;;  %v8598_v48 = vadd.f32 %v11665_v40, %v11663_v36  ;;  %v6672_v4 = vsel %vm243_vm0, %v11840_v17, 0.0 }
 0x64b   : > { %v6761_v6 = vadd.f32 %v6760_v28, %v6759_v39  ;;  %v6665_v32 = vadd.f32 %v6664_v20, %v6663_v7  ;;  %v6668_v28 = vsel %vm243_vm0, %v11813_v3, 0.0  ;;  %v6670_v39 = vsel %vm243_vm0, %v11830_v10, 0.0  ;;  %v11892_v42 = vpop.f32.mrf.mxu0 }
 0x64c   : > { %v6774_v55 = vsel %vm243_vm0, %v6729_v0, 0.0  ;;  %v6674_v9 = vsel %vm243_vm0, %v11854_v25, 0.0 }
 0x64d   : > { %v6763_v47 = vadd.f32 %v6762_v35, %v6761_v6  ;;  %v6667_v43 = vadd.f32 %v6666_v54, %v6665_v32  ;;  %v11864_v35 = vadd.f32 %v8592_v34, %v11728_v52  ;;  %v6772_v6 = vsel %vm243_vm0, %v6728_v41, 0.0 }
 0x64e   : > { %v6730_v52 = vmul.f32 %v11854_v25, %v11854_v25  ;;  %v6732_v54 = vmul.f32 %v11878_v63, %v11878_v63  ;;  %v8607_v34 = vadd.f32 %v11683_v60, %v11679_v8 }
 0x64f   : > { %v6765_v14 = vadd.f32 %v6764_v15, %v6763_v47  ;;  %v6669_v23 = vadd.f32 %v6668_v28, %v6667_v43  ;;  %v8604_v15 = vadd.f32 %v11677_v38, %v11673_v33  ;;  %v6731_v16 = vmul.f32 %v11864_v35, %v11864_v35 }
 0x650   : > { %v11890_v47 = vadd.f32 %v11706_v49, %v8598_v48  ;;  %v6776_v33 = vsel %vm243_vm0, %v6730_v52, 0.0  ;;  %v6676_v38 = vsel %vm243_vm0, %v11864_v35, 0.0  ;;  %v6678_v28 = vsel %vm243_vm0, %v11878_v63, 0.0 }
 0x651   : > { %v6767_v26 = vadd.f32 %v6766_v57, %v6765_v14  ;;  %v6671_v40 = vadd.f32 %v6670_v39, %v6669_v23  ;;  %v11895_v57 = vadd.f32 %v11753_v21, %v8601_v30  ;;  %v11904_v32 = vadd.f32 %v8604_v15, %v6566_v58  ;;  %v12225_v23 = vld [vmem:[#allocation14_spill] sm:$0xff] }
 0x652   : > { %v6778_v21 = vsel %vm243_vm0, %v6731_v16, 0.0  ;;  %v6733_v41 = vmul.f32 %v11890_v47, %v11890_v47  ;;  %v6780_v58 = vsel %vm243_vm0, %v6732_v54, 0.0  ;;  %v6680_v0 = vsel %vm243_vm0, %v11890_v47, 0.0 }
 0x653   : > { %v6769_v61 = vadd.f32 %v6768_v18, %v6767_v26  ;;  %v6673_v51 = vadd.f32 %v6672_v4, %v6671_v40  ;;  %v12223_v26 = vld [vmem:[#allocation9_spill] sm:$0xff]  ;;  %v6734_v60 = vmul.f32 %v11895_v57, %v11895_v57  ;;  %v11920_v48 = vadd.f32 %v8607_v34, %v6569_v11  ;;  %v12226_v11 = vld [vmem:[#allocation15_spill] sm:$0xff] }
 0x654   : > { %v8610_v43 = vadd.f32 %v12223_v26, %v12222_v45  ;;  %v6735_v52 = vmul.f32 %v11904_v32, %v11904_v32  ;;  %v6782_v40 = vsel %vm243_vm0, %v6733_v41, 0.0  ;;  %v6682_v15 = vsel %vm243_vm0, %v11895_v57, 0.0 }
 0x655   : > { %v6771_v36 = vadd.f32 %v6770_v24, %v6769_v61  ;;  %v6675_v14 = vadd.f32 %v6674_v9, %v6673_v51  ;;  %v6582_v24 = vpop.f32.mrf.mxu0  ;;  %v12224_v61 = vld [vmem:[#allocation10_spill] sm:$0xff]  ;;  %v8616_v9 = vadd.f32 %v11744_v62, %v12226_v11  ;;  %v6736_v54 = vmul.f32 %v11920_v48, %v11920_v48 }
 0x656   : > { %v8613_v30 = vadd.f32 %v12225_v23, %v12224_v61  ;;  %v6786_v62 = vsel %vm243_vm0, %v6735_v52, 0.0 }
 0x657   : > { %v6773_v7 = vadd.f32 %v6772_v6, %v6771_v36  ;;  %v6677_v8 = vadd.f32 %v6676_v38, %v6675_v14  ;;  %v8723_v16 = vpop.f32.mrf.mxu0  ;;  %v6684_v38 = vsel %vm243_vm0, %v11904_v32, 0.0  ;;  %v11951_v45 = vadd.f32 %v8616_v9, %v6582_v24 }
 0x658   : > { %v11942_v34 = vadd.f32 %v11844_v22, %v8613_v30 }
 0x659   : > { %v11803_v31 = vpop.f32.mrf.mxu1  ;;  %v6775_v49 = vadd.f32 %v6774_v55, %v6773_v7  ;;  %v6679_v4 = vadd.f32 %v6678_v28, %v6677_v8  ;;  %v11932_v55 = vadd.f32 %v11798_v37, %v8610_v43  ;;  %v8619_v37 = vadd.f32 %v11788_v13, %v11765_v59  ;;  %v6585_v26 = vpop.f32.mrf.mxu0 }
 0x65a   : > { %v6686_v28 = vsel %vm243_vm0, %v11920_v48, 0.0  ;;  %v6788_v8 = vsel %vm243_vm0, %v6736_v54, 0.0  ;;  %v6690_v23 = vsel %vm243_vm0, %v11942_v34, 0.0 }
 0x65b   : > { %v11824_v12 = vpop.f32.mrf.mxu1  ;;  %v6777_v39 = vadd.f32 %v6776_v33, %v6775_v49  ;;  %v6681_v51 = vadd.f32 %v6680_v0, %v6679_v4  ;;  %v6784_v33 = vsel %vm243_vm0, %v6734_v60, 0.0  ;;  %v6737_v41 = vmul.f32 %v11932_v55, %v11932_v55 }
 0x65c   : > { %v8622_v22 = vadd.f32 %v11824_v12, %v11803_v31  ;;  %v6688_v60 = vsel %vm243_vm0, %v11932_v55, 0.0  ;;  %v11962_v24 = vadd.f32 %v8619_v37, %v6585_v26 }
 0x65d   : > { %v11847_v2 = vpop.f32.mrf.mxu1  ;;  %v6779_v6 = vadd.f32 %v6778_v21, %v6777_v39  ;;  %v6683_v14 = vadd.f32 %v6682_v15, %v6681_v51  ;;  %v6790_v12 = vsel %vm243_vm0, %v6737_v41, 0.0  ;;  %v6692_v15 = vsel %vm243_vm0, %v11951_v45, 0.0 }
 0x65e   : > { %v6740_v11 = vmul.f32 %v11962_v24, %v11962_v24 }
 0x65f   : > { %v11870_v19 = vpop.f32.mrf.mxu1  ;;  %v6781_v7 = vadd.f32 %v6780_v58, %v6779_v6  ;;  %v6685_v39 = vadd.f32 %v6684_v38, %v6683_v14  ;;  %v6738_v58 = vmul.f32 %v11942_v34, %v11942_v34 }
 0x660   : > { %v8625_v59 = vadd.f32 %v11870_v19, %v11847_v2  ;;  %v6739_v2 = vmul.f32 %v11951_v45, %v11951_v45  ;;  %v11970_v19 = vadd.f32 %v11892_v42, %v8622_v22  ;;  %v6694_v42 = vsel %vm243_vm0, %v11962_v24, 0.0 }
 0x661   : > { %v6783_v49 = vadd.f32 %v6782_v40, %v6781_v7  ;;  %v6687_v61 = vadd.f32 %v6686_v28, %v6685_v39  ;;  %v6792_v40 = vsel %vm243_vm0, %v6738_v58, 0.0  ;;  %v6796_v14 = vsel %vm243_vm0, %v6740_v11, 0.0 }
 0x662   : > { %v11972_v4 = vadd.f32 %v8723_v16, %v8625_v59  ;;  %v6741_v16 = vmul.f32 %v11970_v19, %v11970_v19 }
 0x663   : > { %v6785_v43 = vadd.f32 %v6784_v33, %v6783_v49  ;;  %v6689_v6 = vadd.f32 %v6688_v60, %v6687_v61  ;;  %v6794_v33 = vsel %vm243_vm0, %v6739_v2, 0.0 }
 0x664   : > { %v6742_v37 = vmul.f32 %v11972_v4, %v11972_v4  ;;  %v6698_v39 = vsel %vm243_vm0, %v11972_v4, 0.0 }
 0x665   : > { %v6787_v0 = vadd.f32 %v6786_v62, %v6785_v43  ;;  %v6691_v7 = vadd.f32 %v6690_v23, %v6689_v6  ;;  %v6696_v62 = vsel %vm243_vm0, %v11970_v19, 0.0  ;;  %v6798_v43 = vsel %vm243_vm0, %v6741_v16, 0.0 }
 0x667   : > { %v6789_v30 = vadd.f32 %v6788_v8, %v6787_v0  ;;  %v6693_v54 = vadd.f32 %v6692_v15, %v6691_v7  ;;  %v6800_v0 = vsel %vm243_vm0, %v6742_v37, 0.0 }
 0x669   : > { %v6791_v9 = vadd.f32 %v6790_v12, %v6789_v30  ;;  %v6695_v22 = vadd.f32 %v6694_v42, %v6693_v54 }
 0x66b   : > { %v6793_v38 = vadd.f32 %v6792_v40, %v6791_v9  ;;  %v6697_v58 = vadd.f32 %v6696_v62, %v6695_v22 }
 0x66d   : > { %v6795_v41 = vadd.f32 %v6794_v33, %v6793_v38 }
 0x66f   : > { %v6797_v60 = vadd.f32 %v6796_v14, %v6795_v41 }
 0x671   : > { %v11882_v20 = vpop.f32.mrf.mxu1  ;;  %v6799_v30 = vadd.f32 %v6798_v43, %v6797_v60 }
 0x673   : > { %v11906_v18 = vpop.f32.mrf.mxu1 }
 0x674   : > { %v8628_v28 = vadd.f32 %v11906_v18, %v11882_v20 }
 0x675   : > { %v11926_v36 = vpop.f32.mrf.mxu1 }
 0x677   : > { %v8630_v21 = vpop.f32.mrf.mxu1 }
 0x678   : > { %v8631_v61 = vadd.f32 %v8630_v21, %v11926_v36  ;;  %v6801_v36 = vadd.f32 %v6800_v0, %v6799_v30 }
 0x688   : > { %v8632_v13 = vpop.f32.mrf.mxu1 }
 0x68a   : > { %v8633_v31 = vpop.f32.mrf.mxu1 }
 0x68b   : > { %v8634_v59 = vadd.f32 %v8633_v31, %v8632_v13  ;;  %v6699_v13 = vadd.f32 %v6698_v39, %v6697_v58 }
 0x68c   : > { %v8635_v52 = vpop.f32.mrf.mxu1 }
 0x68e   : > { %v8636_v51 = vpop.f32.mrf.mxu1 }
 0x68f   : > { %v8637_v23 = vadd.f32 %v8636_v51, %v8635_v52 }
 0x690   : > { %v8726_v49 = vpop.f32.mrf.mxu1 }
 0x691   : > { %v11998_v20 = vadd.f32 %v8726_v49, %v8634_v59 }
 0x692   : > { %v6598_v26 = vpop.f32.mrf.mxu1 }
 0x693   : > { %v11994_v8 = vadd.f32 %v8628_v28, %v6598_v26  ;;  %v6745_v21 = vmul.f32 %v11998_v20, %v11998_v20  ;;  %v6704_v33 = vsel %vm243_vm0, %v11998_v20, 0.0 }
 0x694   : > { %v8727_v12 = vpop.f32.mrf.mxu1 }
 0x695   : > { %v6700_v18 = vsel %vm243_vm0, %v11994_v8, 0.0  ;;  %v6743_v2 = vmul.f32 %v11994_v8, %v11994_v8  ;;  %v12005_v40 = vadd.f32 %v8727_v12, %v8637_v23  ;;  %v6806_v37 = vsel %vm243_vm0, %v6745_v21, 0.0 }
 0x696   : > { %v6601_v31 = vpop.f32.mrf.mxu1  ;;  %v6701_v11 = vadd.f32 %v6700_v18, %v6699_v13 }
 0x697   : > { %v6802_v6 = vsel %vm243_vm0, %v6743_v2, 0.0  ;;  %v6602_v15 = vadd.f32 %v8631_v61, %v6601_v31  ;;  %v6746_v42 = vmul.f32 %v12005_v40, %v12005_v40  ;;  %v6706_v49 = vsel %vm243_vm0, %v12005_v40, 0.0 }
 0x698   : > { %v6803_v7 = vadd.f32 %v6802_v6, %v6801_v36 }
 0x699   : > { %v6702_v52 = vsel %vm243_vm0, %v6602_v15, 0.0  ;;  %v6744_v9 = vmul.f32 %v6602_v15, %v6602_v15  ;;  %v6808_v28 = vsel %vm243_vm0, %v6746_v42, 0.0  ;;  %v12227_v42 = vld [vmem:[#allocation12_spill] sm:$0xff] }
 0x69a   : > { %v6703_v51 = vadd.f32 %v6702_v52, %v6701_v11 }
 0x69b   : > { %v6804_v16 = vsel %vm243_vm0, %v6744_v9, 0.0 }
 0x69c   : > { %v6705_v38 = vadd.f32 %v6704_v33, %v6703_v51  ;;  %v6805_v54 = vadd.f32 %v6804_v16, %v6803_v7 }
 0x69e   : > { %v6707_v14 = vadd.f32 %v6706_v49, %v6705_v38  ;;  %v6807_v62 = vadd.f32 %v6806_v37, %v6805_v54 }
 0x6a0   : > { %v6708_v41 = vrot.slane %v6707_v14, 4  ;;  %v6809_v22 = vadd.f32 %v6808_v28, %v6807_v62 }
 0x6a2   : > { %v6709_v26 = vadd.f32 %v6708_v41, %v6707_v14  ;;  %v6810_v43 = vrot.slane %v6809_v22, 4 }
 0x6a4   : > { %v6710_v39 = vrot.slane %v6709_v26, 2  ;;  %v6811_v59 = vadd.f32 %v6810_v43, %v6809_v22  ;;  %v6613_v43 = vld [vmem:[#allocation2 + $0x19] sm:$0xff] }
 0x6a6   : > { %v6711_v60 = vadd.f32 %v6710_v39, %v6709_v26  ;;  %v6812_v58 = vrot.slane %v6811_v59, 2  ;;  %v6630_v39 = vld [vmem:[#allocation2 + $0xe1] sm:$0xff] }
 0x6a8   : > { %v6712_v0 = vrot.slane %v6711_v60, 1  ;;  %v6813_v61 = vadd.f32 %v6812_v58, %v6811_v59 }
 0x6aa   : > { %v6713_v12 = vadd.f32 %v6712_v0, %v6711_v60  ;;  %v6814_v23 = vrot.slane %v6813_v61, 1 }
 0x6ac   : > { %v12019_v18 = vmul.f32 0.00390625, %v6713_v12  ;;  %v6815_v2 = vadd.f32 %v6814_v23, %v6813_v61  ;;  %v6614_v12 = vld [vmem:[#allocation2 + $0x21] sm:$0xff]  ;;  %v6631_v23 = vld [vmem:[#allocation2 + $0xf1] sm:$0xff] }
 0x6ae   : > { %v6816_v30 = vmul.f32 0.00390625, %v6815_v2  ;;  %v6817_v13 = vmul.f32 %v12019_v18, %v12019_v18  ;;  %v6849_v31 = vsub.f32 %v6602_v15, %v12019_v18  ;;  %v6848_v21 = vsub.f32 %v11994_v8, %v12019_v18  ;;  %v6626_v8 = vld [vmem:[#allocation2 + $0xb1] sm:$0xff] }
 0x6af   : > { %v6850_v52 = vsub.f32 %v11998_v20, %v12019_v18  ;;  %v6851_v9 = vsub.f32 %v12005_v40, %v12019_v18  ;;  %v6836_v7 = vsub.f32 %v11864_v35, %v12019_v18  ;;  %v6820_v16 = vsub.f32 %v12227_v42, %v12019_v18  ;;  %v6629_v40 = vld [vmem:[#allocation2 + $0xd9] sm:$0xff] }
 0x6b0   : > { %v6818_v6 = vsub.f32 %v6816_v30, %v6817_v13  ;;  %v6832_v38 = vsub.f32 %v11813_v3, %v12019_v18  ;;  %v6833_v20 = vsub.f32 %v11830_v10, %v12019_v18  ;;  %v6834_v35 = vsub.f32 %v11840_v17, %v12019_v18 }
 0x6b1   : > { %v6835_v54 = vsub.f32 %v11854_v25, %v12019_v18  ;;  %v6837_v37 = vsub.f32 %v11878_v63, %v12019_v18  ;;  %v12228_v63 = vld [vmem:[#allocation11_spill] sm:$0xff]  ;;  %v6838_v41 = vsub.f32 %v11890_v47, %v12019_v18  ;;  %v6822_v61 = vsub.f32 %v11704_v46, %v12019_v18 }
 0x6b2   : > { %v6819_v11 = vmax.f32 %v6818_v6, 0.0  ;;  %v6821_v28 = vsub.f32 %v12228_v63, %v12019_v18  ;;  %v6839_v47 = vsub.f32 %v11895_v57, %v12019_v18  ;;  %v12229_v6 = vld [vmem:[#allocation13_spill] sm:$0xff]  ;;  %v6615_v46 = vld [vmem:[#allocation2 + $0x31] sm:$0xff]  ;;  %v6632_v57 = vld [vmem:[#allocation2 + $0xf9] sm:$0xff]  ;;  %v6824_v42 = vsub.f32 %v11718_v27, %v12019_v18 }
 0x6b3   : > { %v6617_v27 = vld [vmem:[#allocation2 + $0x49] sm:$0xff] }
 0x6b4   : > { %v6852_v36 = vadd.f32 1e-05, %v6819_v11  ;;  %v6823_v11 = vsub.f32 %v12229_v6, %v12019_v18 }
 0x6b6   : > { %8916 = vrsqrt.f32 %v6852_v36  ;;  %v6840_v36 = vsub.f32 %v11904_v32, %v12019_v18  ;;  %v6633_v32 = vld [vmem:[#allocation2 + $0x109] sm:$0xff] }
 0x6c3   : > { %v12032_v51 = vpop.eup %8916 }
 0x6c4   : > { %v12035_v15 = vmul.f32 %v12032_v51, %v6849_v31  ;;  %v6870_v33 = vmul.f32 %v12032_v51, %v6836_v7  ;;  %v6854_v14 = vmul.f32 %v12032_v51, %v6820_v16  ;;  %v12052_v62 = vmul.f32 %v12032_v51, %v6832_v38  ;;  %v6616_v38 = vld [vmem:[#allocation2 + $0x39] sm:$0xff] }
 0x6c5   : > { %v12055_v3 = vmul.f32 %v12032_v51, %v6833_v20  ;;  %v12058_v10 = vmul.f32 %v12032_v51, %v6834_v35  ;;  %v12061_v17 = vmul.f32 %v12032_v51, %v6835_v54  ;;  %v6871_v25 = vmul.f32 %v12032_v51, %v6837_v37 }
 0x6c6   : > { %v6902_v49 = vadd.f32 %v6870_v33, %v6629_v40  ;;  %v6855_v22 = vmul.f32 %v12032_v51, %v6821_v28  ;;  %v12070_v26 = vmul.f32 %v12032_v51, %v6850_v52  ;;  %v6872_v59 = vmul.f32 %v12032_v51, %v6838_v41 }
 0x6c7   : > { %v12074_v60 = vmul.f32 %v12032_v51, %v6851_v9  ;;  %v6886_v58 = vadd.f32 %v6854_v14, %v6613_v43  ;;  %v6903_v0 = vadd.f32 %v6871_v25, %v6630_v39  ;;  %v6856_v2 = vmul.f32 %v12032_v51, %v6822_v61 }
 0x6c8   : > { %6950 = vxpose.xlu1.b32.start [1/16] (narrow) %v6902_v49, 32  ;;  %v6873_v30 = vmul.f32 %v12032_v51, %v6839_v47  ;;  %v6887_v13 = vadd.f32 %v6855_v22, %v6614_v12  ;;  %v6904_v31 = vadd.f32 %v6872_v59, %v6631_v23  ;;  %v6857_v52 = vmul.f32 %v12032_v51, %v6823_v11 }
 0x6c9   : > { %6918 = vxpose.xlu0.b32.start [1/16] (narrow) %v6886_v58, 32  ;;  %v6874_v9 = vmul.f32 %v12032_v51, %v6840_v36  ;;  %v6888_v7 = vadd.f32 %v6856_v2, %v6615_v46  ;;  %v6841_v16 = vsub.f32 %v11920_v48, %v12019_v18  ;;  %v6858_v20 = vmul.f32 %v12032_v51, %v6824_v42  ;;  %v6634_v48 = vld [vmem:[#allocation2 + $0x111] sm:$0xff] }
 0x6ca   : > { %v6905_v33 = vadd.f32 %v6873_v30, %v6632_v57  ;;  %v6889_v35 = vadd.f32 %v6857_v52, %v6616_v38  ;;  %v6825_v37 = vsub.f32 %v11737_v50, %v12019_v18  ;;  %v6842_v49 = vsub.f32 %v11932_v55, %v12019_v18  ;;  %v6618_v50 = vld [vmem:[#allocation2 + $0x51] sm:$0xff]  ;;  %v6635_v55 = vld [vmem:[#allocation2 + $0x121] sm:$0xff] }
 0x6cb   : > { %v6875_v40 = vmul.f32 %v12032_v51, %v6841_v16  ;;  %v6906_v54 = vadd.f32 %v6874_v9, %v6633_v32  ;;  %v6890_v63 = vadd.f32 %v6858_v20, %v6617_v27  ;;  %v6826_v41 = vsub.f32 %v11749_v56, %v12019_v18  ;;  %v6619_v56 = vld [vmem:[#allocation2 + $0x61] sm:$0xff] }
 0x6cc   : > { %6951 = vxpose.xlu1.b32.cont [2/16] (narrow) %v6903_v0, 32  ;;  %v6859_v14 = vmul.f32 %v12032_v51, %v6825_v37  ;;  %v6876_v25 = vmul.f32 %v12032_v51, %v6842_v49  ;;  %v6843_v22 = vsub.f32 %v11942_v34, %v12019_v18  ;;  %v6827_v0 = vsub.f32 %v11760_v53, %v12019_v18  ;;  %v6636_v34 = vld [vmem:[#allocation2 + $0x129] sm:$0xff] }
 0x6cd   : > { %6919 = vxpose.xlu0.b32.cont [2/16] (narrow) %v6887_v13, 32  ;;  %v6907_v28 = vadd.f32 %v6875_v40, %v6634_v48  ;;  %v6860_v43 = vmul.f32 %v12032_v51, %v6826_v41  ;;  %v6844_v61 = vsub.f32 %v11951_v45, %v12019_v18  ;;  %v6828_v30 = vsub.f32 %v11771_v29, %v12019_v18  ;;  %v6620_v53 = vld [vmem:[#allocation2 + $0x69] sm:$0xff]  ;;  %v6637_v45 = vld [vmem:[#allocation2 + $0x139] sm:$0xff] }
 0x6ce   : > { %v6877_v39 = vmul.f32 %v12032_v51, %v6843_v22  ;;  %v6891_v59 = vadd.f32 %v6859_v14, %v6618_v50  ;;  %v6908_v58 = vadd.f32 %v6876_v25, %v6635_v55  ;;  %v6861_v47 = vmul.f32 %v12032_v51, %v6827_v0  ;;  %v6621_v29 = vld [vmem:[#allocation2 + $0x79] sm:$0xff]  ;;  %v6641_v14 = vld [vmem:[#allocation2 + $0x169] sm:$0xff]  ;;  %v6627_v50 = vld [vmem:[#allocation2 + $0xc1] sm:$0xff] }
 0x6cf   : > { %v6878_v12 = vmul.f32 %v12032_v51, %v6844_v61  ;;  %v6892_v23 = vadd.f32 %v6860_v43, %v6619_v56  ;;  %v6845_v13 = vsub.f32 %v11962_v24, %v12019_v18  ;;  %v6829_v46 = vsub.f32 %v11784_v1, %v12019_v18  ;;  %v6638_v24 = vld [vmem:[#allocation2 + $0x141] sm:$0xff]  ;;  %v6624_v48 = vld [vmem:[#allocation2 + $0x99] sm:$0xff]  ;;  %v6644_v55 = vld [vmem:[#allocation2 + $0x189] sm:$0xff] }
 0x6d0   : > { %6952 = vxpose.xlu1.b32.cont [3/16] (narrow) %v6904_v31, 32  ;;  %v6909_v2 = vadd.f32 %v6877_v39, %v6636_v34  ;;  %v6862_v31 = vmul.f32 %v12032_v51, %v6828_v30  ;;  %v6893_v11 = vadd.f32 %v6861_v47, %v6620_v53  ;;  %v6846_v57 = vsub.f32 %v11970_v19, %v12019_v18  ;;  %v6622_v1 = vld [vmem:[#allocation2 + $0x81] sm:$0xff]  ;;  %v6639_v19 = vld [vmem:[#allocation2 + $0x151] sm:$0xff] }
 0x6d1   : > { %6920 = vxpose.xlu0.b32.cont [3/16] (narrow) %v6888_v7, 32  ;;  %v6879_v6 = vmul.f32 %v12032_v51, %v6845_v13  ;;  %v6910_v36 = vadd.f32 %v6878_v12, %v6637_v45  ;;  %v6863_v52 = vmul.f32 %v12032_v51, %v6829_v46  ;;  %v6830_v42 = vsub.f32 %v11796_v44, %v12019_v18  ;;  %v6640_v44 = vld [vmem:[#allocation2 + $0x159] sm:$0xff] }
 0x6d2   : > { %v6880_v9 = vmul.f32 %v12032_v51, %v6846_v57  ;;  %v6894_v7 = vadd.f32 %v6862_v31, %v6621_v29  ;;  %v6847_v16 = vsub.f32 %v11972_v4, %v12019_v18  ;;  %v6882_v4 = vmul.f32 %v12032_v51, %v6848_v21 }
 0x6d3   : > { %v6864_v38 = vmul.f32 %v12032_v51, %v6830_v42  ;;  %v6895_v20 = vadd.f32 %v6863_v52, %v6622_v1  ;;  %v6899_v21 = vadd.f32 %v12055_v3, %v6626_v8  ;;  %v6900_v43 = vadd.f32 %v12058_v10, %v6627_v50 }
 0x6d4   : > { %6953 = vxpose.xlu1.b32.cont [4/16] (narrow) %v6905_v33, 32  ;;  %v6911_v33 = vadd.f32 %v6879_v6, %v6638_v24  ;;  %v6881_v32 = vmul.f32 %v12032_v51, %v6847_v16  ;;  %v6912_v40 = vadd.f32 %v6880_v9, %v6639_v19  ;;  %v6917_v39 = vadd.f32 %v12074_v60, %v6644_v55 }
 0x6d5   : > { %6921 = vxpose.xlu0.b32.cont [4/16] (narrow) %v6889_v35, 32  ;;  %v6831_v35 = vsub.f32 %v11801_v5, %v12019_v18  ;;  %v6625_v5 = vld [vmem:[#allocation2 + $0xa9] sm:$0xff]  ;;  %v6643_v18 = vld [vmem:[#allocation2 + $0x181] sm:$0xff] }
 0x6d6   : > { %v6913_v27 = vadd.f32 %v6881_v32, %v6640_v44  ;;  %v6898_v41 = vadd.f32 %v12052_v62, %v6625_v5 }
 0x6d7   : > { %v6865_v37 = vmul.f32 %v12032_v51, %v6831_v35  ;;  %v6916_v51 = vadd.f32 %v12070_v26, %v6643_v18 }
 0x6d8   : > { %6954 = vxpose.xlu1.b32.cont [5/16] (narrow) %v6906_v54, 32  ;;  %v6623_v54 = vld [vmem:[#allocation2 + $0x91] sm:$0xff] }
 0x6d9   : > { %6922 = vxpose.xlu0.b32.cont [5/16] (narrow) %v6890_v63, 32  ;;  %v6896_v49 = vadd.f32 %v6864_v38, %v6623_v54  ;;  %v6897_v25 = vadd.f32 %v6865_v37, %v6624_v48  ;;  %v6914_v63 = vadd.f32 %v6882_v4, %v6641_v14 }
 0x6dc   : > { %6955 = vxpose.xlu1.b32.cont [6/16] (narrow) %v6907_v28, 32  ;;  %v6642_v28 = vld [vmem:[#allocation2 + $0x171] sm:$0xff] }
 0x6dd   : > { %6923 = vxpose.xlu0.b32.cont [6/16] (narrow) %v6891_v59, 32  ;;  %v6915_v22 = vadd.f32 %v12035_v15, %v6642_v28  ;;  %v6628_v15 = vld [vmem:[#allocation2 + $0xc9] sm:$0xff] }
 0x6de   : > { %v6901_v62 = vadd.f32 %v12061_v17, %v6628_v15 }
 0x6e0   : > { %6956 = vxpose.xlu1.b32.cont [7/16] (narrow) %v6908_v58, 32 }
 0x6e1   : > { %6924 = vxpose.xlu0.b32.cont [7/16] (narrow) %v6892_v23, 32 }
 0x6e4   : > { %6957 = vxpose.xlu1.b32.cont [8/16] (narrow) %v6909_v2, 32 }
 0x6e5   : > { %6925 = vxpose.xlu0.b32.cont [8/16] (narrow) %v6893_v11, 32 }
 0x6e8   : > { %6958 = vxpose.xlu1.b32.cont [9/16] (narrow) %v6910_v36, 32 }
 0x6e9   : > { %6926 = vxpose.xlu0.b32.cont [9/16] (narrow) %v6894_v7, 32 }
 0x6ec   : > { %6959 = vxpose.xlu1.b32.cont [10/16] (narrow) %v6911_v33, 32 }
 0x6ed   : > { %6927 = vxpose.xlu0.b32.cont [10/16] (narrow) %v6895_v20, 32 }
 0x6f0   : > { %6960 = vxpose.xlu1.b32.cont [11/16] (narrow) %v6912_v40, 32 }
 0x6f1   : > { %6928 = vxpose.xlu0.b32.cont [11/16] (narrow) %v6896_v49, 32 }
 0x6f4   : > { %6961 = vxpose.xlu1.b32.cont [12/16] (narrow) %v6913_v27, 32 }
 0x6f5   : > { %6929 = vxpose.xlu0.b32.cont [12/16] (narrow) %v6897_v25, 32 }
 0x6f8   : > { %6962 = vxpose.xlu1.b32.cont [13/16] (narrow) %v6914_v63, 32 }
 0x6f9   : > { %6930 = vxpose.xlu0.b32.cont [13/16] (narrow) %v6898_v41, 32 }
 0x6fc   : > { %6963 = vxpose.xlu1.b32.cont [14/16] (narrow) %v6915_v22, 32 }
 0x6fd   : > { %6931 = vxpose.xlu0.b32.cont [14/16] (narrow) %v6899_v21, 32 }
 0x700   : > { %6964 = vxpose.xlu1.b32.cont [15/16] (narrow) %v6916_v51, 32 }
 0x701   : > { %6932 = vxpose.xlu0.b32.cont [15/16] (narrow) %v6900_v43, 32 }
 0x704   : > { %6965 = vxpose.xlu1.b32.end [16/16] (narrow) %v6917_v39, 32 }
 0x705   : > { %6933 = vxpose.xlu0.b32.end [16/16] (narrow) %v6901_v62, 32 }
 0x744   : > { %v6966_v3 = vpop.trf.xlu1 }
 0x745   : > { %6983 = vst [vmem:[%s163_s25 + $0x8] sm:$0xff] %v6966_v3  ;;  %v6934_v26 = vpop.trf.xlu0 }
 0x746   : > { %6982 = vst [vmem:[%s163_s25] sm:$0xff] %v6934_v26 }
 0x748   : > { %v6967_v59 = vpop.trf.xlu1 }
 0x749   : > { %6985 = vst [vmem:[%s163_s25 + $0x18] sm:$0xff] %v6967_v59  ;;  %v6935_v58 = vpop.trf.xlu0 }
 0x74a   : > { %6984 = vst [vmem:[%s163_s25 + $0x10] sm:$0xff] %v6935_v58 }
 0x74c   : > { %v6968_v10 = vpop.trf.xlu1 }
 0x74d   : > { %6987 = vst [vmem:[%s163_s25 + $0x28] sm:$0xff] %v6968_v10  ;;  %v6936_v60 = vpop.trf.xlu0 }
 0x74e   : > { %6986 = vst [vmem:[%s163_s25 + $0x20] sm:$0xff] %v6936_v60 }
 0x750   : > { %v6969_v0 = vpop.trf.xlu1 }
 0x751   : > { %6989 = vst [vmem:[%s163_s25 + $0x38] sm:$0xff] %v6969_v0  ;;  %v6937_v17 = vpop.trf.xlu0 }
 0x752   : > { %6988 = vst [vmem:[%s163_s25 + $0x30] sm:$0xff] %v6937_v17 }
 0x753   : > { %8933 = shalt.err (!%p8930_p3)
}
 0x754   : > { %s8934_s20 = scalar_lea.hbm %s12151_s9, 1024  ;;  %s8938_s27 = scalar_lea.hbm %s12196_s3, 2048 }
 0x755   : > { %p8935_p4 = scmp.ne.s32.totalorder %s12151_s9, %s8934_s20  ;;  %p8939_p9 = scmp.lt.s32.totalorder %s12151_s9, %s12196_s3 }
 0x756   : > { %p8940_p10 = scmp.lt.s32.totalorder %s8938_s27, %s8934_s20 }
 0x757   : > { %p8936_p7 = pnand %p8935_p4, %p9046_p5 }
 0x758   : > { %p8941_p11 = por %p8940_p10, %p8939_p9 }
 0x759   : > { %p8937_p8 = pneg %p8936_p7 }
 0x75b   : > { %p8942_p12 = pnand %p8941_p11, %p8937_p8 }
 0x75d   : > { %8945 = shalt.err (!%p8942_p12)
}
 0x75e   : > { %s8986_s6 = smov 256   ;;  %s8987_s7 = smov 16  }
 0x75f   : > { %8732 = dma.vmem_to_hbm [thread:$0]  (%p9046_p5), %s12146_s30, 1024, %s12151_s9, %s12153_s10, %s8986_s6, %s8986_s6, %s8987_s7  }
 0x760 PF: > { %p8738_p13 = scmp.ge.s32.totalorder %s8980_s15, 2  ;;  %s7019_s25 = sand.u32 1, %s8968_s12  }
 0x761   : > { %s7020_s4 = scalar_lea.sflag [#allocation6], %s7019_s25 }
 0x762   : > { %p8735_p0 = pnand %p8738_p13, %p9050_p6 }
 0x764   : > { %p8736_p1 = pneg %p8735_p0 }
 0x766   : > { %8963 = dma.done.wait (%p8736_p1), %s7020_s4, 1024  }
 0x767   : > { %8965 = vsyncadd (%p8736_p1), %s7020_s4, 4294966272  ;;  %p13_p2 = scmp.ge.s32.totalorder %s9033_s18, 4   ;;  %s12230_s12 = smov %s8972_s13 }
 0x768   : > { %s12231_s13 = smov %s8976_s14  ;;  %s12232_s14 = smov %s9044_s21 }
 0x769   : > { %s12233_s15 = smov %s9033_s18  ;;  %15 = sbr.rel (!%p13_p2) target bundleno = 3 (0x3), region = 75 }
 0x76e   :  { %7025 = vsyncpa [#allocation6], 1 }
 0x76f   :  { %7027 = vsyncpa [#allocation6 + $0x1], 1 }

</bundles_post_ra>
